<compile_context>
chip_gen: v5e
topology: v5e:2x2
jax: 0.10.0
libtpu: 0.0.40
codegen_flags: <defaults>
</compile_context>

<pallas_src>
import functools
import numpy as np
import jax
import jax.numpy as jnp
from jax.experimental import pallas as pl
from jax.experimental.pallas import tpu as pltpu

BN_EPS = 1e-5  # nn.BatchNorm2d default


# ----------------------------------------------------------------------------
# In-kernel building blocks (rolls + masks + matmuls: robust Mosaic lowering)
# ----------------------------------------------------------------------------
def _im2col(a, op_ref, width, dil):
    """(C, L) -> (9*C, L) im2col stack for a 3x3 conv with dilation `dil`.

    op_ref is either a (9, L) 0/1 boundary-mask array (roll path, used when the
    stacked lane extent L is a multiple of 128) or a (9, L, L) stack of
    constant zero-padded shift matrices (tiny deep levels).
    """
    if len(op_ref.shape) == 3:                       # shift-matrix path
        parts = [a if k == 4 else
                 jnp.dot(a, op_ref[k], preferred_element_type=jnp.float32)
                 for k in range(9)]
    else:                                            # roll + mask path
        lanes = a.shape[-1]
        parts = []
        for k in range(9):
            ky, kx = divmod(k, 3)
            dy, dx = (ky - 1) * dil, (kx - 1) * dil
            if dy == 0 and dx == 0:
                parts.append(a)                      # centre tap, no shift
            else:
                sh = (-(dy * width + dx)) % lanes
                parts.append(pltpu.roll(a, sh, 1) * op_ref[k:k + 1, :])
    # channels are padded to multiples of 8 -> sublane-aligned concat
    return jnp.concatenate(parts, axis=0)


def _conv1(a, w_ref, b_ref, op_ref, width, dil):
    """REBNCONV (3x3 dilated conv + folded BN + ReLU) on one (C, L) input."""
    col = _im2col(a, op_ref, width, dil)
    y = jnp.dot(w_ref[...], col, preferred_element_type=jnp.float32) + b_ref[...]
    return jnp.maximum(y, 0.0)


def _conv2(a0, a1, w_ref, b_ref, op_ref, width, dil):
    """REBNCONV on torch.cat((a0, a1), 1): split-K over the two inputs."""
    y = (jnp.dot(w_ref[0], _im2col(a0, op_ref, width, dil),
                 preferred_element_type=jnp.float32)
         + jnp.dot(w_ref[1], _im2col(a1, op_ref, width, dil),
                   preferred_element_type=jnp.float32)
         + b_ref[...])
    return jnp.maximum(y, 0.0)


def _maxpool(a, op_ref, p_ref, width):
    """2x2 / stride-2 ceil-mode maxpool.

    Elementwise max of the (0,1),(1,0),(1,1) neighbours (OOB neighbours are
    zero-masked, which is exact because `a` is a ReLU output, i.e. >= 0 --
    this also reproduces PyTorch's exclude-OOB ceil_mode semantics), then ONE
    constant anchor-selection matmul.
    """
    taps = ((5, 0, 1), (7, 1, 0), (8, 1, 1))         # mask/shift rows for the taps
    mx = a
    if len(op_ref.shape) == 3:
        for k, _, _ in taps:
            mx = jnp.maximum(mx, jnp.dot(a, op_ref[k],
                                         preferred_element_type=jnp.float32))
    else:
        lanes = a.shape[-1]
        for k, dy, dx in taps:
            sh = (-(dy * width + dx)) % lanes
            mx = jnp.maximum(mx, pltpu.roll(a, sh, 1) * op_ref[k:k + 1, :])
    return jnp.dot(mx, p_ref[...], preferred_element_type=jnp.float32)


def _upsample(a, u_ref):
    """Bilinear upsample (align_corners=True) via one constant interp matmul."""
    return jnp.dot(a, u_ref[...], preferred_element_type=jnp.float32)


def _attention_gate(g, x, u_ref, ag_ref, ax_ref, ab_ref, apw_ref, apb_ref):
    # TODO(synk): Attention_Gate source was not provided; standard gate assumed
    # (W_g/W_x/psi 1x1 convs with folded BN, ReLU, sigmoid, x * psi) with g
    # bilinearly upsampled (align_corners=True) to x's spatial size.
    gup = _upsample(g, u_ref)                                  # (C, Lx)
    p = (jnp.dot(ag_ref[...], gup, preferred_element_type=jnp.float32)
         + jnp.dot(ax_ref[...], x, preferred_element_type=jnp.float32)
         + ab_ref[...])
    p = jnp.maximum(p, 0.0)                                    # (Fint, Lx)
    psi = (jnp.dot(apw_ref[...], p, preferred_element_type=jnp.float32)
           + apb_ref[...])                                     # (1, Lx)
    psi = pl.reciprocal(1.0 + jnp.exp(-psi), approx=True)      # sigmoid via EUP
    return x * psi


# ----------------------------------------------------------------------------
# The fused kernel: entire AttU_Net5 forward for one batch tile
# ----------------------------------------------------------------------------
def _attu_net5_kernel(x_ref,
                      op1, op2, op3, op4, op4d2,
                      p1, p2, p3,
                      u43, u32, u21,
                      win_w, win_b, w1w, w1b, w2w, w2b, w3w, w3b,
                      w4w, w4b, w5w, w5b,
                      w4dw, w4db, w3dw, w3db, w2dw, w2db, w1dw, w1db,
                      agw, axw, agxb, apw, apb,
                      o_ref, *, widths):
    wl1, wl2, wl3, wl4 = widths                                # image widths per level
    x = x_ref[0]                                               # (Cin_p, L1)

    hxin = _conv1(x, win_w, win_b, op1, wl1, 1)                # (out_p, L1)
    hx1 = _conv1(hxin, w1w, w1b, op1, wl1, 1)                  # (mid_p, L1)
    hx = _maxpool(hx1, op1, p1, wl1)                           # (mid_p, L2)
    hx2 = _conv1(hx, w2w, w2b, op2, wl2, 1)
    hx = _maxpool(hx2, op2, p2, wl2)                           # (mid_p, L3)
    hx3 = _conv1(hx, w3w, w3b, op3, wl3, 1)
    hx = _maxpool(hx3, op3, p3, wl3)                           # (mid_p, L4)
    hx4 = _conv1(hx, w4w, w4b, op4, wl4, 1)
    hx5 = _conv1(hx4, w5w, w5b, op4d2, wl4, 2)                 # dilate=2

    hx4d = _conv2(hx4, hx5, w4dw, w4db, op4, wl4, 1)
    hx4dup = _upsample(hx4d, u43)
    hx3d = _conv2(hx3, hx4dup, w3dw, w3db, op3, wl3, 1)
    hx3dup = _upsample(hx3d, u32)
    hx2d = _conv2(hx2, hx3dup, w2dw, w2db, op2, wl2, 1)

    a1 = _attention_gate(hx2d, hx1, u21, agw, axw, agxb, apw, apb)
    hx2dup = _upsample(hx2d, u21)
    hx1d = _conv2(a1, hx2dup, w1dw, w1db, op1, wl1, 1)

    o_ref[0] = hx1d + hxin                                     # residual fused


# ----------------------------------------------------------------------------
# Constant spatial operators (numpy, built once per (H, W, B_TILE))
# ----------------------------------------------------------------------------
def _interp_matrix(l_out, l_in):
    # bilinear, align_corners=True (matches F.interpolate in the reference)
    a = np.zeros((l_out, l_in), np.float32)
    for i in range(l_out):
        pos = 0.0 if l_out == 1 else i * (l_in - 1) / (l_out - 1)
        lo = int(np.floor(pos))
        hi = min(lo + 1, l_in - 1)
        f = pos - lo
        a[i, lo] += 1.0 - f
        a[i, hi] += f
    return a


@functools.lru_cache(maxsize=None)
def _build_ops(h, w, b_tile):
    ceil2 = lambda v: -(-v // 2)
    h1, w1 = h, w
    h2, w2 = ceil2(h1), ceil2(w1)
    h3, w3 = ceil2(h2), ceil2(w2)
    h4, w4 = ceil2(h3), ceil2(w3)
    eye = np.eye(b_tile, dtype=np.float32)

    def conv_masks(hh, ww, d):
        # (9, B_TILE*HW) 0/1 zero-padding masks for the roll-based conv taps.
        yy, xx = np.meshgrid(np.arange(hh), np.arange(ww), indexing="ij")
        m = np.zeros((9, hh * ww), np.float32)
        for k in range(9):
            ky, kx = divmod(k, 3)
            dy, dx = (ky - 1) * d, (kx - 1) * d
            ok = ((yy + dy >= 0) & (yy + dy < hh) &
                  (xx + dx >= 0) & (xx + dx < ww))
            m[k] = ok.reshape(-1).astype(np.float32)
        return np.tile(m, (1, b_tile))                         # batch-periodic

    def shift_mats(hh, ww, d):
        # (9, L, L) zero-padded shift matrices (block-diag over the batch tile)
        s = np.zeros((9, hh * ww, hh * ww), np.float32)
        for k in range(9):
            ky, kx = divmod(k, 3)
            dy, dx = (ky - 1) * d, (kx - 1) * d
            for y in range(hh):
                sy = y + dy
                if not 0 <= sy < hh:
                    continue
                for xcol in range(ww):
                    sx = xcol + dx
                    if 0 <= sx < ww:
                        s[k, sy * ww + sx, y * ww + xcol] = 1.0
        return np.stack([np.kron(eye, s[k]) for k in range(9)])

    def spatial_op(hh, ww, d):
        lanes = b_tile * hh * ww
        # roll path only when the stacked lane extent is vreg-aligned;
        # tiny/unaligned levels use (cheap) constant shift matrices instead.
        return conv_masks(hh, ww, d) if lanes % 128 == 0 else shift_mats(hh, ww, d)

    def pool_sel(hh, ww):
        # (L_in, L_out) anchor-selection for 2x2/stride-2 ceil_mode pooling
        ho, wo = ceil2(hh), ceil2(ww)
        p = np.zeros((hh * ww, ho * wo), np.float32)
        for yo in range(ho):
            for xo in range(wo):
                p[2 * yo * ww + 2 * xo, yo * wo + xo] = 1.0
        return np.kron(eye, p)

    def up_op(hi, wi, ho, wo):
        u = np.kron(_interp_matrix(ho, hi), _interp_matrix(wo, wi)).T
        return np.kron(eye, u.astype(np.float32))

    return dict(
        op1=spatial_op(h1, w1, 1), op2=spatial_op(h2, w2, 1),
        op3=spatial_op(h3, w3, 1), op4=spatial_op(h4, w4, 1),
        op4d2=spatial_op(h4, w4, 2),
        p1=pool_sel(h1, w1), p2=pool_sel(h2, w2), p3=pool_sel(h3, w3),
        u43=up_op(h4, w4, h3, w3), u32=up_op(h3, w3, h2, w2),
        u21=up_op(h2, w2, h1, w1),
        widths=(w1, w2, w3, w4),
    )


# ----------------------------------------------------------------------------
# Deterministic parameter init (eval-mode BN folded, channels padded to 8)
# ----------------------------------------------------------------------------
def _pad_to(v, m=8):
    return -(-v // m) * m


def _init_rebnconv(key, cin, cout, cin_p, cout_p):
    k = jax.random.split(key, 4)
    w = jax.random.normal(k[0], (cout, cin, 3, 3), jnp.float32) / np.sqrt(cin * 9)
    b = 0.05 * jax.random.normal(k[1], (cout,), jnp.float32)
    gamma = 1.0 + 0.1 * jax.random.normal(k[2], (cout,), jnp.float32)
    beta = 0.1 * jax.random.normal(k[3], (cout,), jnp.float32)
    # eval-mode BN fold (running_mean=0, running_var=1 for this synthetic init)
    scale = gamma / jnp.sqrt(1.0 + BN_EPS)
    bias = b * scale + beta
    wf = w * scale[:, None, None, None]
    # pad channels to multiples of 8 (zero rows/cols) so the in-kernel im2col
    # concat stays sublane-aligned; layout (Cout_p, 9*Cin_p), col = k*Cin_p + c
    wp = jnp.zeros((cout_p, cin_p, 3, 3), jnp.float32).at[:cout, :cin].set(wf)
    bp = jnp.zeros((cout_p,), jnp.float32).at[:cout].set(bias)
    wmat = jnp.transpose(wp, (0, 2, 3, 1)).reshape(cout_p, 9 * cin_p)
    return wmat, bp[:, None]


def _init_rebnconv2(key, cin_each, cout, cin_p_each, cout_p):
    # decoder conv on torch.cat((a, b), 1): weight split per input so the
    # kernel does two aligned split-K matmuls (no in-kernel channel concat).
    k = jax.random.split(key, 4)
    cin = 2 * cin_each
    w = jax.random.normal(k[0], (cout, cin, 3, 3), jnp.float32) / np.sqrt(cin * 9)
    b = 0.05 * jax.random.normal(k[1], (cout,), jnp.float32)
    gamma = 1.0 + 0.1 * jax.random.normal(k[2], (cout,), jnp.float32)
    beta = 0.1 * jax.random.normal(k[3], (cout,), jnp.float32)
    scale = gamma / jnp.sqrt(1.0 + BN_EPS)
    bias = b * scale + beta
    wf = w * scale[:, None, None, None]
    mats = []
    for i in range(2):
        wi = wf[:, i * cin_each:(i + 1) * cin_each]
        wp = (jnp.zeros((cout_p, cin_p_each, 3, 3), jnp.float32)
              .at[:cout, :cin_each].set(wi))
        mats.append(jnp.transpose(wp, (0, 2, 3, 1)).reshape(cout_p, 9 * cin_p_each))
    bp = jnp.zeros((cout_p,), jnp.float32).at[:cout].set(bias)
    return jnp.stack(mats), bp[:, None]


def _init_conv1x1_bn(key, cin, cout, cin_p, cout_p):
    k = jax.random.split(key, 4)
    w = jax.random.normal(k[0], (cout, cin), jnp.float32) / np.sqrt(cin)
    b = 0.05 * jax.random.normal(k[1], (cout,), jnp.float32)
    gamma = 1.0 + 0.1 * jax.random.normal(k[2], (cout,), jnp.float32)
    beta = 0.1 * jax.random.normal(k[3], (cout,), jnp.float32)
    scale = gamma / jnp.sqrt(1.0 + BN_EPS)          # running var=1, mean=0
    wp = (jnp.zeros((cout_p, cin_p), jnp.float32)
          .at[:cout, :cin].set(w * scale[:, None]))
    bp = jnp.zeros((cout_p,), jnp.float32).at[:cout].set(b * scale + beta)
    return wp, bp[:, None]


def init_params(key, in_ch=3, mid_ch=12, out_ch=3):
    inp, outp, midp = _pad_to(in_ch), _pad_to(out_ch), _pad_to(mid_ch)
    fint = max(mid_ch // 2, 1)
    fintp = _pad_to(fint)
    ks = jax.random.split(key, 13)
    p = {}
    p['win_w'], p['win_b'] = _init_rebnconv(ks[0], in_ch, out_ch, inp, outp)
    p['w1_w'], p['w1_b'] = _init_rebnconv(ks[1], out_ch, mid_ch, outp, midp)
    p['w2_w'], p['w2_b'] = _init_rebnconv(ks[2], mid_ch, mid_ch, midp, midp)
    p['w3_w'], p['w3_b'] = _init_rebnconv(ks[3], mid_ch, mid_ch, midp, midp)
    p['w4_w'], p['w4_b'] = _init_rebnconv(ks[4], mid_ch, mid_ch, midp, midp)
    p['w5_w'], p['w5_b'] = _init_rebnconv(ks[5], mid_ch, mid_ch, midp, midp)
    p['w4d_w'], p['w4d_b'] = _init_rebnconv2(ks[6], mid_ch, mid_ch, midp, midp)
    p['w3d_w'], p['w3d_b'] = _init_rebnconv2(ks[7], mid_ch, mid_ch, midp, midp)
    p['w2d_w'], p['w2d_b'] = _init_rebnconv2(ks[8], mid_ch, mid_ch, midp, midp)
    p['w1d_w'], p['w1d_b'] = _init_rebnconv2(ks[9], mid_ch, out_ch, midp, outp)
    ag_w, ag_b = _init_conv1x1_bn(ks[10], mid_ch, fint, midp, fintp)
    ax_w, ax_b = _init_conv1x1_bn(ks[11], mid_ch, fint, midp, fintp)
    ap_w, ap_b = _init_conv1x1_bn(ks[12], fint, 1, fintp, 1)
    p['ag_w'], p['ax_w'], p['agx_b'] = ag_w, ax_w, ag_b + ax_b
    p['apsi_w'], p['apsi_b'] = ap_w, ap_b
    return p


# ----------------------------------------------------------------------------
# Forward: NCHW in / NCHW out, single fused pallas_call
# ----------------------------------------------------------------------------
def _pick_btile(n, hw, lane_cap=2048, tile_cap=8):
    # largest batch tile that keeps lanes bounded AND leaves >=2 grid steps
    # (so v7x's 2 TensorCores both stay busy when n >= 2).
    cap = max(1, min(tile_cap, lane_cap // max(hw, 1)))
    cands = [b for b in range(1, min(n, cap) + 1)
             if n % b == 0 and n // b >= 2]
    return max(cands) if cands else 1


def attu_net5_forward(x_nchw, params, *, out_ch=3):
    n, cin, h, w = x_nchw.shape
    hw = h * w
    cin_p = params['win_w'].shape[1] // 9
    cout_p = params['win_w'].shape[0]

    b_tile = _pick_btile(n, hw)
    steps = n // b_tile
    lanes = b_tile * hw

    ops_np = _build_ops(h, w, b_tile)
    widths = ops_np['widths']
    ops = {k: jnp.asarray(v) for k, v in ops_np.items() if k != 'widths'}

    # pad channels to the aligned count and stack the batch tile on the lane
    # axis (b-major): (steps, Cin_p, B_TILE*HW)
    x = x_nchw.astype(jnp.float32).reshape(n, cin, hw)
    if cin_p > cin:
        x = jnp.pad(x, ((0, 0), (0, cin_p - cin), (0, 0)))
    x = (x.reshape(steps, b_tile, cin_p, hw)
          .transpose(0, 2, 1, 3)
          .reshape(steps, cin_p, lanes))

    const_args = [
        ops['op1'], ops['op2'], ops['op3'], ops['op4'], ops['op4d2'],
        ops['p1'], ops['p2'], ops['p3'],
        ops['u43'], ops['u32'], ops['u21'],
        params['win_w'], params['win_b'],
        params['w1_w'], params['w1_b'], params['w2_w'], params['w2_b'],
        params['w3_w'], params['w3_b'], params['w4_w'], params['w4_b'],
        params['w5_w'], params['w5_b'],
        params['w4d_w'], params['w4d_b'], params['w3d_w'], params['w3d_b'],
        params['w2d_w'], params['w2d_b'], params['w1d_w'], params['w1d_b'],
        params['ag_w'], params['ax_w'], params['agx_b'],
        params['apsi_w'], params['apsi_b'],
    ]

    # Constants now total well under 1 MiB, so the default double-buffering of
    # never-refetched blocks costs only a few hundred KB (pl.Buffered(1) was
    # deliberately not used to keep lowering maximally portable).
    def _const_spec(a):
        zeros = (0,) * a.ndim
        return pl.BlockSpec(a.shape, lambda i, _z=zeros: _z)

    kernel = functools.partial(_attu_net5_kernel, widths=widths)

    out = pl.pallas_call(
        kernel,
        out_shape=jax.ShapeDtypeStruct((steps, cout_p, lanes), jnp.float32),
        grid=(steps,),
        in_specs=[pl.BlockSpec((1, cin_p, lanes), lambda i: (i, 0, 0))]
                + [_const_spec(a) for a in const_args],
        out_specs=pl.BlockSpec((1, cout_p, lanes), lambda i: (i, 0, 0)),
        compiler_params=pltpu.CompilerParams(
            dimension_semantics=("parallel",),       # 2 TCs split the batch
            vmem_limit_bytes=32 * 1024 * 1024),
    )(x, *const_args)

    # un-stack the batch tile and drop the channel padding
    out = (out.reshape(steps, cout_p, b_tile, hw)
              .transpose(0, 2, 1, 3)
              .reshape(n, cout_p, h, w))
    return out[:, :out_ch]


if __name__ == "__main__":
    key = jax.random.PRNGKey(0)
    kx, kp = jax.random.split(key)
    x = jax.random.normal(kx, (4, 3, 16, 16), jnp.float32)     # NCHW, like PyTorch
    params = init_params(kp, in_ch=3, mid_ch=12, out_ch=3)

    fwd = jax.jit(attu_net5_forward, static_argnames=("out_ch",))
    out = fwd(x, params)
    jax.block_until_ready(out)

    assert out.shape == (4, 3, 16, 16), out.shape
    assert bool(jnp.all(jnp.isfinite(out)))
    print("KERNEL_OK")
</pallas_src>

<mosaic_0001>
module attributes {stable_mosaic.version = 11 : i64} {
  func.func @_attu_net5_kernel(%arg0: i32, %arg1: memref<1x8x512xf32, #tpu.memory_space<vmem>>, %arg2: memref<9x512xf32, #tpu.memory_space<vmem>>, %arg3: memref<9x128xf32, #tpu.memory_space<vmem>>, %arg4: memref<9x32x32xf32, #tpu.memory_space<vmem>>, %arg5: memref<9x8x8xf32, #tpu.memory_space<vmem>>, %arg6: memref<9x8x8xf32, #tpu.memory_space<vmem>>, %arg7: memref<512x128xf32, #tpu.memory_space<vmem>>, %arg8: memref<128x32xf32, #tpu.memory_space<vmem>>, %arg9: memref<32x8xf32, #tpu.memory_space<vmem>>, %arg10: memref<8x32xf32, #tpu.memory_space<vmem>>, %arg11: memref<32x128xf32, #tpu.memory_space<vmem>>, %arg12: memref<128x512xf32, #tpu.memory_space<vmem>>, %arg13: memref<8x72xf32, #tpu.memory_space<vmem>>, %arg14: memref<8x1xf32, #tpu.memory_space<vmem>>, %arg15: memref<16x72xf32, #tpu.memory_space<vmem>>, %arg16: memref<16x1xf32, #tpu.memory_space<vmem>>, %arg17: memref<16x144xf32, #tpu.memory_space<vmem>>, %arg18: memref<16x1xf32, #tpu.memory_space<vmem>>, %arg19: memref<16x144xf32, #tpu.memory_space<vmem>>, %arg20: memref<16x1xf32, #tpu.memory_space<vmem>>, %arg21: memref<16x144xf32, #tpu.memory_space<vmem>>, %arg22: memref<16x1xf32, #tpu.memory_space<vmem>>, %arg23: memref<16x144xf32, #tpu.memory_space<vmem>>, %arg24: memref<16x1xf32, #tpu.memory_space<vmem>>, %arg25: memref<2x16x144xf32, #tpu.memory_space<vmem>>, %arg26: memref<16x1xf32, #tpu.memory_space<vmem>>, %arg27: memref<2x16x144xf32, #tpu.memory_space<vmem>>, %arg28: memref<16x1xf32, #tpu.memory_space<vmem>>, %arg29: memref<2x16x144xf32, #tpu.memory_space<vmem>>, %arg30: memref<16x1xf32, #tpu.memory_space<vmem>>, %arg31: memref<2x8x144xf32, #tpu.memory_space<vmem>>, %arg32: memref<8x1xf32, #tpu.memory_space<vmem>>, %arg33: memref<8x16xf32, #tpu.memory_space<vmem>>, %arg34: memref<8x16xf32, #tpu.memory_space<vmem>>, %arg35: memref<8x1xf32, #tpu.memory_space<vmem>>, %arg36: memref<1x8xf32, #tpu.memory_space<vmem>>, %arg37: memref<1x1xf32, #tpu.memory_space<vmem>>, %arg38: memref<1x8x512xf32, #tpu.memory_space<vmem>>) attributes {dimension_semantics = [#tpu.dimension_semantics<parallel>], iteration_bounds = array<i64: 2>, scalar_prefetch = 0 : i64, scratch_operands = 0 : i64, tpu.core_type = #tpu.core_type<tc>, window_params = [{transform_indices = @transform_0, window_bounds = array<i64: 1, 8, 512>}, {pipeline_mode = #tpu.pipeline_mode<synchronous>, transform_indices = @transform_1, window_bounds = array<i64: 9, 512>}, {pipeline_mode = #tpu.pipeline_mode<synchronous>, transform_indices = @transform_2, window_bounds = array<i64: 9, 128>}, {pipeline_mode = #tpu.pipeline_mode<synchronous>, transform_indices = @transform_3, window_bounds = array<i64: 9, 32, 32>}, {pipeline_mode = #tpu.pipeline_mode<synchronous>, transform_indices = @transform_4, window_bounds = array<i64: 9, 8, 8>}, {pipeline_mode = #tpu.pipeline_mode<synchronous>, transform_indices = @transform_5, window_bounds = array<i64: 9, 8, 8>}, {pipeline_mode = #tpu.pipeline_mode<synchronous>, transform_indices = @transform_6, window_bounds = array<i64: 512, 128>}, {pipeline_mode = #tpu.pipeline_mode<synchronous>, transform_indices = @transform_7, window_bounds = array<i64: 128, 32>}, {pipeline_mode = #tpu.pipeline_mode<synchronous>, transform_indices = @transform_8, window_bounds = array<i64: 32, 8>}, {pipeline_mode = #tpu.pipeline_mode<synchronous>, transform_indices = @transform_9, window_bounds = array<i64: 8, 32>}, {pipeline_mode = #tpu.pipeline_mode<synchronous>, transform_indices = @transform_10, window_bounds = array<i64: 32, 128>}, {pipeline_mode = #tpu.pipeline_mode<synchronous>, transform_indices = @transform_11, window_bounds = array<i64: 128, 512>}, {pipeline_mode = #tpu.pipeline_mode<synchronous>, transform_indices = @transform_12, window_bounds = array<i64: 8, 72>}, {pipeline_mode = #tpu.pipeline_mode<synchronous>, transform_indices = @transform_13, window_bounds = array<i64: 8, 1>}, {pipeline_mode = #tpu.pipeline_mode<synchronous>, transform_indices = @transform_14, window_bounds = array<i64: 16, 72>}, {pipeline_mode = #tpu.pipeline_mode<synchronous>, transform_indices = @transform_15, window_bounds = array<i64: 16, 1>}, {pipeline_mode = #tpu.pipeline_mode<synchronous>, transform_indices = @transform_16, window_bounds = array<i64: 16, 144>}, {pipeline_mode = #tpu.pipeline_mode<synchronous>, transform_indices = @transform_17, window_bounds = array<i64: 16, 1>}, {pipeline_mode = #tpu.pipeline_mode<synchronous>, transform_indices = @transform_18, window_bounds = array<i64: 16, 144>}, {pipeline_mode = #tpu.pipeline_mode<synchronous>, transform_indices = @transform_19, window_bounds = array<i64: 16, 1>}, {pipeline_mode = #tpu.pipeline_mode<synchronous>, transform_indices = @transform_20, window_bounds = array<i64: 16, 144>}, {pipeline_mode = #tpu.pipeline_mode<synchronous>, transform_indices = @transform_21, window_bounds = array<i64: 16, 1>}, {pipeline_mode = #tpu.pipeline_mode<synchronous>, transform_indices = @transform_22, window_bounds = array<i64: 16, 144>}, {pipeline_mode = #tpu.pipeline_mode<synchronous>, transform_indices = @transform_23, window_bounds = array<i64: 16, 1>}, {pipeline_mode = #tpu.pipeline_mode<synchronous>, transform_indices = @transform_24, window_bounds = array<i64: 2, 16, 144>}, {pipeline_mode = #tpu.pipeline_mode<synchronous>, transform_indices = @transform_25, window_bounds = array<i64: 16, 1>}, {pipeline_mode = #tpu.pipeline_mode<synchronous>, transform_indices = @transform_26, window_bounds = array<i64: 2, 16, 144>}, {pipeline_mode = #tpu.pipeline_mode<synchronous>, transform_indices = @transform_27, window_bounds = array<i64: 16, 1>}, {pipeline_mode = #tpu.pipeline_mode<synchronous>, transform_indices = @transform_28, window_bounds = array<i64: 2, 16, 144>}, {pipeline_mode = #tpu.pipeline_mode<synchronous>, transform_indices = @transform_29, window_bounds = array<i64: 16, 1>}, {pipeline_mode = #tpu.pipeline_mode<synchronous>, transform_indices = @transform_30, window_bounds = array<i64: 2, 8, 144>}, {pipeline_mode = #tpu.pipeline_mode<synchronous>, transform_indices = @transform_31, window_bounds = array<i64: 8, 1>}, {pipeline_mode = #tpu.pipeline_mode<synchronous>, transform_indices = @transform_32, window_bounds = array<i64: 8, 16>}, {pipeline_mode = #tpu.pipeline_mode<synchronous>, transform_indices = @transform_33, window_bounds = array<i64: 8, 16>}, {pipeline_mode = #tpu.pipeline_mode<synchronous>, transform_indices = @transform_34, window_bounds = array<i64: 8, 1>}, {pipeline_mode = #tpu.pipeline_mode<synchronous>, transform_indices = @transform_35, window_bounds = array<i64: 1, 8>}, {pipeline_mode = #tpu.pipeline_mode<synchronous>, transform_indices = @transform_36, window_bounds = array<i64: 1, 1>}, {transform_indices = @transform_37, window_bounds = array<i64: 1, 8, 512>}]} {
    %c0 = arith.constant 0 : index
    %c0_0 = arith.constant 0 : index
    %c0_1 = arith.constant 0 : index
    %0 = vector.load %arg1[%c0, %c0_0, %c0_1] : memref<1x8x512xf32, #tpu.memory_space<vmem>>, vector<1x8x512xf32>
    %1 = vector.shape_cast %0 : vector<1x8x512xf32> to vector<8x512xf32>
    %c17_i32 = arith.constant 17 : i32
    %2 = tpu.dynamic_rotate %1 by %c17_i32 dim 1 : vector<8x512xf32>, i32 -> vector<8x512xf32>
    %c0_2 = arith.constant 0 : index
    %c0_3 = arith.constant 0 : index
    %3 = vector.load %arg2[%c0_2, %c0_3] : memref<9x512xf32, #tpu.memory_space<vmem>>, vector<1x512xf32>
    %4 = vector.broadcast %3 : vector<1x512xf32> to vector<8x512xf32>
    %5 = arith.mulf %2, %4 : vector<8x512xf32>
    %c16_i32 = arith.constant 16 : i32
    %6 = tpu.dynamic_rotate %1 by %c16_i32 dim 1 : vector<8x512xf32>, i32 -> vector<8x512xf32>
    %c1 = arith.constant 1 : index
    %c0_4 = arith.constant 0 : index
    %7 = vector.load %arg2[%c1, %c0_4] : memref<9x512xf32, #tpu.memory_space<vmem>>, vector<1x512xf32>
    %8 = vector.broadcast %7 : vector<1x512xf32> to vector<8x512xf32>
    %9 = arith.mulf %6, %8 : vector<8x512xf32>
    %c15_i32 = arith.constant 15 : i32
    %10 = tpu.dynamic_rotate %1 by %c15_i32 dim 1 : vector<8x512xf32>, i32 -> vector<8x512xf32>
    %c2 = arith.constant 2 : index
    %c0_5 = arith.constant 0 : index
    %11 = vector.load %arg2[%c2, %c0_5] : memref<9x512xf32, #tpu.memory_space<vmem>>, vector<1x512xf32>
    %12 = vector.broadcast %11 : vector<1x512xf32> to vector<8x512xf32>
    %13 = arith.mulf %10, %12 : vector<8x512xf32>
    %c1_i32 = arith.constant 1 : i32
    %14 = tpu.dynamic_rotate %1 by %c1_i32 dim 1 : vector<8x512xf32>, i32 -> vector<8x512xf32>
    %c3 = arith.constant 3 : index
    %c0_6 = arith.constant 0 : index
    %15 = vector.load %arg2[%c3, %c0_6] : memref<9x512xf32, #tpu.memory_space<vmem>>, vector<1x512xf32>
    %16 = vector.broadcast %15 : vector<1x512xf32> to vector<8x512xf32>
    %17 = arith.mulf %14, %16 : vector<8x512xf32>
    %c511_i32 = arith.constant 511 : i32
    %18 = tpu.dynamic_rotate %1 by %c511_i32 dim 1 : vector<8x512xf32>, i32 -> vector<8x512xf32>
    %c5 = arith.constant 5 : index
    %c0_7 = arith.constant 0 : index
    %19 = vector.load %arg2[%c5, %c0_7] : memref<9x512xf32, #tpu.memory_space<vmem>>, vector<1x512xf32>
    %20 = vector.broadcast %19 : vector<1x512xf32> to vector<8x512xf32>
    %21 = arith.mulf %18, %20 : vector<8x512xf32>
    %c497_i32 = arith.constant 497 : i32
    %22 = tpu.dynamic_rotate %1 by %c497_i32 dim 1 : vector<8x512xf32>, i32 -> vector<8x512xf32>
    %c6 = arith.constant 6 : index
    %c0_8 = arith.constant 0 : index
    %23 = vector.load %arg2[%c6, %c0_8] : memref<9x512xf32, #tpu.memory_space<vmem>>, vector<1x512xf32>
    %24 = vector.broadcast %23 : vector<1x512xf32> to vector<8x512xf32>
    %25 = arith.mulf %22, %24 : vector<8x512xf32>
    %c496_i32 = arith.constant 496 : i32
    %26 = tpu.dynamic_rotate %1 by %c496_i32 dim 1 : vector<8x512xf32>, i32 -> vector<8x512xf32>
    %c7 = arith.constant 7 : index
    %c0_9 = arith.constant 0 : index
    %27 = vector.load %arg2[%c7, %c0_9] : memref<9x512xf32, #tpu.memory_space<vmem>>, vector<1x512xf32>
    %28 = vector.broadcast %27 : vector<1x512xf32> to vector<8x512xf32>
    %29 = arith.mulf %26, %28 : vector<8x512xf32>
    %c495_i32 = arith.constant 495 : i32
    %30 = tpu.dynamic_rotate %1 by %c495_i32 dim 1 : vector<8x512xf32>, i32 -> vector<8x512xf32>
    %c8 = arith.constant 8 : index
    %c0_10 = arith.constant 0 : index
    %31 = vector.load %arg2[%c8, %c0_10] : memref<9x512xf32, #tpu.memory_space<vmem>>, vector<1x512xf32>
    %32 = vector.broadcast %31 : vector<1x512xf32> to vector<8x512xf32>
    %33 = arith.mulf %30, %32 : vector<8x512xf32>
    %34 = tpu.concatenate %5, %9, %13, %17, %1, %21, %25, %29, %33 in 0 : vector<8x512xf32>, vector<8x512xf32>, vector<8x512xf32>, vector<8x512xf32>, vector<8x512xf32>, vector<8x512xf32>, vector<8x512xf32>, vector<8x512xf32>, vector<8x512xf32> -> vector<72x512xf32>
    %c0_11 = arith.constant 0 : index
    %c0_12 = arith.constant 0 : index
    %35 = vector.load %arg13[%c0_11, %c0_12] : memref<8x72xf32, #tpu.memory_space<vmem>>, vector<8x72xf32>
    %cst = arith.constant dense<0.000000e+00> : vector<8x512xf32>
    %36 = tpu.matmul %35, %34, %cst {dimension_numbers = #tpu.dot_dimension_numbers<[1], [0], [0], [1], [0, 0, 1, 1], [], []>} : vector<8x72xf32>, vector<72x512xf32>, vector<8x512xf32> -> vector<8x512xf32>
    %c0_13 = arith.constant 0 : index
    %c0_14 = arith.constant 0 : index
    %37 = vector.load %arg14[%c0_13, %c0_14] : memref<8x1xf32, #tpu.memory_space<vmem>>, vector<8x1xf32>
    %38 = vector.broadcast %37 : vector<8x1xf32> to vector<8x512xf32>
    %39 = arith.addf %36, %38 : vector<8x512xf32>
    %cst_15 = arith.constant 0.000000e+00 : f32
    %40 = vector.broadcast %cst_15 : f32 to vector<8x512xf32>
    %41 = arith.maximumf %39, %40 : vector<8x512xf32>
    %c17_i32_16 = arith.constant 17 : i32
    %42 = tpu.dynamic_rotate %41 by %c17_i32_16 dim 1 : vector<8x512xf32>, i32 -> vector<8x512xf32>
    %c0_17 = arith.constant 0 : index
    %c0_18 = arith.constant 0 : index
    %43 = vector.load %arg2[%c0_17, %c0_18] : memref<9x512xf32, #tpu.memory_space<vmem>>, vector<1x512xf32>
    %44 = vector.broadcast %43 : vector<1x512xf32> to vector<8x512xf32>
    %45 = arith.mulf %42, %44 : vector<8x512xf32>
    %c16_i32_19 = arith.constant 16 : i32
    %46 = tpu.dynamic_rotate %41 by %c16_i32_19 dim 1 : vector<8x512xf32>, i32 -> vector<8x512xf32>
    %c1_20 = arith.constant 1 : index
    %c0_21 = arith.constant 0 : index
    %47 = vector.load %arg2[%c1_20, %c0_21] : memref<9x512xf32, #tpu.memory_space<vmem>>, vector<1x512xf32>
    %48 = vector.broadcast %47 : vector<1x512xf32> to vector<8x512xf32>
    %49 = arith.mulf %46, %48 : vector<8x512xf32>
    %c15_i32_22 = arith.constant 15 : i32
    %50 = tpu.dynamic_rotate %41 by %c15_i32_22 dim 1 : vector<8x512xf32>, i32 -> vector<8x512xf32>
    %c2_23 = arith.constant 2 : index
    %c0_24 = arith.constant 0 : index
    %51 = vector.load %arg2[%c2_23, %c0_24] : memref<9x512xf32, #tpu.memory_space<vmem>>, vector<1x512xf32>
    %52 = vector.broadcast %51 : vector<1x512xf32> to vector<8x512xf32>
    %53 = arith.mulf %50, %52 : vector<8x512xf32>
    %c1_i32_25 = arith.constant 1 : i32
    %54 = tpu.dynamic_rotate %41 by %c1_i32_25 dim 1 : vector<8x512xf32>, i32 -> vector<8x512xf32>
    %c3_26 = arith.constant 3 : index
    %c0_27 = arith.constant 0 : index
    %55 = vector.load %arg2[%c3_26, %c0_27] : memref<9x512xf32, #tpu.memory_space<vmem>>, vector<1x512xf32>
    %56 = vector.broadcast %55 : vector<1x512xf32> to vector<8x512xf32>
    %57 = arith.mulf %54, %56 : vector<8x512xf32>
    %c511_i32_28 = arith.constant 511 : i32
    %58 = tpu.dynamic_rotate %41 by %c511_i32_28 dim 1 : vector<8x512xf32>, i32 -> vector<8x512xf32>
    %c5_29 = arith.constant 5 : index
    %c0_30 = arith.constant 0 : index
    %59 = vector.load %arg2[%c5_29, %c0_30] : memref<9x512xf32, #tpu.memory_space<vmem>>, vector<1x512xf32>
    %60 = vector.broadcast %59 : vector<1x512xf32> to vector<8x512xf32>
    %61 = arith.mulf %58, %60 : vector<8x512xf32>
    %c497_i32_31 = arith.constant 497 : i32
    %62 = tpu.dynamic_rotate %41 by %c497_i32_31 dim 1 : vector<8x512xf32>, i32 -> vector<8x512xf32>
    %c6_32 = arith.constant 6 : index
    %c0_33 = arith.constant 0 : index
    %63 = vector.load %arg2[%c6_32, %c0_33] : memref<9x512xf32, #tpu.memory_space<vmem>>, vector<1x512xf32>
    %64 = vector.broadcast %63 : vector<1x512xf32> to vector<8x512xf32>
    %65 = arith.mulf %62, %64 : vector<8x512xf32>
    %c496_i32_34 = arith.constant 496 : i32
    %66 = tpu.dynamic_rotate %41 by %c496_i32_34 dim 1 : vector<8x512xf32>, i32 -> vector<8x512xf32>
    %c7_35 = arith.constant 7 : index
    %c0_36 = arith.constant 0 : index
    %67 = vector.load %arg2[%c7_35, %c0_36] : memref<9x512xf32, #tpu.memory_space<vmem>>, vector<1x512xf32>
    %68 = vector.broadcast %67 : vector<1x512xf32> to vector<8x512xf32>
    %69 = arith.mulf %66, %68 : vector<8x512xf32>
    %c495_i32_37 = arith.constant 495 : i32
    %70 = tpu.dynamic_rotate %41 by %c495_i32_37 dim 1 : vector<8x512xf32>, i32 -> vector<8x512xf32>
    %c8_38 = arith.constant 8 : index
    %c0_39 = arith.constant 0 : index
    %71 = vector.load %arg2[%c8_38, %c0_39] : memref<9x512xf32, #tpu.memory_space<vmem>>, vector<1x512xf32>
    %72 = vector.broadcast %71 : vector<1x512xf32> to vector<8x512xf32>
    %73 = arith.mulf %70, %72 : vector<8x512xf32>
    %74 = tpu.concatenate %45, %49, %53, %57, %41, %61, %65, %69, %73 in 0 : vector<8x512xf32>, vector<8x512xf32>, vector<8x512xf32>, vector<8x512xf32>, vector<8x512xf32>, vector<8x512xf32>, vector<8x512xf32>, vector<8x512xf32>, vector<8x512xf32> -> vector<72x512xf32>
    %c0_40 = arith.constant 0 : index
    %c0_41 = arith.constant 0 : index
    %75 = vector.load %arg15[%c0_40, %c0_41] : memref<16x72xf32, #tpu.memory_space<vmem>>, vector<16x72xf32>
    %cst_42 = arith.constant dense<0.000000e+00> : vector<16x512xf32>
    %76 = tpu.matmul %75, %74, %cst_42 {dimension_numbers = #tpu.dot_dimension_numbers<[1], [0], [0], [1], [0, 0, 1, 1], [], []>} : vector<16x72xf32>, vector<72x512xf32>, vector<16x512xf32> -> vector<16x512xf32>
    %c0_43 = arith.constant 0 : index
    %c0_44 = arith.constant 0 : index
    %77 = vector.load %arg16[%c0_43, %c0_44] : memref<16x1xf32, #tpu.memory_space<vmem>>, vector<16x1xf32>
    %78 = vector.broadcast %77 : vector<16x1xf32> to vector<16x512xf32>
    %79 = arith.addf %76, %78 : vector<16x512xf32>
    %cst_45 = arith.constant 0.000000e+00 : f32
    %80 = vector.broadcast %cst_45 : f32 to vector<16x512xf32>
    %81 = arith.maximumf %79, %80 : vector<16x512xf32>
    %c511_i32_46 = arith.constant 511 : i32
    %82 = tpu.dynamic_rotate %81 by %c511_i32_46 dim 1 : vector<16x512xf32>, i32 -> vector<16x512xf32>
    %c5_47 = arith.constant 5 : index
    %c0_48 = arith.constant 0 : index
    %83 = vector.load %arg2[%c5_47, %c0_48] : memref<9x512xf32, #tpu.memory_space<vmem>>, vector<1x512xf32>
    %84 = vector.broadcast %83 : vector<1x512xf32> to vector<16x512xf32>
    %85 = arith.mulf %82, %84 : vector<16x512xf32>
    %86 = arith.maximumf %81, %85 : vector<16x512xf32>
    %c496_i32_49 = arith.constant 496 : i32
    %87 = tpu.dynamic_rotate %81 by %c496_i32_49 dim 1 : vector<16x512xf32>, i32 -> vector<16x512xf32>
    %c7_50 = arith.constant 7 : index
    %c0_51 = arith.constant 0 : index
    %88 = vector.load %arg2[%c7_50, %c0_51] : memref<9x512xf32, #tpu.memory_space<vmem>>, vector<1x512xf32>
    %89 = vector.broadcast %88 : vector<1x512xf32> to vector<16x512xf32>
    %90 = arith.mulf %87, %89 : vector<16x512xf32>
    %91 = arith.maximumf %86, %90 : vector<16x512xf32>
    %c495_i32_52 = arith.constant 495 : i32
    %92 = tpu.dynamic_rotate %81 by %c495_i32_52 dim 1 : vector<16x512xf32>, i32 -> vector<16x512xf32>
    %c8_53 = arith.constant 8 : index
    %c0_54 = arith.constant 0 : index
    %93 = vector.load %arg2[%c8_53, %c0_54] : memref<9x512xf32, #tpu.memory_space<vmem>>, vector<1x512xf32>
    %94 = vector.broadcast %93 : vector<1x512xf32> to vector<16x512xf32>
    %95 = arith.mulf %92, %94 : vector<16x512xf32>
    %96 = arith.maximumf %91, %95 : vector<16x512xf32>
    %c0_55 = arith.constant 0 : index
    %c0_56 = arith.constant 0 : index
    %97 = vector.load %arg7[%c0_55, %c0_56] : memref<512x128xf32, #tpu.memory_space<vmem>>, vector<512x128xf32>
    %cst_57 = arith.constant dense<0.000000e+00> : vector<16x128xf32>
    %98 = tpu.matmul %96, %97, %cst_57 {dimension_numbers = #tpu.dot_dimension_numbers<[1], [0], [0], [1], [0, 0, 1, 1], [], []>} : vector<16x512xf32>, vector<512x128xf32>, vector<16x128xf32> -> vector<16x128xf32>
    %c9_i32 = arith.constant 9 : i32
    %99 = tpu.dynamic_rotate %98 by %c9_i32 dim 1 : vector<16x128xf32>, i32 -> vector<16x128xf32>
    %c0_58 = arith.constant 0 : index
    %c0_59 = arith.constant 0 : index
    %100 = vector.load %arg3[%c0_58, %c0_59] : memref<9x128xf32, #tpu.memory_space<vmem>>, vector<1x128xf32>
    %101 = vector.broadcast %100 : vector<1x128xf32> to vector<16x128xf32>
    %102 = arith.mulf %99, %101 : vector<16x128xf32>
    %c8_i32 = arith.constant 8 : i32
    %103 = tpu.dynamic_rotate %98 by %c8_i32 dim 1 : vector<16x128xf32>, i32 -> vector<16x128xf32>
    %c1_60 = arith.constant 1 : index
    %c0_61 = arith.constant 0 : index
    %104 = vector.load %arg3[%c1_60, %c0_61] : memref<9x128xf32, #tpu.memory_space<vmem>>, vector<1x128xf32>
    %105 = vector.broadcast %104 : vector<1x128xf32> to vector<16x128xf32>
    %106 = arith.mulf %103, %105 : vector<16x128xf32>
    %c7_i32 = arith.constant 7 : i32
    %107 = tpu.dynamic_rotate %98 by %c7_i32 dim 1 : vector<16x128xf32>, i32 -> vector<16x128xf32>
    %c2_62 = arith.constant 2 : index
    %c0_63 = arith.constant 0 : index
    %108 = vector.load %arg3[%c2_62, %c0_63] : memref<9x128xf32, #tpu.memory_space<vmem>>, vector<1x128xf32>
    %109 = vector.broadcast %108 : vector<1x128xf32> to vector<16x128xf32>
    %110 = arith.mulf %107, %109 : vector<16x128xf32>
    %c1_i32_64 = arith.constant 1 : i32
    %111 = tpu.dynamic_rotate %98 by %c1_i32_64 dim 1 : vector<16x128xf32>, i32 -> vector<16x128xf32>
    %c3_65 = arith.constant 3 : index
    %c0_66 = arith.constant 0 : index
    %112 = vector.load %arg3[%c3_65, %c0_66] : memref<9x128xf32, #tpu.memory_space<vmem>>, vector<1x128xf32>
    %113 = vector.broadcast %112 : vector<1x128xf32> to vector<16x128xf32>
    %114 = arith.mulf %111, %113 : vector<16x128xf32>
    %c127_i32 = arith.constant 127 : i32
    %115 = tpu.dynamic_rotate %98 by %c127_i32 dim 1 : vector<16x128xf32>, i32 -> vector<16x128xf32>
    %c5_67 = arith.constant 5 : index
    %c0_68 = arith.constant 0 : index
    %116 = vector.load %arg3[%c5_67, %c0_68] : memref<9x128xf32, #tpu.memory_space<vmem>>, vector<1x128xf32>
    %117 = vector.broadcast %116 : vector<1x128xf32> to vector<16x128xf32>
    %118 = arith.mulf %115, %117 : vector<16x128xf32>
    %c121_i32 = arith.constant 121 : i32
    %119 = tpu.dynamic_rotate %98 by %c121_i32 dim 1 : vector<16x128xf32>, i32 -> vector<16x128xf32>
    %c6_69 = arith.constant 6 : index
    %c0_70 = arith.constant 0 : index
    %120 = vector.load %arg3[%c6_69, %c0_70] : memref<9x128xf32, #tpu.memory_space<vmem>>, vector<1x128xf32>
    %121 = vector.broadcast %120 : vector<1x128xf32> to vector<16x128xf32>
    %122 = arith.mulf %119, %121 : vector<16x128xf32>
    %c120_i32 = arith.constant 120 : i32
    %123 = tpu.dynamic_rotate %98 by %c120_i32 dim 1 : vector<16x128xf32>, i32 -> vector<16x128xf32>
    %c7_71 = arith.constant 7 : index
    %c0_72 = arith.constant 0 : index
    %124 = vector.load %arg3[%c7_71, %c0_72] : memref<9x128xf32, #tpu.memory_space<vmem>>, vector<1x128xf32>
    %125 = vector.broadcast %124 : vector<1x128xf32> to vector<16x128xf32>
    %126 = arith.mulf %123, %125 : vector<16x128xf32>
    %c119_i32 = arith.constant 119 : i32
    %127 = tpu.dynamic_rotate %98 by %c119_i32 dim 1 : vector<16x128xf32>, i32 -> vector<16x128xf32>
    %c8_73 = arith.constant 8 : index
    %c0_74 = arith.constant 0 : index
    %128 = vector.load %arg3[%c8_73, %c0_74] : memref<9x128xf32, #tpu.memory_space<vmem>>, vector<1x128xf32>
    %129 = vector.broadcast %128 : vector<1x128xf32> to vector<16x128xf32>
    %130 = arith.mulf %127, %129 : vector<16x128xf32>
    %131 = tpu.concatenate %102, %106, %110, %114, %98, %118, %122, %126, %130 in 0 : vector<16x128xf32>, vector<16x128xf32>, vector<16x128xf32>, vector<16x128xf32>, vector<16x128xf32>, vector<16x128xf32>, vector<16x128xf32>, vector<16x128xf32>, vector<16x128xf32> -> vector<144x128xf32>
    %c0_75 = arith.constant 0 : index
    %c0_76 = arith.constant 0 : index
    %132 = vector.load %arg17[%c0_75, %c0_76] : memref<16x144xf32, #tpu.memory_space<vmem>>, vector<16x144xf32>
    %cst_77 = arith.constant dense<0.000000e+00> : vector<16x128xf32>
    %133 = tpu.matmul %132, %131, %cst_77 {dimension_numbers = #tpu.dot_dimension_numbers<[1], [0], [0], [1], [0, 0, 1, 1], [], []>} : vector<16x144xf32>, vector<144x128xf32>, vector<16x128xf32> -> vector<16x128xf32>
    %c0_78 = arith.constant 0 : index
    %c0_79 = arith.constant 0 : index
    %134 = vector.load %arg18[%c0_78, %c0_79] : memref<16x1xf32, #tpu.memory_space<vmem>>, vector<16x1xf32>
    %135 = vector.broadcast %134 : vector<16x1xf32> to vector<16x128xf32>
    %136 = arith.addf %133, %135 : vector<16x128xf32>
    %cst_80 = arith.constant 0.000000e+00 : f32
    %137 = vector.broadcast %cst_80 : f32 to vector<16x128xf32>
    %138 = arith.maximumf %136, %137 : vector<16x128xf32>
    %c127_i32_81 = arith.constant 127 : i32
    %139 = tpu.dynamic_rotate %138 by %c127_i32_81 dim 1 : vector<16x128xf32>, i32 -> vector<16x128xf32>
    %c5_82 = arith.constant 5 : index
    %c0_83 = arith.constant 0 : index
    %140 = vector.load %arg3[%c5_82, %c0_83] : memref<9x128xf32, #tpu.memory_space<vmem>>, vector<1x128xf32>
    %141 = vector.broadcast %140 : vector<1x128xf32> to vector<16x128xf32>
    %142 = arith.mulf %139, %141 : vector<16x128xf32>
    %143 = arith.maximumf %138, %142 : vector<16x128xf32>
    %c120_i32_84 = arith.constant 120 : i32
    %144 = tpu.dynamic_rotate %138 by %c120_i32_84 dim 1 : vector<16x128xf32>, i32 -> vector<16x128xf32>
    %c7_85 = arith.constant 7 : index
    %c0_86 = arith.constant 0 : index
    %145 = vector.load %arg3[%c7_85, %c0_86] : memref<9x128xf32, #tpu.memory_space<vmem>>, vector<1x128xf32>
    %146 = vector.broadcast %145 : vector<1x128xf32> to vector<16x128xf32>
    %147 = arith.mulf %144, %146 : vector<16x128xf32>
    %148 = arith.maximumf %143, %147 : vector<16x128xf32>
    %c119_i32_87 = arith.constant 119 : i32
    %149 = tpu.dynamic_rotate %138 by %c119_i32_87 dim 1 : vector<16x128xf32>, i32 -> vector<16x128xf32>
    %c8_88 = arith.constant 8 : index
    %c0_89 = arith.constant 0 : index
    %150 = vector.load %arg3[%c8_88, %c0_89] : memref<9x128xf32, #tpu.memory_space<vmem>>, vector<1x128xf32>
    %151 = vector.broadcast %150 : vector<1x128xf32> to vector<16x128xf32>
    %152 = arith.mulf %149, %151 : vector<16x128xf32>
    %153 = arith.maximumf %148, %152 : vector<16x128xf32>
    %c0_90 = arith.constant 0 : index
    %c0_91 = arith.constant 0 : index
    %154 = vector.load %arg8[%c0_90, %c0_91] : memref<128x32xf32, #tpu.memory_space<vmem>>, vector<128x32xf32>
    %cst_92 = arith.constant dense<0.000000e+00> : vector<16x32xf32>
    %155 = tpu.matmul %153, %154, %cst_92 {dimension_numbers = #tpu.dot_dimension_numbers<[1], [0], [0], [1], [0, 0, 1, 1], [], []>} : vector<16x128xf32>, vector<128x32xf32>, vector<16x32xf32> -> vector<16x32xf32>
    %c0_93 = arith.constant 0 : index
    %c0_94 = arith.constant 0 : index
    %c0_95 = arith.constant 0 : index
    %156 = vector.load %arg4[%c0_93, %c0_94, %c0_95] : memref<9x32x32xf32, #tpu.memory_space<vmem>>, vector<1x32x32xf32>
    %157 = vector.shape_cast %156 : vector<1x32x32xf32> to vector<32x32xf32>
    %cst_96 = arith.constant dense<0.000000e+00> : vector<16x32xf32>
    %158 = tpu.matmul %155, %157, %cst_96 {dimension_numbers = #tpu.dot_dimension_numbers<[1], [0], [0], [1], [0, 0, 1, 1], [], []>} : vector<16x32xf32>, vector<32x32xf32>, vector<16x32xf32> -> vector<16x32xf32>
    %c1_97 = arith.constant 1 : index
    %c0_98 = arith.constant 0 : index
    %c0_99 = arith.constant 0 : index
    %159 = vector.load %arg4[%c1_97, %c0_98, %c0_99] : memref<9x32x32xf32, #tpu.memory_space<vmem>>, vector<1x32x32xf32>
    %160 = vector.shape_cast %159 : vector<1x32x32xf32> to vector<32x32xf32>
    %cst_100 = arith.constant dense<0.000000e+00> : vector<16x32xf32>
    %161 = tpu.matmul %155, %160, %cst_100 {dimension_numbers = #tpu.dot_dimension_numbers<[1], [0], [0], [1], [0, 0, 1, 1], [], []>} : vector<16x32xf32>, vector<32x32xf32>, vector<16x32xf32> -> vector<16x32xf32>
    %c2_101 = arith.constant 2 : index
    %c0_102 = arith.constant 0 : index
    %c0_103 = arith.constant 0 : index
    %162 = vector.load %arg4[%c2_101, %c0_102, %c0_103] : memref<9x32x32xf32, #tpu.memory_space<vmem>>, vector<1x32x32xf32>
    %163 = vector.shape_cast %162 : vector<1x32x32xf32> to vector<32x32xf32>
    %cst_104 = arith.constant dense<0.000000e+00> : vector<16x32xf32>
    %164 = tpu.matmul %155, %163, %cst_104 {dimension_numbers = #tpu.dot_dimension_numbers<[1], [0], [0], [1], [0, 0, 1, 1], [], []>} : vector<16x32xf32>, vector<32x32xf32>, vector<16x32xf32> -> vector<16x32xf32>
    %c3_105 = arith.constant 3 : index
    %c0_106 = arith.constant 0 : index
    %c0_107 = arith.constant 0 : index
    %165 = vector.load %arg4[%c3_105, %c0_106, %c0_107] : memref<9x32x32xf32, #tpu.memory_space<vmem>>, vector<1x32x32xf32>
    %166 = vector.shape_cast %165 : vector<1x32x32xf32> to vector<32x32xf32>
    %cst_108 = arith.constant dense<0.000000e+00> : vector<16x32xf32>
    %167 = tpu.matmul %155, %166, %cst_108 {dimension_numbers = #tpu.dot_dimension_numbers<[1], [0], [0], [1], [0, 0, 1, 1], [], []>} : vector<16x32xf32>, vector<32x32xf32>, vector<16x32xf32> -> vector<16x32xf32>
    %c5_109 = arith.constant 5 : index
    %c0_110 = arith.constant 0 : index
    %c0_111 = arith.constant 0 : index
    %168 = vector.load %arg4[%c5_109, %c0_110, %c0_111] : memref<9x32x32xf32, #tpu.memory_space<vmem>>, vector<1x32x32xf32>
    %169 = vector.shape_cast %168 : vector<1x32x32xf32> to vector<32x32xf32>
    %cst_112 = arith.constant dense<0.000000e+00> : vector<16x32xf32>
    %170 = tpu.matmul %155, %169, %cst_112 {dimension_numbers = #tpu.dot_dimension_numbers<[1], [0], [0], [1], [0, 0, 1, 1], [], []>} : vector<16x32xf32>, vector<32x32xf32>, vector<16x32xf32> -> vector<16x32xf32>
    %c6_113 = arith.constant 6 : index
    %c0_114 = arith.constant 0 : index
    %c0_115 = arith.constant 0 : index
    %171 = vector.load %arg4[%c6_113, %c0_114, %c0_115] : memref<9x32x32xf32, #tpu.memory_space<vmem>>, vector<1x32x32xf32>
    %172 = vector.shape_cast %171 : vector<1x32x32xf32> to vector<32x32xf32>
    %cst_116 = arith.constant dense<0.000000e+00> : vector<16x32xf32>
    %173 = tpu.matmul %155, %172, %cst_116 {dimension_numbers = #tpu.dot_dimension_numbers<[1], [0], [0], [1], [0, 0, 1, 1], [], []>} : vector<16x32xf32>, vector<32x32xf32>, vector<16x32xf32> -> vector<16x32xf32>
    %c7_117 = arith.constant 7 : index
    %c0_118 = arith.constant 0 : index
    %c0_119 = arith.constant 0 : index
    %174 = vector.load %arg4[%c7_117, %c0_118, %c0_119] : memref<9x32x32xf32, #tpu.memory_space<vmem>>, vector<1x32x32xf32>
    %175 = vector.shape_cast %174 : vector<1x32x32xf32> to vector<32x32xf32>
    %cst_120 = arith.constant dense<0.000000e+00> : vector<16x32xf32>
    %176 = tpu.matmul %155, %175, %cst_120 {dimension_numbers = #tpu.dot_dimension_numbers<[1], [0], [0], [1], [0, 0, 1, 1], [], []>} : vector<16x32xf32>, vector<32x32xf32>, vector<16x32xf32> -> vector<16x32xf32>
    %c8_121 = arith.constant 8 : index
    %c0_122 = arith.constant 0 : index
    %c0_123 = arith.constant 0 : index
    %177 = vector.load %arg4[%c8_121, %c0_122, %c0_123] : memref<9x32x32xf32, #tpu.memory_space<vmem>>, vector<1x32x32xf32>
    %178 = vector.shape_cast %177 : vector<1x32x32xf32> to vector<32x32xf32>
    %cst_124 = arith.constant dense<0.000000e+00> : vector<16x32xf32>
    %179 = tpu.matmul %155, %178, %cst_124 {dimension_numbers = #tpu.dot_dimension_numbers<[1], [0], [0], [1], [0, 0, 1, 1], [], []>} : vector<16x32xf32>, vector<32x32xf32>, vector<16x32xf32> -> vector<16x32xf32>
    %180 = tpu.concatenate %158, %161, %164, %167, %155, %170, %173, %176, %179 in 0 : vector<16x32xf32>, vector<16x32xf32>, vector<16x32xf32>, vector<16x32xf32>, vector<16x32xf32>, vector<16x32xf32>, vector<16x32xf32>, vector<16x32xf32>, vector<16x32xf32> -> vector<144x32xf32>
    %c0_125 = arith.constant 0 : index
    %c0_126 = arith.constant 0 : index
    %181 = vector.load %arg19[%c0_125, %c0_126] : memref<16x144xf32, #tpu.memory_space<vmem>>, vector<16x144xf32>
    %cst_127 = arith.constant dense<0.000000e+00> : vector<16x32xf32>
    %182 = tpu.matmul %181, %180, %cst_127 {dimension_numbers = #tpu.dot_dimension_numbers<[1], [0], [0], [1], [0, 0, 1, 1], [], []>} : vector<16x144xf32>, vector<144x32xf32>, vector<16x32xf32> -> vector<16x32xf32>
    %c0_128 = arith.constant 0 : index
    %c0_129 = arith.constant 0 : index
    %183 = vector.load %arg20[%c0_128, %c0_129] : memref<16x1xf32, #tpu.memory_space<vmem>>, vector<16x1xf32>
    %184 = vector.broadcast %183 : vector<16x1xf32> to vector<16x32xf32>
    %185 = arith.addf %182, %184 : vector<16x32xf32>
    %cst_130 = arith.constant 0.000000e+00 : f32
    %186 = vector.broadcast %cst_130 : f32 to vector<16x32xf32>
    %187 = arith.maximumf %185, %186 : vector<16x32xf32>
    %c5_131 = arith.constant 5 : index
    %c0_132 = arith.constant 0 : index
    %c0_133 = arith.constant 0 : index
    %188 = vector.load %arg4[%c5_131, %c0_132, %c0_133] : memref<9x32x32xf32, #tpu.memory_space<vmem>>, vector<1x32x32xf32>
    %189 = vector.shape_cast %188 : vector<1x32x32xf32> to vector<32x32xf32>
    %cst_134 = arith.constant dense<0.000000e+00> : vector<16x32xf32>
    %190 = tpu.matmul %187, %189, %cst_134 {dimension_numbers = #tpu.dot_dimension_numbers<[1], [0], [0], [1], [0, 0, 1, 1], [], []>} : vector<16x32xf32>, vector<32x32xf32>, vector<16x32xf32> -> vector<16x32xf32>
    %191 = arith.maximumf %187, %190 : vector<16x32xf32>
    %c7_135 = arith.constant 7 : index
    %c0_136 = arith.constant 0 : index
    %c0_137 = arith.constant 0 : index
    %192 = vector.load %arg4[%c7_135, %c0_136, %c0_137] : memref<9x32x32xf32, #tpu.memory_space<vmem>>, vector<1x32x32xf32>
    %193 = vector.shape_cast %192 : vector<1x32x32xf32> to vector<32x32xf32>
    %cst_138 = arith.constant dense<0.000000e+00> : vector<16x32xf32>
    %194 = tpu.matmul %187, %193, %cst_138 {dimension_numbers = #tpu.dot_dimension_numbers<[1], [0], [0], [1], [0, 0, 1, 1], [], []>} : vector<16x32xf32>, vector<32x32xf32>, vector<16x32xf32> -> vector<16x32xf32>
    %195 = arith.maximumf %191, %194 : vector<16x32xf32>
    %c8_139 = arith.constant 8 : index
    %c0_140 = arith.constant 0 : index
    %c0_141 = arith.constant 0 : index
    %196 = vector.load %arg4[%c8_139, %c0_140, %c0_141] : memref<9x32x32xf32, #tpu.memory_space<vmem>>, vector<1x32x32xf32>
    %197 = vector.shape_cast %196 : vector<1x32x32xf32> to vector<32x32xf32>
    %cst_142 = arith.constant dense<0.000000e+00> : vector<16x32xf32>
    %198 = tpu.matmul %187, %197, %cst_142 {dimension_numbers = #tpu.dot_dimension_numbers<[1], [0], [0], [1], [0, 0, 1, 1], [], []>} : vector<16x32xf32>, vector<32x32xf32>, vector<16x32xf32> -> vector<16x32xf32>
    %199 = arith.maximumf %195, %198 : vector<16x32xf32>
    %c0_143 = arith.constant 0 : index
    %c0_144 = arith.constant 0 : index
    %200 = vector.load %arg9[%c0_143, %c0_144] : memref<32x8xf32, #tpu.memory_space<vmem>>, vector<32x8xf32>
    %cst_145 = arith.constant dense<0.000000e+00> : vector<16x8xf32>
    %201 = tpu.matmul %199, %200, %cst_145 {dimension_numbers = #tpu.dot_dimension_numbers<[1], [0], [0], [1], [0, 0, 1, 1], [], []>} : vector<16x32xf32>, vector<32x8xf32>, vector<16x8xf32> -> vector<16x8xf32>
    %c0_146 = arith.constant 0 : index
    %c0_147 = arith.constant 0 : index
    %c0_148 = arith.constant 0 : index
    %202 = vector.load %arg5[%c0_146, %c0_147, %c0_148] : memref<9x8x8xf32, #tpu.memory_space<vmem>>, vector<1x8x8xf32>
    %203 = vector.shape_cast %202 : vector<1x8x8xf32> to vector<8x8xf32>
    %cst_149 = arith.constant dense<0.000000e+00> : vector<16x8xf32>
    %204 = tpu.matmul %201, %203, %cst_149 {dimension_numbers = #tpu.dot_dimension_numbers<[1], [0], [0], [1], [0, 0, 1, 1], [], []>} : vector<16x8xf32>, vector<8x8xf32>, vector<16x8xf32> -> vector<16x8xf32>
    %c1_150 = arith.constant 1 : index
    %c0_151 = arith.constant 0 : index
    %c0_152 = arith.constant 0 : index
    %205 = vector.load %arg5[%c1_150, %c0_151, %c0_152] : memref<9x8x8xf32, #tpu.memory_space<vmem>>, vector<1x8x8xf32>
    %206 = vector.shape_cast %205 : vector<1x8x8xf32> to vector<8x8xf32>
    %cst_153 = arith.constant dense<0.000000e+00> : vector<16x8xf32>
    %207 = tpu.matmul %201, %206, %cst_153 {dimension_numbers = #tpu.dot_dimension_numbers<[1], [0], [0], [1], [0, 0, 1, 1], [], []>} : vector<16x8xf32>, vector<8x8xf32>, vector<16x8xf32> -> vector<16x8xf32>
    %c2_154 = arith.constant 2 : index
    %c0_155 = arith.constant 0 : index
    %c0_156 = arith.constant 0 : index
    %208 = vector.load %arg5[%c2_154, %c0_155, %c0_156] : memref<9x8x8xf32, #tpu.memory_space<vmem>>, vector<1x8x8xf32>
    %209 = vector.shape_cast %208 : vector<1x8x8xf32> to vector<8x8xf32>
    %cst_157 = arith.constant dense<0.000000e+00> : vector<16x8xf32>
    %210 = tpu.matmul %201, %209, %cst_157 {dimension_numbers = #tpu.dot_dimension_numbers<[1], [0], [0], [1], [0, 0, 1, 1], [], []>} : vector<16x8xf32>, vector<8x8xf32>, vector<16x8xf32> -> vector<16x8xf32>
    %c3_158 = arith.constant 3 : index
    %c0_159 = arith.constant 0 : index
    %c0_160 = arith.constant 0 : index
    %211 = vector.load %arg5[%c3_158, %c0_159, %c0_160] : memref<9x8x8xf32, #tpu.memory_space<vmem>>, vector<1x8x8xf32>
    %212 = vector.shape_cast %211 : vector<1x8x8xf32> to vector<8x8xf32>
    %cst_161 = arith.constant dense<0.000000e+00> : vector<16x8xf32>
    %213 = tpu.matmul %201, %212, %cst_161 {dimension_numbers = #tpu.dot_dimension_numbers<[1], [0], [0], [1], [0, 0, 1, 1], [], []>} : vector<16x8xf32>, vector<8x8xf32>, vector<16x8xf32> -> vector<16x8xf32>
    %c5_162 = arith.constant 5 : index
    %c0_163 = arith.constant 0 : index
    %c0_164 = arith.constant 0 : index
    %214 = vector.load %arg5[%c5_162, %c0_163, %c0_164] : memref<9x8x8xf32, #tpu.memory_space<vmem>>, vector<1x8x8xf32>
    %215 = vector.shape_cast %214 : vector<1x8x8xf32> to vector<8x8xf32>
    %cst_165 = arith.constant dense<0.000000e+00> : vector<16x8xf32>
    %216 = tpu.matmul %201, %215, %cst_165 {dimension_numbers = #tpu.dot_dimension_numbers<[1], [0], [0], [1], [0, 0, 1, 1], [], []>} : vector<16x8xf32>, vector<8x8xf32>, vector<16x8xf32> -> vector<16x8xf32>
    %c6_166 = arith.constant 6 : index
    %c0_167 = arith.constant 0 : index
    %c0_168 = arith.constant 0 : index
    %217 = vector.load %arg5[%c6_166, %c0_167, %c0_168] : memref<9x8x8xf32, #tpu.memory_space<vmem>>, vector<1x8x8xf32>
    %218 = vector.shape_cast %217 : vector<1x8x8xf32> to vector<8x8xf32>
    %cst_169 = arith.constant dense<0.000000e+00> : vector<16x8xf32>
    %219 = tpu.matmul %201, %218, %cst_169 {dimension_numbers = #tpu.dot_dimension_numbers<[1], [0], [0], [1], [0, 0, 1, 1], [], []>} : vector<16x8xf32>, vector<8x8xf32>, vector<16x8xf32> -> vector<16x8xf32>
    %c7_170 = arith.constant 7 : index
    %c0_171 = arith.constant 0 : index
    %c0_172 = arith.constant 0 : index
    %220 = vector.load %arg5[%c7_170, %c0_171, %c0_172] : memref<9x8x8xf32, #tpu.memory_space<vmem>>, vector<1x8x8xf32>
    %221 = vector.shape_cast %220 : vector<1x8x8xf32> to vector<8x8xf32>
    %cst_173 = arith.constant dense<0.000000e+00> : vector<16x8xf32>
    %222 = tpu.matmul %201, %221, %cst_173 {dimension_numbers = #tpu.dot_dimension_numbers<[1], [0], [0], [1], [0, 0, 1, 1], [], []>} : vector<16x8xf32>, vector<8x8xf32>, vector<16x8xf32> -> vector<16x8xf32>
    %c8_174 = arith.constant 8 : index
    %c0_175 = arith.constant 0 : index
    %c0_176 = arith.constant 0 : index
    %223 = vector.load %arg5[%c8_174, %c0_175, %c0_176] : memref<9x8x8xf32, #tpu.memory_space<vmem>>, vector<1x8x8xf32>
    %224 = vector.shape_cast %223 : vector<1x8x8xf32> to vector<8x8xf32>
    %cst_177 = arith.constant dense<0.000000e+00> : vector<16x8xf32>
    %225 = tpu.matmul %201, %224, %cst_177 {dimension_numbers = #tpu.dot_dimension_numbers<[1], [0], [0], [1], [0, 0, 1, 1], [], []>} : vector<16x8xf32>, vector<8x8xf32>, vector<16x8xf32> -> vector<16x8xf32>
    %226 = tpu.concatenate %204, %207, %210, %213, %201, %216, %219, %222, %225 in 0 : vector<16x8xf32>, vector<16x8xf32>, vector<16x8xf32>, vector<16x8xf32>, vector<16x8xf32>, vector<16x8xf32>, vector<16x8xf32>, vector<16x8xf32>, vector<16x8xf32> -> vector<144x8xf32>
    %c0_178 = arith.constant 0 : index
    %c0_179 = arith.constant 0 : index
    %227 = vector.load %arg21[%c0_178, %c0_179] : memref<16x144xf32, #tpu.memory_space<vmem>>, vector<16x144xf32>
    %cst_180 = arith.constant dense<0.000000e+00> : vector<16x8xf32>
    %228 = tpu.matmul %227, %226, %cst_180 {dimension_numbers = #tpu.dot_dimension_numbers<[1], [0], [0], [1], [0, 0, 1, 1], [], []>} : vector<16x144xf32>, vector<144x8xf32>, vector<16x8xf32> -> vector<16x8xf32>
    %c0_181 = arith.constant 0 : index
    %c0_182 = arith.constant 0 : index
    %229 = vector.load %arg22[%c0_181, %c0_182] : memref<16x1xf32, #tpu.memory_space<vmem>>, vector<16x1xf32>
    %230 = vector.broadcast %229 : vector<16x1xf32> to vector<16x8xf32>
    %231 = arith.addf %228, %230 : vector<16x8xf32>
    %cst_183 = arith.constant 0.000000e+00 : f32
    %232 = vector.broadcast %cst_183 : f32 to vector<16x8xf32>
    %233 = arith.maximumf %231, %232 : vector<16x8xf32>
    %c0_184 = arith.constant 0 : index
    %c0_185 = arith.constant 0 : index
    %c0_186 = arith.constant 0 : index
    %234 = vector.load %arg6[%c0_184, %c0_185, %c0_186] : memref<9x8x8xf32, #tpu.memory_space<vmem>>, vector<1x8x8xf32>
    %235 = vector.shape_cast %234 : vector<1x8x8xf32> to vector<8x8xf32>
    %cst_187 = arith.constant dense<0.000000e+00> : vector<16x8xf32>
    %236 = tpu.matmul %233, %235, %cst_187 {dimension_numbers = #tpu.dot_dimension_numbers<[1], [0], [0], [1], [0, 0, 1, 1], [], []>} : vector<16x8xf32>, vector<8x8xf32>, vector<16x8xf32> -> vector<16x8xf32>
    %c1_188 = arith.constant 1 : index
    %c0_189 = arith.constant 0 : index
    %c0_190 = arith.constant 0 : index
    %237 = vector.load %arg6[%c1_188, %c0_189, %c0_190] : memref<9x8x8xf32, #tpu.memory_space<vmem>>, vector<1x8x8xf32>
    %238 = vector.shape_cast %237 : vector<1x8x8xf32> to vector<8x8xf32>
    %cst_191 = arith.constant dense<0.000000e+00> : vector<16x8xf32>
    %239 = tpu.matmul %233, %238, %cst_191 {dimension_numbers = #tpu.dot_dimension_numbers<[1], [0], [0], [1], [0, 0, 1, 1], [], []>} : vector<16x8xf32>, vector<8x8xf32>, vector<16x8xf32> -> vector<16x8xf32>
    %c2_192 = arith.constant 2 : index
    %c0_193 = arith.constant 0 : index
    %c0_194 = arith.constant 0 : index
    %240 = vector.load %arg6[%c2_192, %c0_193, %c0_194] : memref<9x8x8xf32, #tpu.memory_space<vmem>>, vector<1x8x8xf32>
    %241 = vector.shape_cast %240 : vector<1x8x8xf32> to vector<8x8xf32>
    %cst_195 = arith.constant dense<0.000000e+00> : vector<16x8xf32>
    %242 = tpu.matmul %233, %241, %cst_195 {dimension_numbers = #tpu.dot_dimension_numbers<[1], [0], [0], [1], [0, 0, 1, 1], [], []>} : vector<16x8xf32>, vector<8x8xf32>, vector<16x8xf32> -> vector<16x8xf32>
    %c3_196 = arith.constant 3 : index
    %c0_197 = arith.constant 0 : index
    %c0_198 = arith.constant 0 : index
    %243 = vector.load %arg6[%c3_196, %c0_197, %c0_198] : memref<9x8x8xf32, #tpu.memory_space<vmem>>, vector<1x8x8xf32>
    %244 = vector.shape_cast %243 : vector<1x8x8xf32> to vector<8x8xf32>
    %cst_199 = arith.constant dense<0.000000e+00> : vector<16x8xf32>
    %245 = tpu.matmul %233, %244, %cst_199 {dimension_numbers = #tpu.dot_dimension_numbers<[1], [0], [0], [1], [0, 0, 1, 1], [], []>} : vector<16x8xf32>, vector<8x8xf32>, vector<16x8xf32> -> vector<16x8xf32>
    %c5_200 = arith.constant 5 : index
    %c0_201 = arith.constant 0 : index
    %c0_202 = arith.constant 0 : index
    %246 = vector.load %arg6[%c5_200, %c0_201, %c0_202] : memref<9x8x8xf32, #tpu.memory_space<vmem>>, vector<1x8x8xf32>
    %247 = vector.shape_cast %246 : vector<1x8x8xf32> to vector<8x8xf32>
    %cst_203 = arith.constant dense<0.000000e+00> : vector<16x8xf32>
    %248 = tpu.matmul %233, %247, %cst_203 {dimension_numbers = #tpu.dot_dimension_numbers<[1], [0], [0], [1], [0, 0, 1, 1], [], []>} : vector<16x8xf32>, vector<8x8xf32>, vector<16x8xf32> -> vector<16x8xf32>
    %c6_204 = arith.constant 6 : index
    %c0_205 = arith.constant 0 : index
    %c0_206 = arith.constant 0 : index
    %249 = vector.load %arg6[%c6_204, %c0_205, %c0_206] : memref<9x8x8xf32, #tpu.memory_space<vmem>>, vector<1x8x8xf32>
    %250 = vector.shape_cast %249 : vector<1x8x8xf32> to vector<8x8xf32>
    %cst_207 = arith.constant dense<0.000000e+00> : vector<16x8xf32>
    %251 = tpu.matmul %233, %250, %cst_207 {dimension_numbers = #tpu.dot_dimension_numbers<[1], [0], [0], [1], [0, 0, 1, 1], [], []>} : vector<16x8xf32>, vector<8x8xf32>, vector<16x8xf32> -> vector<16x8xf32>
    %c7_208 = arith.constant 7 : index
    %c0_209 = arith.constant 0 : index
    %c0_210 = arith.constant 0 : index
    %252 = vector.load %arg6[%c7_208, %c0_209, %c0_210] : memref<9x8x8xf32, #tpu.memory_space<vmem>>, vector<1x8x8xf32>
    %253 = vector.shape_cast %252 : vector<1x8x8xf32> to vector<8x8xf32>
    %cst_211 = arith.constant dense<0.000000e+00> : vector<16x8xf32>
    %254 = tpu.matmul %233, %253, %cst_211 {dimension_numbers = #tpu.dot_dimension_numbers<[1], [0], [0], [1], [0, 0, 1, 1], [], []>} : vector<16x8xf32>, vector<8x8xf32>, vector<16x8xf32> -> vector<16x8xf32>
    %c8_212 = arith.constant 8 : index
    %c0_213 = arith.constant 0 : index
    %c0_214 = arith.constant 0 : index
    %255 = vector.load %arg6[%c8_212, %c0_213, %c0_214] : memref<9x8x8xf32, #tpu.memory_space<vmem>>, vector<1x8x8xf32>
    %256 = vector.shape_cast %255 : vector<1x8x8xf32> to vector<8x8xf32>
    %cst_215 = arith.constant dense<0.000000e+00> : vector<16x8xf32>
    %257 = tpu.matmul %233, %256, %cst_215 {dimension_numbers = #tpu.dot_dimension_numbers<[1], [0], [0], [1], [0, 0, 1, 1], [], []>} : vector<16x8xf32>, vector<8x8xf32>, vector<16x8xf32> -> vector<16x8xf32>
    %258 = tpu.concatenate %236, %239, %242, %245, %233, %248, %251, %254, %257 in 0 : vector<16x8xf32>, vector<16x8xf32>, vector<16x8xf32>, vector<16x8xf32>, vector<16x8xf32>, vector<16x8xf32>, vector<16x8xf32>, vector<16x8xf32>, vector<16x8xf32> -> vector<144x8xf32>
    %c0_216 = arith.constant 0 : index
    %c0_217 = arith.constant 0 : index
    %259 = vector.load %arg23[%c0_216, %c0_217] : memref<16x144xf32, #tpu.memory_space<vmem>>, vector<16x144xf32>
    %cst_218 = arith.constant dense<0.000000e+00> : vector<16x8xf32>
    %260 = tpu.matmul %259, %258, %cst_218 {dimension_numbers = #tpu.dot_dimension_numbers<[1], [0], [0], [1], [0, 0, 1, 1], [], []>} : vector<16x144xf32>, vector<144x8xf32>, vector<16x8xf32> -> vector<16x8xf32>
    %c0_219 = arith.constant 0 : index
    %c0_220 = arith.constant 0 : index
    %261 = vector.load %arg24[%c0_219, %c0_220] : memref<16x1xf32, #tpu.memory_space<vmem>>, vector<16x1xf32>
    %262 = vector.broadcast %261 : vector<16x1xf32> to vector<16x8xf32>
    %263 = arith.addf %260, %262 : vector<16x8xf32>
    %cst_221 = arith.constant 0.000000e+00 : f32
    %264 = vector.broadcast %cst_221 : f32 to vector<16x8xf32>
    %265 = arith.maximumf %263, %264 : vector<16x8xf32>
    %c0_222 = arith.constant 0 : index
    %c0_223 = arith.constant 0 : index
    %c0_224 = arith.constant 0 : index
    %266 = vector.load %arg25[%c0_222, %c0_223, %c0_224] : memref<2x16x144xf32, #tpu.memory_space<vmem>>, vector<1x16x144xf32>
    %267 = vector.shape_cast %266 : vector<1x16x144xf32> to vector<16x144xf32>
    %c0_225 = arith.constant 0 : index
    %c0_226 = arith.constant 0 : index
    %c0_227 = arith.constant 0 : index
    %268 = vector.load %arg5[%c0_225, %c0_226, %c0_227] : memref<9x8x8xf32, #tpu.memory_space<vmem>>, vector<1x8x8xf32>
    %269 = vector.shape_cast %268 : vector<1x8x8xf32> to vector<8x8xf32>
    %cst_228 = arith.constant dense<0.000000e+00> : vector<16x8xf32>
    %270 = tpu.matmul %233, %269, %cst_228 {dimension_numbers = #tpu.dot_dimension_numbers<[1], [0], [0], [1], [0, 0, 1, 1], [], []>} : vector<16x8xf32>, vector<8x8xf32>, vector<16x8xf32> -> vector<16x8xf32>
    %c1_229 = arith.constant 1 : index
    %c0_230 = arith.constant 0 : index
    %c0_231 = arith.constant 0 : index
    %271 = vector.load %arg5[%c1_229, %c0_230, %c0_231] : memref<9x8x8xf32, #tpu.memory_space<vmem>>, vector<1x8x8xf32>
    %272 = vector.shape_cast %271 : vector<1x8x8xf32> to vector<8x8xf32>
    %cst_232 = arith.constant dense<0.000000e+00> : vector<16x8xf32>
    %273 = tpu.matmul %233, %272, %cst_232 {dimension_numbers = #tpu.dot_dimension_numbers<[1], [0], [0], [1], [0, 0, 1, 1], [], []>} : vector<16x8xf32>, vector<8x8xf32>, vector<16x8xf32> -> vector<16x8xf32>
    %c2_233 = arith.constant 2 : index
    %c0_234 = arith.constant 0 : index
    %c0_235 = arith.constant 0 : index
    %274 = vector.load %arg5[%c2_233, %c0_234, %c0_235] : memref<9x8x8xf32, #tpu.memory_space<vmem>>, vector<1x8x8xf32>
    %275 = vector.shape_cast %274 : vector<1x8x8xf32> to vector<8x8xf32>
    %cst_236 = arith.constant dense<0.000000e+00> : vector<16x8xf32>
    %276 = tpu.matmul %233, %275, %cst_236 {dimension_numbers = #tpu.dot_dimension_numbers<[1], [0], [0], [1], [0, 0, 1, 1], [], []>} : vector<16x8xf32>, vector<8x8xf32>, vector<16x8xf32> -> vector<16x8xf32>
    %c3_237 = arith.constant 3 : index
    %c0_238 = arith.constant 0 : index
    %c0_239 = arith.constant 0 : index
    %277 = vector.load %arg5[%c3_237, %c0_238, %c0_239] : memref<9x8x8xf32, #tpu.memory_space<vmem>>, vector<1x8x8xf32>
    %278 = vector.shape_cast %277 : vector<1x8x8xf32> to vector<8x8xf32>
    %cst_240 = arith.constant dense<0.000000e+00> : vector<16x8xf32>
    %279 = tpu.matmul %233, %278, %cst_240 {dimension_numbers = #tpu.dot_dimension_numbers<[1], [0], [0], [1], [0, 0, 1, 1], [], []>} : vector<16x8xf32>, vector<8x8xf32>, vector<16x8xf32> -> vector<16x8xf32>
    %c5_241 = arith.constant 5 : index
    %c0_242 = arith.constant 0 : index
    %c0_243 = arith.constant 0 : index
    %280 = vector.load %arg5[%c5_241, %c0_242, %c0_243] : memref<9x8x8xf32, #tpu.memory_space<vmem>>, vector<1x8x8xf32>
    %281 = vector.shape_cast %280 : vector<1x8x8xf32> to vector<8x8xf32>
    %cst_244 = arith.constant dense<0.000000e+00> : vector<16x8xf32>
    %282 = tpu.matmul %233, %281, %cst_244 {dimension_numbers = #tpu.dot_dimension_numbers<[1], [0], [0], [1], [0, 0, 1, 1], [], []>} : vector<16x8xf32>, vector<8x8xf32>, vector<16x8xf32> -> vector<16x8xf32>
    %c6_245 = arith.constant 6 : index
    %c0_246 = arith.constant 0 : index
    %c0_247 = arith.constant 0 : index
    %283 = vector.load %arg5[%c6_245, %c0_246, %c0_247] : memref<9x8x8xf32, #tpu.memory_space<vmem>>, vector<1x8x8xf32>
    %284 = vector.shape_cast %283 : vector<1x8x8xf32> to vector<8x8xf32>
    %cst_248 = arith.constant dense<0.000000e+00> : vector<16x8xf32>
    %285 = tpu.matmul %233, %284, %cst_248 {dimension_numbers = #tpu.dot_dimension_numbers<[1], [0], [0], [1], [0, 0, 1, 1], [], []>} : vector<16x8xf32>, vector<8x8xf32>, vector<16x8xf32> -> vector<16x8xf32>
    %c7_249 = arith.constant 7 : index
    %c0_250 = arith.constant 0 : index
    %c0_251 = arith.constant 0 : index
    %286 = vector.load %arg5[%c7_249, %c0_250, %c0_251] : memref<9x8x8xf32, #tpu.memory_space<vmem>>, vector<1x8x8xf32>
    %287 = vector.shape_cast %286 : vector<1x8x8xf32> to vector<8x8xf32>
    %cst_252 = arith.constant dense<0.000000e+00> : vector<16x8xf32>
    %288 = tpu.matmul %233, %287, %cst_252 {dimension_numbers = #tpu.dot_dimension_numbers<[1], [0], [0], [1], [0, 0, 1, 1], [], []>} : vector<16x8xf32>, vector<8x8xf32>, vector<16x8xf32> -> vector<16x8xf32>
    %c8_253 = arith.constant 8 : index
    %c0_254 = arith.constant 0 : index
    %c0_255 = arith.constant 0 : index
    %289 = vector.load %arg5[%c8_253, %c0_254, %c0_255] : memref<9x8x8xf32, #tpu.memory_space<vmem>>, vector<1x8x8xf32>
    %290 = vector.shape_cast %289 : vector<1x8x8xf32> to vector<8x8xf32>
    %cst_256 = arith.constant dense<0.000000e+00> : vector<16x8xf32>
    %291 = tpu.matmul %233, %290, %cst_256 {dimension_numbers = #tpu.dot_dimension_numbers<[1], [0], [0], [1], [0, 0, 1, 1], [], []>} : vector<16x8xf32>, vector<8x8xf32>, vector<16x8xf32> -> vector<16x8xf32>
    %292 = tpu.concatenate %270, %273, %276, %279, %233, %282, %285, %288, %291 in 0 : vector<16x8xf32>, vector<16x8xf32>, vector<16x8xf32>, vector<16x8xf32>, vector<16x8xf32>, vector<16x8xf32>, vector<16x8xf32>, vector<16x8xf32>, vector<16x8xf32> -> vector<144x8xf32>
    %cst_257 = arith.constant dense<0.000000e+00> : vector<16x8xf32>
    %293 = tpu.matmul %267, %292, %cst_257 {dimension_numbers = #tpu.dot_dimension_numbers<[1], [0], [0], [1], [0, 0, 1, 1], [], []>} : vector<16x144xf32>, vector<144x8xf32>, vector<16x8xf32> -> vector<16x8xf32>
    %c1_258 = arith.constant 1 : index
    %c0_259 = arith.constant 0 : index
    %c0_260 = arith.constant 0 : index
    %294 = vector.load %arg25[%c1_258, %c0_259, %c0_260] : memref<2x16x144xf32, #tpu.memory_space<vmem>>, vector<1x16x144xf32>
    %295 = vector.shape_cast %294 : vector<1x16x144xf32> to vector<16x144xf32>
    %c0_261 = arith.constant 0 : index
    %c0_262 = arith.constant 0 : index
    %c0_263 = arith.constant 0 : index
    %296 = vector.load %arg5[%c0_261, %c0_262, %c0_263] : memref<9x8x8xf32, #tpu.memory_space<vmem>>, vector<1x8x8xf32>
    %297 = vector.shape_cast %296 : vector<1x8x8xf32> to vector<8x8xf32>
    %cst_264 = arith.constant dense<0.000000e+00> : vector<16x8xf32>
    %298 = tpu.matmul %265, %297, %cst_264 {dimension_numbers = #tpu.dot_dimension_numbers<[1], [0], [0], [1], [0, 0, 1, 1], [], []>} : vector<16x8xf32>, vector<8x8xf32>, vector<16x8xf32> -> vector<16x8xf32>
    %c1_265 = arith.constant 1 : index
    %c0_266 = arith.constant 0 : index
    %c0_267 = arith.constant 0 : index
    %299 = vector.load %arg5[%c1_265, %c0_266, %c0_267] : memref<9x8x8xf32, #tpu.memory_space<vmem>>, vector<1x8x8xf32>
    %300 = vector.shape_cast %299 : vector<1x8x8xf32> to vector<8x8xf32>
    %cst_268 = arith.constant dense<0.000000e+00> : vector<16x8xf32>
    %301 = tpu.matmul %265, %300, %cst_268 {dimension_numbers = #tpu.dot_dimension_numbers<[1], [0], [0], [1], [0, 0, 1, 1], [], []>} : vector<16x8xf32>, vector<8x8xf32>, vector<16x8xf32> -> vector<16x8xf32>
    %c2_269 = arith.constant 2 : index
    %c0_270 = arith.constant 0 : index
    %c0_271 = arith.constant 0 : index
    %302 = vector.load %arg5[%c2_269, %c0_270, %c0_271] : memref<9x8x8xf32, #tpu.memory_space<vmem>>, vector<1x8x8xf32>
    %303 = vector.shape_cast %302 : vector<1x8x8xf32> to vector<8x8xf32>
    %cst_272 = arith.constant dense<0.000000e+00> : vector<16x8xf32>
    %304 = tpu.matmul %265, %303, %cst_272 {dimension_numbers = #tpu.dot_dimension_numbers<[1], [0], [0], [1], [0, 0, 1, 1], [], []>} : vector<16x8xf32>, vector<8x8xf32>, vector<16x8xf32> -> vector<16x8xf32>
    %c3_273 = arith.constant 3 : index
    %c0_274 = arith.constant 0 : index
    %c0_275 = arith.constant 0 : index
    %305 = vector.load %arg5[%c3_273, %c0_274, %c0_275] : memref<9x8x8xf32, #tpu.memory_space<vmem>>, vector<1x8x8xf32>
    %306 = vector.shape_cast %305 : vector<1x8x8xf32> to vector<8x8xf32>
    %cst_276 = arith.constant dense<0.000000e+00> : vector<16x8xf32>
    %307 = tpu.matmul %265, %306, %cst_276 {dimension_numbers = #tpu.dot_dimension_numbers<[1], [0], [0], [1], [0, 0, 1, 1], [], []>} : vector<16x8xf32>, vector<8x8xf32>, vector<16x8xf32> -> vector<16x8xf32>
    %c5_277 = arith.constant 5 : index
    %c0_278 = arith.constant 0 : index
    %c0_279 = arith.constant 0 : index
    %308 = vector.load %arg5[%c5_277, %c0_278, %c0_279] : memref<9x8x8xf32, #tpu.memory_space<vmem>>, vector<1x8x8xf32>
    %309 = vector.shape_cast %308 : vector<1x8x8xf32> to vector<8x8xf32>
    %cst_280 = arith.constant dense<0.000000e+00> : vector<16x8xf32>
    %310 = tpu.matmul %265, %309, %cst_280 {dimension_numbers = #tpu.dot_dimension_numbers<[1], [0], [0], [1], [0, 0, 1, 1], [], []>} : vector<16x8xf32>, vector<8x8xf32>, vector<16x8xf32> -> vector<16x8xf32>
    %c6_281 = arith.constant 6 : index
    %c0_282 = arith.constant 0 : index
    %c0_283 = arith.constant 0 : index
    %311 = vector.load %arg5[%c6_281, %c0_282, %c0_283] : memref<9x8x8xf32, #tpu.memory_space<vmem>>, vector<1x8x8xf32>
    %312 = vector.shape_cast %311 : vector<1x8x8xf32> to vector<8x8xf32>
    %cst_284 = arith.constant dense<0.000000e+00> : vector<16x8xf32>
    %313 = tpu.matmul %265, %312, %cst_284 {dimension_numbers = #tpu.dot_dimension_numbers<[1], [0], [0], [1], [0, 0, 1, 1], [], []>} : vector<16x8xf32>, vector<8x8xf32>, vector<16x8xf32> -> vector<16x8xf32>
    %c7_285 = arith.constant 7 : index
    %c0_286 = arith.constant 0 : index
    %c0_287 = arith.constant 0 : index
    %314 = vector.load %arg5[%c7_285, %c0_286, %c0_287] : memref<9x8x8xf32, #tpu.memory_space<vmem>>, vector<1x8x8xf32>
    %315 = vector.shape_cast %314 : vector<1x8x8xf32> to vector<8x8xf32>
    %cst_288 = arith.constant dense<0.000000e+00> : vector<16x8xf32>
    %316 = tpu.matmul %265, %315, %cst_288 {dimension_numbers = #tpu.dot_dimension_numbers<[1], [0], [0], [1], [0, 0, 1, 1], [], []>} : vector<16x8xf32>, vector<8x8xf32>, vector<16x8xf32> -> vector<16x8xf32>
    %c8_289 = arith.constant 8 : index
    %c0_290 = arith.constant 0 : index
    %c0_291 = arith.constant 0 : index
    %317 = vector.load %arg5[%c8_289, %c0_290, %c0_291] : memref<9x8x8xf32, #tpu.memory_space<vmem>>, vector<1x8x8xf32>
    %318 = vector.shape_cast %317 : vector<1x8x8xf32> to vector<8x8xf32>
    %cst_292 = arith.constant dense<0.000000e+00> : vector<16x8xf32>
    %319 = tpu.matmul %265, %318, %cst_292 {dimension_numbers = #tpu.dot_dimension_numbers<[1], [0], [0], [1], [0, 0, 1, 1], [], []>} : vector<16x8xf32>, vector<8x8xf32>, vector<16x8xf32> -> vector<16x8xf32>
    %320 = tpu.concatenate %298, %301, %304, %307, %265, %310, %313, %316, %319 in 0 : vector<16x8xf32>, vector<16x8xf32>, vector<16x8xf32>, vector<16x8xf32>, vector<16x8xf32>, vector<16x8xf32>, vector<16x8xf32>, vector<16x8xf32>, vector<16x8xf32> -> vector<144x8xf32>
    %cst_293 = arith.constant dense<0.000000e+00> : vector<16x8xf32>
    %321 = tpu.matmul %295, %320, %cst_293 {dimension_numbers = #tpu.dot_dimension_numbers<[1], [0], [0], [1], [0, 0, 1, 1], [], []>} : vector<16x144xf32>, vector<144x8xf32>, vector<16x8xf32> -> vector<16x8xf32>
    %322 = arith.addf %293, %321 : vector<16x8xf32>
    %c0_294 = arith.constant 0 : index
    %c0_295 = arith.constant 0 : index
    %323 = vector.load %arg26[%c0_294, %c0_295] : memref<16x1xf32, #tpu.memory_space<vmem>>, vector<16x1xf32>
    %324 = vector.broadcast %323 : vector<16x1xf32> to vector<16x8xf32>
    %325 = arith.addf %322, %324 : vector<16x8xf32>
    %cst_296 = arith.constant 0.000000e+00 : f32
    %326 = vector.broadcast %cst_296 : f32 to vector<16x8xf32>
    %327 = arith.maximumf %325, %326 : vector<16x8xf32>
    %c0_297 = arith.constant 0 : index
    %c0_298 = arith.constant 0 : index
    %328 = vector.load %arg10[%c0_297, %c0_298] : memref<8x32xf32, #tpu.memory_space<vmem>>, vector<8x32xf32>
    %cst_299 = arith.constant dense<0.000000e+00> : vector<16x32xf32>
    %329 = tpu.matmul %327, %328, %cst_299 {dimension_numbers = #tpu.dot_dimension_numbers<[1], [0], [0], [1], [0, 0, 1, 1], [], []>} : vector<16x8xf32>, vector<8x32xf32>, vector<16x32xf32> -> vector<16x32xf32>
    %c0_300 = arith.constant 0 : index
    %c0_301 = arith.constant 0 : index
    %c0_302 = arith.constant 0 : index
    %330 = vector.load %arg27[%c0_300, %c0_301, %c0_302] : memref<2x16x144xf32, #tpu.memory_space<vmem>>, vector<1x16x144xf32>
    %331 = vector.shape_cast %330 : vector<1x16x144xf32> to vector<16x144xf32>
    %c0_303 = arith.constant 0 : index
    %c0_304 = arith.constant 0 : index
    %c0_305 = arith.constant 0 : index
    %332 = vector.load %arg4[%c0_303, %c0_304, %c0_305] : memref<9x32x32xf32, #tpu.memory_space<vmem>>, vector<1x32x32xf32>
    %333 = vector.shape_cast %332 : vector<1x32x32xf32> to vector<32x32xf32>
    %cst_306 = arith.constant dense<0.000000e+00> : vector<16x32xf32>
    %334 = tpu.matmul %187, %333, %cst_306 {dimension_numbers = #tpu.dot_dimension_numbers<[1], [0], [0], [1], [0, 0, 1, 1], [], []>} : vector<16x32xf32>, vector<32x32xf32>, vector<16x32xf32> -> vector<16x32xf32>
    %c1_307 = arith.constant 1 : index
    %c0_308 = arith.constant 0 : index
    %c0_309 = arith.constant 0 : index
    %335 = vector.load %arg4[%c1_307, %c0_308, %c0_309] : memref<9x32x32xf32, #tpu.memory_space<vmem>>, vector<1x32x32xf32>
    %336 = vector.shape_cast %335 : vector<1x32x32xf32> to vector<32x32xf32>
    %cst_310 = arith.constant dense<0.000000e+00> : vector<16x32xf32>
    %337 = tpu.matmul %187, %336, %cst_310 {dimension_numbers = #tpu.dot_dimension_numbers<[1], [0], [0], [1], [0, 0, 1, 1], [], []>} : vector<16x32xf32>, vector<32x32xf32>, vector<16x32xf32> -> vector<16x32xf32>
    %c2_311 = arith.constant 2 : index
    %c0_312 = arith.constant 0 : index
    %c0_313 = arith.constant 0 : index
    %338 = vector.load %arg4[%c2_311, %c0_312, %c0_313] : memref<9x32x32xf32, #tpu.memory_space<vmem>>, vector<1x32x32xf32>
    %339 = vector.shape_cast %338 : vector<1x32x32xf32> to vector<32x32xf32>
    %cst_314 = arith.constant dense<0.000000e+00> : vector<16x32xf32>
    %340 = tpu.matmul %187, %339, %cst_314 {dimension_numbers = #tpu.dot_dimension_numbers<[1], [0], [0], [1], [0, 0, 1, 1], [], []>} : vector<16x32xf32>, vector<32x32xf32>, vector<16x32xf32> -> vector<16x32xf32>
    %c3_315 = arith.constant 3 : index
    %c0_316 = arith.constant 0 : index
    %c0_317 = arith.constant 0 : index
    %341 = vector.load %arg4[%c3_315, %c0_316, %c0_317] : memref<9x32x32xf32, #tpu.memory_space<vmem>>, vector<1x32x32xf32>
    %342 = vector.shape_cast %341 : vector<1x32x32xf32> to vector<32x32xf32>
    %cst_318 = arith.constant dense<0.000000e+00> : vector<16x32xf32>
    %343 = tpu.matmul %187, %342, %cst_318 {dimension_numbers = #tpu.dot_dimension_numbers<[1], [0], [0], [1], [0, 0, 1, 1], [], []>} : vector<16x32xf32>, vector<32x32xf32>, vector<16x32xf32> -> vector<16x32xf32>
    %c5_319 = arith.constant 5 : index
    %c0_320 = arith.constant 0 : index
    %c0_321 = arith.constant 0 : index
    %344 = vector.load %arg4[%c5_319, %c0_320, %c0_321] : memref<9x32x32xf32, #tpu.memory_space<vmem>>, vector<1x32x32xf32>
    %345 = vector.shape_cast %344 : vector<1x32x32xf32> to vector<32x32xf32>
    %cst_322 = arith.constant dense<0.000000e+00> : vector<16x32xf32>
    %346 = tpu.matmul %187, %345, %cst_322 {dimension_numbers = #tpu.dot_dimension_numbers<[1], [0], [0], [1], [0, 0, 1, 1], [], []>} : vector<16x32xf32>, vector<32x32xf32>, vector<16x32xf32> -> vector<16x32xf32>
    %c6_323 = arith.constant 6 : index
    %c0_324 = arith.constant 0 : index
    %c0_325 = arith.constant 0 : index
    %347 = vector.load %arg4[%c6_323, %c0_324, %c0_325] : memref<9x32x32xf32, #tpu.memory_space<vmem>>, vector<1x32x32xf32>
    %348 = vector.shape_cast %347 : vector<1x32x32xf32> to vector<32x32xf32>
    %cst_326 = arith.constant dense<0.000000e+00> : vector<16x32xf32>
    %349 = tpu.matmul %187, %348, %cst_326 {dimension_numbers = #tpu.dot_dimension_numbers<[1], [0], [0], [1], [0, 0, 1, 1], [], []>} : vector<16x32xf32>, vector<32x32xf32>, vector<16x32xf32> -> vector<16x32xf32>
    %c7_327 = arith.constant 7 : index
    %c0_328 = arith.constant 0 : index
    %c0_329 = arith.constant 0 : index
    %350 = vector.load %arg4[%c7_327, %c0_328, %c0_329] : memref<9x32x32xf32, #tpu.memory_space<vmem>>, vector<1x32x32xf32>
    %351 = vector.shape_cast %350 : vector<1x32x32xf32> to vector<32x32xf32>
    %cst_330 = arith.constant dense<0.000000e+00> : vector<16x32xf32>
    %352 = tpu.matmul %187, %351, %cst_330 {dimension_numbers = #tpu.dot_dimension_numbers<[1], [0], [0], [1], [0, 0, 1, 1], [], []>} : vector<16x32xf32>, vector<32x32xf32>, vector<16x32xf32> -> vector<16x32xf32>
    %c8_331 = arith.constant 8 : index
    %c0_332 = arith.constant 0 : index
    %c0_333 = arith.constant 0 : index
    %353 = vector.load %arg4[%c8_331, %c0_332, %c0_333] : memref<9x32x32xf32, #tpu.memory_space<vmem>>, vector<1x32x32xf32>
    %354 = vector.shape_cast %353 : vector<1x32x32xf32> to vector<32x32xf32>
    %cst_334 = arith.constant dense<0.000000e+00> : vector<16x32xf32>
    %355 = tpu.matmul %187, %354, %cst_334 {dimension_numbers = #tpu.dot_dimension_numbers<[1], [0], [0], [1], [0, 0, 1, 1], [], []>} : vector<16x32xf32>, vector<32x32xf32>, vector<16x32xf32> -> vector<16x32xf32>
    %356 = tpu.concatenate %334, %337, %340, %343, %187, %346, %349, %352, %355 in 0 : vector<16x32xf32>, vector<16x32xf32>, vector<16x32xf32>, vector<16x32xf32>, vector<16x32xf32>, vector<16x32xf32>, vector<16x32xf32>, vector<16x32xf32>, vector<16x32xf32> -> vector<144x32xf32>
    %cst_335 = arith.constant dense<0.000000e+00> : vector<16x32xf32>
    %357 = tpu.matmul %331, %356, %cst_335 {dimension_numbers = #tpu.dot_dimension_numbers<[1], [0], [0], [1], [0, 0, 1, 1], [], []>} : vector<16x144xf32>, vector<144x32xf32>, vector<16x32xf32> -> vector<16x32xf32>
    %c1_336 = arith.constant 1 : index
    %c0_337 = arith.constant 0 : index
    %c0_338 = arith.constant 0 : index
    %358 = vector.load %arg27[%c1_336, %c0_337, %c0_338] : memref<2x16x144xf32, #tpu.memory_space<vmem>>, vector<1x16x144xf32>
    %359 = vector.shape_cast %358 : vector<1x16x144xf32> to vector<16x144xf32>
    %c0_339 = arith.constant 0 : index
    %c0_340 = arith.constant 0 : index
    %c0_341 = arith.constant 0 : index
    %360 = vector.load %arg4[%c0_339, %c0_340, %c0_341] : memref<9x32x32xf32, #tpu.memory_space<vmem>>, vector<1x32x32xf32>
    %361 = vector.shape_cast %360 : vector<1x32x32xf32> to vector<32x32xf32>
    %cst_342 = arith.constant dense<0.000000e+00> : vector<16x32xf32>
    %362 = tpu.matmul %329, %361, %cst_342 {dimension_numbers = #tpu.dot_dimension_numbers<[1], [0], [0], [1], [0, 0, 1, 1], [], []>} : vector<16x32xf32>, vector<32x32xf32>, vector<16x32xf32> -> vector<16x32xf32>
    %c1_343 = arith.constant 1 : index
    %c0_344 = arith.constant 0 : index
    %c0_345 = arith.constant 0 : index
    %363 = vector.load %arg4[%c1_343, %c0_344, %c0_345] : memref<9x32x32xf32, #tpu.memory_space<vmem>>, vector<1x32x32xf32>
    %364 = vector.shape_cast %363 : vector<1x32x32xf32> to vector<32x32xf32>
    %cst_346 = arith.constant dense<0.000000e+00> : vector<16x32xf32>
    %365 = tpu.matmul %329, %364, %cst_346 {dimension_numbers = #tpu.dot_dimension_numbers<[1], [0], [0], [1], [0, 0, 1, 1], [], []>} : vector<16x32xf32>, vector<32x32xf32>, vector<16x32xf32> -> vector<16x32xf32>
    %c2_347 = arith.constant 2 : index
    %c0_348 = arith.constant 0 : index
    %c0_349 = arith.constant 0 : index
    %366 = vector.load %arg4[%c2_347, %c0_348, %c0_349] : memref<9x32x32xf32, #tpu.memory_space<vmem>>, vector<1x32x32xf32>
    %367 = vector.shape_cast %366 : vector<1x32x32xf32> to vector<32x32xf32>
    %cst_350 = arith.constant dense<0.000000e+00> : vector<16x32xf32>
    %368 = tpu.matmul %329, %367, %cst_350 {dimension_numbers = #tpu.dot_dimension_numbers<[1], [0], [0], [1], [0, 0, 1, 1], [], []>} : vector<16x32xf32>, vector<32x32xf32>, vector<16x32xf32> -> vector<16x32xf32>
    %c3_351 = arith.constant 3 : index
    %c0_352 = arith.constant 0 : index
    %c0_353 = arith.constant 0 : index
    %369 = vector.load %arg4[%c3_351, %c0_352, %c0_353] : memref<9x32x32xf32, #tpu.memory_space<vmem>>, vector<1x32x32xf32>
    %370 = vector.shape_cast %369 : vector<1x32x32xf32> to vector<32x32xf32>
    %cst_354 = arith.constant dense<0.000000e+00> : vector<16x32xf32>
    %371 = tpu.matmul %329, %370, %cst_354 {dimension_numbers = #tpu.dot_dimension_numbers<[1], [0], [0], [1], [0, 0, 1, 1], [], []>} : vector<16x32xf32>, vector<32x32xf32>, vector<16x32xf32> -> vector<16x32xf32>
    %c5_355 = arith.constant 5 : index
    %c0_356 = arith.constant 0 : index
    %c0_357 = arith.constant 0 : index
    %372 = vector.load %arg4[%c5_355, %c0_356, %c0_357] : memref<9x32x32xf32, #tpu.memory_space<vmem>>, vector<1x32x32xf32>
    %373 = vector.shape_cast %372 : vector<1x32x32xf32> to vector<32x32xf32>
    %cst_358 = arith.constant dense<0.000000e+00> : vector<16x32xf32>
    %374 = tpu.matmul %329, %373, %cst_358 {dimension_numbers = #tpu.dot_dimension_numbers<[1], [0], [0], [1], [0, 0, 1, 1], [], []>} : vector<16x32xf32>, vector<32x32xf32>, vector<16x32xf32> -> vector<16x32xf32>
    %c6_359 = arith.constant 6 : index
    %c0_360 = arith.constant 0 : index
    %c0_361 = arith.constant 0 : index
    %375 = vector.load %arg4[%c6_359, %c0_360, %c0_361] : memref<9x32x32xf32, #tpu.memory_space<vmem>>, vector<1x32x32xf32>
    %376 = vector.shape_cast %375 : vector<1x32x32xf32> to vector<32x32xf32>
    %cst_362 = arith.constant dense<0.000000e+00> : vector<16x32xf32>
    %377 = tpu.matmul %329, %376, %cst_362 {dimension_numbers = #tpu.dot_dimension_numbers<[1], [0], [0], [1], [0, 0, 1, 1], [], []>} : vector<16x32xf32>, vector<32x32xf32>, vector<16x32xf32> -> vector<16x32xf32>
    %c7_363 = arith.constant 7 : index
    %c0_364 = arith.constant 0 : index
    %c0_365 = arith.constant 0 : index
    %378 = vector.load %arg4[%c7_363, %c0_364, %c0_365] : memref<9x32x32xf32, #tpu.memory_space<vmem>>, vector<1x32x32xf32>
    %379 = vector.shape_cast %378 : vector<1x32x32xf32> to vector<32x32xf32>
    %cst_366 = arith.constant dense<0.000000e+00> : vector<16x32xf32>
    %380 = tpu.matmul %329, %379, %cst_366 {dimension_numbers = #tpu.dot_dimension_numbers<[1], [0], [0], [1], [0, 0, 1, 1], [], []>} : vector<16x32xf32>, vector<32x32xf32>, vector<16x32xf32> -> vector<16x32xf32>
    %c8_367 = arith.constant 8 : index
    %c0_368 = arith.constant 0 : index
    %c0_369 = arith.constant 0 : index
    %381 = vector.load %arg4[%c8_367, %c0_368, %c0_369] : memref<9x32x32xf32, #tpu.memory_space<vmem>>, vector<1x32x32xf32>
    %382 = vector.shape_cast %381 : vector<1x32x32xf32> to vector<32x32xf32>
    %cst_370 = arith.constant dense<0.000000e+00> : vector<16x32xf32>
    %383 = tpu.matmul %329, %382, %cst_370 {dimension_numbers = #tpu.dot_dimension_numbers<[1], [0], [0], [1], [0, 0, 1, 1], [], []>} : vector<16x32xf32>, vector<32x32xf32>, vector<16x32xf32> -> vector<16x32xf32>
    %384 = tpu.concatenate %362, %365, %368, %371, %329, %374, %377, %380, %383 in 0 : vector<16x32xf32>, vector<16x32xf32>, vector<16x32xf32>, vector<16x32xf32>, vector<16x32xf32>, vector<16x32xf32>, vector<16x32xf32>, vector<16x32xf32>, vector<16x32xf32> -> vector<144x32xf32>
    %cst_371 = arith.constant dense<0.000000e+00> : vector<16x32xf32>
    %385 = tpu.matmul %359, %384, %cst_371 {dimension_numbers = #tpu.dot_dimension_numbers<[1], [0], [0], [1], [0, 0, 1, 1], [], []>} : vector<16x144xf32>, vector<144x32xf32>, vector<16x32xf32> -> vector<16x32xf32>
    %386 = arith.addf %357, %385 : vector<16x32xf32>
    %c0_372 = arith.constant 0 : index
    %c0_373 = arith.constant 0 : index
    %387 = vector.load %arg28[%c0_372, %c0_373] : memref<16x1xf32, #tpu.memory_space<vmem>>, vector<16x1xf32>
    %388 = vector.broadcast %387 : vector<16x1xf32> to vector<16x32xf32>
    %389 = arith.addf %386, %388 : vector<16x32xf32>
    %cst_374 = arith.constant 0.000000e+00 : f32
    %390 = vector.broadcast %cst_374 : f32 to vector<16x32xf32>
    %391 = arith.maximumf %389, %390 : vector<16x32xf32>
    %c0_375 = arith.constant 0 : index
    %c0_376 = arith.constant 0 : index
    %392 = vector.load %arg11[%c0_375, %c0_376] : memref<32x128xf32, #tpu.memory_space<vmem>>, vector<32x128xf32>
    %cst_377 = arith.constant dense<0.000000e+00> : vector<16x128xf32>
    %393 = tpu.matmul %391, %392, %cst_377 {dimension_numbers = #tpu.dot_dimension_numbers<[1], [0], [0], [1], [0, 0, 1, 1], [], []>} : vector<16x32xf32>, vector<32x128xf32>, vector<16x128xf32> -> vector<16x128xf32>
    %c0_378 = arith.constant 0 : index
    %c0_379 = arith.constant 0 : index
    %c0_380 = arith.constant 0 : index
    %394 = vector.load %arg29[%c0_378, %c0_379, %c0_380] : memref<2x16x144xf32, #tpu.memory_space<vmem>>, vector<1x16x144xf32>
    %395 = vector.shape_cast %394 : vector<1x16x144xf32> to vector<16x144xf32>
    %c9_i32_381 = arith.constant 9 : i32
    %396 = tpu.dynamic_rotate %138 by %c9_i32_381 dim 1 : vector<16x128xf32>, i32 -> vector<16x128xf32>
    %c0_382 = arith.constant 0 : index
    %c0_383 = arith.constant 0 : index
    %397 = vector.load %arg3[%c0_382, %c0_383] : memref<9x128xf32, #tpu.memory_space<vmem>>, vector<1x128xf32>
    %398 = vector.broadcast %397 : vector<1x128xf32> to vector<16x128xf32>
    %399 = arith.mulf %396, %398 : vector<16x128xf32>
    %c8_i32_384 = arith.constant 8 : i32
    %400 = tpu.dynamic_rotate %138 by %c8_i32_384 dim 1 : vector<16x128xf32>, i32 -> vector<16x128xf32>
    %c1_385 = arith.constant 1 : index
    %c0_386 = arith.constant 0 : index
    %401 = vector.load %arg3[%c1_385, %c0_386] : memref<9x128xf32, #tpu.memory_space<vmem>>, vector<1x128xf32>
    %402 = vector.broadcast %401 : vector<1x128xf32> to vector<16x128xf32>
    %403 = arith.mulf %400, %402 : vector<16x128xf32>
    %c7_i32_387 = arith.constant 7 : i32
    %404 = tpu.dynamic_rotate %138 by %c7_i32_387 dim 1 : vector<16x128xf32>, i32 -> vector<16x128xf32>
    %c2_388 = arith.constant 2 : index
    %c0_389 = arith.constant 0 : index
    %405 = vector.load %arg3[%c2_388, %c0_389] : memref<9x128xf32, #tpu.memory_space<vmem>>, vector<1x128xf32>
    %406 = vector.broadcast %405 : vector<1x128xf32> to vector<16x128xf32>
    %407 = arith.mulf %404, %406 : vector<16x128xf32>
    %c1_i32_390 = arith.constant 1 : i32
    %408 = tpu.dynamic_rotate %138 by %c1_i32_390 dim 1 : vector<16x128xf32>, i32 -> vector<16x128xf32>
    %c3_391 = arith.constant 3 : index
    %c0_392 = arith.constant 0 : index
    %409 = vector.load %arg3[%c3_391, %c0_392] : memref<9x128xf32, #tpu.memory_space<vmem>>, vector<1x128xf32>
    %410 = vector.broadcast %409 : vector<1x128xf32> to vector<16x128xf32>
    %411 = arith.mulf %408, %410 : vector<16x128xf32>
    %c127_i32_393 = arith.constant 127 : i32
    %412 = tpu.dynamic_rotate %138 by %c127_i32_393 dim 1 : vector<16x128xf32>, i32 -> vector<16x128xf32>
    %c5_394 = arith.constant 5 : index
    %c0_395 = arith.constant 0 : index
    %413 = vector.load %arg3[%c5_394, %c0_395] : memref<9x128xf32, #tpu.memory_space<vmem>>, vector<1x128xf32>
    %414 = vector.broadcast %413 : vector<1x128xf32> to vector<16x128xf32>
    %415 = arith.mulf %412, %414 : vector<16x128xf32>
    %c121_i32_396 = arith.constant 121 : i32
    %416 = tpu.dynamic_rotate %138 by %c121_i32_396 dim 1 : vector<16x128xf32>, i32 -> vector<16x128xf32>
    %c6_397 = arith.constant 6 : index
    %c0_398 = arith.constant 0 : index
    %417 = vector.load %arg3[%c6_397, %c0_398] : memref<9x128xf32, #tpu.memory_space<vmem>>, vector<1x128xf32>
    %418 = vector.broadcast %417 : vector<1x128xf32> to vector<16x128xf32>
    %419 = arith.mulf %416, %418 : vector<16x128xf32>
    %c120_i32_399 = arith.constant 120 : i32
    %420 = tpu.dynamic_rotate %138 by %c120_i32_399 dim 1 : vector<16x128xf32>, i32 -> vector<16x128xf32>
    %c7_400 = arith.constant 7 : index
    %c0_401 = arith.constant 0 : index
    %421 = vector.load %arg3[%c7_400, %c0_401] : memref<9x128xf32, #tpu.memory_space<vmem>>, vector<1x128xf32>
    %422 = vector.broadcast %421 : vector<1x128xf32> to vector<16x128xf32>
    %423 = arith.mulf %420, %422 : vector<16x128xf32>
    %c119_i32_402 = arith.constant 119 : i32
    %424 = tpu.dynamic_rotate %138 by %c119_i32_402 dim 1 : vector<16x128xf32>, i32 -> vector<16x128xf32>
    %c8_403 = arith.constant 8 : index
    %c0_404 = arith.constant 0 : index
    %425 = vector.load %arg3[%c8_403, %c0_404] : memref<9x128xf32, #tpu.memory_space<vmem>>, vector<1x128xf32>
    %426 = vector.broadcast %425 : vector<1x128xf32> to vector<16x128xf32>
    %427 = arith.mulf %424, %426 : vector<16x128xf32>
    %428 = tpu.concatenate %399, %403, %407, %411, %138, %415, %419, %423, %427 in 0 : vector<16x128xf32>, vector<16x128xf32>, vector<16x128xf32>, vector<16x128xf32>, vector<16x128xf32>, vector<16x128xf32>, vector<16x128xf32>, vector<16x128xf32>, vector<16x128xf32> -> vector<144x128xf32>
    %cst_405 = arith.constant dense<0.000000e+00> : vector<16x128xf32>
    %429 = tpu.matmul %395, %428, %cst_405 {dimension_numbers = #tpu.dot_dimension_numbers<[1], [0], [0], [1], [0, 0, 1, 1], [], []>} : vector<16x144xf32>, vector<144x128xf32>, vector<16x128xf32> -> vector<16x128xf32>
    %c1_406 = arith.constant 1 : index
    %c0_407 = arith.constant 0 : index
    %c0_408 = arith.constant 0 : index
    %430 = vector.load %arg29[%c1_406, %c0_407, %c0_408] : memref<2x16x144xf32, #tpu.memory_space<vmem>>, vector<1x16x144xf32>
    %431 = vector.shape_cast %430 : vector<1x16x144xf32> to vector<16x144xf32>
    %c9_i32_409 = arith.constant 9 : i32
    %432 = tpu.dynamic_rotate %393 by %c9_i32_409 dim 1 : vector<16x128xf32>, i32 -> vector<16x128xf32>
    %c0_410 = arith.constant 0 : index
    %c0_411 = arith.constant 0 : index
    %433 = vector.load %arg3[%c0_410, %c0_411] : memref<9x128xf32, #tpu.memory_space<vmem>>, vector<1x128xf32>
    %434 = vector.broadcast %433 : vector<1x128xf32> to vector<16x128xf32>
    %435 = arith.mulf %432, %434 : vector<16x128xf32>
    %c8_i32_412 = arith.constant 8 : i32
    %436 = tpu.dynamic_rotate %393 by %c8_i32_412 dim 1 : vector<16x128xf32>, i32 -> vector<16x128xf32>
    %c1_413 = arith.constant 1 : index
    %c0_414 = arith.constant 0 : index
    %437 = vector.load %arg3[%c1_413, %c0_414] : memref<9x128xf32, #tpu.memory_space<vmem>>, vector<1x128xf32>
    %438 = vector.broadcast %437 : vector<1x128xf32> to vector<16x128xf32>
    %439 = arith.mulf %436, %438 : vector<16x128xf32>
    %c7_i32_415 = arith.constant 7 : i32
    %440 = tpu.dynamic_rotate %393 by %c7_i32_415 dim 1 : vector<16x128xf32>, i32 -> vector<16x128xf32>
    %c2_416 = arith.constant 2 : index
    %c0_417 = arith.constant 0 : index
    %441 = vector.load %arg3[%c2_416, %c0_417] : memref<9x128xf32, #tpu.memory_space<vmem>>, vector<1x128xf32>
    %442 = vector.broadcast %441 : vector<1x128xf32> to vector<16x128xf32>
    %443 = arith.mulf %440, %442 : vector<16x128xf32>
    %c1_i32_418 = arith.constant 1 : i32
    %444 = tpu.dynamic_rotate %393 by %c1_i32_418 dim 1 : vector<16x128xf32>, i32 -> vector<16x128xf32>
    %c3_419 = arith.constant 3 : index
    %c0_420 = arith.constant 0 : index
    %445 = vector.load %arg3[%c3_419, %c0_420] : memref<9x128xf32, #tpu.memory_space<vmem>>, vector<1x128xf32>
    %446 = vector.broadcast %445 : vector<1x128xf32> to vector<16x128xf32>
    %447 = arith.mulf %444, %446 : vector<16x128xf32>
    %c127_i32_421 = arith.constant 127 : i32
    %448 = tpu.dynamic_rotate %393 by %c127_i32_421 dim 1 : vector<16x128xf32>, i32 -> vector<16x128xf32>
    %c5_422 = arith.constant 5 : index
    %c0_423 = arith.constant 0 : index
    %449 = vector.load %arg3[%c5_422, %c0_423] : memref<9x128xf32, #tpu.memory_space<vmem>>, vector<1x128xf32>
    %450 = vector.broadcast %449 : vector<1x128xf32> to vector<16x128xf32>
    %451 = arith.mulf %448, %450 : vector<16x128xf32>
    %c121_i32_424 = arith.constant 121 : i32
    %452 = tpu.dynamic_rotate %393 by %c121_i32_424 dim 1 : vector<16x128xf32>, i32 -> vector<16x128xf32>
    %c6_425 = arith.constant 6 : index
    %c0_426 = arith.constant 0 : index
    %453 = vector.load %arg3[%c6_425, %c0_426] : memref<9x128xf32, #tpu.memory_space<vmem>>, vector<1x128xf32>
    %454 = vector.broadcast %453 : vector<1x128xf32> to vector<16x128xf32>
    %455 = arith.mulf %452, %454 : vector<16x128xf32>
    %c120_i32_427 = arith.constant 120 : i32
    %456 = tpu.dynamic_rotate %393 by %c120_i32_427 dim 1 : vector<16x128xf32>, i32 -> vector<16x128xf32>
    %c7_428 = arith.constant 7 : index
    %c0_429 = arith.constant 0 : index
    %457 = vector.load %arg3[%c7_428, %c0_429] : memref<9x128xf32, #tpu.memory_space<vmem>>, vector<1x128xf32>
    %458 = vector.broadcast %457 : vector<1x128xf32> to vector<16x128xf32>
    %459 = arith.mulf %456, %458 : vector<16x128xf32>
    %c119_i32_430 = arith.constant 119 : i32
    %460 = tpu.dynamic_rotate %393 by %c119_i32_430 dim 1 : vector<16x128xf32>, i32 -> vector<16x128xf32>
    %c8_431 = arith.constant 8 : index
    %c0_432 = arith.constant 0 : index
    %461 = vector.load %arg3[%c8_431, %c0_432] : memref<9x128xf32, #tpu.memory_space<vmem>>, vector<1x128xf32>
    %462 = vector.broadcast %461 : vector<1x128xf32> to vector<16x128xf32>
    %463 = arith.mulf %460, %462 : vector<16x128xf32>
    %464 = tpu.concatenate %435, %439, %443, %447, %393, %451, %455, %459, %463 in 0 : vector<16x128xf32>, vector<16x128xf32>, vector<16x128xf32>, vector<16x128xf32>, vector<16x128xf32>, vector<16x128xf32>, vector<16x128xf32>, vector<16x128xf32>, vector<16x128xf32> -> vector<144x128xf32>
    %cst_433 = arith.constant dense<0.000000e+00> : vector<16x128xf32>
    %465 = tpu.matmul %431, %464, %cst_433 {dimension_numbers = #tpu.dot_dimension_numbers<[1], [0], [0], [1], [0, 0, 1, 1], [], []>} : vector<16x144xf32>, vector<144x128xf32>, vector<16x128xf32> -> vector<16x128xf32>
    %466 = arith.addf %429, %465 : vector<16x128xf32>
    %c0_434 = arith.constant 0 : index
    %c0_435 = arith.constant 0 : index
    %467 = vector.load %arg30[%c0_434, %c0_435] : memref<16x1xf32, #tpu.memory_space<vmem>>, vector<16x1xf32>
    %468 = vector.broadcast %467 : vector<16x1xf32> to vector<16x128xf32>
    %469 = arith.addf %466, %468 : vector<16x128xf32>
    %cst_436 = arith.constant 0.000000e+00 : f32
    %470 = vector.broadcast %cst_436 : f32 to vector<16x128xf32>
    %471 = arith.maximumf %469, %470 : vector<16x128xf32>
    %c0_437 = arith.constant 0 : index
    %c0_438 = arith.constant 0 : index
    %472 = vector.load %arg12[%c0_437, %c0_438] : memref<128x512xf32, #tpu.memory_space<vmem>>, vector<128x512xf32>
    %cst_439 = arith.constant dense<0.000000e+00> : vector<16x512xf32>
    %473 = tpu.matmul %471, %472, %cst_439 {dimension_numbers = #tpu.dot_dimension_numbers<[1], [0], [0], [1], [0, 0, 1, 1], [], []>} : vector<16x128xf32>, vector<128x512xf32>, vector<16x512xf32> -> vector<16x512xf32>
    %c0_440 = arith.constant 0 : index
    %c0_441 = arith.constant 0 : index
    %474 = vector.load %arg33[%c0_440, %c0_441] : memref<8x16xf32, #tpu.memory_space<vmem>>, vector<8x16xf32>
    %cst_442 = arith.constant dense<0.000000e+00> : vector<8x512xf32>
    %475 = tpu.matmul %474, %473, %cst_442 {dimension_numbers = #tpu.dot_dimension_numbers<[1], [0], [0], [1], [0, 0, 1, 1], [], []>} : vector<8x16xf32>, vector<16x512xf32>, vector<8x512xf32> -> vector<8x512xf32>
    %c0_443 = arith.constant 0 : index
    %c0_444 = arith.constant 0 : index
    %476 = vector.load %arg34[%c0_443, %c0_444] : memref<8x16xf32, #tpu.memory_space<vmem>>, vector<8x16xf32>
    %cst_445 = arith.constant dense<0.000000e+00> : vector<8x512xf32>
    %477 = tpu.matmul %476, %81, %cst_445 {dimension_numbers = #tpu.dot_dimension_numbers<[1], [0], [0], [1], [0, 0, 1, 1], [], []>} : vector<8x16xf32>, vector<16x512xf32>, vector<8x512xf32> -> vector<8x512xf32>
    %478 = arith.addf %475, %477 : vector<8x512xf32>
    %c0_446 = arith.constant 0 : index
    %c0_447 = arith.constant 0 : index
    %479 = vector.load %arg35[%c0_446, %c0_447] : memref<8x1xf32, #tpu.memory_space<vmem>>, vector<8x1xf32>
    %480 = vector.broadcast %479 : vector<8x1xf32> to vector<8x512xf32>
    %481 = arith.addf %478, %480 : vector<8x512xf32>
    %cst_448 = arith.constant 0.000000e+00 : f32
    %482 = vector.broadcast %cst_448 : f32 to vector<8x512xf32>
    %483 = arith.maximumf %481, %482 : vector<8x512xf32>
    %c0_449 = arith.constant 0 : index
    %c0_450 = arith.constant 0 : index
    %484 = vector.load %arg36[%c0_449, %c0_450] : memref<1x8xf32, #tpu.memory_space<vmem>>, vector<1x8xf32>
    %cst_451 = arith.constant dense<0.000000e+00> : vector<1x512xf32>
    %485 = tpu.matmul %484, %483, %cst_451 {dimension_numbers = #tpu.dot_dimension_numbers<[1], [0], [0], [1], [0, 0, 1, 1], [], []>} : vector<1x8xf32>, vector<8x512xf32>, vector<1x512xf32> -> vector<1x512xf32>
    %c0_452 = arith.constant 0 : index
    %c0_453 = arith.constant 0 : index
    %486 = vector.load %arg37[%c0_452, %c0_453] : memref<1x1xf32, #tpu.memory_space<vmem>>, vector<1x1xf32>
    %487 = vector.broadcast %486 : vector<1x1xf32> to vector<1x512xf32>
    %488 = arith.addf %485, %487 : vector<1x512xf32>
    %cst_454 = arith.constant 0.000000e+00 : f32
    %489 = vector.broadcast %cst_454 : f32 to vector<1x512xf32>
    %490 = arith.subf %489, %488 : vector<1x512xf32>
    %491 = math.exp %490 : vector<1x512xf32>
    %cst_455 = arith.constant 1.000000e+00 : f32
    %492 = vector.broadcast %cst_455 : f32 to vector<1x512xf32>
    %493 = arith.addf %492, %491 : vector<1x512xf32>
    %494 = tpu.reciprocal %493 {approx = true} : vector<1x512xf32> -> vector<1x512xf32>
    %495 = vector.broadcast %494 : vector<1x512xf32> to vector<16x512xf32>
    %496 = arith.mulf %81, %495 : vector<16x512xf32>
    %c0_456 = arith.constant 0 : index
    %c0_457 = arith.constant 0 : index
    %497 = vector.load %arg12[%c0_456, %c0_457] : memref<128x512xf32, #tpu.memory_space<vmem>>, vector<128x512xf32>
    %cst_458 = arith.constant dense<0.000000e+00> : vector<16x512xf32>
    %498 = tpu.matmul %471, %497, %cst_458 {dimension_numbers = #tpu.dot_dimension_numbers<[1], [0], [0], [1], [0, 0, 1, 1], [], []>} : vector<16x128xf32>, vector<128x512xf32>, vector<16x512xf32> -> vector<16x512xf32>
    %c0_459 = arith.constant 0 : index
    %c0_460 = arith.constant 0 : index
    %c0_461 = arith.constant 0 : index
    %499 = vector.load %arg31[%c0_459, %c0_460, %c0_461] : memref<2x8x144xf32, #tpu.memory_space<vmem>>, vector<1x8x144xf32>
    %500 = vector.shape_cast %499 : vector<1x8x144xf32> to vector<8x144xf32>
    %c17_i32_462 = arith.constant 17 : i32
    %501 = tpu.dynamic_rotate %496 by %c17_i32_462 dim 1 : vector<16x512xf32>, i32 -> vector<16x512xf32>
    %c0_463 = arith.constant 0 : index
    %c0_464 = arith.constant 0 : index
    %502 = vector.load %arg2[%c0_463, %c0_464] : memref<9x512xf32, #tpu.memory_space<vmem>>, vector<1x512xf32>
    %503 = vector.broadcast %502 : vector<1x512xf32> to vector<16x512xf32>
    %504 = arith.mulf %501, %503 : vector<16x512xf32>
    %c16_i32_465 = arith.constant 16 : i32
    %505 = tpu.dynamic_rotate %496 by %c16_i32_465 dim 1 : vector<16x512xf32>, i32 -> vector<16x512xf32>
    %c1_466 = arith.constant 1 : index
    %c0_467 = arith.constant 0 : index
    %506 = vector.load %arg2[%c1_466, %c0_467] : memref<9x512xf32, #tpu.memory_space<vmem>>, vector<1x512xf32>
    %507 = vector.broadcast %506 : vector<1x512xf32> to vector<16x512xf32>
    %508 = arith.mulf %505, %507 : vector<16x512xf32>
    %c15_i32_468 = arith.constant 15 : i32
    %509 = tpu.dynamic_rotate %496 by %c15_i32_468 dim 1 : vector<16x512xf32>, i32 -> vector<16x512xf32>
    %c2_469 = arith.constant 2 : index
    %c0_470 = arith.constant 0 : index
    %510 = vector.load %arg2[%c2_469, %c0_470] : memref<9x512xf32, #tpu.memory_space<vmem>>, vector<1x512xf32>
    %511 = vector.broadcast %510 : vector<1x512xf32> to vector<16x512xf32>
    %512 = arith.mulf %509, %511 : vector<16x512xf32>
    %c1_i32_471 = arith.constant 1 : i32
    %513 = tpu.dynamic_rotate %496 by %c1_i32_471 dim 1 : vector<16x512xf32>, i32 -> vector<16x512xf32>
    %c3_472 = arith.constant 3 : index
    %c0_473 = arith.constant 0 : index
    %514 = vector.load %arg2[%c3_472, %c0_473] : memref<9x512xf32, #tpu.memory_space<vmem>>, vector<1x512xf32>
    %515 = vector.broadcast %514 : vector<1x512xf32> to vector<16x512xf32>
    %516 = arith.mulf %513, %515 : vector<16x512xf32>
    %c511_i32_474 = arith.constant 511 : i32
    %517 = tpu.dynamic_rotate %496 by %c511_i32_474 dim 1 : vector<16x512xf32>, i32 -> vector<16x512xf32>
    %c5_475 = arith.constant 5 : index
    %c0_476 = arith.constant 0 : index
    %518 = vector.load %arg2[%c5_475, %c0_476] : memref<9x512xf32, #tpu.memory_space<vmem>>, vector<1x512xf32>
    %519 = vector.broadcast %518 : vector<1x512xf32> to vector<16x512xf32>
    %520 = arith.mulf %517, %519 : vector<16x512xf32>
    %c497_i32_477 = arith.constant 497 : i32
    %521 = tpu.dynamic_rotate %496 by %c497_i32_477 dim 1 : vector<16x512xf32>, i32 -> vector<16x512xf32>
    %c6_478 = arith.constant 6 : index
    %c0_479 = arith.constant 0 : index
    %522 = vector.load %arg2[%c6_478, %c0_479] : memref<9x512xf32, #tpu.memory_space<vmem>>, vector<1x512xf32>
    %523 = vector.broadcast %522 : vector<1x512xf32> to vector<16x512xf32>
    %524 = arith.mulf %521, %523 : vector<16x512xf32>
    %c496_i32_480 = arith.constant 496 : i32
    %525 = tpu.dynamic_rotate %496 by %c496_i32_480 dim 1 : vector<16x512xf32>, i32 -> vector<16x512xf32>
    %c7_481 = arith.constant 7 : index
    %c0_482 = arith.constant 0 : index
    %526 = vector.load %arg2[%c7_481, %c0_482] : memref<9x512xf32, #tpu.memory_space<vmem>>, vector<1x512xf32>
    %527 = vector.broadcast %526 : vector<1x512xf32> to vector<16x512xf32>
    %528 = arith.mulf %525, %527 : vector<16x512xf32>
    %c495_i32_483 = arith.constant 495 : i32
    %529 = tpu.dynamic_rotate %496 by %c495_i32_483 dim 1 : vector<16x512xf32>, i32 -> vector<16x512xf32>
    %c8_484 = arith.constant 8 : index
    %c0_485 = arith.constant 0 : index
    %530 = vector.load %arg2[%c8_484, %c0_485] : memref<9x512xf32, #tpu.memory_space<vmem>>, vector<1x512xf32>
    %531 = vector.broadcast %530 : vector<1x512xf32> to vector<16x512xf32>
    %532 = arith.mulf %529, %531 : vector<16x512xf32>
    %533 = tpu.concatenate %504, %508, %512, %516, %496, %520, %524, %528, %532 in 0 : vector<16x512xf32>, vector<16x512xf32>, vector<16x512xf32>, vector<16x512xf32>, vector<16x512xf32>, vector<16x512xf32>, vector<16x512xf32>, vector<16x512xf32>, vector<16x512xf32> -> vector<144x512xf32>
    %cst_486 = arith.constant dense<0.000000e+00> : vector<8x512xf32>
    %534 = tpu.matmul %500, %533, %cst_486 {dimension_numbers = #tpu.dot_dimension_numbers<[1], [0], [0], [1], [0, 0, 1, 1], [], []>} : vector<8x144xf32>, vector<144x512xf32>, vector<8x512xf32> -> vector<8x512xf32>
    %c1_487 = arith.constant 1 : index
    %c0_488 = arith.constant 0 : index
    %c0_489 = arith.constant 0 : index
    %535 = vector.load %arg31[%c1_487, %c0_488, %c0_489] : memref<2x8x144xf32, #tpu.memory_space<vmem>>, vector<1x8x144xf32>
    %536 = vector.shape_cast %535 : vector<1x8x144xf32> to vector<8x144xf32>
    %c17_i32_490 = arith.constant 17 : i32
    %537 = tpu.dynamic_rotate %498 by %c17_i32_490 dim 1 : vector<16x512xf32>, i32 -> vector<16x512xf32>
    %c0_491 = arith.constant 0 : index
    %c0_492 = arith.constant 0 : index
    %538 = vector.load %arg2[%c0_491, %c0_492] : memref<9x512xf32, #tpu.memory_space<vmem>>, vector<1x512xf32>
    %539 = vector.broadcast %538 : vector<1x512xf32> to vector<16x512xf32>
    %540 = arith.mulf %537, %539 : vector<16x512xf32>
    %c16_i32_493 = arith.constant 16 : i32
    %541 = tpu.dynamic_rotate %498 by %c16_i32_493 dim 1 : vector<16x512xf32>, i32 -> vector<16x512xf32>
    %c1_494 = arith.constant 1 : index
    %c0_495 = arith.constant 0 : index
    %542 = vector.load %arg2[%c1_494, %c0_495] : memref<9x512xf32, #tpu.memory_space<vmem>>, vector<1x512xf32>
    %543 = vector.broadcast %542 : vector<1x512xf32> to vector<16x512xf32>
    %544 = arith.mulf %541, %543 : vector<16x512xf32>
    %c15_i32_496 = arith.constant 15 : i32
    %545 = tpu.dynamic_rotate %498 by %c15_i32_496 dim 1 : vector<16x512xf32>, i32 -> vector<16x512xf32>
    %c2_497 = arith.constant 2 : index
    %c0_498 = arith.constant 0 : index
    %546 = vector.load %arg2[%c2_497, %c0_498] : memref<9x512xf32, #tpu.memory_space<vmem>>, vector<1x512xf32>
    %547 = vector.broadcast %546 : vector<1x512xf32> to vector<16x512xf32>
    %548 = arith.mulf %545, %547 : vector<16x512xf32>
    %c1_i32_499 = arith.constant 1 : i32
    %549 = tpu.dynamic_rotate %498 by %c1_i32_499 dim 1 : vector<16x512xf32>, i32 -> vector<16x512xf32>
    %c3_500 = arith.constant 3 : index
    %c0_501 = arith.constant 0 : index
    %550 = vector.load %arg2[%c3_500, %c0_501] : memref<9x512xf32, #tpu.memory_space<vmem>>, vector<1x512xf32>
    %551 = vector.broadcast %550 : vector<1x512xf32> to vector<16x512xf32>
    %552 = arith.mulf %549, %551 : vector<16x512xf32>
    %c511_i32_502 = arith.constant 511 : i32
    %553 = tpu.dynamic_rotate %498 by %c511_i32_502 dim 1 : vector<16x512xf32>, i32 -> vector<16x512xf32>
    %c5_503 = arith.constant 5 : index
    %c0_504 = arith.constant 0 : index
    %554 = vector.load %arg2[%c5_503, %c0_504] : memref<9x512xf32, #tpu.memory_space<vmem>>, vector<1x512xf32>
    %555 = vector.broadcast %554 : vector<1x512xf32> to vector<16x512xf32>
    %556 = arith.mulf %553, %555 : vector<16x512xf32>
    %c497_i32_505 = arith.constant 497 : i32
    %557 = tpu.dynamic_rotate %498 by %c497_i32_505 dim 1 : vector<16x512xf32>, i32 -> vector<16x512xf32>
    %c6_506 = arith.constant 6 : index
    %c0_507 = arith.constant 0 : index
    %558 = vector.load %arg2[%c6_506, %c0_507] : memref<9x512xf32, #tpu.memory_space<vmem>>, vector<1x512xf32>
    %559 = vector.broadcast %558 : vector<1x512xf32> to vector<16x512xf32>
    %560 = arith.mulf %557, %559 : vector<16x512xf32>
    %c496_i32_508 = arith.constant 496 : i32
    %561 = tpu.dynamic_rotate %498 by %c496_i32_508 dim 1 : vector<16x512xf32>, i32 -> vector<16x512xf32>
    %c7_509 = arith.constant 7 : index
    %c0_510 = arith.constant 0 : index
    %562 = vector.load %arg2[%c7_509, %c0_510] : memref<9x512xf32, #tpu.memory_space<vmem>>, vector<1x512xf32>
    %563 = vector.broadcast %562 : vector<1x512xf32> to vector<16x512xf32>
    %564 = arith.mulf %561, %563 : vector<16x512xf32>
    %c495_i32_511 = arith.constant 495 : i32
    %565 = tpu.dynamic_rotate %498 by %c495_i32_511 dim 1 : vector<16x512xf32>, i32 -> vector<16x512xf32>
    %c8_512 = arith.constant 8 : index
    %c0_513 = arith.constant 0 : index
    %566 = vector.load %arg2[%c8_512, %c0_513] : memref<9x512xf32, #tpu.memory_space<vmem>>, vector<1x512xf32>
    %567 = vector.broadcast %566 : vector<1x512xf32> to vector<16x512xf32>
    %568 = arith.mulf %565, %567 : vector<16x512xf32>
    %569 = tpu.concatenate %540, %544, %548, %552, %498, %556, %560, %564, %568 in 0 : vector<16x512xf32>, vector<16x512xf32>, vector<16x512xf32>, vector<16x512xf32>, vector<16x512xf32>, vector<16x512xf32>, vector<16x512xf32>, vector<16x512xf32>, vector<16x512xf32> -> vector<144x512xf32>
    %cst_514 = arith.constant dense<0.000000e+00> : vector<8x512xf32>
    %570 = tpu.matmul %536, %569, %cst_514 {dimension_numbers = #tpu.dot_dimension_numbers<[1], [0], [0], [1], [0, 0, 1, 1], [], []>} : vector<8x144xf32>, vector<144x512xf32>, vector<8x512xf32> -> vector<8x512xf32>
    %571 = arith.addf %534, %570 : vector<8x512xf32>
    %c0_515 = arith.constant 0 : index
    %c0_516 = arith.constant 0 : index
    %572 = vector.load %arg32[%c0_515, %c0_516] : memref<8x1xf32, #tpu.memory_space<vmem>>, vector<8x1xf32>
    %573 = vector.broadcast %572 : vector<8x1xf32> to vector<8x512xf32>
    %574 = arith.addf %571, %573 : vector<8x512xf32>
    %cst_517 = arith.constant 0.000000e+00 : f32
    %575 = vector.broadcast %cst_517 : f32 to vector<8x512xf32>
    %576 = arith.maximumf %574, %575 : vector<8x512xf32>
    %577 = arith.addf %576, %41 : vector<8x512xf32>
    %c0_518 = arith.constant 0 : index
    %c0_519 = arith.constant 0 : index
    %c0_520 = arith.constant 0 : index
    %578 = vector.load %arg38[%c0_518, %c0_519, %c0_520] : memref<1x8x512xf32, #tpu.memory_space<vmem>>, vector<1x8x512xf32>
    %579 = vector.shape_cast %578 : vector<1x8x512xf32> to vector<8x512xf32>
    %580 = vector.shape_cast %577 : vector<8x512xf32> to vector<1x8x512xf32>
    tpu.vector_store %arg38[%c0_518, %c0_519, %c0_520], %580 {strides = array<i32>} : memref<1x8x512xf32, #tpu.memory_space<vmem>>, vector<1x8x512xf32>,
    return
  }
  func.func @transform_0(%arg0: i32) -> (i32, i32, i32) {
    %c0_i32 = arith.constant 0 : i32
    %c0_i32_0 = arith.constant 0 : i32
    %c0_i32_1 = arith.constant 0 : i32
    return %arg0, %c0_i32, %c0_i32_0 : i32, i32, i32
  }
  func.func @transform_1(%arg0: i32) -> (i32, i32) {
    %c0_i32 = arith.constant 0 : i32
    %c0_i32_0 = arith.constant 0 : i32
    %c0_i32_1 = arith.constant 0 : i32
    return %c0_i32, %c0_i32_0 : i32, i32
  }
  func.func @transform_2(%arg0: i32) -> (i32, i32) {
    %c0_i32 = arith.constant 0 : i32
    %c0_i32_0 = arith.constant 0 : i32
    %c0_i32_1 = arith.constant 0 : i32
    return %c0_i32, %c0_i32_0 : i32, i32
  }
  func.func @transform_3(%arg0: i32) -> (i32, i32, i32) {
    %c0_i32 = arith.constant 0 : i32
    %c0_i32_0 = arith.constant 0 : i32
    %c0_i32_1 = arith.constant 0 : i32
    %c0_i32_2 = arith.constant 0 : i32
    return %c0_i32, %c0_i32_0, %c0_i32_1 : i32, i32, i32
  }
  func.func @transform_4(%arg0: i32) -> (i32, i32, i32) {
    %c0_i32 = arith.constant 0 : i32
    %c0_i32_0 = arith.constant 0 : i32
    %c0_i32_1 = arith.constant 0 : i32
    %c0_i32_2 = arith.constant 0 : i32
    return %c0_i32, %c0_i32_0, %c0_i32_1 : i32, i32, i32
  }
  func.func @transform_5(%arg0: i32) -> (i32, i32, i32) {
    %c0_i32 = arith.constant 0 : i32
    %c0_i32_0 = arith.constant 0 : i32
    %c0_i32_1 = arith.constant 0 : i32
    %c0_i32_2 = arith.constant 0 : i32
    return %c0_i32, %c0_i32_0, %c0_i32_1 : i32, i32, i32
  }
  func.func @transform_6(%arg0: i32) -> (i32, i32) {
    %c0_i32 = arith.constant 0 : i32
    %c0_i32_0 = arith.constant 0 : i32
    %c0_i32_1 = arith.constant 0 : i32
    return %c0_i32, %c0_i32_0 : i32, i32
  }
  func.func @transform_7(%arg0: i32) -> (i32, i32) {
    %c0_i32 = arith.constant 0 : i32
    %c0_i32_0 = arith.constant 0 : i32
    %c0_i32_1 = arith.constant 0 : i32
    return %c0_i32, %c0_i32_0 : i32, i32
  }
  func.func @transform_8(%arg0: i32) -> (i32, i32) {
    %c0_i32 = arith.constant 0 : i32
    %c0_i32_0 = arith.constant 0 : i32
    %c0_i32_1 = arith.constant 0 : i32
    return %c0_i32, %c0_i32_0 : i32, i32
  }
  func.func @transform_9(%arg0: i32) -> (i32, i32) {
    %c0_i32 = arith.constant 0 : i32
    %c0_i32_0 = arith.constant 0 : i32
    %c0_i32_1 = arith.constant 0 : i32
    return %c0_i32, %c0_i32_0 : i32, i32
  }
  func.func @transform_10(%arg0: i32) -> (i32, i32) {
    %c0_i32 = arith.constant 0 : i32
    %c0_i32_0 = arith.constant 0 : i32
    %c0_i32_1 = arith.constant 0 : i32
    return %c0_i32, %c0_i32_0 : i32, i32
  }
  func.func @transform_11(%arg0: i32) -> (i32, i32) {
    %c0_i32 = arith.constant 0 : i32
    %c0_i32_0 = arith.constant 0 : i32
    %c0_i32_1 = arith.constant 0 : i32
    return %c0_i32, %c0_i32_0 : i32, i32
  }
  func.func @transform_12(%arg0: i32) -> (i32, i32) {
    %c0_i32 = arith.constant 0 : i32
    %c0_i32_0 = arith.constant 0 : i32
    %c0_i32_1 = arith.constant 0 : i32
    return %c0_i32, %c0_i32_0 : i32, i32
  }
  func.func @transform_13(%arg0: i32) -> (i32, i32) {
    %c0_i32 = arith.constant 0 : i32
    %c0_i32_0 = arith.constant 0 : i32
    %c0_i32_1 = arith.constant 0 : i32
    return %c0_i32, %c0_i32_0 : i32, i32
  }
  func.func @transform_14(%arg0: i32) -> (i32, i32) {
    %c0_i32 = arith.constant 0 : i32
    %c0_i32_0 = arith.constant 0 : i32
    %c0_i32_1 = arith.constant 0 : i32
    return %c0_i32, %c0_i32_0 : i32, i32
  }
  func.func @transform_15(%arg0: i32) -> (i32, i32) {
    %c0_i32 = arith.constant 0 : i32
    %c0_i32_0 = arith.constant 0 : i32
    %c0_i32_1 = arith.constant 0 : i32
    return %c0_i32, %c0_i32_0 : i32, i32
  }
  func.func @transform_16(%arg0: i32) -> (i32, i32) {
    %c0_i32 = arith.constant 0 : i32
    %c0_i32_0 = arith.constant 0 : i32
    %c0_i32_1 = arith.constant 0 : i32
    return %c0_i32, %c0_i32_0 : i32, i32
  }
  func.func @transform_17(%arg0: i32) -> (i32, i32) {
    %c0_i32 = arith.constant 0 : i32
    %c0_i32_0 = arith.constant 0 : i32
    %c0_i32_1 = arith.constant 0 : i32
    return %c0_i32, %c0_i32_0 : i32, i32
  }
  func.func @transform_18(%arg0: i32) -> (i32, i32) {
    %c0_i32 = arith.constant 0 : i32
    %c0_i32_0 = arith.constant 0 : i32
    %c0_i32_1 = arith.constant 0 : i32
    return %c0_i32, %c0_i32_0 : i32, i32
  }
  func.func @transform_19(%arg0: i32) -> (i32, i32) {
    %c0_i32 = arith.constant 0 : i32
    %c0_i32_0 = arith.constant 0 : i32
    %c0_i32_1 = arith.constant 0 : i32
    return %c0_i32, %c0_i32_0 : i32, i32
  }
  func.func @transform_20(%arg0: i32) -> (i32, i32) {
    %c0_i32 = arith.constant 0 : i32
    %c0_i32_0 = arith.constant 0 : i32
    %c0_i32_1 = arith.constant 0 : i32
    return %c0_i32, %c0_i32_0 : i32, i32
  }
  func.func @transform_21(%arg0: i32) -> (i32, i32) {
    %c0_i32 = arith.constant 0 : i32
    %c0_i32_0 = arith.constant 0 : i32
    %c0_i32_1 = arith.constant 0 : i32
    return %c0_i32, %c0_i32_0 : i32, i32
  }
  func.func @transform_22(%arg0: i32) -> (i32, i32) {
    %c0_i32 = arith.constant 0 : i32
    %c0_i32_0 = arith.constant 0 : i32
    %c0_i32_1 = arith.constant 0 : i32
    return %c0_i32, %c0_i32_0 : i32, i32
  }
  func.func @transform_23(%arg0: i32) -> (i32, i32) {
    %c0_i32 = arith.constant 0 : i32
    %c0_i32_0 = arith.constant 0 : i32
    %c0_i32_1 = arith.constant 0 : i32
    return %c0_i32, %c0_i32_0 : i32, i32
  }
  func.func @transform_24(%arg0: i32) -> (i32, i32, i32) {
    %c0_i32 = arith.constant 0 : i32
    %c0_i32_0 = arith.constant 0 : i32
    %c0_i32_1 = arith.constant 0 : i32
    %c0_i32_2 = arith.constant 0 : i32
    return %c0_i32, %c0_i32_0, %c0_i32_1 : i32, i32, i32
  }
  func.func @transform_25(%arg0: i32) -> (i32, i32) {
    %c0_i32 = arith.constant 0 : i32
    %c0_i32_0 = arith.constant 0 : i32
    %c0_i32_1 = arith.constant 0 : i32
    return %c0_i32, %c0_i32_0 : i32, i32
  }
  func.func @transform_26(%arg0: i32) -> (i32, i32, i32) {
    %c0_i32 = arith.constant 0 : i32
    %c0_i32_0 = arith.constant 0 : i32
    %c0_i32_1 = arith.constant 0 : i32
    %c0_i32_2 = arith.constant 0 : i32
    return %c0_i32, %c0_i32_0, %c0_i32_1 : i32, i32, i32
  }
  func.func @transform_27(%arg0: i32) -> (i32, i32) {
    %c0_i32 = arith.constant 0 : i32
    %c0_i32_0 = arith.constant 0 : i32
    %c0_i32_1 = arith.constant 0 : i32
    return %c0_i32, %c0_i32_0 : i32, i32
  }
  func.func @transform_28(%arg0: i32) -> (i32, i32, i32) {
    %c0_i32 = arith.constant 0 : i32
    %c0_i32_0 = arith.constant 0 : i32
    %c0_i32_1 = arith.constant 0 : i32
    %c0_i32_2 = arith.constant 0 : i32
    return %c0_i32, %c0_i32_0, %c0_i32_1 : i32, i32, i32
  }
  func.func @transform_29(%arg0: i32) -> (i32, i32) {
    %c0_i32 = arith.constant 0 : i32
    %c0_i32_0 = arith.constant 0 : i32
    %c0_i32_1 = arith.constant 0 : i32
    return %c0_i32, %c0_i32_0 : i32, i32
  }
  func.func @transform_30(%arg0: i32) -> (i32, i32, i32) {
    %c0_i32 = arith.constant 0 : i32
    %c0_i32_0 = arith.constant 0 : i32
    %c0_i32_1 = arith.constant 0 : i32
    %c0_i32_2 = arith.constant 0 : i32
    return %c0_i32, %c0_i32_0, %c0_i32_1 : i32, i32, i32
  }
  func.func @transform_31(%arg0: i32) -> (i32, i32) {
    %c0_i32 = arith.constant 0 : i32
    %c0_i32_0 = arith.constant 0 : i32
    %c0_i32_1 = arith.constant 0 : i32
    return %c0_i32, %c0_i32_0 : i32, i32
  }
  func.func @transform_32(%arg0: i32) -> (i32, i32) {
    %c0_i32 = arith.constant 0 : i32
    %c0_i32_0 = arith.constant 0 : i32
    %c0_i32_1 = arith.constant 0 : i32
    return %c0_i32, %c0_i32_0 : i32, i32
  }
  func.func @transform_33(%arg0: i32) -> (i32, i32) {
    %c0_i32 = arith.constant 0 : i32
    %c0_i32_0 = arith.constant 0 : i32
    %c0_i32_1 = arith.constant 0 : i32
    return %c0_i32, %c0_i32_0 : i32, i32
  }
  func.func @transform_34(%arg0: i32) -> (i32, i32) {
    %c0_i32 = arith.constant 0 : i32
    %c0_i32_0 = arith.constant 0 : i32
    %c0_i32_1 = arith.constant 0 : i32
    return %c0_i32, %c0_i32_0 : i32, i32
  }
  func.func @transform_35(%arg0: i32) -> (i32, i32) {
    %c0_i32 = arith.constant 0 : i32
    %c0_i32_0 = arith.constant 0 : i32
    %c0_i32_1 = arith.constant 0 : i32
    return %c0_i32, %c0_i32_0 : i32, i32
  }
  func.func @transform_36(%arg0: i32) -> (i32, i32) {
    %c0_i32 = arith.constant 0 : i32
    %c0_i32_0 = arith.constant 0 : i32
    %c0_i32_1 = arith.constant 0 : i32
    return %c0_i32, %c0_i32_0 : i32, i32
  }
  func.func @transform_37(%arg0: i32) -> (i32, i32, i32) {
    %c0_i32 = arith.constant 0 : i32
    %c0_i32_0 = arith.constant 0 : i32
    %c0_i32_1 = arith.constant 0 : i32
    return %arg0, %c0_i32, %c0_i32_0 : i32, i32, i32
  }
}

</mosaic_0001>

<bundles_post_ra>
// kernel: attu_net5_forward.1
= control target key start
LH: loop header
LB: loop body
LE: loop exit
PB: predicated region body
PF: predicated region fallthrough
CT: control target
= control target key end

     0   :  { %s7148_s6 = smov 1   ;;  %s7149_s10 = smov 2   ;;  %s10268_s0 = inlined_call_operand.smem [shape: u32[38], index: -1, kind: input, shape index: {}] }
   0x1   :  { %s7229_s5 = sld [smem:[%s10268_s0]]   ;;  %s7150_s14 = smov 3  }
   0x2   :  { %s7234_s9 = sld [smem:[%s10268_s0 + %s7148_s6]]   ;;  %s7151_s18 = smov 4  }
   0x3   :  { %s7239_s13 = sld [smem:[%s10268_s0 + %s7149_s10]]   ;;  %s7152_s22 = smov 5  }
   0x4   :  { %s7244_s17 = sld [smem:[%s10268_s0 + %s7150_s14]]   ;;  %s7153_s26 = smov 6  }
   0x5   :  { %s7249_s21 = sld [smem:[%s10268_s0 + %s7151_s18]]   ;;  %s7154_s30 = smov 7  }
   0x6   :  { %s7254_s25 = sld [smem:[%s10268_s0 + %s7152_s22]]   ;;  %s7155_s4 = smov 8  }
   0x7   :  { %10489 = sst [smem:[#allocation34_spill]] %s7229_s5  ;;  %s7156_s10 = smov 9  }
   0x8   :  { %10490 = sst [smem:[#allocation35_spill]] %s7234_s9  ;;  %s7157_s15 = smov 10  }
   0x9   :  { %10491 = sst [smem:[#allocation36_spill]] %s7239_s13  ;;  %s7158_s20 = smov 11  }
   0xa   :  { %10492 = sst [smem:[#allocation37_spill]] %s7244_s17  ;;  %s7160_s1 = smov 13  }
   0xb   :  { %s7259_s29 = sld [smem:[%s10268_s0 + %s7153_s26]]   ;;  %s7159_s26 = smov 12  }
   0xc   :  { %10493 = sst [smem:[#allocation38_spill]] %s7254_s25  ;;  %s7161_s7 = smov 14  }
   0xd   :  { %s7264_s3 = sld [smem:[%s10268_s0 + %s7154_s30]]   ;;  %s7163_s22 = smov 16  }
   0xe   :  { %s7269_s8 = sld [smem:[%s10268_s0 + %s7155_s4]]   ;;  %s7164_s28 = smov 17  }
   0xf   :  { %s7274_s14 = sld [smem:[%s10268_s0 + %s7156_s10]]  }
  0x10   :  { %s7279_s19 = sld [smem:[%s10268_s0 + %s7157_s15]]   ;;  %s7162_s15 = smov 15  }
  0x11   :  { %s7284_s24 = sld [smem:[%s10268_s0 + %s7158_s20]]  }
  0x12   :  { %s7289_s30 = sld [smem:[%s10268_s0 + %s7159_s26]]  }
  0x13   :  { %10494 = sst [smem:[#allocation39_spill]] %s7264_s3 }
  0x14   :  { %10495 = sst [smem:[#allocation40_spill]] %s7269_s8 }
  0x15   :  { %s7294_s6 = sld [smem:[%s10268_s0 + %s7160_s1]]   ;;  %s7184_s1 = smov 37  }
  0x16   :  { %10496 = sst [smem:[#allocation41_spill]] %s7279_s19 }
  0x17   :  { %s7299_s12 = sld [smem:[%s10268_s0 + %s7161_s7]]   ;;  %s7165_s7 = smov 18  }
  0x18   :  { %10497 = sst [smem:[#allocation42_spill]] %s7289_s30 }
  0x19   :  { %s7304_s20 = sld [smem:[%s10268_s0 + %s7162_s15]]   ;;  %s7166_s15 = smov 19  }
  0x1a   :  { %s7309_s27 = sld [smem:[%s10268_s0 + %s7163_s22]]   ;;  %s7167_s22 = smov 20  }
  0x1b   :  { %10498 = sst [smem:[#allocation43_spill]] %s7294_s6 }
  0x1c   :  { %s7314_s4 = sld [smem:[%s10268_s0 + %s7164_s28]]   ;;  %s7168_s28 = smov 21  }
  0x1d   :  { %10499 = sst [smem:[#allocation44_spill]] %s7299_s12 }
  0x1e   :  { %s7319_s19 = sld [smem:[%s10268_s0 + %s7165_s7]]   ;;  %s7169_s7 = smov 22  }
  0x1f   :  { %10500 = sst [smem:[#allocation45_spill]] %s7304_s20 }
  0x20   :  { %10501 = sst [smem:[#allocation46_spill]] %s7309_s27 }
  0x21   :  { %s7324_s17 = sld [smem:[%s10268_s0 + %s7166_s15]]   ;;  %s7170_s15 = smov 23  }
  0x22   :  { %10502 = sst [smem:[#allocation47_spill]] %s7314_s4 }
  0x23   :  { %s7329_s27 = sld [smem:[%s10268_s0 + %s7167_s22]]   ;;  %s7171_s22 = smov 24  }
  0x24   :  { %10503 = sst [smem:[#allocation48_spill]] %s7319_s19 }
  0x25   :  { %s7334_s4 = sld [smem:[%s10268_s0 + %s7168_s28]]   ;;  %s7172_s28 = smov 25  }
  0x26   :  { %s7339_s19 = sld [smem:[%s10268_s0 + %s7169_s7]]   ;;  %s7173_s7 = smov 26  }
  0x27   :  { %10504 = sst [smem:[#allocation49_spill]] %s7324_s17 }
  0x28   :  { %s7344_s17 = sld [smem:[%s10268_s0 + %s7170_s15]]   ;;  %s7174_s15 = smov 27  }
  0x29   :  { %10505 = sst [smem:[#allocation50_spill]] %s7329_s27 }
  0x2a   :  { %s7349_s27 = sld [smem:[%s10268_s0 + %s7171_s22]]   ;;  %s7175_s22 = smov 28  }
  0x2b   :  { %10506 = sst [smem:[#allocation51_spill]] %s7334_s4 }
  0x2c   :  { %s7354_s4 = sld [smem:[%s10268_s0 + %s7172_s28]]   ;;  %s7176_s28 = smov 29  }
  0x2d   :  { %s7359_s12 = sld [smem:[%s10268_s0 + %s7173_s7]]   ;;  %s7177_s7 = smov 30  }
  0x2e   :  { %10507 = sst [smem:[#allocation52_spill]] %s7344_s17 }
  0x2f   :  { %s7364_s17 = sld [smem:[%s10268_s0 + %s7174_s15]]   ;;  %s7178_s15 = smov 31  }
  0x30   :  { %10508 = sst [smem:[#allocation53_spill]] %s7349_s27 }
  0x31   :  { %s7369_s27 = sld [smem:[%s10268_s0 + %s7175_s22]]   ;;  %s7179_s22 = smov 32  }
  0x32   :  { %10509 = sst [smem:[#allocation54_spill]] %s7354_s4 }
  0x33   :  { %s7374_s4 = sld [smem:[%s10268_s0 + %s7176_s28]]   ;;  %s7180_s28 = smov 33  }
  0x34   :  { %s7379_s20 = sld [smem:[%s10268_s0 + %s7177_s7]]   ;;  %s7181_s7 = smov 34  }
  0x35   :  { %10510 = sst [smem:[#allocation55_spill]] %s7364_s17 }
  0x36   :  { %s7384_s17 = sld [smem:[%s10268_s0 + %s7178_s15]]   ;;  %s7182_s15 = smov 35  }
  0x37   :  { %s7389_s30 = sld [smem:[%s10268_s0 + %s7179_s22]]   ;;  %s7183_s22 = smov 36  }
  0x38   :  { %s7399_s6 = sld [smem:[%s10268_s0 + %s7181_s7]]  }
  0x39   :  { %10511 = sst [smem:[#allocation56_spill]] %s7374_s4 }
  0x3a   :  { %s7394_s4 = sld [smem:[%s10268_s0 + %s7180_s28]]  }
  0x3b   :  { %s6150_s5 = sld [smem:[%s10268_s0 + %s7183_s22]]  }
  0x3c   :  { %10512 = sst [smem:[#allocation57_spill]] %s7384_s17 }
  0x3d   :  { %s7404_s17 = sld [smem:[%s10268_s0 + %s7182_s15]]  }
  0x3e   :  { %10514 = sst [smem:[#allocation59_spill]] %s7399_s6 }
  0x40   :  { %10513 = sst [smem:[#allocation58_spill]] %s7394_s4 }
  0x41   :  { %s7412_s4 = sld [smem:[%s10268_s0 + %s7184_s1]]   ;;  %v80_v0 = vstv %s6150_s5 }
  0x42   :  { %81 = vst [vmem:[#allocation2] sm:$0x1] %v80_v0 }
  0x43   :  { %82 = vsyncpa [#allocation4], 0 }
  0x44   :  { %83 = vsyncpa [#allocation6], 0 }
  0x45   :  { %84 = vsyncpa [#allocation9], 0 }
  0x46   :  { %85 = vsyncpa [#allocation12], 0 }
  0x47   :  { %86 = vsyncpa [#allocation15], 0 }
  0x48   :  { %87 = vsyncpa [#allocation18], 0 }
  0x49   :  { %88 = vsyncpa [#allocation21], 0 }
  0x4a   :  { %89 = vsyncpa [#allocation24], 0  ;;  %s7414_s7 = smov 0  }
  0x4b LB: > { %s10515_s9 = sld [smem:[#allocation35_spill]]  ;;  %s7423_s5 = sadd.s32 4294967295, %s7146_s7   ;;  %s7146_s7 = sphi %s7414_s7, %s95_s7  }
  0x4c   : > { %s10516_s8 = sld [smem:[#allocation40_spill]]  ;;  %p6154_p0 = scmp.ge.s32.totalorder %s7146_s7, 1 }
  0x4d   : > { %s10517_s3 = sld [smem:[#allocation39_spill]]  ;;  %p908_p1 = scmp.lt.s32.totalorder %s7146_s7, 3 }
  0x4e   : > { %s10518_s25 = sld [smem:[#allocation38_spill]]  ;;  %p6503_p2 = scmp.eq.s32.totalorder %s7423_s5, 0 }
  0x4f   : > { %s10519_s13 = sld [smem:[#allocation36_spill]]  ;;  %p7428_p3 = pnand %p6154_p0, %p908_p1 }
  0x50   : > { %s7185_s11 = smov [#allocation5]   ;;  %s7186_s22 = smov [#allocation8]  }
  0x51   : > { %s7432_s15 = sshll.u32 %s7185_s11, 4  ;;  %p6457_p4 = pneg %p7428_p3  ;;  %s936_s15 = int_to_ptr.vmem [resolvable:$true] %s7432_s15 }
  0x52   : > { %s7446_s23 = sshll.u32 %s7186_s22, 4 }
  0x53   : > { %p7440_p5 = pnand %p6503_p2, %p6457_p4  ;;  %10522 = sst [smem:[#allocation60_spill]] %s7446_s23 }
  0x54   : > { %s964_s16 = sshll.u32 %s10518_s25, 4  ;;  %s7444_s16 = int_to_ptr.hbm [resolvable:$true] %s964_s16 }
  0x55   : > { %s933_s0 = sshll.u32 %s10519_s13, 4  ;;  %p7453_p7 = pneg %p7440_p5  ;;  %s7420_s0 = int_to_ptr.hbm [resolvable:$true] %s933_s0 }
  0x56   : > { %s6658_s1 = sshra.s32 %s7420_s0, 4  ;;  %s6665_s11 = scalar_lea.hbm %s10519_s13, 16  ;;  %s6659_s1 = int_to_ptr.hbm [resolvable:$true] %s6658_s1 }
  0x57   : > { %s6660_s28 = scalar_lea.hbm %s6659_s1, 16  ;;  %p6666_p10 = scmp.lt.s32.totalorder %s6659_s1, %s10519_s13 }
  0x58   : > { %p6661_p6 = scmp.ne.s32.totalorder %s6659_s1, %s6660_s28  ;;  %p6667_p11 = scmp.lt.s32.totalorder %s6665_s11, %s6660_s28 }
  0x5a   : > { %p6663_p8 = pnand %p7453_p7, %p6661_p6  ;;  %p6668_p12 = por %p6667_p11, %p6666_p10 }
  0x5c   : > { %p6664_p9 = pneg %p6663_p8 }
  0x5e   : > { %p6669_p13 = pnand %p6668_p12, %p6664_p9 }
  0x60   : > { %6672 = shalt.err (!%p6669_p13)
}
  0x61   : > { %s10288_s22 = smov 128   ;;  %s10290_s26 = smov 8  }
  0x62   : > { %6463 = dma.hbm_to_vmem [thread:$0]  (!%p7440_p5), %s7420_s0, 256, %s936_s15, [#allocation6], %s10288_s22, %s10288_s22, %s10290_s26  }
  0x63   : > { %s6688_s23 = sshra.s32 %s7444_s16, 4  ;;  %s6695_s28 = scalar_lea.hbm %s10518_s25, 72  ;;  %s6689_s23 = int_to_ptr.hbm [resolvable:$true] %s6688_s23 }
  0x64   : > { %s6690_s1 = scalar_lea.hbm %s6689_s23, 72  ;;  %p6696_p6 = scmp.lt.s32.totalorder %s6689_s23, %s10518_s25 }
  0x65   : > { %p6691_p0 = scmp.ne.s32.totalorder %s6689_s23, %s6690_s1  ;;  %p6697_p8 = scmp.lt.s32.totalorder %s6695_s28, %s6690_s1 }
  0x67   : > { %p6693_p1 = pnand %p6691_p0, %p7453_p7  ;;  %p6698_p9 = por %p6697_p8, %p6696_p6 }
  0x69   : > { %p6694_p4 = pneg %p6693_p1 }
  0x6b   : > { %p6699_p10 = pnand %p6698_p9, %p6694_p4 }
  0x6d   : > { %6702 = shalt.err (!%p6699_p10)
}
  0x6e   : > { %s10524_s11 = sld [smem:[#allocation60_spill]]  ;;  %s10526_s15 = sshll.u32 %s10517_s3, 4  ;;  %s993_s15 = int_to_ptr.hbm [resolvable:$true] %s10526_s15 }
  0x6f   : > { %s7189_s23 = smov [#allocation11]   ;;  %s1021_s28 = sshll.u32 %s7274_s14, 4  ;;  %s7483_s28 = int_to_ptr.hbm [resolvable:$true] %s1021_s28 }
  0x70   : > { %s994_s1 = sshll.u32 %s7189_s23, 4  ;;  %s6718_s13 = sshra.s32 %s993_s15, 4  ;;  %s995_s1 = int_to_ptr.vmem [resolvable:$true] %s994_s1  ;;  %s6719_s13 = int_to_ptr.hbm [resolvable:$true] %s6718_s13 }
  0x71   : > { %s6720_s25 = scalar_lea.hbm %s6719_s13, 128  ;;  %p6726_p0 = scmp.lt.s32.totalorder %s6719_s13, %s10517_s3 }
  0x72   : > { %p6721_p11 = scmp.ne.s32.totalorder %s6719_s13, %s6720_s25 }
  0x74   : > { %s10525_s0 = int_to_ptr.vmem [resolvable:$true] %s10524_s11  ;;  %p6723_p12 = pnand %p6721_p11, %p7453_p7 }
  0x75   : > { %6469 = dma.hbm_to_vmem [thread:$0]  (!%p7440_p5), %s7444_s16, 1152, %s10525_s0, [#allocation9], %s10288_s22, %s10288_s22, %s10290_s26  }
  0x76   : > { %p6724_p13 = pneg %p6723_p12  ;;  %s6725_s11 = scalar_lea.hbm %s10517_s3, 128 }
  0x77   : > { %p6727_p1 = scmp.lt.s32.totalorder %s6725_s11, %s6720_s25 }
  0x79   : > { %p6728_p4 = por %p6727_p1, %p6726_p0 }
  0x7b   : > { %p6729_p6 = pnand %p6728_p4, %p6724_p13 }
  0x7d   : > { %6732 = shalt.err (!%p6729_p6)
}
  0x7e   : > { %6475 = dma.hbm_to_vmem [thread:$0]  (!%p7440_p5), %s993_s15, 2048, %s995_s1, [#allocation12], %s10288_s22, %s10288_s22, %s10290_s26  }
  0x7f   : > { %s1079_s16 = sshll.u32 %s7339_s19, 4  ;;  %s7190_s0 = smov [#allocation14]   ;;  %s7495_s16 = int_to_ptr.hbm [resolvable:$true] %s1079_s16 }
  0x80   : > { %s1023_s23 = sshll.u32 %s7190_s0, 4  ;;  %s6748_s13 = sshra.s32 %s7483_s28, 4  ;;  %s1024_s23 = int_to_ptr.vmem [resolvable:$true] %s1023_s23  ;;  %s6749_s13 = int_to_ptr.hbm [resolvable:$true] %s6748_s13 }
  0x81   : > { %s6750_s25 = scalar_lea.hbm %s6749_s13, 8  ;;  %s6755_s11 = scalar_lea.hbm %s7274_s14, 8 }
  0x82   : > { %p6751_p8 = scmp.ne.s32.totalorder %s6749_s13, %s6750_s25  ;;  %p6756_p11 = scmp.lt.s32.totalorder %s6749_s13, %s7274_s14 }
  0x83   : > { %p6757_p12 = scmp.lt.s32.totalorder %s6755_s11, %s6750_s25 }
  0x84   : > { %p6753_p9 = pnand %p6751_p8, %p7453_p7 }
  0x85   : > { %p6758_p13 = por %p6757_p12, %p6756_p11 }
  0x86   : > { %p6754_p10 = pneg %p6753_p9 }
  0x88   : > { %p6759_p0 = pnand %p6758_p13, %p6754_p10 }
  0x8a   : > { %6762 = shalt.err (!%p6759_p0)
}
  0x8b   : > { %6481 = dma.hbm_to_vmem [thread:$0]  (!%p7440_p5), %s7483_s28, 128, %s1024_s23, [#allocation15]  }
  0x8c   : > { %s7191_s15 = smov [#allocation17]   ;;  %s6778_s0 = sshra.s32 %s7495_s16, 4  ;;  %s6779_s0 = int_to_ptr.hbm [resolvable:$true] %s6778_s0 }
  0x8d   : > { %s1081_s1 = sshll.u32 %s7191_s15, 4  ;;  %s6780_s22 = scalar_lea.hbm %s6779_s0, 32  ;;  %s1082_s1 = int_to_ptr.vmem [resolvable:$true] %s1081_s1 }
  0x8e   : > { %p6781_p1 = scmp.ne.s32.totalorder %s6779_s0, %s6780_s22  ;;  %s6785_s13 = scalar_lea.hbm %s7339_s19, 32 }
  0x8f   : > { %p6786_p8 = scmp.lt.s32.totalorder %s6779_s0, %s7339_s19  ;;  %p6787_p9 = scmp.lt.s32.totalorder %s6785_s13, %s6780_s22 }
  0x90   : > { %p6783_p4 = pnand %p6781_p1, %p7453_p7 }
  0x91   : > { %p6788_p10 = por %p6787_p9, %p6786_p8 }
  0x92   : > { %p6784_p6 = pneg %p6783_p4 }
  0x94   : > { %p6789_p11 = pnand %p6788_p10, %p6784_p6 }
  0x96   : > { %6792 = shalt.err (!%p6789_p11)
}
  0x97   : > { %s10292_s25 = smov 256   ;;  %s10294_s28 = smov 16  }
  0x98   : > { %6487 = dma.hbm_to_vmem [thread:$0]  (!%p7440_p5), %s7495_s16, 512, %s1082_s1, [#allocation18], %s10292_s25, %s10292_s25, %s10294_s28  }
  0x99   : > { %s1119_s23 = sshll.u32 %s7369_s27, 4  ;;  %s7194_s22 = smov [#allocation20]   ;;  %s1120_s23 = int_to_ptr.hbm [resolvable:$true] %s1119_s23 }
  0x9a   : > { %s1121_s11 = sshll.u32 %s7194_s22, 4  ;;  %s1154_s15 = sshll.u32 %s7389_s30, 4  ;;  %s1122_s11 = int_to_ptr.vmem [resolvable:$true] %s1121_s11  ;;  %s1155_s15 = int_to_ptr.hbm [resolvable:$true] %s1154_s15 }
  0x9b   : > { %s6808_s0 = sshra.s32 %s1120_s23, 4  ;;  %s6815_s26 = scalar_lea.hbm %s7369_s27, 64  ;;  %s6809_s0 = int_to_ptr.hbm [resolvable:$true] %s6808_s0 }
  0x9c   : > { %s6810_s13 = scalar_lea.hbm %s6809_s0, 64  ;;  %p6816_p1 = scmp.lt.s32.totalorder %s6809_s0, %s7369_s27 }
  0x9d   : > { %p6811_p12 = scmp.ne.s32.totalorder %s6809_s0, %s6810_s13  ;;  %p6817_p4 = scmp.lt.s32.totalorder %s6815_s26, %s6810_s13 }
  0x9f   : > { %p6813_p13 = pnand %p6811_p12, %p7453_p7  ;;  %p6818_p6 = por %p6817_p4, %p6816_p1 }
  0xa1   : > { %p6814_p0 = pneg %p6813_p13 }
  0xa3   : > { %p6819_p8 = pnand %p6818_p6, %p6814_p0 }
  0xa5   : > { %6822 = shalt.err (!%p6819_p8)
}
  0xa6   : > { %6493 = dma.hbm_to_vmem [thread:$0]  (!%p7440_p5), %s1120_s23, 1024, %s1122_s11, [#allocation21], %s10292_s25, %s10292_s25, %s10294_s28  }
  0xa7   : > { %s7195_s16 = smov [#allocation23]   ;;  %s919_s22 = sshll.u32 %s10515_s9, 4  ;;  %s7528_s22 = int_to_ptr.hbm [resolvable:$true] %s919_s22 }
  0xa8   : > { %s1156_s1 = sshll.u32 %s7195_s16, 4  ;;  %s6838_s26 = sshra.s32 %s1155_s15, 4  ;;  %s1157_s1 = int_to_ptr.vmem [resolvable:$true] %s1156_s1  ;;  %s6839_s26 = int_to_ptr.hbm [resolvable:$true] %s6838_s26 }
  0xa9   : > { %s6840_s0 = scalar_lea.hbm %s6839_s26, 8  ;;  %s6845_s13 = scalar_lea.hbm %s7389_s30, 8 }
  0xaa   : > { %p6841_p9 = scmp.ne.s32.totalorder %s6839_s26, %s6840_s0  ;;  %p6846_p12 = scmp.lt.s32.totalorder %s6839_s26, %s7389_s30 }
  0xab   : > { %p6847_p13 = scmp.lt.s32.totalorder %s6845_s13, %s6840_s0 }
  0xac   : > { %p6843_p10 = pnand %p6841_p9, %p7453_p7 }
  0xad   : > { %p6848_p0 = por %p6847_p13, %p6846_p12 }
  0xae   : > { %p6844_p11 = pneg %p6843_p10 }
  0xb0   : > { %p6849_p1 = pnand %p6848_p0, %p6844_p11 }
  0xb2   : > { %6852 = shalt.err (!%p6849_p1)
}
  0xb3   : > { %6499 = dma.hbm_to_vmem [thread:$0]  (!%p7440_p5), %s1155_s15, 128, %s1157_s1, [#allocation24]  }
  0xb4   : > { %s7196_s23 = smov [#allocation3]   ;;  %s950_s16 = sshll.u32 %s7249_s21, 4  ;;  %s951_s16 = int_to_ptr.hbm [resolvable:$true] %s950_s16 }
  0xb5   : > { %s921_s11 = sshll.u32 %s7196_s23, 4  ;;  %s6868_s25 = sshra.s32 %s7528_s22, 4  ;;  %s922_s11 = int_to_ptr.vmem [resolvable:$true] %s921_s11  ;;  %s6869_s25 = int_to_ptr.hbm [resolvable:$true] %s6868_s25 }
  0xb6   : > { %s6870_s28 = scalar_lea.hbm %s6869_s25, 64  ;;  %s6875_s26 = scalar_lea.hbm %s10515_s9, 64 }
  0xb7   : > { %p6871_p4 = scmp.ne.s32.totalorder %s6869_s25, %s6870_s28  ;;  %p6876_p9 = scmp.lt.s32.totalorder %s6869_s25, %s10515_s9 }
  0xb8   : > { %p6877_p10 = scmp.lt.s32.totalorder %s6875_s26, %s6870_s28 }
  0xb9   : > { %p6873_p6 = pnand %p6871_p4, %p7453_p7 }
  0xba   : > { %p6878_p11 = por %p6877_p10, %p6876_p9 }
  0xbb   : > { %p6874_p8 = pneg %p6873_p6 }
  0xbd   : > { %p6879_p12 = pnand %p6878_p11, %p6874_p8 }
  0xbf   : > { %6882 = shalt.err (!%p6879_p12)
}
  0xc0   : > { %s10296_s0 = smov 512   ;;  %s10297_s15 = smov 32  }
  0xc1   : > { %6460 = dma.hbm_to_vmem [thread:$0]  (!%p7440_p5), %s7528_s22, 1024, %s922_s11, [#allocation4], %s10296_s0, %s10296_s0, %s10297_s15  }
  0xc2   : > { %s7199_s1 = smov [#allocation7]   ;;  %s978_s28 = sshll.u32 %s7259_s29, 4  ;;  %s7549_s28 = int_to_ptr.hbm [resolvable:$true] %s978_s28 }
  0xc3   : > { %s952_s25 = sshll.u32 %s7199_s1, 4  ;;  %s6898_s13 = sshra.s32 %s951_s16, 4  ;;  %s953_s25 = int_to_ptr.vmem [resolvable:$true] %s952_s25  ;;  %s6899_s13 = int_to_ptr.hbm [resolvable:$true] %s6898_s13 }
  0xc4   : > { %s6900_s23 = scalar_lea.hbm %s6899_s13, 72  ;;  %s6905_s26 = scalar_lea.hbm %s7249_s21, 72 }
  0xc5   : > { %p6901_p13 = scmp.ne.s32.totalorder %s6899_s13, %s6900_s23  ;;  %p6906_p4 = scmp.lt.s32.totalorder %s6899_s13, %s7249_s21 }
  0xc6   : > { %p6907_p6 = scmp.lt.s32.totalorder %s6905_s26, %s6900_s23 }
  0xc7   : > { %p6903_p0 = pnand %p6901_p13, %p7453_p7 }
  0xc8   : > { %p6908_p8 = por %p6907_p6, %p6906_p4 }
  0xc9   : > { %p6904_p1 = pneg %p6903_p0 }
  0xcb   : > { %p6909_p9 = pnand %p6908_p8, %p6904_p1 }
  0xcd   : > { %6912 = shalt.err (!%p6909_p9)
}
  0xce   : > { %s10527_s22 = smov 8   ;;  %s10528_s11 = smov 128  }
  0xcf   : > { %6466 = dma.hbm_to_vmem [thread:$0]  (!%p7440_p5), %s951_s16, 1152, %s953_s25, [#allocation6], %s10528_s11, %s10528_s11, %s10527_s22  }
  0xd0   : > { %s1006_s1 = sshll.u32 %s10516_s8, 4  ;;  %s7200_s0 = smov [#allocation10]   ;;  %s7561_s1 = int_to_ptr.hbm [resolvable:$true] %s1006_s1 }
  0xd1   : > { %s980_s15 = sshll.u32 %s7200_s0, 4  ;;  %s6928_s13 = sshra.s32 %s7549_s28, 4  ;;  %s981_s15 = int_to_ptr.vmem [resolvable:$true] %s980_s15  ;;  %s6929_s13 = int_to_ptr.hbm [resolvable:$true] %s6928_s13 }
  0xd2   : > { %s6930_s23 = scalar_lea.hbm %s6929_s13, 512  ;;  %s6935_s26 = scalar_lea.hbm %s7259_s29, 512 }
  0xd3   : > { %p6931_p10 = scmp.ne.s32.totalorder %s6929_s13, %s6930_s23  ;;  %p6936_p13 = scmp.lt.s32.totalorder %s6929_s13, %s7259_s29 }
  0xd4   : > { %p6937_p0 = scmp.lt.s32.totalorder %s6935_s26, %s6930_s23 }
  0xd5   : > { %p6933_p11 = pnand %p6931_p10, %p7453_p7 }
  0xd6   : > { %p6938_p1 = por %p6937_p0, %p6936_p13 }
  0xd7   : > { %p6934_p12 = pneg %p6933_p11 }
  0xd9   : > { %p6939_p4 = pnand %p6938_p1, %p6934_p12 }
  0xdb   : > { %6942 = shalt.err (!%p6939_p4)
}
  0xdc   : > { %6472 = dma.hbm_to_vmem [thread:$0]  (!%p7440_p5), %s7549_s28, 8192, %s981_s15, [#allocation9], %s10528_s11, %s10528_s11, %s10527_s22  }
  0xdd   : > { %s7201_s16 = smov [#allocation13]   ;;  %s1035_s25 = sshll.u32 %s7284_s24, 4  ;;  %s7575_s25 = int_to_ptr.hbm [resolvable:$true] %s1035_s25 }
  0xde   : > { %s1008_s0 = sshll.u32 %s7201_s16, 4  ;;  %s6958_s13 = sshra.s32 %s7561_s1, 4  ;;  %s1009_s0 = int_to_ptr.vmem [resolvable:$true] %s1008_s0  ;;  %s6959_s13 = int_to_ptr.hbm [resolvable:$true] %s6958_s13 }
  0xdf   : > { %s6960_s23 = scalar_lea.hbm %s6959_s13, 32  ;;  %s6965_s26 = scalar_lea.hbm %s10516_s8, 32 }
  0xe0   : > { %p6961_p6 = scmp.ne.s32.totalorder %s6959_s13, %s6960_s23  ;;  %p6966_p10 = scmp.lt.s32.totalorder %s6959_s13, %s10516_s8 }
  0xe1   : > { %p6967_p11 = scmp.lt.s32.totalorder %s6965_s26, %s6960_s23 }
  0xe2   : > { %p6963_p8 = pnand %p6961_p6, %p7453_p7 }
  0xe3   : > { %p6968_p12 = por %p6967_p11, %p6966_p10 }
  0xe4   : > { %p6964_p9 = pneg %p6963_p8 }
  0xe6   : > { %p6969_p13 = pnand %p6968_p12, %p6964_p9 }
  0xe8   : > { %6972 = shalt.err (!%p6969_p13)
}
  0xe9   : > { %6478 = dma.hbm_to_vmem [thread:$0]  (!%p7440_p5), %s7561_s1, 512, %s1009_s0, [#allocation12], %s10528_s11, %s10528_s11, %s10527_s22  }
  0xea   : > { %s1102_s15 = sshll.u32 %s7359_s12, 4  ;;  %s7202_s28 = smov [#allocation16]   ;;  %s7589_s15 = int_to_ptr.hbm [resolvable:$true] %s1102_s15 }
  0xeb   : > { %s1037_s16 = sshll.u32 %s7202_s28, 4  ;;  %s6988_s13 = sshra.s32 %s7575_s25, 4  ;;  %s1038_s16 = int_to_ptr.vmem [resolvable:$true] %s1037_s16  ;;  %s6989_s13 = int_to_ptr.hbm [resolvable:$true] %s6988_s13 }
  0xec   : > { %s6990_s23 = scalar_lea.hbm %s6989_s13, 512  ;;  %s6995_s26 = scalar_lea.hbm %s7284_s24, 512 }
  0xed   : > { %p6991_p0 = scmp.ne.s32.totalorder %s6989_s13, %s6990_s23  ;;  %p6996_p6 = scmp.lt.s32.totalorder %s6989_s13, %s7284_s24 }
  0xee   : > { %p6997_p8 = scmp.lt.s32.totalorder %s6995_s26, %s6990_s23 }
  0xef   : > { %p6993_p1 = pnand %p6991_p0, %p7453_p7 }
  0xf0   : > { %p6998_p9 = por %p6997_p8, %p6996_p6 }
  0xf1   : > { %p6994_p4 = pneg %p6993_p1 }
  0xf3   : > { %p6999_p10 = pnand %p6998_p9, %p6994_p4 }
  0xf5   : > { %7002 = shalt.err (!%p6999_p10)
}
  0xf6   : > { %s10529_s22 = smov 32   ;;  %s10530_s11 = smov 512  }
  0xf7   : > { %6484 = dma.hbm_to_vmem [thread:$0]  (!%p7440_p5), %s7575_s25, 8192, %s1038_s16, [#allocation15], %s10530_s11, %s10530_s11, %s10529_s22  }
  0xf8   : > { %s7203_s1 = smov [#allocation19]   ;;  %s1136_s28 = sshll.u32 %s7379_s20, 4  ;;  %s7603_s28 = int_to_ptr.hbm [resolvable:$true] %s1136_s28 }
  0xf9   : > { %s1104_s0 = sshll.u32 %s7203_s1, 4  ;;  %s7018_s13 = sshra.s32 %s7589_s15, 4  ;;  %s1105_s0 = int_to_ptr.vmem [resolvable:$true] %s1104_s0  ;;  %s7019_s13 = int_to_ptr.hbm [resolvable:$true] %s7018_s13 }
  0xfa   : > { %s7020_s23 = scalar_lea.hbm %s7019_s13, 64  ;;  %s7025_s26 = scalar_lea.hbm %s7359_s12, 64 }
  0xfb   : > { %p7021_p11 = scmp.ne.s32.totalorder %s7019_s13, %s7020_s23  ;;  %p7026_p0 = scmp.lt.s32.totalorder %s7019_s13, %s7359_s12 }
  0xfc   : > { %p7027_p1 = scmp.lt.s32.totalorder %s7025_s26, %s7020_s23 }
  0xfd   : > { %p7023_p12 = pnand %p7021_p11, %p7453_p7 }
  0xfe   : > { %p7028_p4 = por %p7027_p1, %p7026_p0 }
  0xff   : > { %p7024_p13 = pneg %p7023_p12 }
 0x101   : > { %p7029_p6 = pnand %p7028_p4, %p7024_p13 }
 0x103   : > { %7032 = shalt.err (!%p7029_p6)
}
 0x104   : > { %s10531_s25 = smov 16   ;;  %s10532_s16 = smov 256  }
 0x105   : > { %s10533_s22 = sld [smem:[#allocation58_spill]]  ;;  %s7204_s1 = smov [#allocation22]  }
 0x106   : > { %6490 = dma.hbm_to_vmem [thread:$0]  (!%p7440_p5), %s7589_s15, 1024, %s1105_s0, [#allocation18], %s10532_s16, %s10532_s16, %s10531_s25  }
 0x107   : > { %s1138_s3 = sshll.u32 %s7204_s1, 4  ;;  %s7048_s13 = sshra.s32 %s7603_s28, 4  ;;  %s1139_s3 = int_to_ptr.vmem [resolvable:$true] %s1138_s3  ;;  %s7049_s13 = int_to_ptr.hbm [resolvable:$true] %s7048_s13 }
 0x108   : > { %s7050_s23 = scalar_lea.hbm %s7049_s13, 32  ;;  %s7055_s26 = scalar_lea.hbm %s7379_s20, 32 }
 0x109   : > { %p7051_p8 = scmp.ne.s32.totalorder %s7049_s13, %s7050_s23  ;;  %p7056_p11 = scmp.lt.s32.totalorder %s7049_s13, %s7379_s20 }
 0x10a   : > { %p7057_p12 = scmp.lt.s32.totalorder %s7055_s26, %s7050_s23 }
 0x10b   : > { %s1166_s11 = sshll.u32 %s10533_s22, 4  ;;  %p7053_p9 = pnand %p7051_p8, %p7453_p7  ;;  %s7617_s11 = int_to_ptr.hbm [resolvable:$true] %s1166_s11 }
 0x10c   : > { %p7058_p13 = por %p7057_p12, %p7056_p11 }
 0x10d   : > { %p7054_p10 = pneg %p7053_p9 }
 0x10f   : > { %p7059_p0 = pnand %p7058_p13, %p7054_p10 }
 0x111   : > { %7062 = shalt.err (!%p7059_p0)
}
 0x112   : > { %6496 = dma.hbm_to_vmem [thread:$0]  (!%p7440_p5), %s7603_s28, 512, %s1139_s3, [#allocation21], %s10532_s16, %s10532_s16, %s10531_s25  }
 0x113   : > { %s7205_s15 = smov [#allocation25]   ;;  %s7078_s1 = sshra.s32 %s7617_s11, 4  ;;  %s7079_s1 = int_to_ptr.hbm [resolvable:$true] %s7078_s1 }
 0x114   : > { %s1168_s0 = sshll.u32 %s7205_s15, 4  ;;  %s7080_s13 = scalar_lea.hbm %s7079_s1, 8  ;;  %s1169_s0 = int_to_ptr.vmem [resolvable:$true] %s1168_s0 }
 0x115   : > { %p7081_p1 = scmp.ne.s32.totalorder %s7079_s1, %s7080_s13  ;;  %s7085_s23 = scalar_lea.hbm %s10533_s22, 8 }
 0x116   : > { %p7086_p8 = scmp.lt.s32.totalorder %s7079_s1, %s10533_s22  ;;  %p7087_p9 = scmp.lt.s32.totalorder %s7085_s23, %s7080_s13 }
 0x117   : > { %p7083_p4 = pnand %p7081_p1, %p7453_p7 }
 0x118   : > { %p7088_p10 = por %p7087_p9, %p7086_p8 }
 0x119   : > { %p7084_p6 = pneg %p7083_p4 }
 0x11b   : > { %p7089_p11 = pnand %p7088_p10, %p7084_p6 }
 0x11d   : > { %7092 = shalt.err (!%p7089_p11)
}
 0x11e   : > { %6502 = dma.hbm_to_vmem [thread:$0]  (!%p7440_p5), %s7617_s11, 128, %s1169_s0, [#allocation24]  }
 0x11f   : > { %1198 = sbr.rel (%p7428_p3) target bundleno = 5251 (0x1483), region = 168 }
 0x124   : > { %7113 = dma.done.wait (%p6503_p2), [#allocation4], 1024  }
 0x125   : > { %7115 = vsyncadd (%p6503_p2), [#allocation4], 4294966272 }
 0x126   : > { %7117 = dma.done.wait (%p6503_p2), [#allocation6], 1408  }
 0x127   : > { %7119 = vsyncadd (%p6503_p2), [#allocation6], 4294965888 }
 0x128   : > { %7121 = dma.done.wait (%p6503_p2), [#allocation9], 9344  }
 0x129   : > { %7123 = vsyncadd (%p6503_p2), [#allocation9], 4294957952 }
 0x12a   : > { %7125 = dma.done.wait (%p6503_p2), [#allocation12], 2560  }
 0x12b   : > { %7127 = vsyncadd (%p6503_p2), [#allocation12], 4294964736 }
 0x12c   : > { %7129 = dma.done.wait (%p6503_p2), [#allocation15], 8320  }
 0x12d   : > { %7131 = vsyncadd (%p6503_p2), [#allocation15], 4294958976 }
 0x12e   : > { %7133 = dma.done.wait (%p6503_p2), [#allocation18], 1536  }
 0x12f   : > { %7135 = vsyncadd (%p6503_p2), [#allocation18], 4294965760 }
 0x130   : > { %7137 = dma.done.wait (%p6503_p2), [#allocation21], 1536  }
 0x131   : > { %7139 = vsyncadd (%p6503_p2), [#allocation21], 4294965760 }
 0x132   : > { %7141 = dma.done.wait (%p6503_p2), [#allocation24], 256  }
 0x133   : > { %7143 = vsyncadd (%p6503_p2), [#allocation24], 4294967040  ;;  %s10534_s3 = sld [smem:[#allocation34_spill]]  ;;  %p1361_p3 = scmp.lt.s32.totalorder %s7423_s5, 1  ;;  %v1383_v7 = vlaneseq  ;;  %vm1607_vm8 = vcmask 588800   ;;  %vm2299_vm9 = vcmask 130048  }
 0x134   : > { %s10310_s2 = smov 111   ;;  %s10312_s28 = smov 112   ;;  %v1586_v9 = vld [vmem:[#allocation3 + $0x20] ss:$8 sm:$0xf]  ;;  %vm2421_vm10 = vcmask 261120  }
 0x135   : > { %s10804_s5 = smov (!%p1361_p3, %s7423_s5), 1  ;;  %s10314_s25 = smov 113   ;;  %v7754_v8 = vand.u32 127, %v1383_v7  ;;  %v7757_v10 = vperm.slane %v1586_v9, 3  ;;  %v7764_v18 = vperm.slane %v1586_v9, 2  ;;  %v7814_v49 = vperm.slane %v1586_v9, 0 }
 0x136   : > { %s10303_s10 = sshll.u32 %s10804_s5, 5  ;;  %s10400_s16 = smov 127   ;;  %v1558_v16 = vld [vmem:[#allocation3 + $0x7] ss:$8 sm:$0xf]  ;;  %v7816_v50 = vperm.slane %v1586_v9, 1 }
 0x137   : > { %s10372_s11 = smov 1   ;;  %s10308_s26 = smov 15   ;;  %10535 = vst [vmem:[#allocation61_spill] sm:$0xff] %v7754_v8  ;;  %vm1580_vm0 = vcmp.lt.s32.totalorder %v7754_v8, 111  ;;  %v7762_v17 = vperm.slane %v1558_v16, 3  ;;  %vm1552_vm1 = vcmp.lt.s32.totalorder %v7754_v8, 112 }
 0x138   : > { %s10306_s15 = smov 16   ;;  %s10304_s0 = smov 17   ;;  %10536 = vst [vmem:[#allocation62_spill] sm:$0xff] %v7757_v10  ;;  %v7767_v21 = vperm.slane %v1558_v16, 2  ;;  %vm1524_vm2 = vcmp.lt.s32.totalorder %v7754_v8, 113  ;;  %vm1496_vm3 = vcmp.lt.s32.totalorder %v7754_v8, 127 }
 0x139   : > { %s1365_s18 = scalar_lea.vmem %s10534_s3, %s10303_s10  ;;  %10537 = vst [vmem:[#allocation63_spill] sm:$0xff] %v7762_v17  ;;  %v1530_v28 = vld [vmem:[#allocation3 + $0x6] ss:$8 sm:$0xf]  ;;  %v7819_v53 = vperm.slane %v1558_v16, 0  ;;  %v7821_v54 = vperm.slane %v1558_v16, 1 }
 0x13a   : > { %v7680_v1 = vld [vmem:[%s1365_s18 + $0x18] sm:$0xff]  ;;  %v7682_v2 = vld [vmem:[%s1365_s18 + $0x10] sm:$0xff]  ;;  %v7684_v3 = vld [vmem:[%s1365_s18] sm:$0xff]  ;;  %10538 = vst [vmem:[#allocation64_spill] sm:$0xff] %v7764_v18  ;;  %v7779_v30 = vperm.slane %v1530_v28, 2  ;;  %v7782_v31 = vperm.slane %v1530_v28, 3 }
 0x13b   : > { %1578 = vrot.lane.b32.xlu1 %v7680_v1, %s10310_s2  ;;  %1548 = vrot.lane.b32.xlu2 %v7682_v2, %s10312_s28  ;;  %v7710_v4 = vld [vmem:[%s1365_s18 + $0x8] sm:$0xff]  ;;  %10539 = vst [vmem:[#allocation65_spill] sm:$0xff] %v7767_v21  ;;  %v7834_v61 = vperm.slane %v1530_v28, 0  ;;  %v7836_v62 = vperm.slane %v1530_v28, 1  ;;  %vm1468_vm4 = vcmp.lt.s32.totalorder %v7754_v8, 1  ;;  %vm1440_vm5 = vcmp.lt.s32.totalorder %v7754_v8, 15 }
 0x13c   : > { %1572 = vrot.lane.b32.xlu0 %v7684_v3, %s10310_s2  ;;  %10540 = vst [vmem:[#allocation66_spill] sm:$0xff] %v7779_v30  ;;  %v7792_v39 = vld [vmem:[#allocation3 + $0x5] ss:$8 sm:$0xf]  ;;  %s10554_s1 = sld [smem:[#allocation43_spill]]  ;;  %vm1412_vm6 = vcmp.lt.s32.totalorder %v7754_v8, 16 }
 0x13d   : > { %10541 = vst [vmem:[#allocation67_spill] sm:$0xff] %v7782_v31  ;;  %v7795_v40 = vperm.slane %v7792_v39, 2  ;;  %v7799_v41 = vperm.slane %v7792_v39, 3  ;;  %s10558_s13 = sld [smem:[#allocation42_spill]]  ;;  %vm1385_vm7 = vcmp.lt.s32.totalorder %v7754_v8, 17  ;;  %s10320_s18 = smov 121  }
 0x13e   : > { %10544 = vst [vmem:[#allocation70_spill] sm:$0xff] %v7814_v49  ;;  %s10574_s23 = sld [smem:[#allocation45_spill]]  ;;  %s10326_s10 = smov 7   ;;  %vm2832_vm11 = vcmask 64512  }
 0x13f   : > { %10542 = vst [vmem:[#allocation68_spill] sm:$0xff] %v7795_v40  ;;  %s10575_s3 = sld [smem:[#allocation44_spill]]  ;;  %s10625_s8 = smov 1  }
 0x140   : > { %10543 = vst [vmem:[#allocation69_spill] sm:$0xff] %v7799_v41  ;;  %s10626_s9 = smov 7   ;;  %s10628_s6 = sld [smem:[#allocation59_spill]] }
 0x141   : > { %10545 = vst [vmem:[#allocation71_spill] sm:$0xff] %v7816_v50 }
 0x142   : > { %10546 = vst [vmem:[#allocation72_spill] sm:$0xff] %v7819_v53 }
 0x143   : > { %1550 = vrot.lane.b32.xlu2 %v7680_v1, %s10312_s28  ;;  %1544 = vrot.lane.b32.xlu1 %v7684_v3, %s10312_s28  ;;  %10547 = vst [vmem:[#allocation73_spill] sm:$0xff] %v7821_v54 }
 0x144   : > { %1576 = vrot.lane.b32.xlu0 %v7682_v2, %s10310_s2  ;;  %10548 = vst [vmem:[#allocation74_spill] sm:$0xff] %v7834_v61 }
 0x145   : > { %10549 = vst [vmem:[#allocation75_spill] sm:$0xff] %v7836_v62 }
 0x14b   : > { %1522 = vrot.lane.b32.xlu2 %v7680_v1, %s10314_s25  ;;  %1520 = vrot.lane.b32.xlu1 %v7682_v2, %s10314_s25 }
 0x14c   : > { %1516 = vrot.lane.b32.xlu0 %v7684_v3, %s10314_s25 }
 0x153   : > { %1494 = vrot.lane.b32.xlu2 %v7680_v1, %s10400_s16  ;;  %1492 = vrot.lane.b32.xlu1 %v7682_v2, %s10400_s16 }
 0x154   : > { %1488 = vrot.lane.b32.xlu0 %v7684_v3, %s10400_s16 }
 0x15b   : > { %1462 = vrot.lane.b32.xlu2 %v7710_v4, %s10372_s11  ;;  %1546 = vrot.lane.b32.xlu1 %v7710_v4, %s10312_s28 }
 0x15c   : > { %1574 = vrot.lane.b32.xlu0 %v7710_v4, %s10310_s2 }
 0x163   : > { %1518 = vrot.lane.b32.xlu2 %v7710_v4, %s10314_s25  ;;  %1466 = vrot.lane.b32.xlu1 %v7680_v1, %s10372_s11 }
 0x164   : > { %1464 = vrot.lane.b32.xlu0 %v7682_v2, %s10372_s11 }
 0x16b   : > { %1438 = vrot.lane.b32.xlu2 %v7680_v1, %s10308_s26  ;;  %1436 = vrot.lane.b32.xlu1 %v7682_v2, %s10308_s26 }
 0x16c   : > { %1434 = vrot.lane.b32.xlu0 %v7710_v4, %s10308_s26 }
 0x173   : > { %1408 = vrot.lane.b32.xlu2 %v7682_v2, %s10306_s15  ;;  %1406 = vrot.lane.b32.xlu1 %v7710_v4, %s10306_s15 }
 0x174   : > { %1490 = vrot.lane.b32.xlu0 %v7710_v4, %s10400_s16 }
 0x17b   : > { %1379 = vrot.lane.b32.xlu2 %v7682_v2, %s10304_s0  ;;  %1377 = vrot.lane.b32.xlu1 %v7710_v4, %s10304_s0 }
 0x17c   : > { %1410 = vrot.lane.b32.xlu0 %v7680_v1, %s10306_s15 }
 0x183   : > { %1432 = vrot.lane.b32.xlu2 %v7684_v3, %s10308_s26  ;;  %1460 = vrot.lane.b32.xlu1 %v7684_v3, %s10372_s11 }
 0x184   : > { %1381 = vrot.lane.b32.xlu0 %v7680_v1, %s10304_s0 }
 0x18b   : > { %1375 = vrot.lane.b32.xlu1 %v7684_v3, %s10304_s0 }
 0x18c   : > { %1404 = vrot.lane.b32.xlu0 %v7684_v3, %s10306_s15 }
 0x195   : > { %v7752_v5 = vpop.permute.xlu2 %1548 }
 0x19d   : > { %v1551_v6 = vpop.permute.xlu2 %1550 }
 0x19e   : > { %v1553_v25 = vsel %vm1552_vm1, %v7752_v5, %v1551_v6 }
 0x19f   : > { %v1570_v29 = vmul.f32 %v7767_v21, %v1553_v25 }
 0x1a5   : > { %v1523_v11 = vpop.permute.xlu2 %1522 }
 0x1ad   : > { %v1579_v12 = vpop.permute.xlu1 %1578  ;;  %v1495_v23 = vpop.permute.xlu2 %1494 }
 0x1ae   : > { %v1573_v13 = vpop.permute.xlu0 %1572 }
 0x1af   : > { %v1584_v14 = vsel %vm1580_vm0, %v1579_v12, %v1573_v13 }
 0x1b0   : > { %v1599_v15 = vmul.f32 %v7757_v10, %v1584_v14 }
 0x1b2   : > { %1678 = vmatpush.msra.mxu3 %v1599_v15 }
 0x1b5   : > { %v1545_v19 = vpop.permute.xlu1 %1544  ;;  %v7790_v38 = vpop.permute.xlu2 %1462 }
 0x1b6   : > { %v1577_v20 = vpop.permute.xlu0 %1576  ;;  %v1556_v22 = vsel %vm1552_vm1, %v1551_v6, %v1545_v19 }
 0x1b7   : > { %v1581_v24 = vsel %vm1580_vm0, %v1577_v20, %v1579_v12  ;;  %v1571_v26 = vmul.f32 %v7762_v17, %v1556_v22  ;;  %v1446_v22 = vld [vmem:[#allocation3 + $0x2] ss:$8 sm:$0xf] }
 0x1b8   : > { %v1598_v27 = vmul.f32 %v7764_v18, %v1581_v24  ;;  %v7870_v24 = vperm.slane %v1446_v22, 2 }
 0x1b9   : > { %1679 = vmatpush.msra.mxu3 %v1571_v26 }
 0x1ba   : > { %1658 = vmatpush.msra.mxu2 %v1598_v27  ;;  %10553 = vst [vmem:[#allocation79_spill] sm:$0xff] %v7870_v24 }
 0x1bc   : > { %1659 = vmatpush.msra.mxu2 %v1570_v29 }
 0x1bd   : > { %v1521_v32 = vpop.permute.xlu1 %1520  ;;  %v1519_v48 = vpop.permute.xlu2 %1518 }
 0x1be   : > { %v1517_v33 = vpop.permute.xlu0 %1516  ;;  %v1525_v34 = vsel %vm1524_vm2, %v1521_v32, %v1523_v11  ;;  %v1526_v0 = vsel %vm1524_vm2, %v1519_v48, %v1521_v32 }
 0x1bf   : > { %v1528_v35 = vsel %vm1524_vm2, %v1523_v11, %v1517_v33  ;;  %v1542_v36 = vmul.f32 %v7779_v30, %v1525_v34  ;;  %v1527_v63 = vsel %vm1524_vm2, %v1517_v33, %v1519_v48  ;;  %v1541_v7 = vmul.f32 %v7836_v62, %v1526_v0  ;;  %v7879_v34 = vld [vmem:[#allocation3 + $0x1] ss:$8 sm:$0xf] }
 0x1c0   : > { %v1543_v37 = vmul.f32 %v7782_v31, %v1528_v35  ;;  %v1540_v6 = vmul.f32 %v7834_v61, %v1527_v63  ;;  %v7883_v35 = vperm.slane %v7879_v34, 2  ;;  %v7214_v48 = vmov 0  }
 0x1c1   : > { %1660 = vmatpush.msra.mxu2 %v1542_v36  ;;  %v7886_v36 = vperm.slane %v7792_v39, 0  ;;  %6614 = vset.pattern.permute.xlu2 %v7214_v48 }
 0x1c2   : > { %1680 = vmatpush.msra.mxu3 %v1543_v37  ;;  %10555 = vst [vmem:[#allocation80_spill] sm:$0xff] %v7883_v35  ;;  %v7889_v37 = vperm.slane %v7792_v39, 1  ;;  %6615 = vset.pattern.permute.xlu0 %v7214_v48 }
 0x1c3   : > { %10556 = vst [vmem:[#allocation81_spill] sm:$0xff] %v7886_v36  ;;  %6616 = vset.pattern.permute.xlu1 %v7214_v48 }
 0x1c4   : > { %10557 = vst [vmem:[#allocation82_spill] sm:$0xff] %v7889_v37 }
 0x1c5   : > { %v7801_v42 = vpop.permute.xlu1 %1492  ;;  %v7855_v12 = vpop.permute.xlu2 %1438 }
 0x1c6   : > { %v7803_v43 = vpop.permute.xlu0 %1488  ;;  %v1497_v44 = vsel %vm1496_vm3, %v7801_v42, %v1495_v23 }
 0x1c7   : > { %v1500_v45 = vsel %vm1496_vm3, %v1495_v23, %v7803_v43  ;;  %v1514_v46 = vmul.f32 %v7795_v40, %v1497_v44  ;;  %v7867_v23 = vperm.slane %v1446_v22, 3 }
 0x1c8   : > { %v1515_v47 = vmul.f32 %v7799_v41, %v1500_v45  ;;  %v1601_v45 = vld [vmem:[%s10554_s1] sm:$0xff]  ;;  %s10324_s1 = smov 120  }
 0x1c9   : > { %1661 = vmatpush.msra.mxu2 %v1514_v46  ;;  %10552 = vst [vmem:[#allocation78_spill] sm:$0xff] %v7867_v23  ;;  %1604 = vperm.xlu2 %6614, %v1601_v45  }
 0x1ca   : > { %1681 = vmatpush.msra.mxu3 %v1515_v47 }
 0x1cb   : > { %1662 = vmatpush.msra.mxu2 %v7682_v2 }
 0x1cc   : > { %1682 = vmatpush.msra.mxu3 %v7680_v1  ;;  %v7842_v1 = vld [vmem:[#allocation3 + $0x3] ss:$8 sm:$0xf] }
 0x1cd   : > { %v1547_v51 = vpop.permute.xlu1 %1546  ;;  %v7850_v9 = vperm.slane %v7842_v1, 2  ;;  %v7853_v11 = vperm.slane %v7842_v1, 3  ;;  %v1409_v28 = vpop.permute.xlu2 %1408 }
 0x1ce   : > { %v1575_v52 = vpop.permute.xlu0 %1574  ;;  %v1555_v57 = vsel %vm1552_vm1, %v1545_v19, %v1547_v51  ;;  %v1554_v58 = vsel %vm1552_vm1, %v1547_v51, %v7752_v5 }
 0x1cf   : > { %v1583_v55 = vsel %vm1580_vm0, %v1573_v13, %v1575_v52  ;;  %v1582_v56 = vsel %vm1580_vm0, %v1575_v52, %v1577_v20  ;;  %v1568_v2 = vmul.f32 %v7819_v53, %v1555_v57  ;;  %v1569_v5 = vmul.f32 %v7821_v54, %v1554_v58  ;;  %10550 = vst [vmem:[#allocation76_spill] sm:$0xff] %v7850_v9  ;;  %v1390_v57 = vld [vmem:[#allocation3] ss:$8 sm:$0xf] }
 0x1d0   : > { %v1596_v59 = vmul.f32 %v7814_v49, %v1583_v55  ;;  %v1597_v60 = vmul.f32 %v7816_v50, %v1582_v56  ;;  %10551 = vst [vmem:[#allocation77_spill] sm:$0xff] %v7853_v11  ;;  %v7961_v48 = vperm.slane %v1390_v57, 1 }
 0x1d2   : > { %1618 = vmatpush.msra.mxu0 %v1596_v59  ;;  %1638 = vmatpush.msra.mxu1 %v1597_v60  ;;  %10569 = vst [vmem:[#allocation93_spill] sm:$0xff] %v7961_v48 }
 0x1d4   : > { %1619 = vmatpush.msra.mxu0 %v1568_v2  ;;  %1639 = vmatpush.msra.mxu1 %v1569_v5  ;;  %v1600_v5 = vld [vmem:[%s10558_s13] sm:$0xff]  ;;  %s10584_s13 = sld [smem:[#allocation47_spill]] }
 0x1d5   : > { %v7857_v13 = vpop.permute.xlu1 %1466  ;;  %v1380_v58 = vpop.permute.xlu2 %1379 }
 0x1d6   : > { %1620 = vmatpush.msra.mxu0 %v1540_v6  ;;  %1640 = vmatpush.msra.mxu1 %v1541_v7  ;;  %v1465_v14 = vpop.permute.xlu0 %1464  ;;  %v7926_v7 = vperm.slane %v7842_v1, 1 }
 0x1d7   : > { %v1470_v15 = vsel %vm1468_vm4, %v7790_v38, %v1465_v14  ;;  %v1469_v16 = vsel %vm1468_vm4, %v1465_v14, %v7857_v13  ;;  %v7928_v14 = vperm.slane %v1390_v57, 3 }
 0x1d8   : > { %v1486_v19 = vmul.f32 %v7850_v9, %v1470_v15  ;;  %v1487_v20 = vmul.f32 %v7853_v11, %v1469_v16  ;;  %10562 = vst [vmem:[#allocation86_spill] sm:$0xff] %v7926_v7  ;;  %v7930_v16 = vperm.slane %v1446_v22, 0 }
 0x1d9   : > { %10563 = vst [vmem:[#allocation87_spill] sm:$0xff] %v7928_v14 }
 0x1da   : > { %1663 = vmatpush.msra.mxu2 %v1486_v19  ;;  %1683 = vmatpush.msra.mxu3 %v1487_v20  ;;  %10564 = vst [vmem:[#allocation88_spill] sm:$0xff] %v7930_v16  ;;  %v7932_v19 = vperm.slane %v1446_v22, 1 }
 0x1dc   : > { %10565 = vst [vmem:[#allocation89_spill] sm:$0xff] %v7932_v19 }
 0x1dd   : > { %v1437_v25 = vpop.permute.xlu1 %1436 }
 0x1de   : > { %v1435_v26 = vpop.permute.xlu0 %1434  ;;  %v1441_v27 = vsel %vm1440_vm5, %v1437_v25, %v7855_v12 }
 0x1df   : > { %v1442_v29 = vsel %vm1440_vm5, %v1435_v26, %v1437_v25  ;;  %v1459_v32 = vmul.f32 %v7867_v23, %v1441_v27 }
 0x1e0   : > { %v1458_v33 = vmul.f32 %v7870_v24, %v1442_v29 }
 0x1e1   : > { %1684 = vmatpush.msra.mxu3 %v1459_v32 }
 0x1e2   : > { %1664 = vmatpush.msra.mxu2 %v1458_v33 }
 0x1e5   : > { %v7891_v44 = vpop.permute.xlu1 %1406 }
 0x1e6   : > { %v1491_v46 = vpop.permute.xlu0 %1490  ;;  %v1414_v47 = vsel %vm1412_vm6, %v7891_v44, %v1409_v28 }
 0x1e7   : > { %v1499_v51 = vsel %vm1496_vm3, %v7803_v43, %v1491_v46  ;;  %v1498_v39 = vsel %vm1496_vm3, %v1491_v46, %v7801_v42  ;;  %v1430_v52 = vmul.f32 %v7883_v35, %v1414_v47  ;;  %v7907_v43 = vperm.slane %v1390_v57, 2 }
 0x1e8   : > { %v1512_v55 = vmul.f32 %v7886_v36, %v1499_v51  ;;  %v1513_v56 = vmul.f32 %v7889_v37, %v1498_v39  ;;  %v7910_v42 = vperm.slane %v7879_v34, 3  ;;  %v7959_v47 = vperm.slane %v1390_v57, 0 }
 0x1e9   : > { %1665 = vmatpush.msra.mxu2 %v1430_v52  ;;  %10559 = vst [vmem:[#allocation83_spill] sm:$0xff] %v7907_v43 }
 0x1ea   : > { %1621 = vmatpush.msra.mxu0 %v1512_v55  ;;  %1641 = vmatpush.msra.mxu1 %v1513_v56  ;;  %10560 = vst [vmem:[#allocation84_spill] sm:$0xff] %v7910_v42 }
 0x1eb   : > { %10568 = vst [vmem:[#allocation92_spill] sm:$0xff] %v7959_v47 }
 0x1ec   : > { %1622 = vmatpush.msra.mxu0 %v7684_v3  ;;  %1642 = vmatpush.msra.mxu1 %v7710_v4  ;;  %v1433_v3 = vpop.permute.xlu2 %1432  ;;  %v7923_v4 = vperm.slane %v7842_v1, 0 }
 0x1ed   : > { %v1378_v59 = vpop.permute.xlu1 %1377  ;;  %v1444_v1 = vsel %vm1440_vm5, %v7855_v12, %v1433_v3  ;;  %v7954_v12 = vperm.slane %v7879_v34, 0 }
 0x1ee   : > { %v1411_v60 = vpop.permute.xlu0 %1410  ;;  %v1387_v63 = vsel %vm1385_vm7, %v1378_v59, %v1380_v58  ;;  %10561 = vst [vmem:[#allocation85_spill] sm:$0xff] %v7923_v4 }
 0x1ef   : > { %v1413_v0 = vsel %vm1412_vm6, %v1409_v28, %v1411_v60  ;;  %v1402_v2 = vmul.f32 %v7907_v43, %v1387_v63  ;;  %v1443_v28 = vsel %vm1440_vm5, %v1433_v3, %v1435_v26  ;;  %10566 = vst [vmem:[#allocation90_spill] sm:$0xff] %v7954_v12  ;;  %v7957_v26 = vperm.slane %v7879_v34, 1 }
 0x1f0   : > { %v1431_v6 = vmul.f32 %v7910_v42, %v1413_v0  ;;  %v1457_v33 = vmul.f32 %v7932_v19, %v1443_v28 }
 0x1f1   : > { %1666 = vmatpush.msra.mxu2 %v1402_v2  ;;  %10567 = vst [vmem:[#allocation91_spill] sm:$0xff] %v7957_v26 }
 0x1f2   : > { %1685 = vmatpush.msra.mxu3 %v1431_v6  ;;  %6193 = vmatmul.msk.f32.vlgmr.msra.gmra.mxu2 %vm1607_vm8, %v1600_v5 }
 0x1f5   : > { %v1461_v15 = vpop.permute.xlu1 %1460 }
 0x1f6   : > { %v1382_v20 = vpop.permute.xlu0 %1381  ;;  %v1472_v25 = vsel %vm1468_vm4, %v7857_v13, %v1461_v15  ;;  %v1471_v27 = vsel %vm1468_vm4, %v1461_v15, %v7790_v38  ;;  %v1456_v38 = vmul.f32 %v7930_v16, %v1444_v1  ;;  %v1825_v1 = vld [vmem:[%s10574_s23] sm:$0xff] }
 0x1f7   : > { %v1484_v29 = vmul.f32 %v7923_v4, %v1472_v25  ;;  %v1485_v22 = vmul.f32 %v7926_v7, %v1471_v27  ;;  %v1386_v32 = vsel %vm1385_vm7, %v1380_v58, %v1382_v20 }
 0x1f8   : > { %v1403_v13 = vmul.f32 %v7928_v14, %v1386_v32 }
 0x1f9   : > { %1623 = vmatpush.msra.mxu0 %v1484_v29  ;;  %1643 = vmatpush.msra.mxu1 %v1485_v22 }
 0x1fa   : > { %1686 = vmatpush.msra.mxu3 %v1403_v13 }
 0x1fb   : > { %1624 = vmatpush.msra.mxu0 %v1456_v38  ;;  %1644 = vmatpush.msra.mxu1 %v1457_v33 }
 0x1fc   : > { %6194 = vmatmul.msk.f32.vlgmr.msra.gmra.mxu3 %vm1607_vm8, %v1600_v5 }
 0x1fd   : > { %v1376_v45 = vpop.permute.xlu1 %1375 }
 0x1fe   : > { %v1405_v46 = vpop.permute.xlu0 %1404  ;;  %v1389_v52 = vsel %vm1385_vm7, %v1382_v20, %v1376_v45  ;;  %v1388_v34 = vsel %vm1385_vm7, %v1376_v45, %v1378_v59 }
 0x1ff   : > { %v1416_v51 = vsel %vm1412_vm6, %v1411_v60, %v1405_v46  ;;  %v1415_v39 = vsel %vm1412_vm6, %v1405_v46, %v7891_v44  ;;  %v1400_v57 = vmul.f32 %v7959_v47, %v1389_v52  ;;  %v1401_v58 = vmul.f32 %v7961_v48, %v1388_v34 }
 0x200   : > { %v1428_v55 = vmul.f32 %v7954_v12, %v1416_v51  ;;  %v1429_v56 = vmul.f32 %v7957_v26, %v1415_v39 }
 0x202   : > { %1625 = vmatpush.msra.mxu0 %v1428_v55  ;;  %1645 = vmatpush.msra.mxu1 %v1429_v56 }
 0x204   : > { %1626 = vmatpush.msra.mxu0 %v1400_v57  ;;  %1646 = vmatpush.msra.mxu1 %v1401_v58 }
 0x205   : > { %6191 = vmatmul.msk.f32.vlgmr.msra.gmra.mxu0 %vm1607_vm8, %v1600_v5  ;;  %6192 = vmatmul.msk.f32.vlgmr.msra.gmra.mxu1 %vm1607_vm8, %v1600_v5 }
 0x223   : > { %v1605_v44 = vpop.permute.xlu2 %1604 }
 0x275   : > { %v1668_v20 = vpop.f32.mrf.mxu2 }
 0x276   : > { %v1669_v25 = vadd.f32 %v1668_v20, %v1605_v44 }
 0x278   : > { %v8002_v27 = vmax.f32 %v1669_v25, 0.0 }
 0x27a   : > { %10573 = vst [vmem:[#allocation97_spill] sm:$0xff] %v8002_v27 }
 0x27f   : > { %v1688_v3 = vpop.f32.mrf.mxu3 }
 0x280   : > { %v1689_v5 = vadd.f32 %v1688_v3, %v1605_v44 }
 0x282   : > { %v1628_v60 = vpop.f32.mrf.mxu0  ;;  %v1648_v63 = vpop.f32.mrf.mxu1  ;;  %v7994_v15 = vmax.f32 %v1689_v5, 0.0 }
 0x283   : > { %v1629_v59 = vadd.f32 %v1628_v60, %v1605_v44  ;;  %v1649_v0 = vadd.f32 %v1648_v63, %v1605_v44 }
 0x284   : > { %10572 = vst [vmem:[#allocation96_spill] sm:$0xff] %v7994_v15 }
 0x285   : > { %v7978_v2 = vmax.f32 %v1629_v59, 0.0  ;;  %v7980_v6 = vmax.f32 %v1649_v0, 0.0 }
 0x287   : > { %10570 = vst [vmem:[#allocation94_spill] sm:$0xff] %v7978_v2  ;;  %1807 = vrot.lane.b32.xlu0 %v7978_v2, %s10310_s2  ;;  %1729 = vrot.lane.b32.xlu2 %v7980_v6, %s10308_s26 }
 0x288   : > { %10571 = vst [vmem:[#allocation95_spill] sm:$0xff] %v7980_v6  ;;  %1745 = vrot.lane.b32.xlu1 %v7980_v6, %s10372_s11 }
 0x28f   : > { %1791 = vrot.lane.b32.xlu0 %v7978_v2, %s10312_s28  ;;  %1777 = vrot.lane.b32.xlu2 %v7980_v6, %s10314_s25 }
 0x290   : > { %1793 = vrot.lane.b32.xlu1 %v7980_v6, %s10312_s28 }
 0x297   : > { %1775 = vrot.lane.b32.xlu0 %v7978_v2, %s10314_s25  ;;  %1813 = vrot.lane.b32.xlu2 %v7994_v15, %s10310_s2 }
 0x298   : > { %1697 = vrot.lane.b32.xlu1 %v7980_v6, %s10304_s0 }
 0x29f   : > { %1759 = vrot.lane.b32.xlu0 %v7978_v2, %s10400_s16  ;;  %1797 = vrot.lane.b32.xlu2 %v7994_v15, %s10312_s28 }
 0x2a0   : > { %1811 = vrot.lane.b32.xlu1 %v8002_v27, %s10310_s2 }
 0x2a7   : > { %1781 = vrot.lane.b32.xlu2 %v7994_v15, %s10314_s25  ;;  %1809 = vrot.lane.b32.xlu0 %v7980_v6, %s10310_s2 }
 0x2a8   : > { %1795 = vrot.lane.b32.xlu1 %v8002_v27, %s10312_s28 }
 0x2af   : > { %1765 = vrot.lane.b32.xlu2 %v7994_v15, %s10400_s16  ;;  %1713 = vrot.lane.b32.xlu0 %v7980_v6, %s10306_s15 }
 0x2b0   : > { %1779 = vrot.lane.b32.xlu1 %v8002_v27, %s10314_s25  ;;  %s10587_s25 = sld [smem:[#allocation49_spill]] }
 0x2b7   : > { %1747 = vrot.lane.b32.xlu2 %v8002_v27, %s10372_s11  ;;  %1761 = vrot.lane.b32.xlu0 %v7980_v6, %s10400_s16 }
 0x2b8   : > { %1763 = vrot.lane.b32.xlu1 %v8002_v27, %s10400_s16 }
 0x2bf   : > { %1717 = vrot.lane.b32.xlu2 %v7994_v15, %s10306_s15  ;;  %1749 = vrot.lane.b32.xlu0 %v7994_v15, %s10372_s11 }
 0x2c0   : > { %1733 = vrot.lane.b32.xlu1 %v7994_v15, %s10308_s26 }
 0x2c7   : > { %1699 = vrot.lane.b32.xlu2 %v8002_v27, %s10304_s0  ;;  %1731 = vrot.lane.b32.xlu0 %v8002_v27, %s10308_s26 }
 0x2c8   : > { %1715 = vrot.lane.b32.xlu1 %v8002_v27, %s10306_s15 }
 0x2cf   : > { %1727 = vrot.lane.b32.xlu2 %v7978_v2, %s10308_s26  ;;  %1701 = vrot.lane.b32.xlu0 %v7994_v15, %s10304_s0  ;;  %s10322_s26 = smov 119  }
 0x2d0   : > { %1743 = vrot.lane.b32.xlu1 %v7978_v2, %s10372_s11 }
 0x2d7   : > { %1829 = vperm.xlu2 %6614, %v1825_v1   ;;  %1711 = vrot.lane.b32.xlu0 %v7978_v2, %s10306_s15  ;;  %s10316_s15 = smov 9  }
 0x2d8   : > { %1695 = vrot.lane.b32.xlu1 %v7978_v2, %s10304_s0  ;;  %s10318_s0 = smov 8  }
 0x2e1   : > { %v8051_v28 = vpop.permute.xlu2 %1729 }
 0x2e9   : > { %v1778_v29 = vpop.permute.xlu2 %1777 }
 0x2f1   : > { %v1814_v22 = vpop.permute.xlu2 %1813 }
 0x2f9   : > { %v1808_v32 = vpop.permute.xlu0 %1807  ;;  %v1798_v45 = vpop.permute.xlu2 %1797 }
 0x2fa   : > { %v8053_v13 = vpop.permute.xlu1 %1745  ;;  %v1818_v38 = vsel %vm1580_vm0, %v1814_v22, %v1808_v32 }
 0x2fb   : > { %v1822_v33 = vmul.f32 %v1818_v38, %v7757_v10 }
 0x2fd   : > { %1919 = vmatpush.msrb.mxu3 %v1822_v33 }
 0x301   : > { %v1792_v46 = vpop.permute.xlu0 %1791  ;;  %v1782_v34 = vpop.permute.xlu2 %1781 }
 0x302   : > { %v1794_v51 = vpop.permute.xlu1 %1793  ;;  %v1802_v39 = vsel %vm1552_vm1, %v1798_v45, %v1792_v46 }
 0x303   : > { %v1806_v52 = vmul.f32 %v1802_v39, %v7762_v17  ;;  %v1801_v33 = vsel %vm1552_vm1, %v1792_v46, %v1794_v51 }
 0x305   : > { %1920 = vmatpush.msrb.mxu3 %v1806_v52 }
 0x309   : > { %v1776_v55 = vpop.permute.xlu0 %1775  ;;  %v1766_v44 = vpop.permute.xlu2 %1765 }
 0x30a   : > { %v8061_v56 = vpop.permute.xlu1 %1697  ;;  %v1786_v57 = vsel %vm1524_vm2, %v1782_v34, %v1776_v55 }
 0x30b   : > { %v1790_v58 = vmul.f32 %v1786_v57, %v7782_v31 }
 0x30d   : > { %1921 = vmatpush.msrb.mxu3 %v1790_v58 }
 0x311   : > { %v1760_v60 = vpop.permute.xlu0 %1759 }
 0x312   : > { %v1812_v63 = vpop.permute.xlu1 %1811  ;;  %v1770_v59 = vsel %vm1496_vm3, %v1766_v44, %v1760_v60 }
 0x313   : > { %v1815_v0 = vsel %vm1580_vm0, %v1812_v63, %v1814_v22  ;;  %v1774_v3 = vmul.f32 %v1770_v59, %v7799_v41 }
 0x314   : > { %v1821_v5 = vmul.f32 %v1815_v0, %v7764_v18 }
 0x315   : > { %1922 = vmatpush.msrb.mxu3 %v1774_v3 }
 0x316   : > { %1896 = vmatpush.msrb.mxu2 %v1821_v5 }
 0x317   : > { %1923 = vmatpush.msrb.mxu3 %v7994_v15 }
 0x319   : > { %v1810_v20 = vpop.permute.xlu0 %1809 }
 0x31a   : > { %v1796_v25 = vpop.permute.xlu1 %1795  ;;  %v1817_v1 = vsel %vm1580_vm0, %v1808_v32, %v1810_v20  ;;  %v1816_v38 = vsel %vm1580_vm0, %v1810_v20, %v1812_v63  ;;  %v1785_v32 = vsel %vm1524_vm2, %v1776_v55, %v1778_v29  ;;  %v1803_v63 = vmul.f32 %v1801_v33, %v7819_v53 }
 0x31b   : > { %v1819_v22 = vmul.f32 %v1817_v1, %v7814_v49  ;;  %v1820_v39 = vmul.f32 %v1816_v38, %v7816_v50  ;;  %v1799_v52 = vsel %vm1552_vm1, %v1796_v25, %v1798_v45  ;;  %v1800_v57 = vsel %vm1552_vm1, %v1794_v51, %v1796_v25  ;;  %v1748_v45 = vpop.permute.xlu2 %1747 }
 0x31c   : > { %v1805_v58 = vmul.f32 %v1799_v52, %v7767_v21  ;;  %v1804_v46 = vmul.f32 %v1800_v57, %v7821_v54  ;;  %v1787_v59 = vmul.f32 %v1785_v32, %v7834_v61 }
 0x31d   : > { %1850 = vmatpush.msrb.mxu0 %v1819_v22  ;;  %1873 = vmatpush.msrb.mxu1 %v1820_v39 }
 0x31e   : > { %1897 = vmatpush.msrb.mxu2 %v1805_v58 }
 0x31f   : > { %1851 = vmatpush.msrb.mxu0 %v1803_v63  ;;  %1874 = vmatpush.msrb.mxu1 %v1804_v46 }
 0x321   : > { %1852 = vmatpush.msrb.mxu0 %v1787_v59  ;;  %v8091_v0 = vpop.permute.xlu0 %1713  ;;  %v1826_v59 = vld [vmem:[%s10574_s23 + $0x8] sm:$0xff] }
 0x322   : > { %v1780_v51 = vpop.permute.xlu1 %1779  ;;  %1834 = vperm.xlu0 %6615, %v1826_v59  }
 0x323   : > { %v1784_v3 = vsel %vm1524_vm2, %v1778_v29, %v1780_v51  ;;  %v1783_v55 = vsel %vm1524_vm2, %v1780_v51, %v1782_v34  ;;  %v8101_v33 = vpop.permute.xlu2 %1717 }
 0x324   : > { %v1788_v5 = vmul.f32 %v1784_v3, %v7836_v62  ;;  %v1789_v20 = vmul.f32 %v1783_v55, %v7779_v30 }
 0x326   : > { %1875 = vmatpush.msrb.mxu1 %v1788_v5  ;;  %1898 = vmatpush.msrb.mxu2 %v1789_v20 }
 0x329   : > { %v1762_v25 = vpop.permute.xlu0 %1761 }
 0x32a   : > { %v1764_v1 = vpop.permute.xlu1 %1763  ;;  %v1769_v38 = vsel %vm1496_vm3, %v1760_v60, %v1762_v25  ;;  %v1752_v60 = vsel %vm1468_vm4, %v8053_v13, %v1748_v45 }
 0x32b   : > { %v1771_v22 = vmul.f32 %v1769_v38, %v7886_v36  ;;  %v1768_v29 = vsel %vm1496_vm3, %v1762_v25, %v1764_v1  ;;  %v1767_v34 = vsel %vm1496_vm3, %v1764_v1, %v1766_v44  ;;  %v1757_v44 = vmul.f32 %v1752_v60, %v7850_v9  ;;  %v1700_v46 = vpop.permute.xlu2 %1699 }
 0x32c   : > { %v1772_v39 = vmul.f32 %v1768_v29, %v7889_v37  ;;  %v1773_v52 = vmul.f32 %v1767_v34, %v7795_v40  ;;  %v1704_v38 = vsel %vm1385_vm7, %v8061_v56, %v1700_v46 }
 0x32d   : > { %1853 = vmatpush.msrb.mxu0 %v1771_v22 }
 0x32e   : > { %1876 = vmatpush.msrb.mxu1 %v1772_v39  ;;  %1899 = vmatpush.msrb.mxu2 %v1773_v52  ;;  %v1709_v39 = vmul.f32 %v1704_v38, %v7907_v43  ;;  %v1823_v52 = vld [vmem:[%s10575_s3] sm:$0xff] }
 0x32f   : > { %1854 = vmatpush.msrb.mxu0 %v7978_v2 }
 0x330   : > { %1877 = vmatpush.msrb.mxu1 %v7980_v6  ;;  %1900 = vmatpush.msrb.mxu2 %v8002_v27 }
 0x331   : > { %v1750_v57 = vpop.permute.xlu0 %1749 }
 0x332   : > { %1901 = vmatpush.msrb.mxu2 %v1757_v44  ;;  %v1734_v58 = vpop.permute.xlu1 %1733  ;;  %v1751_v32 = vsel %vm1468_vm4, %v1748_v45, %v1750_v57 }
 0x333   : > { %v1758_v63 = vmul.f32 %v1751_v32, %v7853_v11  ;;  %v1728_v34 = vpop.permute.xlu2 %1727 }
 0x335   : > { %1924 = vmatpush.msrb.mxu3 %v1758_v63  ;;  %v1737_v63 = vsel %vm1440_vm5, %v1728_v34, %v8051_v28 }
 0x339   : > { %v1732_v51 = vpop.permute.xlu0 %1731 }
 0x33a   : > { %v1716_v3 = vpop.permute.xlu1 %1715  ;;  %v1736_v55 = vsel %vm1440_vm5, %v8051_v28, %v1732_v51  ;;  %v1735_v5 = vsel %vm1440_vm5, %v1732_v51, %v1734_v58 }
 0x33b   : > { %v1741_v20 = vmul.f32 %v1736_v55, %v7870_v24  ;;  %v1742_v45 = vmul.f32 %v1735_v5, %v7867_v23  ;;  %v1720_v25 = vsel %vm1412_vm6, %v8091_v0, %v1716_v3  ;;  %v1719_v1 = vsel %vm1412_vm6, %v1716_v3, %v8101_v33 }
 0x33c   : > { %v1725_v22 = vmul.f32 %v1720_v25, %v7883_v35  ;;  %v1726_v29 = vmul.f32 %v1719_v1, %v7910_v42  ;;  %v1738_v55 = vsel %vm1440_vm5, %v1734_v58, %v1728_v34 }
 0x33d   : > { %1902 = vmatpush.msrb.mxu2 %v1741_v20  ;;  %1925 = vmatpush.msrb.mxu3 %v1742_v45  ;;  %v1739_v28 = vmul.f32 %v1738_v55, %v7930_v16  ;;  %v1824_v20 = vld [vmem:[%s10575_s3 + $0x8] sm:$0xff]  ;;  %s10624_s3 = smov 120  }
 0x33f   : > { %1903 = vmatpush.msrb.mxu2 %v1725_v22  ;;  %1926 = vmatpush.msrb.mxu3 %v1726_v29 }
 0x341   : > { %1904 = vmatpush.msrb.mxu2 %v1709_v39  ;;  %v1702_v60 = vpop.permute.xlu0 %1701 }
 0x342   : > { %v1744_v44 = vpop.permute.xlu1 %1743  ;;  %6199 = vmatmul.msk.f32.vlgmr.msrb.gmra.mxu2 %vm1607_vm8, %v1823_v52  ;;  %v1703_v32 = vsel %vm1385_vm7, %v1700_v46, %v1702_v60 }
 0x343   : > { %v1754_v59 = vsel %vm1468_vm4, %v1750_v57, %v1744_v44  ;;  %v1753_v51 = vsel %vm1468_vm4, %v1744_v44, %v8053_v13  ;;  %v1710_v3 = vmul.f32 %v1703_v32, %v7928_v14  ;;  %v1740_v57 = vmul.f32 %v1737_v63, %v7932_v19 }
 0x344   : > { %v1755_v5 = vmul.f32 %v1754_v59, %v7923_v4  ;;  %v1756_v46 = vmul.f32 %v1753_v51, %v7926_v7 }
 0x345   : > { %1927 = vmatpush.msrb.mxu3 %v1710_v3 }
 0x346   : > { %1855 = vmatpush.msrb.mxu0 %v1755_v5  ;;  %1878 = vmatpush.msrb.mxu1 %v1756_v46 }
 0x347   : > { %6201 = vmatmul.msk.f32.vlgmr.msrb.gmra.mxu3 %vm1607_vm8, %v1823_v52 }
 0x348   : > { %1856 = vmatpush.msrb.mxu0 %v1739_v28  ;;  %1879 = vmatpush.msrb.mxu1 %v1740_v57 }
 0x349   : > { %v1712_v13 = vpop.permute.xlu0 %1711 }
 0x34a   : > { %v1696_v45 = vpop.permute.xlu1 %1695  ;;  %v1722_v58 = vsel %vm1412_vm6, %v8101_v33, %v1712_v13  ;;  %v1721_v25 = vsel %vm1412_vm6, %v1712_v13, %v8091_v0  ;;  %6200 = vmatmul.msk.f32.gmra.mxu2 %vm1607_vm8, %v1824_v20  ;;  %v1830_v0 = vpop.permute.xlu2 %1829 }
 0x34b   : > { %v1723_v1 = vmul.f32 %v1722_v58, %v7954_v12  ;;  %v1724_v38 = vmul.f32 %v1721_v25, %v7957_v26  ;;  %v1706_v22 = vsel %vm1385_vm7, %v1702_v60, %v1696_v45  ;;  %v1705_v29 = vsel %vm1385_vm7, %v1696_v45, %v8061_v56 }
 0x34c   : > { %v1707_v33 = vmul.f32 %v1706_v22, %v7959_v47  ;;  %v1708_v34 = vmul.f32 %v1705_v29, %v7961_v48 }
 0x34d   : > { %1857 = vmatpush.msrb.mxu0 %v1723_v1  ;;  %1880 = vmatpush.msrb.mxu1 %v1724_v38 }
 0x34f   : > { %1858 = vmatpush.msrb.mxu0 %v1707_v33  ;;  %1881 = vmatpush.msrb.mxu1 %v1708_v34  ;;  %v2078_v34 = vld [vmem:[#allocation10 + $0x78] sm:$0xff] }
 0x350   : > { %6195 = vmatmul.msk.f32.vlgmr.msrb.gmra.mxu0 %vm1607_vm8, %v1823_v52  ;;  %6197 = vmatmul.msk.f32.vlgmr.msrb.gmra.mxu1 %vm1607_vm8, %v1823_v52 }
 0x351   : > { %6202 = vmatmul.msk.f32.gmra.mxu3 %vm1607_vm8, %v1824_v20  ;;  %2127 = vmatpush.msra.mxu0 %v2078_v34  ;;  %v2125_v34 = vld [vmem:[#allocation10 + $0x1f0] sm:$0xff] }
 0x358   : > { %6196 = vmatmul.msk.f32.gmra.mxu0 %vm1607_vm8, %v1824_v20  ;;  %6198 = vmatmul.msk.f32.gmra.mxu1 %vm1607_vm8, %v1824_v20 }
 0x394   : > { %v1835_v63 = vpop.permute.xlu0 %1834 }
 0x3c5   : > { %v1906_v28 = vpop.f32.mrf.mxu2 }
 0x3c6   : > { %v1907_v57 = vadd.f32 %v1906_v28, %v1830_v0  ;;  %v2093_v28 = vld [vmem:[#allocation10 + $0xf0] sm:$0xff] }
 0x3c8   : > { %v8208_v20 = vmax.f32 %v1907_v57, 0.0  ;;  %v2068_v57 = vld [vmem:[#allocation10 + $0x28] sm:$0xff] }
 0x3ca   : > { %v1929_v51 = vpop.f32.mrf.mxu3  ;;  %10580 = vst [vmem:[#allocation102_spill] sm:$0xff] %v8208_v20 }
 0x3cb   : > { %v1930_v55 = vadd.f32 %v1929_v51, %v1830_v0  ;;  %v2070_v51 = vld [vmem:[#allocation10 + $0x38] sm:$0xff] }
 0x3cd   : > { %v1860_v56 = vpop.f32.mrf.mxu0  ;;  %v1883_v44 = vpop.f32.mrf.mxu1  ;;  %v8200_v46 = vmax.f32 %v1930_v55, 0.0  ;;  %v2069_v55 = vld [vmem:[#allocation10 + $0x30] sm:$0xff] }
 0x3ce   : > { %v1861_v39 = vadd.f32 %v1860_v56, %v1830_v0  ;;  %v1884_v52 = vadd.f32 %v1883_v44, %v1830_v0  ;;  %v1909_v25 = vpop.f32.mrf.mxu2  ;;  %v2077_v0 = vld [vmem:[#allocation10 + $0x70] sm:$0xff]  ;;  %v2076_v56 = vld [vmem:[#allocation10 + $0x68] sm:$0xff]  ;;  %v2074_v44 = vld [vmem:[#allocation10 + $0x58] sm:$0xff] }
 0x3cf   : > { %10579 = vst [vmem:[#allocation101_spill] sm:$0xff] %v8200_v46  ;;  %v1910_v38 = vadd.f32 %v1909_v25, %v1835_v63  ;;  %2128 = vmatpush.msra.mxu0 %v2077_v0  ;;  %v2126_v25 = vld [vmem:[#allocation10 + $0x1f8] sm:$0xff] }
 0x3d0   : > { %v8182_v60 = vmax.f32 %v1861_v39, 0.0  ;;  %v8190_v59 = vmax.f32 %v1884_v52, 0.0  ;;  %v2075_v39 = vld [vmem:[#allocation10 + $0x60] sm:$0xff]  ;;  %v2073_v52 = vld [vmem:[#allocation10 + $0x50] sm:$0xff]  ;;  %2196 = vmatpush.msra.mxu3 %v2126_v25  ;;  %v2066_v0 = vld [vmem:[#allocation10 + $0x18] sm:$0xff] }
 0x3d1   : > { %v8224_v29 = vmax.f32 %v1910_v38, 0.0  ;;  %2129 = vmatpush.msra.mxu0 %v2076_v56  ;;  %v2091_v38 = vld [vmem:[#allocation10 + $0xe0] sm:$0xff]  ;;  %v2090_v56 = vld [vmem:[#allocation10 + $0xd8] sm:$0xff] }
 0x3d2   : > { %10576 = vst [vmem:[#allocation98_spill] sm:$0xff] %v8182_v60  ;;  %2023 = vrot.lane.b32.xlu0 %v8182_v60, %s10310_s2  ;;  %1983 = vrot.lane.b32.xlu2 %v8182_v60, %s10312_s28  ;;  %v2087_v25 = vld [vmem:[#allocation10 + $0xc0] sm:$0xff] }
 0x3d3   : > { %1943 = vrot.lane.b32.xlu1 %v8182_v60, %s10400_s16  ;;  %10577 = vst [vmem:[#allocation99_spill] sm:$0xff] %v8190_v59  ;;  %2130 = vmatpush.msra.mxu0 %v2075_v39  ;;  %v2108_v39 = vld [vmem:[#allocation10 + $0x168] sm:$0xff] }
 0x3d4   : > { %v1932_v13 = vpop.f32.mrf.mxu3  ;;  %10582 = vst [vmem:[#allocation104_spill] sm:$0xff] %v8224_v29  ;;  %2197 = vmatpush.msra.mxu3 %v2125_v34  ;;  %v2104_v34 = vld [vmem:[#allocation10 + $0x148] sm:$0xff] }
 0x3d5   : > { %v1863_v32 = vpop.f32.mrf.mxu0  ;;  %v1933_v45 = vadd.f32 %v1932_v13, %v1835_v63  ;;  %v1886_v1 = vpop.f32.mrf.mxu1  ;;  %2131 = vmatpush.msra.mxu0 %v2074_v44  ;;  %v2092_v13 = vld [vmem:[#allocation10 + $0xe8] sm:$0xff] }
 0x3d6   : > { %v1864_v3 = vadd.f32 %v1863_v32, %v1835_v63  ;;  %v1887_v22 = vadd.f32 %v1886_v1, %v1835_v63  ;;  %v2072_v32 = vld [vmem:[#allocation10 + $0x48] sm:$0xff]  ;;  %v2071_v63 = vld [vmem:[#allocation10 + $0x40] sm:$0xff] }
 0x3d7   : > { %v8216_v58 = vmax.f32 %v1933_v45, 0.0  ;;  %2132 = vmatpush.msra.mxu0 %v2073_v52  ;;  %v2110_v45 = vld [vmem:[#allocation10 + $0x178] sm:$0xff]  ;;  %v2067_v1 = vld [vmem:[#allocation10 + $0x20] sm:$0xff]  ;;  %v2124_v44 = vld [vmem:[#allocation10 + $0x1e8] sm:$0xff] }
 0x3d8   : > { %v8198_v5 = vmax.f32 %v1864_v3, 0.0  ;;  %v8226_v33 = vmax.f32 %v1887_v22, 0.0  ;;  %v2094_v3 = vld [vmem:[#allocation10 + $0xf8] sm:$0xff]  ;;  %2173 = vmatpush.msra.mxu2 %v2110_v45  ;;  %v2109_v22 = vld [vmem:[#allocation10 + $0x170] sm:$0xff]  ;;  %2198 = vmatpush.msra.mxu3 %v2124_v44  ;;  %v2063_v45 = vld [vmem:[#allocation10] sm:$0xff] }
 0x3d9   : > { %10581 = vst [vmem:[#allocation103_spill] sm:$0xff] %v8216_v58  ;;  %2133 = vmatpush.msra.mxu0 %v2072_v32  ;;  %2150 = vmatpush.msra.mxu1 %v2094_v3  ;;  %v2065_v52 = vld [vmem:[#allocation10 + $0x10] sm:$0xff]  ;;  %v2119_v44 = vld [vmem:[#allocation10 + $0x1c0] sm:$0xff] }
 0x3da   : > { %2027 = vrot.lane.b32.xlu0 %v8190_v59, %s10310_s2  ;;  %1987 = vrot.lane.b32.xlu2 %v8190_v59, %s10312_s28  ;;  %10578 = vst [vmem:[#allocation100_spill] sm:$0xff] %v8198_v5  ;;  %v2089_v32 = vld [vmem:[#allocation10 + $0xd0] sm:$0xff] }
 0x3db   : > { %1947 = vrot.lane.b32.xlu1 %v8190_v59, %s10400_s16  ;;  %10583 = vst [vmem:[#allocation105_spill] sm:$0xff] %v8226_v33  ;;  %2134 = vmatpush.msra.mxu0 %v2071_v63  ;;  %v2107_v63 = vld [vmem:[#allocation10 + $0x160] sm:$0xff] }
 0x3dc   : > { %2151 = vmatpush.msra.mxu1 %v2093_v28  ;;  %2174 = vmatpush.msra.mxu2 %v2109_v22  ;;  %v2088_v28 = vld [vmem:[#allocation10 + $0xc8] sm:$0xff]  ;;  %v2086_v22 = vld [vmem:[#allocation10 + $0xb8] sm:$0xff] }
 0x3dd   : > { %2135 = vmatpush.msra.mxu0 %v2070_v51  ;;  %v2123_v51 = vld [vmem:[#allocation10 + $0x1e0] sm:$0xff] }
 0x3de   : > { %2152 = vmatpush.msra.mxu1 %v2092_v13  ;;  %2175 = vmatpush.msra.mxu2 %v2108_v39  ;;  %v2122_v13 = vld [vmem:[#allocation10 + $0x1d8] sm:$0xff]  ;;  %v2103_v39 = vld [vmem:[#allocation10 + $0x140] sm:$0xff] }
 0x3df   : > { %2136 = vmatpush.msra.mxu0 %v2069_v55  ;;  %2199 = vmatpush.msra.mxu3 %v2123_v51  ;;  %v2064_v55 = vld [vmem:[#allocation10 + $0x8] sm:$0xff] }
 0x3e0   : > { %2153 = vmatpush.msra.mxu1 %v2091_v38  ;;  %2176 = vmatpush.msra.mxu2 %v2107_v63  ;;  %v2121_v38 = vld [vmem:[#allocation10 + $0x1d0] sm:$0xff]  ;;  %v2118_v63 = vld [vmem:[#allocation10 + $0x1b8] sm:$0xff] }
 0x3e1   : > { %2137 = vmatpush.msra.mxu0 %v2068_v57  ;;  %v2106_v57 = vld [vmem:[#allocation10 + $0x158] sm:$0xff]  ;;  %2200 = vmatpush.msra.mxu3 %v2122_v13 }
 0x3e2   : > { %1995 = vrot.lane.b32.xlu0 %v8200_v46, %s10312_s28  ;;  %1985 = vrot.lane.b32.xlu2 %v8198_v5, %s10312_s28  ;;  %v2082_v13 = vld [vmem:[#allocation10 + $0x98] sm:$0xff] }
 0x3e3   : > { %1945 = vrot.lane.b32.xlu1 %v8198_v5, %s10400_s16  ;;  %2138 = vmatpush.msra.mxu0 %v2067_v1  ;;  %v2105_v1 = vld [vmem:[#allocation10 + $0x150] sm:$0xff] }
 0x3e4   : > { %2154 = vmatpush.msra.mxu1 %v2090_v56  ;;  %2177 = vmatpush.msra.mxu2 %v2106_v57  ;;  %v2085_v56 = vld [vmem:[#allocation10 + $0xb0] sm:$0xff] }
 0x3e5   : > { %2139 = vmatpush.msra.mxu0 %v2066_v0  ;;  %2201 = vmatpush.msra.mxu3 %v2121_v38  ;;  %v2120_v0 = vld [vmem:[#allocation10 + $0x1c8] sm:$0xff]  ;;  %v2117_v57 = vld [vmem:[#allocation10 + $0x1b0] sm:$0xff]  ;;  %v2099_v38 = vld [vmem:[#allocation10 + $0x120] sm:$0xff] }
 0x3e6   : > { %2155 = vmatpush.msra.mxu1 %v2089_v32  ;;  %2178 = vmatpush.msra.mxu2 %v2105_v1  ;;  %v2102_v32 = vld [vmem:[#allocation10 + $0x138] sm:$0xff]  ;;  %v2081_v1 = vld [vmem:[#allocation10 + $0x90] sm:$0xff] }
 0x3e7   : > { %2140 = vmatpush.msra.mxu0 %v2065_v52  ;;  %2202 = vmatpush.msra.mxu3 %v2120_v0  ;;  %v2084_v52 = vld [vmem:[#allocation10 + $0xa8] sm:$0xff]  ;;  %v2098_v0 = vld [vmem:[#allocation10 + $0x118] sm:$0xff] }
 0x3e8   : > { %2156 = vmatpush.msra.mxu1 %v2088_v28  ;;  %2179 = vmatpush.msra.mxu2 %v2104_v34  ;;  %v2101_v28 = vld [vmem:[#allocation10 + $0x130] sm:$0xff]  ;;  %v2080_v34 = vld [vmem:[#allocation10 + $0x88] sm:$0xff] }
 0x3e9   : > { %2141 = vmatpush.msra.mxu0 %v2064_v55  ;;  %2203 = vmatpush.msra.mxu3 %v2119_v44  ;;  %v2083_v55 = vld [vmem:[#allocation10 + $0xa0] sm:$0xff] }
 0x3ea   : > { %2031 = vrot.lane.b32.xlu0 %v8208_v20, %s10310_s2  ;;  %1955 = vrot.lane.b32.xlu2 %v8200_v46, %s10400_s16 }
 0x3eb   : > { %1951 = vrot.lane.b32.xlu1 %v8208_v20, %s10400_s16  ;;  %2142 = vmatpush.msra.mxu0 %v2063_v45  ;;  %v2100_v45 = vld [vmem:[#allocation10 + $0x128] sm:$0xff] }
 0x3ec   : > { %2157 = vmatpush.msra.mxu1 %v2087_v25  ;;  %2180 = vmatpush.msra.mxu2 %v2103_v39  ;;  %v2116_v25 = vld [vmem:[#allocation10 + $0x1a8] sm:$0xff] }
 0x3ed   : > { %2204 = vmatpush.msra.mxu3 %v2118_v63  ;;  %v2113_v63 = vld [vmem:[#allocation10 + $0x190] sm:$0xff] }
 0x3ee   : > { %2158 = vmatpush.msra.mxu1 %v2086_v22  ;;  %2181 = vmatpush.msra.mxu2 %v2102_v32  ;;  %v2115_v22 = vld [vmem:[#allocation10 + $0x1a0] sm:$0xff]  ;;  %v2097_v32 = vld [vmem:[#allocation10 + $0x110] sm:$0xff] }
 0x3ef   : > { %2205 = vmatpush.msra.mxu3 %v2117_v57  ;;  %v2112_v57 = vld [vmem:[#allocation10 + $0x188] sm:$0xff] }
 0x3f0   : > { %2159 = vmatpush.msra.mxu1 %v2085_v56  ;;  %2182 = vmatpush.msra.mxu2 %v2101_v28  ;;  %v2114_v56 = vld [vmem:[#allocation10 + $0x198] sm:$0xff]  ;;  %v2096_v28 = vld [vmem:[#allocation10 + $0x108] sm:$0xff] }
 0x3f1   : > { %2206 = vmatpush.msra.mxu3 %v2116_v25 }
 0x3f2   : > { %1997 = vrot.lane.b32.xlu0 %v8216_v58, %s10312_s28  ;;  %1991 = vrot.lane.b32.xlu2 %v8208_v20, %s10312_s28 }
 0x3f3   : > { %2035 = vrot.lane.b32.xlu1 %v8200_v46, %s10310_s2  ;;  %2160 = vmatpush.msra.mxu1 %v2084_v52  ;;  %v2079_v52 = vld [vmem:[#allocation10 + $0x80] sm:$0xff] }
 0x3f4   : > { %2183 = vmatpush.msra.mxu2 %v2100_v45  ;;  %2207 = vmatpush.msra.mxu3 %v2115_v22  ;;  %v2111_v45 = vld [vmem:[#allocation10 + $0x180] sm:$0xff] }
 0x3f5   : > { %2161 = vmatpush.msra.mxu1 %v2083_v55 }
 0x3f6   : > { %2184 = vmatpush.msra.mxu2 %v2099_v38  ;;  %2208 = vmatpush.msra.mxu3 %v2114_v56 }
 0x3f7   : > { %2162 = vmatpush.msra.mxu1 %v2082_v13  ;;  %v2095_v13 = vld [vmem:[#allocation10 + $0x100] sm:$0xff] }
 0x3f8   : > { %2185 = vmatpush.msra.mxu2 %v2098_v0  ;;  %2209 = vmatpush.msra.mxu3 %v2113_v63 }
 0x3f9   : > { %2163 = vmatpush.msra.mxu1 %v2081_v1 }
 0x3fa   : > { %2033 = vrot.lane.b32.xlu0 %v8224_v29, %s10310_s2  ;;  %1957 = vrot.lane.b32.xlu2 %v8216_v58, %s10400_s16 }
 0x3fb   : > { %1949 = vrot.lane.b32.xlu1 %v8226_v33, %s10400_s16  ;;  %2164 = vmatpush.msra.mxu1 %v2080_v34 }
 0x3fc   : > { %2186 = vmatpush.msra.mxu2 %v2097_v32  ;;  %2210 = vmatpush.msra.mxu3 %v2112_v57 }
 0x3fd   : > { %2165 = vmatpush.msra.mxu1 %v2079_v52 }
 0x3fe   : > { %2187 = vmatpush.msra.mxu2 %v2096_v28  ;;  %2211 = vmatpush.msra.mxu3 %v2111_v45 }
 0x400   : > { %2188 = vmatpush.msra.mxu2 %v2095_v13 }
 0x402   : > { %2025 = vrot.lane.b32.xlu0 %v8198_v5, %s10310_s2  ;;  %1993 = vrot.lane.b32.xlu2 %v8224_v29, %s10312_s28 }
 0x403   : > { %1953 = vrot.lane.b32.xlu1 %v8224_v29, %s10400_s16 }
 0x40a   : > { %1989 = vrot.lane.b32.xlu2 %v8226_v33, %s10312_s28  ;;  %s10586_s28 = sld [smem:[#allocation51_spill]] }
 0x40b   : > { %2037 = vrot.lane.b32.xlu1 %v8216_v58, %s10310_s2 }
 0x413   : > { %2029 = vrot.lane.b32.xlu1 %v8226_v33, %s10310_s2  ;;  %s10585_s2 = sld [smem:[#allocation46_spill]] }
 0x42c   : > { %v8246_v3 = vpop.permute.xlu2 %1983 }
 0x434   : > { %v8248_v51 = vpop.permute.xlu2 %1987 }
 0x435   : > { %v2003_v38 = vsel %vm1552_vm1, %v8246_v3, %v8248_v51 }
 0x436   : > { %v2007_v56 = vmul.f32 %v2003_v38, %v7819_v53 }
 0x43c   : > { %v8250_v55 = vpop.permute.xlu2 %1985 }
 0x444   : > { %v2024_v39 = vpop.permute.xlu0 %2023  ;;  %v1956_v52 = vpop.permute.xlu2 %1955 }
 0x445   : > { %v1944_v44 = vpop.permute.xlu1 %1943 }
 0x44c   : > { %v2028_v25 = vpop.permute.xlu0 %2027  ;;  %v1992_v15 = vpop.permute.xlu2 %1991 }
 0x44d   : > { %v1948_v1 = vpop.permute.xlu1 %1947  ;;  %v2043_v0 = vsel %vm1580_vm0, %v2024_v39, %v2028_v25  ;;  %v2001_v38 = vsel %vm1552_vm1, %v8248_v51, %v1992_v15 }
 0x44e   : > { %v1963_v22 = vsel %vm1496_vm3, %v1944_v44, %v1948_v1  ;;  %v2047_v28 = vmul.f32 %v2043_v0, %v7814_v49  ;;  %v2008_v51 = vmul.f32 %v2001_v38, %v7821_v54 }
 0x44f   : > { %v1967_v34 = vmul.f32 %v1963_v22, %v7886_v36  ;;  %v1965_v22 = vsel %vm1496_vm3, %v1956_v52, %v1944_v44 }
 0x451   : > { %v1975_v32 = vmax.f32 %v8182_v60, %v1967_v34 }
 0x453   : > { %v2015_v63 = vmax.f32 %v1975_v32, %v2007_v56 }
 0x454   : > { %v1996_v57 = vpop.permute.xlu0 %1995 }
 0x455   : > { %v2055_v13 = vmax.f32 %v2015_v63, %v2047_v28  ;;  %v1946_v45 = vpop.permute.xlu1 %1945  ;;  %v2005_v63 = vsel %vm1552_vm1, %v1996_v57, %v8246_v3  ;;  %v1970_v28 = vmul.f32 %v1965_v22, %v7799_v41 }
 0x457   : > { %2143 = vmatmul.f32.vlgmr.msra.gmra.mxu0 %v2055_v13  ;;  %v1978_v3 = vmax.f32 %v8200_v46, %v1970_v28 }
 0x45c   : > { %v2032_v2 = vpop.permute.xlu0 %2031 }
 0x45d   : > { %v1952_v6 = vpop.permute.xlu1 %1951  ;;  %v2041_v44 = vsel %vm1580_vm0, %v2028_v25, %v2032_v2 }
 0x45e   : > { %v1959_v34 = vsel %vm1496_vm3, %v1952_v6, %v1956_v52  ;;  %v1961_v0 = vsel %vm1496_vm3, %v1948_v1, %v1952_v6  ;;  %v1999_v6 = vsel %vm1552_vm1, %v1992_v15, %v1996_v57  ;;  %v2010_v1 = vmul.f32 %v2005_v63, %v7762_v17 }
 0x45f   : > { %v1968_v56 = vmul.f32 %v1961_v0, %v7889_v37  ;;  %v1969_v32 = vmul.f32 %v1959_v34, %v7795_v40  ;;  %v2048_v0 = vmul.f32 %v2041_v44, %v7816_v50  ;;  %v2009_v25 = vmul.f32 %v1999_v6, %v7767_v21 }
 0x460   : > { %v2018_v15 = vmax.f32 %v1978_v3, %v2010_v1 }
 0x461   : > { %v1976_v52 = vmax.f32 %v8190_v59, %v1968_v56  ;;  %v1977_v13 = vmax.f32 %v8208_v20, %v1969_v32 }
 0x463   : > { %v2016_v34 = vmax.f32 %v1976_v52, %v2008_v51  ;;  %v2017_v57 = vmax.f32 %v1977_v13, %v2009_v25  ;;  %v1958_v52 = vpop.permute.xlu2 %1957 }
 0x464   : > { %v1998_v28 = vpop.permute.xlu0 %1997 }
 0x465   : > { %v2056_v27 = vmax.f32 %v2016_v34, %v2048_v0  ;;  %v2036_v22 = vpop.permute.xlu1 %2035 }
 0x466   : > { %v2039_v38 = vsel %vm1580_vm0, %v2032_v2, %v2036_v22  ;;  %v2045_v56 = vsel %vm1580_vm0, %v2036_v22, %v2024_v39  ;;  %v1966_v2 = vsel %vm1496_vm3, %v1958_v52, %v1946_v45 }
 0x467   : > { %v2049_v63 = vmul.f32 %v2039_v38, %v7764_v18  ;;  %v2050_v32 = vmul.f32 %v2045_v56, %v7757_v10  ;;  %2166 = vmatmul.f32.vlgmr.msra.gmra.mxu1 %v2056_v27  ;;  %v2006_v27 = vsel %vm1552_vm1, %v1998_v28, %v8250_v55  ;;  %v1974_v3 = vmul.f32 %v1966_v2, %v7799_v41 }
 0x468   : > { %v2014_v22 = vmul.f32 %v2006_v27, %v7762_v17 }
 0x469   : > { %v2057_v44 = vmax.f32 %v2017_v57, %v2049_v63  ;;  %v2058_v51 = vmax.f32 %v2018_v15, %v2050_v32  ;;  %v1982_v57 = vmax.f32 %v8216_v58, %v1974_v3 }
 0x46b   : > { %2189 = vmatmul.f32.vlgmr.msra.gmra.mxu2 %v2057_v44  ;;  %2212 = vmatmul.f32.vlgmr.msra.gmra.mxu3 %v2058_v51  ;;  %v1994_v0 = vpop.permute.xlu2 %1993 }
 0x46c   : > { %v2034_v34 = vpop.permute.xlu0 %2033  ;;  %v2000_v25 = vsel %vm1552_vm1, %v1994_v0, %v1998_v28 }
 0x46d   : > { %v1950_v6 = vpop.permute.xlu1 %1949  ;;  %v2013_v63 = vmul.f32 %v2000_v25, %v7767_v21 }
 0x46e   : > { %v1964_v38 = vsel %vm1496_vm3, %v1946_v45, %v1950_v6  ;;  %v2022_v45 = vmax.f32 %v1982_v57, %v2014_v22 }
 0x46f   : > { %v1971_v51 = vmul.f32 %v1964_v38, %v7886_v36 }
 0x471   : > { %v1979_v22 = vmax.f32 %v8198_v5, %v1971_v51 }
 0x473   : > { %v1990_v2 = vpop.permute.xlu2 %1989 }
 0x474   : > { %v2026_v32 = vpop.permute.xlu0 %2025  ;;  %v2002_v25 = vsel %vm1552_vm1, %v1990_v2, %v1994_v0  ;;  %v2004_v38 = vsel %vm1552_vm1, %v8250_v55, %v1990_v2 }
 0x475   : > { %v1954_v39 = vpop.permute.xlu1 %1953  ;;  %v2012_v57 = vmul.f32 %v2002_v25, %v7821_v54 }
 0x476   : > { %v1960_v1 = vsel %vm1496_vm3, %v1954_v39, %v1958_v52  ;;  %v1962_v15 = vsel %vm1496_vm3, %v1950_v6, %v1954_v39 }
 0x477   : > { %v1973_v13 = vmul.f32 %v1960_v1, %v7795_v40  ;;  %v1972_v1 = vmul.f32 %v1962_v15, %v7889_v37 }
 0x479   : > { %v1981_v56 = vmax.f32 %v8224_v29, %v1973_v13  ;;  %v1980_v15 = vmax.f32 %v8226_v33, %v1972_v1 }
 0x47b   : > { %v2021_v27 = vmax.f32 %v1981_v56, %v2013_v63  ;;  %v2011_v56 = vmul.f32 %v2004_v38, %v7819_v53 }
 0x47d   : > { %v2038_v44 = vpop.permute.xlu1 %2037 }
 0x47e   : > { %v2040_v28 = vsel %vm1580_vm0, %v2034_v34, %v2038_v44  ;;  %v2046_v52 = vsel %vm1580_vm0, %v2038_v44, %v2026_v32 }
 0x47f   : > { %v2053_v6 = vmul.f32 %v2040_v28, %v7764_v18  ;;  %v2054_v39 = vmul.f32 %v2046_v52, %v7757_v10  ;;  %v2019_v28 = vmax.f32 %v1979_v22, %v2011_v56  ;;  %v2020_v52 = vmax.f32 %v1980_v15, %v2012_v57 }
 0x481   : > { %v2061_v13 = vmax.f32 %v2021_v27, %v2053_v6  ;;  %v2062_v3 = vmax.f32 %v2022_v45, %v2054_v39 }
 0x483   : > { %2192 = vmatmul.f32.gmra.mxu2 %v2061_v13  ;;  %2215 = vmatmul.f32.gmra.mxu3 %v2062_v3 }
 0x485   : > { %v2030_v63 = vpop.permute.xlu1 %2029 }
 0x486   : > { %v2042_v44 = vsel %vm1580_vm0, %v2030_v63, %v2034_v34  ;;  %v2044_v0 = vsel %vm1580_vm0, %v2026_v32, %v2030_v63  ;;  %v2287_v63 = vld [vmem:[%s10584_s13] sm:$0xff] }
 0x487   : > { %v2051_v55 = vmul.f32 %v2044_v0, %v7814_v49  ;;  %v2052_v45 = vmul.f32 %v2042_v44, %v7816_v50  ;;  %v8355_v0 = vld [vmem:[#allocation5 + $0x7] ss:$0 sm:$0xff] }
 0x489   : > { %v2059_v51 = vmax.f32 %v2019_v28, %v2051_v55  ;;  %v2060_v2 = vmax.f32 %v2020_v52, %v2052_v45 }
 0x48b   : > { %2146 = vmatmul.f32.gmra.mxu0 %v2059_v51  ;;  %2169 = vmatmul.f32.gmra.mxu1 %v2060_v2  ;;  %v6617_v51 = vld [vmem:[#allocation5 + $0x6] ss:$0 sm:$0xff] }
 0x4d4   : > { %v2144_v27 = vpop.f32.mrf.mxu0 }
 0x4e4   : > { %v2167_v1 = vpop.f32.mrf.mxu1 }
 0x4e5   : > { %v2168_v6 = vadd.f32 %v2167_v1, %v2144_v27 }
 0x4ee   : > { %v2190_v39 = vpop.f32.mrf.mxu2  ;;  %v2213_v3 = vpop.f32.mrf.mxu3 }
 0x4ef   : > { %v2191_v13 = vadd.f32 %v2190_v39, %v2168_v6  ;;  %v8359_v6 = vld [vmem:[#allocation5 + $0x5] ss:$0 sm:$0xff] }
 0x4f1   : > { %v2214_v34 = vadd.f32 %v2213_v3, %v2191_v13 }
 0x4f3   : > { %2259 = vrot.lane.b32.xlu2 %v2214_v34, %s10320_s18  ;;  %2267 = vrot.lane.b32.xlu0 %v2214_v34, %s10324_s1 }
 0x506   : > { %v2193_v22 = vpop.f32.mrf.mxu2  ;;  %v2216_v56 = vpop.f32.mrf.mxu3 }
 0x508   : > { %v2147_v32 = vpop.f32.mrf.mxu0  ;;  %v2170_v25 = vpop.f32.mrf.mxu1 }
 0x509   : > { %v2171_v38 = vadd.f32 %v2170_v25, %v2147_v32 }
 0x50b   : > { %v2194_v15 = vadd.f32 %v2193_v22, %v2171_v38  ;;  %v6620_v22 = vld [vmem:[#allocation5 + $0x3] ss:$0 sm:$0xff] }
 0x50d   : > { %v2217_v57 = vadd.f32 %v2216_v56, %v2194_v15  ;;  %v2288_v56 = vld [vmem:[%s10584_s13 + $0x8] sm:$0xff] }
 0x50f   : > { %2253 = vrot.lane.b32.xlu0 %v2217_v57, %s10400_s16  ;;  %2261 = vrot.lane.b32.xlu1 %v2217_v57, %s10320_s18  ;;  %s10592_s18 = sld [smem:[#allocation54_spill]] }
 0x510   : > { %2269 = vrot.lane.b32.xlu2 %v2217_v57, %s10324_s1 }
 0x517   : > { %2243 = vrot.lane.b32.xlu0 %v2214_v34, %s10372_s11  ;;  %2251 = vrot.lane.b32.xlu1 %v2214_v34, %s10400_s16 }
 0x518   : > { %2235 = vrot.lane.b32.xlu2 %v2214_v34, %s10326_s10 }
 0x51f   : > { %2229 = vrot.lane.b32.xlu0 %v2217_v57, %s10318_s0  ;;  %2237 = vrot.lane.b32.xlu1 %v2217_v57, %s10326_s10 }
 0x520   : > { %2245 = vrot.lane.b32.xlu2 %v2217_v57, %s10372_s11 }
 0x527   : > { %2219 = vrot.lane.b32.xlu0 %v2214_v34, %s10316_s15  ;;  %2227 = vrot.lane.b32.xlu1 %v2214_v34, %s10318_s0  ;;  %s10591_s0 = sld [smem:[#allocation55_spill]] }
 0x528   : > { %2221 = vrot.lane.b32.xlu2 %v2217_v57, %s10316_s15  ;;  %s10589_s15 = sld [smem:[#allocation52_spill]] }
 0x52f   : > { %2291 = vperm.xlu0 %6615, %v2287_v63   ;;  %2277 = vrot.lane.b32.xlu1 %v2217_v57, %s10322_s26 }
 0x530   : > { %2275 = vrot.lane.b32.xlu2 %v2214_v34, %s10322_s26 }
 0x537   : > { %2296 = vperm.xlu1 %6616, %v2288_v56  }
 0x54d   : > { %v2260_v44 = vpop.permute.xlu2 %2259 }
 0x54e   : > { %v2265_v13 = vmul.f32 %v6617_v51, %v2260_v44  ;;  %v6619_v44 = vld [vmem:[#allocation5 + $0x2] ss:$0 sm:$0xff] }
 0x565   : > { %v2268_v28 = vpop.permute.xlu0 %2267 }
 0x566   : > { %v2273_v45 = vmul.f32 %v8355_v0, %v2268_v28 }
 0x56a   : > { %v2270_v55 = vpop.permute.xlu2 %2269 }
 0x56b   : > { %v2274_v52 = vmul.f32 %v8355_v0, %v2270_v55 }
 0x56d   : > { %2306 = vmatpush.msrb.mxu0 %v2274_v52 }
 0x56f   : > { %2307 = vmatpush.msrb.mxu0 %v2273_v45 }
 0x572   : > { %v2236_v39 = vpop.permute.xlu2 %2235 }
 0x57a   : > { %v2246_v15 = vpop.permute.xlu2 %2245 }
 0x57b   : > { %v2250_v63 = vmul.f32 %v6620_v22, %v2246_v15 }
 0x581   : > { %v2262_v2 = vpop.permute.xlu1 %2261  ;;  %v2254_v1 = vpop.permute.xlu0 %2253 }
 0x582   : > { %v2266_v27 = vmul.f32 %v6617_v51, %v2262_v2  ;;  %v2258_v3 = vmul.f32 %v8359_v6, %v2254_v1  ;;  %v6624_v51 = vld [vmem:[#allocation5 + $0x1] ss:$0 sm:$0xff]  ;;  %v2241_v2 = vmul.f32 %v6619_v44, %v2236_v39  ;;  %v2222_v1 = vpop.permute.xlu2 %2221 }
 0x584   : > { %2308 = vmatpush.msrb.mxu0 %v2266_v27  ;;  %v6621_v27 = vld [vmem:[#allocation5] ss:$0 sm:$0xff] }
 0x586   : > { %2309 = vmatpush.msrb.mxu0 %v2265_v13 }
 0x588   : > { %2310 = vmatpush.msrb.mxu0 %v2258_v3 }
 0x589   : > { %v2252_v32 = vpop.permute.xlu1 %2251  ;;  %v2244_v25 = vpop.permute.xlu0 %2243 }
 0x58a   : > { %v2257_v38 = vmul.f32 %v8359_v6, %v2252_v32  ;;  %v2249_v52 = vmul.f32 %v6620_v22, %v2244_v25  ;;  %v2226_v32 = vmul.f32 %v6621_v27, %v2222_v1  ;;  %v8365_v22 = vld [vmem:[#allocation5 + $0x8] ss:$0 sm:$0xff]  ;;  %v2276_v39 = vpop.permute.xlu2 %2275 }
 0x58c   : > { %2311 = vmatpush.msrb.mxu0 %v2257_v38  ;;  %v2283_v38 = vld [vmem:[%s10585_s2] sm:$0xff] }
 0x58e   : > { %2312 = vmatpush.msrb.mxu0 %v2217_v57 }
 0x590   : > { %2313 = vmatpush.msrb.mxu0 %v2214_v34 }
 0x591   : > { %v2238_v28 = vpop.permute.xlu1 %2237  ;;  %v2230_v55 = vpop.permute.xlu0 %2229 }
 0x592   : > { %2314 = vmatpush.msrb.mxu0 %v2250_v63  ;;  %v2242_v45 = vmul.f32 %v6619_v44, %v2238_v28  ;;  %v2234_v13 = vmul.f32 %v6624_v51, %v2230_v55  ;;  %v2281_v63 = vmul.f32 %v8365_v22, %v2276_v39  ;;  %v2284_v28 = vld [vmem:[%s10585_s2 + $0x8] sm:$0xff]  ;;  %v2285_v55 = vld [vmem:[%s10585_s2 + $0x10] sm:$0xff]  ;;  %v2286_v44 = vld [vmem:[%s10585_s2 + $0x18] sm:$0xff]  ;;  %s10623_s2 = sld [smem:[#allocation56_spill]] }
 0x593   : > { %v2652_v39 = vld [vmem:[%s10587_s25 + $0x8] sm:$0xff] }
 0x594   : > { %2315 = vmatpush.msrb.mxu0 %v2249_v52 }
 0x596   : > { %2316 = vmatpush.msrb.mxu0 %v2242_v45 }
 0x598   : > { %2317 = vmatpush.msrb.mxu0 %v2241_v2 }
 0x599   : > { %v2228_v57 = vpop.permute.xlu1 %2227  ;;  %v2220_v34 = vpop.permute.xlu0 %2219 }
 0x59a   : > { %v2233_v3 = vmul.f32 %v6624_v51, %v2228_v57  ;;  %2318 = vmatpush.msrb.mxu0 %v2234_v13  ;;  %v2225_v25 = vmul.f32 %v6621_v27, %v2220_v34 }
 0x59c   : > { %2319 = vmatpush.msrb.mxu0 %v2233_v3 }
 0x59e   : > { %2320 = vmatpush.msrb.mxu0 %v2226_v32 }
 0x5a0   : > { %2321 = vmatpush.msrb.mxu0 %v2225_v25 }
 0x5a1   : > { %v2278_v15 = vpop.permute.xlu1 %2277  ;;  %2322 = vmatmul.f32.vlgmr.msrb.gmra.mxu0 %v2283_v38  ;;  %v2292_v45 = vpop.permute.xlu0 %2291  ;;  %v3041_v38 = vld [vmem:[%s10586_s28] sm:$0xff] }
 0x5a2   : > { %v2282_v56 = vmul.f32 %v8365_v22, %v2278_v15  ;;  %v2651_v15 = vld [vmem:[%s10587_s25] sm:$0xff] }
 0x5a4   : > { %2343 = vmatpush.msrb.mxu1 %v2282_v56  ;;  %v3317_v56 = vld [vmem:[%s10589_s15 + $0x8] sm:$0xff] }
 0x5a6   : > { %2344 = vmatpush.msrb.mxu1 %v2281_v63  ;;  %v3316_v63 = vld [vmem:[%s10589_s15] sm:$0xff] }
 0x5a7   : > { %6203 = vmatmul.msk.f32.vlgmr.msrb.gmra.mxu1 %vm2299_vm9, %v2284_v28  ;;  %v3042_v28 = vld [vmem:[%s10586_s28 + $0x8] sm:$0xff] }
 0x5a9   : > { %2325 = vmatmul.f32.gmra.mxu0 %v2285_v55  ;;  %v2297_v27 = vpop.permute.xlu1 %2296  ;;  %v4333_v55 = vld [vmem:[%s10591_s0] sm:$0xff] }
 0x5af   : > { %6204 = vmatmul.msk.f32.gmra.mxu1 %vm2299_vm9, %v2286_v44  ;;  %v3870_v44 = vld [vmem:[%s10592_s18 + $0x8] sm:$0xff] }
 0x61e   : > { %v2323_v52 = vpop.f32.mrf.mxu0 }
 0x61f   : > { %v2324_v51 = vadd.f32 %v2323_v52, %v2292_v45  ;;  %v3869_v52 = vld [vmem:[%s10592_s18] sm:$0xff] }
 0x620   : > { %v2393_v45 = vld [vmem:[#allocation11 + $0x78] sm:$0xff] }
 0x621   : > { %2394 = vmatpush.msrb.mxu2 %v2393_v45 }
 0x624   : > { %v2346_v2 = vpop.f32.mrf.mxu1 }
 0x625   : > { %v2347_v1 = vadd.f32 %v2346_v2, %v2324_v51  ;;  %v4334_v51 = vld [vmem:[%s10591_s0 + $0x8] sm:$0xff]  ;;  %v2392_v2 = vld [vmem:[#allocation11 + $0x70] sm:$0xff]  ;;  %s10607_s0 = sld [smem:[#allocation53_spill]] }
 0x626   : > { %v2326_v13 = vpop.f32.mrf.mxu0  ;;  %2395 = vmatpush.msrb.mxu2 %v2392_v2 }
 0x627   : > { %v8374_v57 = vmax.f32 %v2347_v1, 0.0  ;;  %v2327_v3 = vadd.f32 %v2326_v13, %v2297_v27  ;;  %v2391_v1 = vld [vmem:[#allocation11 + $0x68] sm:$0xff]  ;;  %v2390_v27 = vld [vmem:[#allocation11 + $0x60] sm:$0xff]  ;;  %v2389_v13 = vld [vmem:[#allocation11 + $0x58] sm:$0xff] }
 0x628   : > { %2396 = vmatpush.msrb.mxu2 %v2391_v1 }
 0x629   : > { %10588 = vst [vmem:[#allocation106_spill] sm:$0xff] %v8374_v57  ;;  %2370 = vrot.lane.b32.xlu1 %v8374_v57, %s10322_s26  ;;  %2362 = vrot.lane.b32.xlu0 %v8374_v57, %s10324_s1 }
 0x62a   : > { %2354 = vrot.lane.b32.xlu2 %v8374_v57, %s10400_s16  ;;  %2397 = vmatpush.msrb.mxu2 %v2390_v27 }
 0x62c   : > { %v2349_v34 = vpop.f32.mrf.mxu1  ;;  %2398 = vmatpush.msrb.mxu2 %v2389_v13 }
 0x62d   : > { %v2350_v32 = vadd.f32 %v2349_v34, %v2327_v3  ;;  %v2388_v3 = vld [vmem:[#allocation11 + $0x50] sm:$0xff]  ;;  %v2387_v34 = vld [vmem:[#allocation11 + $0x48] sm:$0xff] }
 0x62e   : > { %2399 = vmatpush.msrb.mxu2 %v2388_v3 }
 0x62f   : > { %v8382_v25 = vmax.f32 %v2350_v32, 0.0  ;;  %v2386_v32 = vld [vmem:[#allocation11 + $0x40] sm:$0xff] }
 0x630   : > { %2400 = vmatpush.msrb.mxu2 %v2387_v34 }
 0x631   : > { %10590 = vst [vmem:[#allocation107_spill] sm:$0xff] %v8382_v25  ;;  %2372 = vrot.lane.b32.xlu1 %v8382_v25, %s10322_s26  ;;  %2364 = vrot.lane.b32.xlu0 %v8382_v25, %s10324_s1  ;;  %s10593_s26 = smov 121   ;;  %s10594_s1 = smov 8  }
 0x632   : > { %2356 = vrot.lane.b32.xlu2 %v8382_v25, %s10400_s16  ;;  %2401 = vmatpush.msrb.mxu2 %v2386_v32  ;;  %s10606_s16 = sld [smem:[#allocation50_spill]] }
 0x639   : > { %3045 = vperm.xlu1 %6616, %v3041_v38   ;;  %2660 = vperm.xlu0 %6615, %v2652_v39   ;;  %v2385_v38 = vld [vmem:[#allocation11 + $0x38] sm:$0xff]  ;;  %v2384_v39 = vld [vmem:[#allocation11 + $0x30] sm:$0xff] }
 0x63a   : > { %2655 = vperm.xlu2 %6614, %v2651_v15   ;;  %2402 = vmatpush.msrb.mxu2 %v2385_v38  ;;  %v2383_v15 = vld [vmem:[#allocation11 + $0x28] sm:$0xff] }
 0x63c   : > { %2403 = vmatpush.msrb.mxu2 %v2384_v39 }
 0x63e   : > { %2404 = vmatpush.msrb.mxu2 %v2383_v15 }
 0x641   : > { %3325 = vperm.xlu1 %6616, %v3317_v56   ;;  %3320 = vperm.xlu0 %6615, %v3316_v63   ;;  %v2382_v56 = vld [vmem:[#allocation11 + $0x20] sm:$0xff]  ;;  %v2381_v63 = vld [vmem:[#allocation11 + $0x18] sm:$0xff] }
 0x642   : > { %3050 = vperm.xlu2 %6614, %v3042_v28   ;;  %2405 = vmatpush.msrb.mxu2 %v2382_v56  ;;  %v2380_v28 = vld [vmem:[#allocation11 + $0x10] sm:$0xff] }
 0x644   : > { %2406 = vmatpush.msrb.mxu2 %v2381_v63 }
 0x646   : > { %2407 = vmatpush.msrb.mxu2 %v2380_v28 }
 0x649   : > { %4337 = vperm.xlu1 %6616, %v4333_v55   ;;  %3878 = vperm.xlu0 %6615, %v3870_v44   ;;  %v2379_v55 = vld [vmem:[#allocation11 + $0x8] sm:$0xff]  ;;  %v2378_v44 = vld [vmem:[#allocation11] sm:$0xff] }
 0x64a   : > { %3873 = vperm.xlu2 %6614, %v3869_v52   ;;  %2408 = vmatpush.msrb.mxu2 %v2379_v55 }
 0x64c   : > { %2409 = vmatpush.msrb.mxu2 %v2378_v44 }
 0x651   : > { %4400 = vrot.lane.b32.xlu1 %v8382_v25, %s10326_s10  ;;  %4404 = vrot.lane.b32.xlu0 %v8374_v57, %s10372_s11 }
 0x652   : > { %4342 = vperm.xlu2 %6614, %v4334_v51  }
 0x659   : > { %4398 = vrot.lane.b32.xlu0 %v8374_v57, %s10326_s10  ;;  %s10596_s10 = sld [smem:[#allocation37_spill]] }
 0x65a   : > { %4410 = vrot.lane.b32.xlu2 %v8374_v57, %s10593_s26 }
 0x65f   : > { %v8441_v44 = vld [vmem:[%s10596_s10 + $0x18] sm:$0xff]  ;;  %v8500_v43 = vld [vmem:[%s10596_s10 + $0xb0] sm:$0xff]  ;;  %v8507_v14 = vld [vmem:[%s10596_s10 + $0x48] sm:$0xff] }
 0x660   : > { %2440 = vmatpush.msrb.mxu3 %v8441_v44  ;;  %v8503_v48 = vld [vmem:[%s10596_s10 + $0x110] sm:$0xff]  ;;  %v8510_v35 = vld [vmem:[%s10596_s10 + $0xa8] sm:$0xff]  ;;  %v8519_v26 = vld [vmem:[%s10596_s10 + $0x40] sm:$0xff] }
 0x661   : > { %4412 = vrot.lane.b32.xlu0 %v8382_v25, %s10593_s26  ;;  %v8515_v42 = vld [vmem:[%s10596_s10 + $0x108] sm:$0xff]  ;;  %v8522_v10 = vld [vmem:[%s10596_s10 + $0xa0] sm:$0xff]  ;;  %v8534_v12 = vld [vmem:[%s10596_s10 + $0xd8] sm:$0xff] }
 0x662   : > { %4406 = vrot.lane.b32.xlu2 %v8382_v25, %s10372_s11  ;;  %v8527_v47 = vld [vmem:[%s10596_s10 + $0x100] sm:$0xff]  ;;  %v8543_v16 = vld [vmem:[%s10596_s10 + $0xd0] sm:$0xff]  ;;  %v8549_v24 = vld [vmem:[%s10596_s10 + $0xc8] sm:$0xff]  ;;  %s10602_s11 = sld [smem:[#allocation48_spill]] }
 0x663   : > { %v8553_v11 = vld [vmem:[%s10596_s10 + $0xc0] sm:$0xff]  ;;  %v8561_v9 = vld [vmem:[%s10596_s10 + $0xf8] sm:$0xff]  ;;  %v8565_v19 = vld [vmem:[%s10596_s10 + $0xf0] sm:$0xff] }
 0x664   : > { %v8569_v7 = vld [vmem:[%s10596_s10 + $0xe8] sm:$0xff]  ;;  %v8580_v36 = vld [vmem:[%s10596_s10 + $0xe0] sm:$0xff] }
 0x668   : > { %v2648_v50 = vld [vmem:[%s10602_s11 + $0x8] sm:$0xff]  ;;  %v2650_v8 = vld [vmem:[%s10602_s11 + $0x18] sm:$0xff] }
 0x66a   : > { %4394 = vrot.lane.b32.xlu2 %v8382_v25, %s10594_s1 }
 0x684   : > { %v2355_v52 = vpop.permute.xlu2 %2354 }
 0x685   : > { %v8415_v45 = vmul.f32 %v8359_v6, %v2355_v52  ;;  %v6210_v52 = vld [vmem:[%s10596_s10 + $0x38] sm:$0xff] }
 0x686   : > { %2468 = vmatpush.msra.mxu1 %v6210_v52  ;;  %v8497_v52 = vld [vmem:[%s10596_s10 + $0x50] sm:$0xff] }
 0x687   : > { %10595 = vst [vmem:[#allocation108_spill] sm:$0xff] %v8415_v45  ;;  %v2360_v1 = vmax.f32 %v8374_v57, %v8415_v45 }
 0x68c   : > { %v2357_v13 = vpop.permute.xlu2 %2356 }
 0x68d   : > { %v8427_v32 = vmul.f32 %v8359_v6, %v2357_v13  ;;  %v8462_v13 = vld [vmem:[%s10596_s10 + $0x28] sm:$0xff] }
 0x68f   : > { %10599 = vst [vmem:[#allocation111_spill] sm:$0xff] %v8427_v32  ;;  %v2361_v56 = vmax.f32 %v8382_v25, %v8427_v32 }
 0x69b   : > { %v2371_v51 = vpop.permute.xlu1 %2370  ;;  %v2363_v2 = vpop.permute.xlu0 %2362 }
 0x69c   : > { %v8420_v27 = vmul.f32 %v8355_v0, %v2363_v2  ;;  %v8423_v3 = vmul.f32 %v8365_v22, %v2371_v51  ;;  %v8445_v51 = vld [vmem:[%s10596_s10 + $0x78] sm:$0xff]  ;;  %v8455_v2 = vld [vmem:[%s10596_s10 + $0x70] sm:$0xff] }
 0x69d   : > { %2524 = vmatpush.msra.mxu0 %v8445_v51 }
 0x69e   : > { %10597 = vst [vmem:[#allocation109_spill] sm:$0xff] %v8420_v27  ;;  %v2368_v34 = vmax.f32 %v2360_v1, %v8420_v27  ;;  %v8459_v1 = vld [vmem:[%s10596_s10 + $0x8] sm:$0xff] }
 0x69f   : > { %10598 = vst [vmem:[#allocation110_spill] sm:$0xff] %v8423_v3  ;;  %2525 = vmatpush.msra.mxu0 %v8455_v2 }
 0x6a0   : > { %v2376_v38 = vmax.f32 %v2368_v34, %v8423_v3  ;;  %v8467_v34 = vld [vmem:[%s10596_s10 + $0x68] sm:$0xff] }
 0x6a1   : > { %2526 = vmatpush.msra.mxu0 %v8467_v34 }
 0x6a2   : > { %2410 = vmatmul.f32.vlgmr.msrb.gmra.mxu2 %v2376_v38  ;;  %v8474_v38 = vld [vmem:[%s10596_s10] sm:$0xff] }
 0x6a3   : > { %v2373_v39 = vpop.permute.xlu1 %2372  ;;  %v2365_v15 = vpop.permute.xlu0 %2364 }
 0x6a4   : > { %v8433_v63 = vmul.f32 %v8355_v0, %v2365_v15  ;;  %v8436_v28 = vmul.f32 %v8365_v22, %v2373_v39  ;;  %v8449_v0 = vld [vmem:[%s10596_s10 + $0x10] sm:$0xff]  ;;  %v8477_v39 = vld [vmem:[%s10596_s10 + $0x20] sm:$0xff] }
 0x6a5   : > { %v8452_v22 = vld [vmem:[%s10596_s10 + $0x30] sm:$0xff]  ;;  %2441 = vmatpush.msrb.mxu3 %v8449_v0  ;;  %v8480_v15 = vld [vmem:[%s10596_s10 + $0x60] sm:$0xff] }
 0x6a6   : > { %10600 = vst [vmem:[#allocation112_spill] sm:$0xff] %v8433_v63  ;;  %v2369_v6 = vmax.f32 %v2361_v56, %v8433_v63  ;;  %2469 = vmatpush.msra.mxu1 %v8452_v22  ;;  %2527 = vmatpush.msra.mxu0 %v8480_v15  ;;  %v8486_v56 = vld [vmem:[%s10596_s10 + $0x58] sm:$0xff] }
 0x6a7   : > { %10601 = vst [vmem:[#allocation113_spill] sm:$0xff] %v8436_v28  ;;  %2442 = vmatpush.msrb.mxu3 %v8459_v1 }
 0x6a8   : > { %v2377_v55 = vmax.f32 %v2369_v6, %v8436_v28  ;;  %2470 = vmatpush.msra.mxu1 %v8462_v13  ;;  %v8489_v6 = vld [vmem:[%s10596_s10 + $0xb8] sm:$0xff]  ;;  %v3038_v28 = vld [vmem:[%s10606_s16 + $0x8] sm:$0xff] }
 0x6a9   : > { %2443 = vmatpush.msrb.mxu3 %v8474_v38 }
 0x6aa   : > { %2413 = vmatmul.f32.gmra.mxu2 %v2377_v55  ;;  %2471 = vmatpush.msra.mxu1 %v8477_v39  ;;  %v8492_v55 = vld [vmem:[%s10596_s10 + $0x118] sm:$0xff] }
 0x6ab   : > { %2496 = vmatpush.msra.mxu3 %v8486_v56  ;;  %2636 = vmatpush.msrb.mxu0 %v8492_v55 }
 0x6ac   : > { %2552 = vmatpush.msrb.mxu1 %v8489_v6 }
 0x6ad   : > { %2497 = vmatpush.msra.mxu3 %v8497_v52  ;;  %2637 = vmatpush.msrb.mxu0 %v8503_v48 }
 0x6ae   : > { %2553 = vmatpush.msrb.mxu1 %v8500_v43 }
 0x6af   : > { %2498 = vmatpush.msra.mxu3 %v8507_v14  ;;  %2638 = vmatpush.msrb.mxu0 %v8515_v42 }
 0x6b0   : > { %2554 = vmatpush.msrb.mxu1 %v8510_v35 }
 0x6b1   : > { %2499 = vmatpush.msra.mxu3 %v8519_v26  ;;  %2639 = vmatpush.msrb.mxu0 %v8527_v47 }
 0x6b2   : > { %2555 = vmatpush.msrb.mxu1 %v8522_v10 }
 0x725   : > { %v8536_v23 = vpop.f32.mrf.mxu2 }
 0x726   : > { %6205 = vmatmul.msk.f32.vlgmr.msrb.gmra.mxu3 %vm2421_vm10, %v8536_v23  ;;  %6211 = vmatmul.msk.f32.vlgmr.msra.gmra.mxu1 %vm2421_vm10, %v8536_v23 }
 0x727   : > { %6223 = vmatmul.msk.f32.vlgmr.msra.gmra.mxu0 %vm2421_vm10, %v8536_v23  ;;  %2580 = vmatpush.msrb.mxu3 %v8534_v12 }
 0x728   : > { %2760 = vmatpush.msra.mxu0 %v8561_v9 }
 0x729   : > { %2581 = vmatpush.msrb.mxu3 %v8543_v16 }
 0x72a   : > { %2761 = vmatpush.msra.mxu0 %v8565_v19 }
 0x72b   : > { %2582 = vmatpush.msrb.mxu3 %v8549_v24 }
 0x72c   : > { %2762 = vmatpush.msra.mxu0 %v8569_v7 }
 0x72d   : > { %v2414_v4 = vpop.f32.mrf.mxu2  ;;  %2583 = vmatpush.msrb.mxu3 %v8553_v11 }
 0x72e   : > { %6206 = vmatmul.msk.f32.gmra.mxu3 %vm2421_vm10, %v2414_v4  ;;  %6212 = vmatmul.msk.f32.gmra.mxu1 %vm2421_vm10, %v2414_v4 }
 0x72f   : > { %6224 = vmatmul.msk.f32.gmra.mxu0 %vm2421_vm10, %v2414_v4 }
 0x730   : > { %2763 = vmatpush.msra.mxu0 %v8580_v36 }
 0x736   : > { %6217 = vmatmul.msk.f32.vlgmr.msra.gmra.mxu3 %vm2421_vm10, %v8536_v23  ;;  %6229 = vmatmul.msk.f32.vlgmr.msrb.gmra.mxu1 %vm2421_vm10, %v8536_v23 }
 0x737   : > { %6247 = vmatmul.msk.f32.vlgmr.msrb.gmra.mxu0 %vm2421_vm10, %v8536_v23  ;;  %2608 = vmatpush.msra.mxu3 %v8561_v9 }
 0x739   : > { %2609 = vmatpush.msra.mxu3 %v8565_v19 }
 0x73b   : > { %2610 = vmatpush.msra.mxu3 %v8569_v7 }
 0x73d   : > { %2611 = vmatpush.msra.mxu3 %v8580_v36 }
 0x73e   : > { %6218 = vmatmul.msk.f32.gmra.mxu3 %vm2421_vm10, %v2414_v4  ;;  %6230 = vmatmul.msk.f32.gmra.mxu1 %vm2421_vm10, %v2414_v4 }
 0x73f   : > { %6248 = vmatmul.msk.f32.gmra.mxu0 %vm2421_vm10, %v2414_v4 }
 0x746   : > { %6235 = vmatmul.msk.f32.vlgmr.msrb.gmra.mxu3 %vm2421_vm10, %v8536_v23 }
 0x747   : > { %2735 = vmatpush.msrb.mxu3 %v8489_v6 }
 0x749   : > { %2736 = vmatpush.msrb.mxu3 %v8500_v43 }
 0x74b   : > { %2737 = vmatpush.msrb.mxu3 %v8510_v35 }
 0x74d   : > { %2738 = vmatpush.msrb.mxu3 %v8522_v10 }
 0x74e   : > { %6236 = vmatmul.msk.f32.gmra.mxu3 %vm2421_vm10, %v2414_v4 }
 0x756   : > { %6241 = vmatmul.msk.f32.vlgmr.msra.gmra.mxu3 %vm2421_vm10, %v8536_v23 }
 0x75e   : > { %6242 = vmatmul.msk.f32.gmra.mxu3 %vm2421_vm10, %v2414_v4 }
 0x7a3   : > { %v2473_v37 = vpop.f32.mrf.mxu1 }
 0x7a4   : > { %v2529_v41 = vpop.f32.mrf.mxu0 }
 0x7a9   : > { %v2445_v40 = vpop.f32.mrf.mxu3 }
 0x7ab   : > { %v2476_v62 = vpop.f32.mrf.mxu1 }
 0x7ac   : > { %v2532_v31 = vpop.f32.mrf.mxu0 }
 0x7b1   : > { %v2448_v61 = vpop.f32.mrf.mxu3 }
 0x7b4   : > { %v2641_v30 = vpop.f32.mrf.mxu0 }
 0x7b9   : > { %v2501_v17 = vpop.f32.mrf.mxu3 }
 0x7bc   : > { %v2644_v53 = vpop.f32.mrf.mxu0 }
 0x7bd   : > { %2706 = vmatpush.msra.mxu2 %v2644_v53  ;;  %v2557_v53 = vpop.f32.mrf.mxu1 }
 0x7bf   : > { %2707 = vmatpush.msra.mxu2 %v2641_v30 }
 0x7c0   : > { %6249 = vmatmul.msk.f32.vlgmr.msra.gmra.mxu2 %vm2299_vm9, %v2648_v50  ;;  %v2647_v50 = vld [vmem:[%s10602_s11] sm:$0xff] }
 0x7c1   : > { %2785 = vmatpush.msrb.mxu2 %v8492_v55  ;;  %v2504_v21 = vpop.f32.mrf.mxu3 }
 0x7c3   : > { %2786 = vmatpush.msrb.mxu2 %v8503_v48 }
 0x7c5   : > { %2787 = vmatpush.msrb.mxu2 %v8515_v42  ;;  %v2560_v59 = vpop.f32.mrf.mxu1 }
 0x7c7   : > { %2788 = vmatpush.msrb.mxu2 %v8527_v47 }
 0x7c8   : > { %6250 = vmatmul.msk.f32.gmra.mxu2 %vm2299_vm9, %v2650_v8  ;;  %v2649_v8 = vld [vmem:[%s10602_s11 + $0x10] sm:$0xff] }
 0x7c9   : > { %v2585_v49 = vpop.f32.mrf.mxu3 }
 0x7d1   : > { %v2588_v18 = vpop.f32.mrf.mxu3 }
 0x7d9   : > { %v2613_v54 = vpop.f32.mrf.mxu3 }
 0x7e1   : > { %v2616_v30 = vpop.f32.mrf.mxu3 }
 0x7e2   : > { %2669 = vmatpush.msra.mxu1 %v2616_v30  ;;  %v2798_v30 = vld [vmem:[#allocation13] sm:$0xff] }
 0x7e4   : > { %2670 = vmatpush.msra.mxu1 %v2613_v54 }
 0x7e6   : > { %2671 = vmatpush.msra.mxu1 %v2588_v18 }
 0x7e8   : > { %2672 = vmatpush.msra.mxu1 %v2585_v49  ;;  %v2656_v49 = vpop.permute.xlu2 %2655 }
 0x7ea   : > { %2673 = vmatpush.msra.mxu1 %v2560_v59 }
 0x7ec   : > { %2674 = vmatpush.msra.mxu1 %v2557_v53 }
 0x7ee   : > { %2675 = vmatpush.msra.mxu1 %v2414_v4 }
 0x7f0   : > { %2676 = vmatpush.msra.mxu1 %v8536_v23  ;;  %v2661_v23 = vpop.permute.xlu0 %2660 }
 0x7f2   : > { %2677 = vmatpush.msra.mxu1 %v2532_v31 }
 0x7f4   : > { %2678 = vmatpush.msra.mxu1 %v2529_v41 }
 0x7f6   : > { %2679 = vmatpush.msra.mxu1 %v2504_v21 }
 0x7f8   : > { %2680 = vmatpush.msra.mxu1 %v2501_v17 }
 0x7fa   : > { %2681 = vmatpush.msra.mxu1 %v2476_v62  ;;  %v2800_v62 = vld [vmem:[#allocation13 + $0x10] sm:$0xff] }
 0x7fc   : > { %2682 = vmatpush.msra.mxu1 %v2473_v37  ;;  %v2799_v37 = vld [vmem:[#allocation13 + $0x8] sm:$0xff] }
 0x7fe   : > { %2683 = vmatpush.msra.mxu1 %v2448_v61  ;;  %v2801_v61 = vld [vmem:[#allocation13 + $0x18] sm:$0xff] }
 0x7ff   : > { %2820 = vmatpush.msra.mxu3 %v2801_v61  ;;  %v8648_v61 = vld [vmem:[#allocation7] sm:$0xff] }
 0x800   : > { %2684 = vmatpush.msra.mxu1 %v2445_v40  ;;  %2854 = vmatpush.msrb.mxu0 %v8648_v61 }
 0x801   : > { %2685 = vmatmul.f32.vlgmr.msra.gmra.mxu1 %v2647_v50  ;;  %2821 = vmatpush.msra.mxu3 %v2800_v62  ;;  %v8650_v62 = vld [vmem:[#allocation7 + $0x8] sm:$0xff] }
 0x802   : > { %2879 = vmatpush.msrb.mxu1 %v8650_v62 }
 0x803   : > { %2822 = vmatpush.msra.mxu3 %v2799_v37  ;;  %v8652_v37 = vld [vmem:[#allocation7 + $0x10] sm:$0xff] }
 0x804   : > { %2904 = vmatpush.msra.mxu2 %v8652_v37 }
 0x805   : > { %2823 = vmatpush.msra.mxu3 %v2798_v30  ;;  %v8656_v30 = vld [vmem:[#allocation7 + $0x18] sm:$0xff] }
 0x809   : > { %2688 = vmatmul.f32.gmra.mxu1 %v2649_v8 }
 0x843   : > { %v2709_v18 = vpop.f32.mrf.mxu2 }
 0x84b   : > { %v2712_v21 = vpop.f32.mrf.mxu2 }
 0x87e   : > { %v2686_v54 = vpop.f32.mrf.mxu1 }
 0x87f   : > { %v2687_v59 = vadd.f32 %v2686_v54, %v2656_v49 }
 0x881   : > { %v2710_v53 = vadd.f32 %v2709_v18, %v2687_v59 }
 0x883   : > { %v8610_v4 = vmax.f32 %v2710_v53, 0.0 }
 0x885   : > { %6251 = vmatmul.msk.f32.vlgmr.msrb.gmra.mxu3 %vm2421_vm10, %v8610_v4  ;;  %6253 = vmatmul.msk.f32.vlgmr.msra.gmra.mxu0 %vm2421_vm10, %v8610_v4 }
 0x886   : > { %6255 = vmatmul.msk.f32.vlgmr.msrb.gmra.mxu2 %vm2421_vm10, %v8610_v4  ;;  %v2689_v17 = vpop.f32.mrf.mxu1  ;;  %2929 = vmatpush.msrb.mxu3 %v8656_v30 }
 0x887   : > { %v2690_v31 = vadd.f32 %v2689_v17, %v2661_v23 }
 0x889   : > { %v2713_v40 = vadd.f32 %v2712_v21, %v2690_v31 }
 0x88b   : > { %v8618_v41 = vmax.f32 %v2713_v40, 0.0 }
 0x88d   : > { %6252 = vmatmul.msk.f32.gmra.mxu3 %vm2421_vm10, %v8618_v41  ;;  %6254 = vmatmul.msk.f32.gmra.mxu0 %vm2421_vm10, %v8618_v41 }
 0x88e   : > { %6256 = vmatmul.msk.f32.gmra.mxu2 %vm2421_vm10, %v8618_v41 }
 0x902   : > { %v8626_v50 = vpop.f32.mrf.mxu0 }
 0x908   : > { %v8628_v8 = vpop.f32.mrf.mxu3 }
 0x909   : > { %10603 = vst [vmem:[#allocation114_spill] sm:$0xff] %v8628_v8  ;;  %v2746_v18 = vmax.f32 %v8610_v4, %v8628_v8  ;;  %v8632_v49 = vpop.f32.mrf.mxu2 }
 0x90a   : > { %10604 = vst [vmem:[#allocation115_spill] sm:$0xff] %v8632_v49  ;;  %v8641_v17 = vpop.f32.mrf.mxu0 }
 0x90b   : > { %v2771_v54 = vmax.f32 %v2746_v18, %v8626_v50  ;;  %v8660_v18 = vld [vmem:[#allocation7 + $0x28] sm:$0xff] }
 0x90c   : > { %2954 = vmatpush.msra.mxu0 %v8660_v18 }
 0x90d   : > { %v2796_v59 = vmax.f32 %v2771_v54, %v8632_v49  ;;  %v8662_v54 = vld [vmem:[#allocation7 + $0x30] sm:$0xff]  ;;  %v3040_v49 = vld [vmem:[%s10606_s16 + $0x18] sm:$0xff] }
 0x90e   : > { %2979 = vmatpush.msra.mxu1 %v8662_v54 }
 0x90f   : > { %6257 = vmatmul.msk.f32.vlgmr.msra.gmra.mxu3 %vm2421_vm10, %v2796_v59  ;;  %v8664_v59 = vld [vmem:[#allocation7 + $0x38] sm:$0xff] }
 0x910   : > { %v8637_v53 = vpop.f32.mrf.mxu3  ;;  %3004 = vmatpush.msrb.mxu2 %v8664_v59 }
 0x911   : > { %10605 = vst [vmem:[#allocation116_spill] sm:$0xff] %v8637_v53  ;;  %v2747_v23 = vmax.f32 %v8618_v41, %v8637_v53  ;;  %v8644_v31 = vpop.f32.mrf.mxu2 }
 0x913   : > { %v2772_v21 = vmax.f32 %v2747_v23, %v8641_v17  ;;  %v8668_v23 = vld [vmem:[#allocation7 + $0x40] sm:$0xff] }
 0x914   : > { %3029 = vmatpush.msra.mxu3 %v8668_v23 }
 0x915   : > { %v2797_v40 = vmax.f32 %v2772_v21, %v8644_v31 }
 0x917   : > { %6258 = vmatmul.msk.f32.gmra.mxu3 %vm2421_vm10, %v2797_v40 }
 0x992   : > { %v2825_v21 = vpop.f32.mrf.mxu3 }
 0x993   : > { %6259 = vmatmul.msk.f32.vlgmr.msrb.gmra.mxu0 %vm2832_vm11, %v2825_v21  ;;  %6261 = vmatmul.msk.f32.vlgmr.msrb.gmra.mxu1 %vm2832_vm11, %v2825_v21 }
 0x994   : > { %6263 = vmatmul.msk.f32.vlgmr.msra.gmra.mxu2 %vm2832_vm11, %v2825_v21  ;;  %6265 = vmatmul.msk.f32.vlgmr.msrb.gmra.mxu3 %vm2832_vm11, %v2825_v21 }
 0x99a   : > { %v2828_v40 = vpop.f32.mrf.mxu3 }
 0x99b   : > { %6260 = vmatmul.msk.f32.gmra.mxu0 %vm2832_vm11, %v2828_v40  ;;  %6262 = vmatmul.msk.f32.gmra.mxu1 %vm2832_vm11, %v2828_v40 }
 0x99c   : > { %6264 = vmatmul.msk.f32.gmra.mxu2 %vm2832_vm11, %v2828_v40  ;;  %6266 = vmatmul.msk.f32.gmra.mxu3 %vm2832_vm11, %v2828_v40 }
 0x9a3   : > { %6267 = vmatmul.msk.f32.vlgmr.msra.gmra.mxu0 %vm2832_vm11, %v2825_v21  ;;  %6269 = vmatmul.msk.f32.vlgmr.msra.gmra.mxu1 %vm2832_vm11, %v2825_v21 }
 0x9a4   : > { %6271 = vmatmul.msk.f32.vlgmr.msrb.gmra.mxu2 %vm2832_vm11, %v2825_v21  ;;  %6273 = vmatmul.msk.f32.vlgmr.msra.gmra.mxu3 %vm2832_vm11, %v2825_v21 }
 0x9ab   : > { %6268 = vmatmul.msk.f32.gmra.mxu0 %vm2832_vm11, %v2828_v40  ;;  %6270 = vmatmul.msk.f32.gmra.mxu1 %vm2832_vm11, %v2828_v40 }
 0x9ac   : > { %6272 = vmatmul.msk.f32.gmra.mxu2 %vm2832_vm11, %v2828_v40  ;;  %6274 = vmatmul.msk.f32.gmra.mxu3 %vm2832_vm11, %v2828_v40 }
 0xa10   : > { %v2881_v33 = vpop.f32.mrf.mxu1  ;;  %v2856_v60 = vpop.f32.mrf.mxu0 }
 0xa17   : > { %v2906_v46 = vpop.f32.mrf.mxu2  ;;  %v2931_v58 = vpop.f32.mrf.mxu3 }
 0xa18   : > { %v2884_v5 = vpop.f32.mrf.mxu1  ;;  %v2859_v45 = vpop.f32.mrf.mxu0 }
 0xa1f   : > { %v2909_v57 = vpop.f32.mrf.mxu2  ;;  %v2934_v25 = vpop.f32.mrf.mxu3 }
 0xa20   : > { %v2981_v63 = vpop.f32.mrf.mxu1  ;;  %v2956_v20 = vpop.f32.mrf.mxu0 }
 0xa27   : > { %v3006_v32 = vpop.f32.mrf.mxu2  ;;  %v3031_v27 = vpop.f32.mrf.mxu3 }
 0xa28   : > { %v2984_v8 = vpop.f32.mrf.mxu1  ;;  %v2959_v53 = vpop.f32.mrf.mxu0 }
 0xa2f   : > { %v3009_v29 = vpop.f32.mrf.mxu2  ;;  %v3034_v3 = vpop.f32.mrf.mxu3 }
 0xa30   : > { %3059 = vmatpush.msrb.mxu0 %v3009_v29  ;;  %3096 = vmatpush.msrb.mxu1 %v3034_v3  ;;  %v3037_v29 = vld [vmem:[%s10606_s16] sm:$0xff] }
 0xa31   : > { %v3107_v3 = vld [vmem:[#allocation8] sm:$0xff] }
 0xa32   : > { %3060 = vmatpush.msrb.mxu0 %v3006_v32  ;;  %3097 = vmatpush.msrb.mxu1 %v3031_v27  ;;  %v3039_v27 = vld [vmem:[%s10606_s16 + $0x10] sm:$0xff]  ;;  %v3138_v32 = vld [vmem:[#allocation8 + $0x8] sm:$0xff] }
 0xa33   : > { %6275 = vmatmul.msk.f32.vlgmr.msrb.gmra.mxu1 %vm2299_vm9, %v3038_v28  ;;  %3129 = vmatpush.msra.mxu2 %v3107_v3 }
 0xa34   : > { %3061 = vmatpush.msrb.mxu0 %v2984_v8  ;;  %3154 = vmatpush.msrb.mxu3 %v3138_v32  ;;  %v3288_v8 = vld [vmem:[#allocation8 + $0x40] sm:$0xff] }
 0xa36   : > { %3062 = vmatpush.msrb.mxu0 %v2981_v63  ;;  %v3163_v63 = vld [vmem:[#allocation8 + $0x10] sm:$0xff] }
 0xa37   : > { %3179 = vmatpush.msra.mxu1 %v3163_v63 }
 0xa38   : > { %3063 = vmatpush.msrb.mxu0 %v2959_v53 }
 0xa3a   : > { %3064 = vmatpush.msrb.mxu0 %v2956_v20  ;;  %v3238_v20 = vld [vmem:[#allocation8 + $0x30] sm:$0xff] }
 0xa3b   : > { %6276 = vmatmul.msk.f32.gmra.mxu1 %vm2299_vm9, %v3040_v49  ;;  %v3051_v49 = vpop.permute.xlu2 %3050 }
 0xa3c   : > { %3065 = vmatpush.msrb.mxu0 %v2828_v40 }
 0xa3e   : > { %3066 = vmatpush.msrb.mxu0 %v2825_v21 }
 0xa40   : > { %3067 = vmatpush.msrb.mxu0 %v2934_v25  ;;  %v3188_v25 = vld [vmem:[#allocation8 + $0x18] sm:$0xff] }
 0xa41   : > { %3204 = vmatpush.msrb.mxu2 %v3188_v25 }
 0xa42   : > { %3068 = vmatpush.msrb.mxu0 %v2931_v58  ;;  %v3213_v58 = vld [vmem:[#allocation8 + $0x28] sm:$0xff] }
 0xa43   : > { %3229 = vmatpush.msra.mxu3 %v3213_v58 }
 0xa44   : > { %3069 = vmatpush.msrb.mxu0 %v2909_v57  ;;  %v3263_v57 = vld [vmem:[#allocation8 + $0x38] sm:$0xff] }
 0xa45   : > { %3279 = vmatpush.msrb.mxu1 %v3263_v57 }
 0xa46   : > { %3070 = vmatpush.msrb.mxu0 %v2906_v46  ;;  %v3046_v46 = vpop.permute.xlu1 %3045 }
 0xa48   : > { %3071 = vmatpush.msrb.mxu0 %v2884_v5 }
 0xa4a   : > { %3072 = vmatpush.msrb.mxu0 %v2881_v33 }
 0xa4c   : > { %3073 = vmatpush.msrb.mxu0 %v2859_v45 }
 0xa4e   : > { %3074 = vmatpush.msrb.mxu0 %v2856_v60 }
 0xa4f   : > { %3075 = vmatmul.f32.vlgmr.msrb.gmra.mxu0 %v3037_v29 }
 0xa50   : > { %3254 = vmatpush.msra.mxu0 %v3238_v20 }
 0xa57   : > { %3078 = vmatmul.f32.gmra.mxu0 %v3039_v27 }
 0xab0   : > { %v3099_v5 = vpop.f32.mrf.mxu1 }
 0xab8   : > { %v3102_v21 = vpop.f32.mrf.mxu1 }
 0xacc   : > { %v3076_v60 = vpop.f32.mrf.mxu0 }
 0xacd   : > { %v3077_v33 = vadd.f32 %v3076_v60, %v3046_v46 }
 0xacf   : > { %v3100_v45 = vadd.f32 %v3099_v5, %v3077_v33 }
 0xad1   : > { %v8694_v28 = vmax.f32 %v3100_v45, 0.0 }
 0xad3   : > { %6277 = vmatmul.msk.f32.vlgmr.msra.gmra.mxu2 %vm2832_vm11, %v8694_v28  ;;  %6279 = vmatmul.msk.f32.vlgmr.msrb.gmra.mxu3 %vm2832_vm11, %v8694_v28 }
 0xad4   : > { %6281 = vmatmul.msk.f32.vlgmr.msra.gmra.mxu1 %vm2832_vm11, %v8694_v28  ;;  %6287 = vmatmul.msk.f32.vlgmr.msra.gmra.mxu0 %vm2832_vm11, %v8694_v28  ;;  %v3079_v53 = vpop.f32.mrf.mxu0 }
 0xad5   : > { %v3080_v40 = vadd.f32 %v3079_v53, %v3051_v49  ;;  %3304 = vmatpush.msra.mxu2 %v3288_v8  ;;  %3401 = vmatpush.msra.mxu1 %v8648_v61  ;;  %v3313_v8 = vld [vmem:[#allocation17 + $0x8] sm:$0xff]  ;;  %v3312_v49 = vld [vmem:[#allocation17] sm:$0xff]  ;;  %v3315_v53 = vld [vmem:[#allocation17 + $0x18] sm:$0xff] }
 0xad7   : > { %v3103_v29 = vadd.f32 %v3102_v21, %v3080_v40  ;;  %v3314_v21 = vld [vmem:[#allocation17 + $0x10] sm:$0xff] }
 0xad9   : > { %v8705_v27 = vmax.f32 %v3103_v29, 0.0 }
 0xadb   : > { %6278 = vmatmul.msk.f32.gmra.mxu2 %vm2832_vm11, %v8705_v27  ;;  %6280 = vmatmul.msk.f32.gmra.mxu3 %vm2832_vm11, %v8705_v27 }
 0xadc   : > { %6282 = vmatmul.msk.f32.gmra.mxu1 %vm2832_vm11, %v8705_v27  ;;  %6288 = vmatmul.msk.f32.gmra.mxu0 %vm2832_vm11, %v8705_v27 }
 0xae3   : > { %6283 = vmatmul.msk.f32.vlgmr.msrb.gmra.mxu2 %vm2832_vm11, %v8694_v28  ;;  %6285 = vmatmul.msk.f32.vlgmr.msra.gmra.mxu3 %vm2832_vm11, %v8694_v28 }
 0xae4   : > { %6289 = vmatmul.msk.f32.vlgmr.msrb.gmra.mxu1 %vm2832_vm11, %v8694_v28  ;;  %3424 = vmatpush.msrb.mxu2 %v8650_v62 }
 0xae5   : > { %3470 = vmatpush.msrb.mxu1 %v8656_v30 }
 0xaeb   : > { %6284 = vmatmul.msk.f32.gmra.mxu2 %vm2832_vm11, %v8705_v27  ;;  %6286 = vmatmul.msk.f32.gmra.mxu3 %vm2832_vm11, %v8705_v27 }
 0xaec   : > { %6290 = vmatmul.msk.f32.gmra.mxu1 %vm2832_vm11, %v8705_v27 }
 0xaf3   : > { %6291 = vmatmul.msk.f32.vlgmr.msra.gmra.mxu2 %vm2832_vm11, %v8694_v28 }
 0xaf4   : > { %6295 = vmatmul.msk.f32.vlgmr.msra.gmra.mxu1 %vm2832_vm11, %v8694_v28  ;;  %3493 = vmatpush.msra.mxu2 %v8660_v18 }
 0xaf5   : > { %3562 = vmatpush.msra.mxu1 %v8668_v23 }
 0xafb   : > { %6292 = vmatmul.msk.f32.gmra.mxu2 %vm2832_vm11, %v8705_v27 }
 0xafc   : > { %6296 = vmatmul.msk.f32.gmra.mxu1 %vm2832_vm11, %v8705_v27 }
 0xb03   : > { %6297 = vmatmul.msk.f32.vlgmr.msrb.gmra.mxu2 %vm2832_vm11, %v8694_v28 }
 0xb04   : > { %6301 = vmatmul.msk.f32.vlgmr.msrb.gmra.mxu1 %vm2832_vm11, %v8694_v28  ;;  %3596 = vmatpush.msrb.mxu2 %v8648_v61 }
 0xb05   : > { %3665 = vmatpush.msrb.mxu1 %v8656_v30 }
 0xb0b   : > { %6298 = vmatmul.msk.f32.gmra.mxu2 %vm2832_vm11, %v8705_v27 }
 0xb0c   : > { %6302 = vmatmul.msk.f32.gmra.mxu1 %vm2832_vm11, %v8705_v27 }
 0xb13   : > { %6303 = vmatmul.msk.f32.vlgmr.msra.gmra.mxu2 %vm2832_vm11, %v8694_v28 }
 0xb14   : > { %6309 = vmatmul.msk.f32.vlgmr.msra.gmra.mxu1 %vm2832_vm11, %v8694_v28  ;;  %3688 = vmatpush.msra.mxu2 %v8660_v18 }
 0xb15   : > { %3757 = vmatpush.msra.mxu1 %v8668_v23 }
 0xb1b   : > { %6304 = vmatmul.msk.f32.gmra.mxu2 %vm2832_vm11, %v8705_v27 }
 0xb1c   : > { %6310 = vmatmul.msk.f32.gmra.mxu1 %vm2832_vm11, %v8705_v27 }
 0xb51   : > { %v3181_v61 = vpop.f32.mrf.mxu1  ;;  %v3256_v58 = vpop.f32.mrf.mxu0 }
 0xb56   : > { %v3131_v30 = vpop.f32.mrf.mxu2  ;;  %v3156_v3 = vpop.f32.mrf.mxu3 }
 0xb59   : > { %v3184_v32 = vpop.f32.mrf.mxu1  ;;  %v3259_v18 = vpop.f32.mrf.mxu0 }
 0xb5e   : > { %v3134_v63 = vpop.f32.mrf.mxu2  ;;  %v3159_v20 = vpop.f32.mrf.mxu3 }
 0xb61   : > { %v3281_v25 = vpop.f32.mrf.mxu1 }
 0xb66   : > { %v3206_v57 = vpop.f32.mrf.mxu2  ;;  %v3231_v5 = vpop.f32.mrf.mxu3 }
 0xb69   : > { %v3284_v46 = vpop.f32.mrf.mxu1 }
 0xb6a   : > { %3334 = vmatpush.msrb.mxu3 %v3284_v46 }
 0xb6c   : > { %3335 = vmatpush.msrb.mxu3 %v3281_v25 }
 0xb6e   : > { %3336 = vmatpush.msrb.mxu3 %v3259_v18  ;;  %v3209_v23 = vpop.f32.mrf.mxu2  ;;  %v3234_v60 = vpop.f32.mrf.mxu3 }
 0xb70   : > { %3337 = vmatpush.msrb.mxu3 %v3256_v58 }
 0xb72   : > { %3338 = vmatpush.msrb.mxu3 %v3234_v60 }
 0xb74   : > { %3339 = vmatpush.msrb.mxu3 %v3231_v5 }
 0xb76   : > { %3340 = vmatpush.msrb.mxu3 %v8705_v27  ;;  %v3306_v33 = vpop.f32.mrf.mxu2 }
 0xb78   : > { %3341 = vmatpush.msrb.mxu3 %v8694_v28 }
 0xb7a   : > { %3342 = vmatpush.msrb.mxu3 %v3209_v23 }
 0xb7c   : > { %3343 = vmatpush.msrb.mxu3 %v3206_v57  ;;  %v3326_v57 = vpop.permute.xlu1 %3325 }
 0xb7e   : > { %3344 = vmatpush.msrb.mxu3 %v3184_v32  ;;  %v3309_v45 = vpop.f32.mrf.mxu2 }
 0xb7f   : > { %3371 = vmatpush.msrb.mxu0 %v3309_v45 }
 0xb80   : > { %3345 = vmatpush.msrb.mxu3 %v3181_v61 }
 0xb81   : > { %3372 = vmatpush.msrb.mxu0 %v3306_v33 }
 0xb82   : > { %3346 = vmatpush.msrb.mxu3 %v3159_v20  ;;  %6293 = vmatmul.msk.f32.vlgmr.msrb.gmra.mxu0 %vm2299_vm9, %v3313_v8 }
 0xb83   : > { %3447 = vmatpush.msra.mxu0 %v8652_v37 }
 0xb84   : > { %3347 = vmatpush.msrb.mxu3 %v3156_v3  ;;  %v3321_v3 = vpop.permute.xlu0 %3320 }
 0xb85   : > { %3539 = vmatpush.msrb.mxu0 %v8664_v59 }
 0xb86   : > { %3348 = vmatpush.msrb.mxu3 %v3134_v63 }
 0xb88   : > { %3349 = vmatpush.msrb.mxu3 %v3131_v30 }
 0xb89   : > { %3350 = vmatmul.f32.vlgmr.msrb.gmra.mxu3 %v3312_v49 }
 0xb8a   : > { %6294 = vmatmul.msk.f32.gmra.mxu0 %vm2299_vm9, %v3315_v53  ;;  %3516 = vmatpush.msra.mxu3 %v8662_v54 }
 0xb8c   : > { %3619 = vmatpush.msrb.mxu3 %v8650_v62  ;;  %v8782_v62 = vpop.f32.mrf.mxu1 }
 0xb91   : > { %3353 = vmatmul.f32.gmra.mxu3 %v3314_v21 }
 0xb92   : > { %6299 = vmatmul.msk.f32.vlgmr.msra.gmra.mxu0 %vm2832_vm11, %v8694_v28 }
 0xb93   : > { %3642 = vmatpush.msra.mxu0 %v8652_v37 }
 0xb94   : > { %v8784_v37 = vpop.f32.mrf.mxu1 }
 0xb99   : > { %6305 = vmatmul.msk.f32.vlgmr.msra.gmra.mxu3 %vm2832_vm11, %v8694_v28 }
 0xb9a   : > { %6300 = vmatmul.msk.f32.gmra.mxu0 %vm2832_vm11, %v8705_v27  ;;  %3711 = vmatpush.msra.mxu3 %v8662_v54 }
 0xb9c   : > { %v3472_v40 = vpop.f32.mrf.mxu1 }
 0xba1   : > { %6306 = vmatmul.msk.f32.gmra.mxu3 %vm2832_vm11, %v8705_v27 }
 0xba2   : > { %6307 = vmatmul.msk.f32.vlgmr.msrb.gmra.mxu0 %vm2832_vm11, %v8694_v28 }
 0xba3   : > { %3734 = vmatpush.msrb.mxu0 %v8664_v59  ;;  %v3426_v59 = vpop.f32.mrf.mxu2 }
 0xba4   : > { %v3475_v61 = vpop.f32.mrf.mxu1 }
 0xbaa   : > { %6308 = vmatmul.msk.f32.gmra.mxu0 %vm2832_vm11, %v8705_v27 }
 0xbab   : > { %v3429_v45 = vpop.f32.mrf.mxu2 }
 0xbac   : > { %v3564_v54 = vpop.f32.mrf.mxu1 }
 0xbb3   : > { %v3495_v53 = vpop.f32.mrf.mxu2 }
 0xbb4   : > { %v3567_v5 = vpop.f32.mrf.mxu1 }
 0xbff   : > { %v3374_v29 = vpop.f32.mrf.mxu0 }
 0xc07   : > { %v3377_v30 = vpop.f32.mrf.mxu0 }
 0xc0c   : > { %v3351_v32 = vpop.f32.mrf.mxu3 }
 0xc0d   : > { %v3352_v63 = vadd.f32 %v3351_v32, %v3321_v3  ;;  %v6313_v3 = vld [vmem:[%s10607_s0 + $0x30] sm:$0xff]  ;;  %v6642_v32 = vld [vmem:[%s10596_s10 + $0x18] sm:$0xff] }
 0xc0f   : > { %v3375_v20 = vadd.f32 %v3374_v29, %v3352_v63  ;;  %v3449_v25 = vpop.f32.mrf.mxu0  ;;  %v6643_v63 = vld [vmem:[%s10596_s10 + $0x10] sm:$0xff] }
 0xc11   : > { %v8786_v58 = vmax.f32 %v3375_v20, 0.0  ;;  %v6644_v20 = vld [vmem:[%s10596_s10 + $0x8] sm:$0xff] }
 0xc13   : > { %6315 = vmatmul.msk.f32.vlgmr.msrb.gmra.mxu2 %vm2832_vm11, %v8786_v58  ;;  %6317 = vmatmul.msk.f32.vlgmr.msrb.gmra.mxu3 %vm2832_vm11, %v8786_v58 }
 0xc14   : > { %6319 = vmatmul.msk.f32.vlgmr.msra.gmra.mxu0 %vm2832_vm11, %v8786_v58  ;;  %6321 = vmatmul.msk.f32.vlgmr.msrb.gmra.mxu1 %vm2832_vm11, %v8786_v58  ;;  %v3354_v46 = vpop.f32.mrf.mxu3 }
 0xc15   : > { %3860 = vmatpush.msrb.mxu1 %v3567_v5  ;;  %v3355_v18 = vadd.f32 %v3354_v46, %v3326_v57 }
 0xc17   : > { %v3378_v23 = vadd.f32 %v3377_v30, %v3355_v18  ;;  %3861 = vmatpush.msrb.mxu1 %v3564_v54  ;;  %v3452_v60 = vpop.f32.mrf.mxu0  ;;  %v6311_v30 = vld [vmem:[%s10607_s0 + $0x20] sm:$0xff]  ;;  %v6641_v54 = vld [vmem:[%s10596_s10 + $0x38] sm:$0xff]  ;;  %v3879_v18 = vpop.permute.xlu0 %3878 }
 0xc19   : > { %v8796_v33 = vmax.f32 %v3378_v23, 0.0  ;;  %v6645_v23 = vld [vmem:[%s10596_s10 + $0x30] sm:$0xff] }
 0xc1b   : > { %6316 = vmatmul.msk.f32.gmra.mxu2 %vm2832_vm11, %v8796_v33  ;;  %6318 = vmatmul.msk.f32.gmra.mxu3 %vm2832_vm11, %v8796_v33 }
 0xc1c   : > { %6320 = vmatmul.msk.f32.gmra.mxu0 %vm2832_vm11, %v8796_v33  ;;  %6322 = vmatmul.msk.f32.gmra.mxu1 %vm2832_vm11, %v8796_v33  ;;  %v3518_v49 = vpop.f32.mrf.mxu3 }
 0xc1f   : > { %v3541_v8 = vpop.f32.mrf.mxu0 }
 0xc23   : > { %6323 = vmatmul.msk.f32.vlgmr.msra.gmra.mxu2 %vm2832_vm11, %v8786_v58  ;;  %6325 = vmatmul.msk.f32.vlgmr.msra.gmra.mxu3 %vm2832_vm11, %v8786_v58 }
 0xc24   : > { %6327 = vmatmul.msk.f32.vlgmr.msrb.gmra.mxu0 %vm2832_vm11, %v8786_v58  ;;  %6329 = vmatmul.msk.f32.vlgmr.msra.gmra.mxu1 %vm2832_vm11, %v8786_v58  ;;  %v3521_v29 = vpop.f32.mrf.mxu3 }
 0xc25   : > { %3931 = vmatpush.msra.mxu1 %v8441_v44  ;;  %v3498_v44 = vpop.f32.mrf.mxu2 }
 0xc27   : > { %v3544_v21 = vpop.f32.mrf.mxu0  ;;  %3932 = vmatpush.msra.mxu1 %v8449_v0  ;;  %v3383_v0 = vld [vmem:[%s10607_s0 + $0x8] sm:$0xff] }
 0xc28   : > { %3823 = vmatpush.msra.mxu0 %v3544_v21 }
 0xc29   : > { %3933 = vmatpush.msra.mxu1 %v8459_v1  ;;  %v3385_v1 = vld [vmem:[%s10607_s0 + $0x18] sm:$0xff] }
 0xc2a   : > { %3824 = vmatpush.msra.mxu0 %v3541_v8  ;;  %v6647_v8 = vld [vmem:[%s10596_s10 + $0x20] sm:$0xff] }
 0xc2b   : > { %6324 = vmatmul.msk.f32.gmra.mxu2 %vm2832_vm11, %v8796_v33  ;;  %6326 = vmatmul.msk.f32.gmra.mxu3 %vm2832_vm11, %v8796_v33 }
 0xc2c   : > { %6328 = vmatmul.msk.f32.gmra.mxu0 %vm2832_vm11, %v8796_v33  ;;  %6330 = vmatmul.msk.f32.gmra.mxu1 %vm2832_vm11, %v8796_v33 }
 0xc2d   : > { %3825 = vmatpush.msra.mxu0 %v3521_v29  ;;  %3934 = vmatpush.msra.mxu1 %v8474_v38 }
 0xc2f   : > { %3826 = vmatpush.msra.mxu0 %v3518_v49  ;;  %v6648_v49 = vld [vmem:[%s10596_s10 + $0xd8] sm:$0xff] }
 0xc31   : > { %3827 = vmatpush.msra.mxu0 %v3498_v44 }
 0xc33   : > { %3828 = vmatpush.msra.mxu0 %v3495_v53  ;;  %v6649_v53 = vld [vmem:[%s10596_s10 + $0xd0] sm:$0xff] }
 0xc34   : > { %6333 = vmatmul.msk.f32.vlgmr.msrb.gmra.mxu1 %vm2299_vm9, %v3383_v0 }
 0xc35   : > { %3829 = vmatpush.msra.mxu0 %v8705_v27  ;;  %4023 = vmatpush.msrb.mxu1 %v8534_v12  ;;  %v3384_v12 = vld [vmem:[%s10607_s0 + $0x10] sm:$0xff] }
 0xc37   : > { %3830 = vmatpush.msra.mxu0 %v8694_v28  ;;  %4024 = vmatpush.msrb.mxu1 %v8543_v16  ;;  %v3382_v16 = vld [vmem:[%s10607_s0] sm:$0xff] }
 0xc39   : > { %3831 = vmatpush.msra.mxu0 %v3475_v61  ;;  %4025 = vmatpush.msrb.mxu1 %v8549_v24  ;;  %v6314_v61 = vld [vmem:[%s10607_s0 + $0x38] sm:$0xff] }
 0xc3b   : > { %3832 = vmatpush.msra.mxu0 %v3472_v40  ;;  %4026 = vmatpush.msrb.mxu1 %v8553_v11 }
 0xc3c   : > { %6334 = vmatmul.msk.f32.gmra.mxu1 %vm2299_vm9, %v3385_v1 }
 0xc3d   : > { %3833 = vmatpush.msra.mxu0 %v3452_v60 }
 0xc3f   : > { %3834 = vmatpush.msra.mxu0 %v3449_v25  ;;  %v3874_v25 = vpop.permute.xlu2 %3873 }
 0xc41   : > { %3835 = vmatpush.msra.mxu0 %v3429_v45 }
 0xc43   : > { %3836 = vmatpush.msra.mxu0 %v3426_v59 }
 0xc44   : > { %6337 = vmatmul.msk.f32.vlgmr.msra.gmra.mxu1 %vm2421_vm10, %v8610_v4 }
 0xc45   : > { %3837 = vmatpush.msra.mxu0 %v8784_v37  ;;  %4126 = vmatpush.msra.mxu1 %v8445_v51 }
 0xc47   : > { %3838 = vmatpush.msra.mxu0 %v8782_v62  ;;  %4127 = vmatpush.msra.mxu1 %v8455_v2 }
 0xc48   : > { %3839 = vmatmul.f32.vlgmr.msra.gmra.mxu0 %v3382_v16 }
 0xc49   : > { %4000 = vmatpush.msrb.mxu0 %v8445_v51  ;;  %4128 = vmatpush.msra.mxu1 %v8467_v34 }
 0xc4b   : > { %4001 = vmatpush.msrb.mxu0 %v8455_v2  ;;  %4129 = vmatpush.msra.mxu1 %v8480_v15 }
 0xc4c   : > { %6338 = vmatmul.msk.f32.gmra.mxu1 %vm2421_vm10, %v8618_v41 }
 0xc4d   : > { %4002 = vmatpush.msrb.mxu0 %v8467_v34 }
 0xc4f   : > { %4003 = vmatpush.msrb.mxu0 %v8480_v15 }
 0xc50   : > { %3842 = vmatmul.f32.gmra.mxu0 %v3384_v12 }
 0xc51   : > { %4103 = vmatpush.msra.mxu0 %v8486_v56 }
 0xc53   : > { %4104 = vmatpush.msra.mxu0 %v8497_v52 }
 0xc54   : > { %6345 = vmatmul.msk.f32.vlgmr.msrb.gmra.mxu1 %vm2421_vm10, %v8610_v4 }
 0xc55   : > { %4105 = vmatpush.msra.mxu0 %v8507_v14  ;;  %4218 = vmatpush.msrb.mxu1 %v8492_v55 }
 0xc57   : > { %4106 = vmatpush.msra.mxu0 %v8519_v26  ;;  %4219 = vmatpush.msrb.mxu1 %v8503_v48 }
 0xc58   : > { %6343 = vmatmul.msk.f32.vlgmr.msrb.gmra.mxu0 %vm2421_vm10, %v8610_v4 }
 0xc59   : > { %4195 = vmatpush.msrb.mxu0 %v8561_v9  ;;  %4220 = vmatpush.msrb.mxu1 %v8515_v42 }
 0xc5b   : > { %4196 = vmatpush.msrb.mxu0 %v8565_v19  ;;  %4221 = vmatpush.msrb.mxu1 %v8527_v47 }
 0xc5c   : > { %6346 = vmatmul.msk.f32.gmra.mxu1 %vm2421_vm10, %v8618_v41 }
 0xc5d   : > { %4197 = vmatpush.msrb.mxu0 %v8569_v7 }
 0xc5f   : > { %4198 = vmatpush.msrb.mxu0 %v8580_v36  ;;  %v6312_v36 = vld [vmem:[%s10607_s0 + $0x28] sm:$0xff]  ;;  %s10615_s0 = sld [smem:[#allocation41_spill]] }
 0xc60   : > { %6344 = vmatmul.msk.f32.gmra.mxu0 %vm2421_vm10, %v8618_v41 }
 0xc91   : > { %v3644_v48 = vpop.f32.mrf.mxu0  ;;  %v3667_v51 = vpop.f32.mrf.mxu1 }
 0xc96   : > { %v3598_v9 = vpop.f32.mrf.mxu2  ;;  %v3621_v2 = vpop.f32.mrf.mxu3 }
 0xc99   : > { %v3647_v42 = vpop.f32.mrf.mxu0  ;;  %v3670_v34 = vpop.f32.mrf.mxu1 }
 0xc9e   : > { %v3601_v19 = vpop.f32.mrf.mxu2  ;;  %v3624_v15 = vpop.f32.mrf.mxu3 }
 0xca1   : > { %v3736_v47 = vpop.f32.mrf.mxu0  ;;  %v3759_v55 = vpop.f32.mrf.mxu1 }
 0xca6   : > { %v3713_v28 = vpop.f32.mrf.mxu3  ;;  %v3690_v27 = vpop.f32.mrf.mxu2 }
 0xca9   : > { %v3739_v7 = vpop.f32.mrf.mxu0  ;;  %v3762_v62 = vpop.f32.mrf.mxu1 }
 0xcaa   : > { %3771 = vmatpush.msrb.mxu2 %v3739_v7  ;;  %3808 = vmatpush.msrb.mxu3 %v3762_v62  ;;  %v4622_v7 = vld [vmem:[#allocation16 + $0x108] sm:$0xff] }
 0xcab   : > { %v4383_v62 = vld [vmem:[#allocation20 + $0x8] sm:$0xff] }
 0xcac   : > { %3772 = vmatpush.msrb.mxu2 %v3736_v47  ;;  %3809 = vmatpush.msrb.mxu3 %v3759_v55  ;;  %v3917_v47 = vld [vmem:[#allocation19 + $0x10] sm:$0xff]  ;;  %v4634_v55 = vld [vmem:[#allocation16 + $0x168] sm:$0xff] }
 0xcad   : > { %6331 = vmatmul.msk.f32.vlgmr.msrb.gmra.mxu3 %vm2299_vm9, %v6312_v36  ;;  %v4618_v36 = vld [vmem:[#allocation16 + $0xe8] sm:$0xff] }
 0xcae   : > { %v3716_v37 = vpop.f32.mrf.mxu3  ;;  %v3693_v40 = vpop.f32.mrf.mxu2 }
 0xcaf   : > { %3773 = vmatpush.msrb.mxu2 %v3716_v37  ;;  %v4614_v37 = vld [vmem:[#allocation16 + $0xc8] sm:$0xff] }
 0xcb1   : > { %3774 = vmatpush.msrb.mxu2 %v3713_v28  ;;  %v4630_v28 = vld [vmem:[#allocation16 + $0x148] sm:$0xff] }
 0xcb3   : > { %3775 = vmatpush.msrb.mxu2 %v3693_v40  ;;  %v4610_v40 = vld [vmem:[#allocation16 + $0xa8] sm:$0xff] }
 0xcb5   : > { %3776 = vmatpush.msrb.mxu2 %v3690_v27  ;;  %6332 = vmatmul.msk.f32.gmra.mxu3 %vm2299_vm9, %v6314_v61  ;;  %v4626_v27 = vld [vmem:[#allocation16 + $0x128] sm:$0xff] }
 0xcb6   : > { %v4606_v61 = vld [vmem:[#allocation16 + $0x88] sm:$0xff] }
 0xcb7   : > { %3777 = vmatpush.msrb.mxu2 %v8796_v33  ;;  %v6646_v33 = vld [vmem:[%s10596_s10 + $0x28] sm:$0xff]  ;;  %s10627_s10 = smov 119  }
 0xcb9   : > { %3778 = vmatpush.msrb.mxu2 %v8786_v58 }
 0xcbb   : > { %3779 = vmatpush.msrb.mxu2 %v3670_v34  ;;  %v4646_v34 = vld [vmem:[#allocation16 + $0x1c8] sm:$0xff] }
 0xcbd   : > { %3780 = vmatpush.msrb.mxu2 %v3667_v51  ;;  %v3915_v51 = vld [vmem:[#allocation19] sm:$0xff] }
 0xcbf   : > { %3781 = vmatpush.msrb.mxu2 %v3647_v42  ;;  %v10612_v42 = vld [vmem:[#allocation110_spill] sm:$0xff] }
 0xcc1   : > { %3782 = vmatpush.msrb.mxu2 %v3644_v48 }
 0xcc3   : > { %3783 = vmatpush.msrb.mxu2 %v3624_v15  ;;  %v4638_v15 = vld [vmem:[#allocation16 + $0x188] sm:$0xff] }
 0xcc5   : > { %3784 = vmatpush.msrb.mxu2 %v3621_v2  ;;  %v4650_v2 = vld [vmem:[#allocation16 + $0x1e8] sm:$0xff] }
 0xcc7   : > { %3785 = vmatpush.msrb.mxu2 %v3601_v19  ;;  %v4642_v19 = vld [vmem:[#allocation16 + $0x1a8] sm:$0xff] }
 0xcc9   : > { %3786 = vmatpush.msrb.mxu2 %v3598_v9  ;;  %v10611_v9 = vld [vmem:[#allocation113_spill] sm:$0xff] }
 0xcca   : > { %3787 = vmatmul.f32.vlgmr.msrb.gmra.mxu2 %v6311_v30  ;;  %v4602_v30 = vld [vmem:[#allocation16 + $0x68] sm:$0xff] }
 0xccb   : > { %3954 = vmatpush.msra.mxu2 %v6641_v54 }
 0xccd   : > { %3955 = vmatpush.msra.mxu2 %v8452_v22  ;;  %v3885_v22 = vld [vmem:[#allocation14] sm:$0xff] }
 0xcce   : > { %3907 = vmatpush.msra.mxu3 %v3885_v22 }
 0xccf   : > { %3956 = vmatpush.msra.mxu2 %v8462_v13 }
 0xcd0   : > { %3977 = vmatpush.msrb.mxu3 %v8486_v56 }
 0xcd1   : > { %3957 = vmatpush.msra.mxu2 %v8477_v39 }
 0xcd2   : > { %3790 = vmatmul.f32.gmra.mxu2 %v6313_v3  ;;  %3978 = vmatpush.msrb.mxu3 %v8497_v52  ;;  %v4594_v3 = vld [vmem:[#allocation16 + $0x28] sm:$0xff] }
 0xcd3   : > { %4057 = vmatpush.msrb.mxu2 %v6642_v32  ;;  %v4590_v32 = vld [vmem:[#allocation16 + $0x8] sm:$0xff] }
 0xcd4   : > { %3979 = vmatpush.msrb.mxu3 %v8507_v14 }
 0xcd5   : > { %4058 = vmatpush.msrb.mxu2 %v6643_v63  ;;  %v10613_v63 = vld [vmem:[#allocation104_spill] sm:$0xff] }
 0xcd6   : > { %3980 = vmatpush.msrb.mxu3 %v8519_v26 }
 0xcd7   : > { %4059 = vmatpush.msrb.mxu2 %v6644_v20  ;;  %v10614_v20 = vld [vmem:[#allocation102_spill] sm:$0xff] }
 0xcd9   : > { %4060 = vmatpush.msrb.mxu2 %v8474_v38  ;;  %v3840_v38 = vpop.f32.mrf.mxu0 }
 0xcda   : > { %6339 = vmatmul.msk.f32.vlgmr.msra.gmra.mxu2 %vm2421_vm10, %v8610_v4 }
 0xcdb   : > { %4149 = vmatpush.msra.mxu2 %v8489_v6 }
 0xcdd   : > { %4150 = vmatpush.msra.mxu2 %v8500_v43 }
 0xcdf   : > { %4151 = vmatpush.msra.mxu2 %v8510_v35  ;;  %v3863_v35 = vpop.f32.mrf.mxu1 }
 0xce1   : > { %4152 = vmatpush.msra.mxu2 %v8522_v10  ;;  %v3843_v5 = vpop.f32.mrf.mxu0 }
 0xce2   : > { %6340 = vmatmul.msk.f32.gmra.mxu2 %vm2421_vm10, %v8618_v41 }
 0xce7   : > { %v3866_v26 = vpop.f32.mrf.mxu1 }
 0xce9   : > { %v4005_v1 = vpop.f32.mrf.mxu0 }
 0xcef   : > { %v3936_v21 = vpop.f32.mrf.mxu1 }
 0xcf1   : > { %v4008_v12 = vpop.f32.mrf.mxu0 }
 0xcf7   : > { %v3939_v29 = vpop.f32.mrf.mxu1 }
 0xcff   : > { %v4028_v44 = vpop.f32.mrf.mxu1 }
 0xd30   : > { %v3811_v13 = vpop.f32.mrf.mxu3 }
 0xd38   : > { %v3814_v58 = vpop.f32.mrf.mxu3 }
 0xd4d   : > { %v3788_v43 = vpop.f32.mrf.mxu2 }
 0xd4e   : > { %v3812_v39 = vadd.f32 %v3811_v13, %v3788_v43 }
 0xd50   : > { %v3841_v10 = vadd.f32 %v3840_v38, %v3812_v39 }
 0xd52   : > { %v3864_v6 = vadd.f32 %v3863_v35, %v3841_v10 }
 0xd54   : > { %v3881_v59 = vadd.f32 %v3874_v25, %v3864_v6  ;;  %v4405_v25 = vpop.permute.xlu0 %4404 }
 0xd55   : > { %v3791_v57 = vpop.f32.mrf.mxu2 }
 0xd56   : > { %v3883_v56 = vmax.f32 %v3881_v59, 0.0  ;;  %v3815_v52 = vadd.f32 %v3814_v58, %v3791_v57 }
 0xd58   : > { %v3844_v14 = vadd.f32 %v3843_v5, %v3815_v52  ;;  %6335 = vmatmul.msk.f32.vlgmr.msra.gmra.mxu3 %vm2832_vm11, %v3883_v56  ;;  %v8968_v56 = vpop.permute.xlu2 %4342 }
 0xd59   : > { %4080 = vmatpush.msra.mxu3 %v6641_v54  ;;  %v4598_v54 = vld [vmem:[#allocation16 + $0x48] sm:$0xff] }
 0xd5a   : > { %v3867_v46 = vadd.f32 %v3866_v26, %v3844_v14 }
 0xd5b   : > { %4081 = vmatpush.msra.mxu3 %v6645_v23  ;;  %v4351_v23 = vld [vmem:[%s10615_s0 + $0x10] sm:$0xff] }
 0xd5c   : > { %v3882_v60 = vadd.f32 %v3879_v18, %v3867_v46  ;;  %v4399_v14 = vpop.permute.xlu0 %4398  ;;  %v4352_v46 = vld [vmem:[%s10615_s0 + $0x18] sm:$0xff] }
 0xd5d   : > { %4082 = vmatpush.msra.mxu3 %v6646_v33  ;;  %v3959_v48 = vpop.f32.mrf.mxu2  ;;  %v4036_v18 = vld [vmem:[#allocation19 + $0x28] sm:$0xff]  ;;  %v4350_v33 = vld [vmem:[%s10615_s0 + $0x8] sm:$0xff] }
 0xd5e   : > { %v3884_v45 = vmax.f32 %v3882_v60, 0.0 }
 0xd5f   : > { %4083 = vmatpush.msra.mxu3 %v6647_v8 }
 0xd60   : > { %6336 = vmatmul.msk.f32.gmra.mxu3 %vm2832_vm11, %v3884_v45  ;;  %v4349_v45 = vld [vmem:[%s10615_s0] sm:$0xff]  ;;  %s10622_s0 = smov 127  }
 0xd68   : > { %6341 = vmatmul.msk.f32.vlgmr.msrb.gmra.mxu3 %vm2421_vm10, %v8610_v4 }
 0xd69   : > { %4172 = vmatpush.msrb.mxu3 %v6648_v49  ;;  %v3916_v49 = vld [vmem:[#allocation19 + $0x8] sm:$0xff] }
 0xd6b   : > { %4173 = vmatpush.msrb.mxu3 %v6649_v53  ;;  %v4411_v53 = vpop.permute.xlu2 %4410 }
 0xd6d   : > { %4174 = vmatpush.msrb.mxu3 %v8549_v24  ;;  %v4031_v24 = vpop.f32.mrf.mxu1 }
 0xd6f   : > { %4175 = vmatpush.msrb.mxu3 %v8553_v11  ;;  %v10608_v11 = vld [vmem:[#allocation115_spill] sm:$0xff] }
 0xd70   : > { %6342 = vmatmul.msk.f32.gmra.mxu3 %vm2421_vm10, %v8618_v41 }
 0xddb   : > { %v8913_v0 = vpop.f32.mrf.mxu3 }
 0xddc   : > { %6347 = vmatmul.msk.f32.vlgmr.msrb.gmra.mxu2 %vm2421_vm10, %v8913_v0  ;;  %6349 = vmatmul.msk.f32.vlgmr.msra.gmra.mxu3 %vm2421_vm10, %v8913_v0 }
 0xddd   : > { %6351 = vmatmul.msk.f32.vlgmr.msra.gmra.mxu0 %vm2421_vm10, %v8913_v0  ;;  %6353 = vmatmul.msk.f32.vlgmr.msra.gmra.mxu1 %vm2421_vm10, %v8913_v0 }
 0xdde   : > { %4287 = vmatpush.msra.mxu0 %v8641_v17  ;;  %4324 = vmatpush.msra.mxu1 %v8644_v31  ;;  %v10610_v17 = vld [vmem:[#allocation114_spill] sm:$0xff] }
 0xde0   : > { %4288 = vmatpush.msra.mxu0 %v8626_v50  ;;  %4325 = vmatpush.msra.mxu1 %v10608_v11  ;;  %v10609_v50 = vld [vmem:[#allocation116_spill] sm:$0xff]  ;;  %v8977_v11 = vld [vmem:[#allocation5 + $0x6] ss:$0 sm:$0xff] }
 0xde2   : > { %4289 = vmatpush.msra.mxu0 %v4031_v24 }
 0xde3   : > { %v8927_v16 = vpop.f32.mrf.mxu3 }
 0xde4   : > { %4290 = vmatpush.msra.mxu0 %v4028_v44  ;;  %6348 = vmatmul.msk.f32.gmra.mxu2 %vm2421_vm10, %v8927_v16  ;;  %v4038_v44 = vld [vmem:[#allocation19 + $0x38] sm:$0xff] }
 0xde5   : > { %6350 = vmatmul.msk.f32.gmra.mxu3 %vm2421_vm10, %v8927_v16  ;;  %6352 = vmatmul.msk.f32.gmra.mxu0 %vm2421_vm10, %v8927_v16 }
 0xde6   : > { %6354 = vmatmul.msk.f32.gmra.mxu1 %vm2421_vm10, %v8927_v16  ;;  %4291 = vmatpush.msra.mxu0 %v10609_v50  ;;  %v4414_v50 = vmul.f32 %v8977_v11, %v4411_v53 }
 0xde8   : > { %4292 = vmatpush.msra.mxu0 %v10610_v17  ;;  %v4338_v17 = vpop.permute.xlu1 %4337 }
 0xdea   : > { %4293 = vmatpush.msra.mxu0 %v8618_v41 }
 0xdeb   : > { %v3982_v31 = vpop.f32.mrf.mxu3 }
 0xdec   : > { %4294 = vmatpush.msra.mxu0 %v8610_v4  ;;  %6355 = vmatmul.msk.f32.vlgmr.msra.gmra.mxu2 %vm2421_vm10, %v8913_v0  ;;  %v3962_v4 = vpop.f32.mrf.mxu2 }
 0xded   : > { %6357 = vmatmul.msk.f32.vlgmr.msrb.gmra.mxu3 %vm2421_vm10, %v8913_v0  ;;  %6359 = vmatmul.msk.f32.vlgmr.msrb.gmra.mxu0 %vm2421_vm10, %v8913_v0 }
 0xdee   : > { %6361 = vmatmul.msk.f32.vlgmr.msrb.gmra.mxu1 %vm2421_vm10, %v8913_v0  ;;  %4295 = vmatpush.msra.mxu0 %v4008_v12  ;;  %v10618_v12 = vld [vmem:[#allocation111_spill] sm:$0xff] }
 0xdf0   : > { %4296 = vmatpush.msra.mxu0 %v4005_v1  ;;  %v10617_v1 = vld [vmem:[#allocation109_spill] sm:$0xff] }
 0xdf3   : > { %v3985_v41 = vpop.f32.mrf.mxu3 }
 0xdf4   : > { %6356 = vmatmul.msk.f32.gmra.mxu2 %vm2421_vm10, %v8927_v16  ;;  %4297 = vmatpush.msra.mxu0 %v3985_v41  ;;  %v10619_v41 = vld [vmem:[#allocation108_spill] sm:$0xff] }
 0xdf5   : > { %6358 = vmatmul.msk.f32.gmra.mxu3 %vm2421_vm10, %v8927_v16  ;;  %6360 = vmatmul.msk.f32.gmra.mxu0 %vm2421_vm10, %v8927_v16 }
 0xdf6   : > { %6362 = vmatmul.msk.f32.gmra.mxu1 %vm2421_vm10, %v8927_v16  ;;  %4298 = vmatpush.msra.mxu0 %v3982_v31  ;;  %v3918_v31 = vld [vmem:[#allocation19 + $0x18] sm:$0xff] }
 0xdf8   : > { %4299 = vmatpush.msra.mxu0 %v3962_v4  ;;  %v8989_v4 = vld [vmem:[#allocation5 + $0x3] ss:$0 sm:$0xff] }
 0xdfa   : > { %4300 = vmatpush.msra.mxu0 %v3959_v48  ;;  %v4407_v48 = vpop.permute.xlu2 %4406 }
 0xdfc   : > { %4301 = vmatpush.msra.mxu0 %v3939_v29  ;;  %v10616_v29 = vld [vmem:[#allocation112_spill] sm:$0xff] }
 0xdfe   : > { %4302 = vmatpush.msra.mxu0 %v3936_v21  ;;  %v4413_v21 = vpop.permute.xlu0 %4412  ;;  %6365 = vmatmul.msk.f32.vlgmr.msra.gmra.mxu1 %vm2299_vm9, %v3916_v49 }
 0xdff   : > { %4303 = vmatmul.f32.vlgmr.msra.gmra.mxu0 %v3915_v51  ;;  %v4415_v24 = vmul.f32 %v8977_v11, %v4413_v21  ;;  %v4409_v51 = vmul.f32 %v8989_v4, %v4407_v48 }
 0xe00   : > { %4564 = vmatpush.msrb.mxu0 %v10611_v9  ;;  %v4401_v9 = vpop.permute.xlu1 %4400 }
 0xe02   : > { %4565 = vmatpush.msrb.mxu0 %v10612_v42  ;;  %v8995_v42 = vld [vmem:[#allocation5 + $0x2] ss:$0 sm:$0xff] }
 0xe04   : > { %4676 = vmatpush.msra.mxu0 %v4650_v2  ;;  %v4408_v2 = vmul.f32 %v8989_v4, %v4405_v25 }
 0xe06   : > { %4677 = vmatpush.msra.mxu0 %v4646_v34  ;;  %6366 = vmatmul.msk.f32.gmra.mxu1 %vm2299_vm9, %v3918_v31  ;;  %v4403_v34 = vmul.f32 %v8995_v42, %v4401_v9  ;;  %v4649_v9 = vld [vmem:[#allocation16 + $0x1e0] sm:$0xff] }
 0xe07   : > { %4306 = vmatmul.f32.gmra.mxu0 %v3917_v47  ;;  %v4402_v47 = vmul.f32 %v8995_v42, %v4399_v14 }
 0xe08   : > { %4678 = vmatpush.msra.mxu0 %v4642_v19  ;;  %v4395_v19 = vpop.permute.xlu2 %4394 }
 0xe0a   : > { %4679 = vmatpush.msra.mxu0 %v4638_v15  ;;  %v4035_v15 = vld [vmem:[#allocation19 + $0x20] sm:$0xff] }
 0xe0c   : > { %4680 = vmatpush.msra.mxu0 %v4634_v55  ;;  %v9001_v55 = vld [vmem:[#allocation5 + $0x1] ss:$0 sm:$0xff] }
 0xe0e   : > { %4681 = vmatpush.msra.mxu0 %v4630_v28  ;;  %v4397_v28 = vmul.f32 %v9001_v55, %v4395_v19 }
 0xe0f   : > { %6371 = vmatmul.msk.f32.vlgmr.msrb.gmra.mxu0 %vm2299_vm9, %v4383_v62 }
 0xe10   : > { %4682 = vmatpush.msra.mxu0 %v4626_v27  ;;  %v4037_v27 = vld [vmem:[#allocation19 + $0x30] sm:$0xff] }
 0xe12   : > { %4683 = vmatpush.msra.mxu0 %v4622_v7 }
 0xe14   : > { %4684 = vmatpush.msra.mxu0 %v4618_v36 }
 0xe16   : > { %4685 = vmatpush.msra.mxu0 %v4614_v37 }
 0xe18   : > { %4686 = vmatpush.msra.mxu0 %v4610_v40 }
 0xe1a   : > { %4687 = vmatpush.msra.mxu0 %v4606_v61 }
 0xe1c   : > { %4688 = vmatpush.msra.mxu0 %v4602_v30 }
 0xe1e   : > { %4689 = vmatpush.msra.mxu0 %v4598_v54 }
 0xe20   : > { %4690 = vmatpush.msra.mxu0 %v4594_v3 }
 0xe22   : > { %4691 = vmatpush.msra.mxu0 %v4590_v32 }
 0xe24   : > { %4804 = vmatpush.msrb.mxu0 %v10613_v63 }
 0xe26   : > { %4805 = vmatpush.msrb.mxu0 %v10614_v20 }
 0xe5a   : > { %v4108_v22 = vpop.f32.mrf.mxu0  ;;  %v4131_v13 = vpop.f32.mrf.mxu1 }
 0xe5f   : > { %v8962_v38 = vpop.f32.mrf.mxu2  ;;  %v8964_v43 = vpop.f32.mrf.mxu3 }
 0xe62   : > { %v4111_v39 = vpop.f32.mrf.mxu0 }
 0xe63   : > { %v4134_v35 = vpop.f32.mrf.mxu1 }
 0xe67   : > { %v8966_v10 = vpop.f32.mrf.mxu2 }
 0xe68   : > { %v4088_v6 = vpop.f32.mrf.mxu3 }
 0xe6a   : > { %v4200_v58 = vpop.f32.mrf.mxu0 }
 0xe6b   : > { %v4223_v59 = vpop.f32.mrf.mxu1 }
 0xe6f   : > { %v4154_v52 = vpop.f32.mrf.mxu2 }
 0xe70   : > { %v4177_v57 = vpop.f32.mrf.mxu3 }
 0xe72   : > { %v4203_v5 = vpop.f32.mrf.mxu0 }
 0xe73   : > { %v4226_v26 = vpop.f32.mrf.mxu1  ;;  %4235 = vmatpush.msrb.mxu2 %v4203_v5 }
 0xe74   : > { %4272 = vmatpush.msra.mxu3 %v4226_v26 }
 0xe75   : > { %4236 = vmatpush.msrb.mxu2 %v4200_v58 }
 0xe76   : > { %4273 = vmatpush.msra.mxu3 %v4223_v59  ;;  %v4573_v59 = vld [vmem:[%s10623_s2] sm:$0xff] }
 0xe77   : > { %6363 = vmatmul.msk.f32.vlgmr.msra.gmra.mxu3 %vm2299_vm9, %v4036_v18  ;;  %v4157_v8 = vpop.f32.mrf.mxu2 }
 0xe78   : > { %4371 = vmatpush.msrb.mxu3 %v4352_v46  ;;  %v4180_v60 = vpop.f32.mrf.mxu3 }
 0xe79   : > { %4237 = vmatpush.msrb.mxu2 %v4180_v60 }
 0xe7a   : > { %4372 = vmatpush.msrb.mxu3 %v4351_v23 }
 0xe7b   : > { %4238 = vmatpush.msrb.mxu2 %v4177_v57  ;;  %v4327_v37 = vpop.f32.mrf.mxu1  ;;  %v4928_v57 = vld [vmem:[#allocation2] sm:$0x1] }
 0xe7c   : > { %4373 = vmatpush.msrb.mxu3 %v4350_v33  ;;  %v4304_v62 = vpop.f32.mrf.mxu0 }
 0xe7d   : > { %4239 = vmatpush.msrb.mxu2 %v4157_v8 }
 0xe7e   : > { %4374 = vmatpush.msrb.mxu3 %v4349_v45  ;;  %v6654_v45 = vld [vmem:[#allocation5 + $0x7] ss:$0 sm:$0xff] }
 0xe7f   : > { %4240 = vmatpush.msrb.mxu2 %v4154_v52  ;;  %6364 = vmatmul.msk.f32.gmra.mxu3 %vm2299_vm9, %v4038_v44  ;;  %v4913_v52 = vld [vmem:[%s10628_s6] sm:$0xff]  ;;  %s10697_s6 = sld [smem:[#allocation57_spill]] }
 0xe80   : > { %4527 = vmatpush.msra.mxu3 %v10616_v29 }
 0xe81   : > { %4241 = vmatpush.msrb.mxu2 %v8927_v16  ;;  %v10620_v16 = vld [vmem:[#allocation107_spill] sm:$0xff] }
 0xe82   : > { %4528 = vmatpush.msra.mxu3 %v10617_v1  ;;  %v6655_v1 = vld [vmem:[#allocation5 + $0x5] ss:$0 sm:$0xff] }
 0xe83   : > { %4242 = vmatpush.msrb.mxu2 %v8913_v0  ;;  %v10621_v0 = vld [vmem:[#allocation106_spill] sm:$0xff] }
 0xe84   : > { %4529 = vmatpush.msra.mxu3 %v4415_v24 }
 0xe85   : > { %4243 = vmatpush.msrb.mxu2 %v4134_v35 }
 0xe86   : > { %4530 = vmatpush.msra.mxu3 %v4414_v50 }
 0xe87   : > { %4244 = vmatpush.msrb.mxu2 %v4131_v13 }
 0xe88   : > { %4531 = vmatpush.msra.mxu3 %v10618_v12 }
 0xe89   : > { %4245 = vmatpush.msrb.mxu2 %v4111_v39 }
 0xe8a   : > { %4532 = vmatpush.msra.mxu3 %v10619_v41 }
 0xe8b   : > { %4246 = vmatpush.msrb.mxu2 %v4108_v22  ;;  %v4307_v22 = vpop.f32.mrf.mxu0 }
 0xe8c   : > { %4533 = vmatpush.msra.mxu3 %v10620_v16 }
 0xe8d   : > { %4247 = vmatpush.msrb.mxu2 %v4088_v6 }
 0xe8e   : > { %4534 = vmatpush.msra.mxu3 %v10621_v0 }
 0xe8f   : > { %4248 = vmatpush.msrb.mxu2 %v8964_v43  ;;  %v4330_v43 = vpop.f32.mrf.mxu1 }
 0xe90   : > { %4535 = vmatpush.msra.mxu3 %v4409_v51 }
 0xe91   : > { %4249 = vmatpush.msrb.mxu2 %v8966_v10 }
 0xe92   : > { %4536 = vmatpush.msra.mxu3 %v4408_v2  ;;  %v4418_v2 = vld [vmem:[#allocation20 + $0x28] sm:$0xff] }
 0xe93   : > { %4250 = vmatpush.msrb.mxu2 %v8962_v38 }
 0xe94   : > { %4537 = vmatpush.msra.mxu3 %v4403_v34  ;;  %4251 = vmatmul.f32.vlgmr.msrb.gmra.mxu2 %v4035_v15  ;;  %v4645_v34 = vld [vmem:[#allocation16 + $0x1c0] sm:$0xff] }
 0xe96   : > { %4538 = vmatpush.msra.mxu3 %v4402_v47  ;;  %v4641_v47 = vld [vmem:[#allocation16 + $0x1a0] sm:$0xff] }
 0xe98   : > { %4539 = vmatpush.msra.mxu3 %v4397_v28  ;;  %v4385_v28 = vld [vmem:[#allocation20 + $0x18] sm:$0xff] }
 0xe99   : > { %6372 = vmatmul.msk.f32.gmra.mxu0 %vm2299_vm9, %v4385_v28  ;;  %v4612_v28 = vld [vmem:[#allocation16 + $0xb8] sm:$0xff] }
 0xe9c   : > { %4254 = vmatmul.f32.gmra.mxu2 %v4037_v27 }
 0xefa   : > { %v4275_v7 = vpop.f32.mrf.mxu3 }
 0xf02   : > { %v4278_v54 = vpop.f32.mrf.mxu3 }
 0xf17   : > { %v4252_v36 = vpop.f32.mrf.mxu2 }
 0xf18   : > { %v4276_v40 = vadd.f32 %v4275_v7, %v4252_v36  ;;  %v6657_v7 = vld [vmem:[#allocation5] ss:$0 sm:$0xff]  ;;  %v4637_v36 = vld [vmem:[#allocation16 + $0x180] sm:$0xff] }
 0xf1a   : > { %v4305_v61 = vadd.f32 %v4304_v62, %v4276_v40  ;;  %v4633_v40 = vld [vmem:[#allocation16 + $0x160] sm:$0xff] }
 0xf1c   : > { %v4328_v30 = vadd.f32 %v4327_v37, %v4305_v61 }
 0xf1e   : > { %v4345_v3 = vadd.f32 %v4338_v17, %v4328_v30  ;;  %v4420_v30 = vld [vmem:[#allocation20 + $0x38] sm:$0xff] }
 0xf1f   : > { %v4255_v32 = vpop.f32.mrf.mxu2 }
 0xf20   : > { %v4347_v13 = vmax.f32 %v4345_v3, 0.0  ;;  %v4279_v38 = vadd.f32 %v4278_v54, %v4255_v32  ;;  %v4629_v3 = vld [vmem:[#allocation16 + $0x140] sm:$0xff] }
 0xf22   : > { %v4308_v39 = vadd.f32 %v4307_v22, %v4279_v38  ;;  %6367 = vmatmul.msk.f32.vlgmr.msrb.gmra.mxu3 %vm2421_vm10, %v4347_v13  ;;  %v4625_v13 = vld [vmem:[#allocation16 + $0x120] sm:$0xff] }
 0xf24   : > { %v4331_v35 = vadd.f32 %v4330_v43, %v4308_v39  ;;  %v4621_v43 = vld [vmem:[#allocation16 + $0x100] sm:$0xff] }
 0xf25   : > { %v4382_v39 = vld [vmem:[#allocation20] sm:$0xff] }
 0xf26   : > { %v4346_v10 = vadd.f32 %v8968_v56, %v4331_v35  ;;  %v4574_v56 = vld [vmem:[%s10623_s2 + $0x8] sm:$0xff]  ;;  %s10641_s2 = smov 17  }
 0xf27   : > { %v4617_v35 = vld [vmem:[#allocation16 + $0xe0] sm:$0xff] }
 0xf28   : > { %v4348_v6 = vmax.f32 %v4346_v10, 0.0  ;;  %v4613_v10 = vld [vmem:[#allocation16 + $0xc0] sm:$0xff] }
 0xf2a   : > { %6368 = vmatmul.msk.f32.gmra.mxu3 %vm2421_vm10, %v4348_v6  ;;  %v4609_v6 = vld [vmem:[#allocation16 + $0xa0] sm:$0xff] }
 0xfa5   : > { %v9007_v25 = vpop.f32.mrf.mxu3 }
 0xfa6   : > { %4445 = vrot.lane.b32.xlu1 %v9007_v25, %s10622_s0  ;;  %4451 = vrot.lane.b32.xlu2 %v9007_v25, %s10593_s26 }
 0xfa7   : > { %4457 = vrot.lane.b32.xlu0 %v9007_v25, %s10624_s3 }
 0xfad   : > { %v4379_v58 = vpop.f32.mrf.mxu3 }
 0xfae   : > { %4439 = vrot.lane.b32.xlu1 %v9007_v25, %s10625_s8  ;;  %4433 = vrot.lane.b32.xlu2 %v9007_v25, %s10626_s9 }
 0xfaf   : > { %4463 = vrot.lane.b32.xlu0 %v9007_v25, %s10627_s10 }
 0xfb6   : > { %4441 = vrot.lane.b32.xlu2 %v4379_v58, %s10625_s8  ;;  %4459 = vrot.lane.b32.xlu1 %v4379_v58, %s10624_s3  ;;  %s10629_s3 = smov 9  }
 0xfb7   : > { %4447 = vrot.lane.b32.xlu0 %v4379_v58, %s10622_s0 }
 0xfbe   : > { %4429 = vrot.lane.b32.xlu2 %v4379_v58, %s10594_s1  ;;  %4453 = vrot.lane.b32.xlu1 %v4379_v58, %s10593_s26  ;;  %s10638_s26 = smov 111  }
 0xfbf   : > { %4435 = vrot.lane.b32.xlu0 %v4379_v58, %s10626_s9  ;;  %s10636_s9 = smov 113  }
 0xfc6   : > { %4427 = vrot.lane.b32.xlu2 %v9007_v25, %s10594_s1  ;;  %4392 = vrot.lane.b32.xlu1 %v10621_v0, %s10594_s1  ;;  %s10639_s1 = smov 15  }
 0xfc7   : > { %4465 = vrot.lane.b32.xlu0 %v4379_v58, %s10627_s10  ;;  %s10637_s10 = smov 112  }
 0xfce   : > { %4577 = vperm.xlu2 %6614, %v4573_v59   ;;  %4388 = vrot.lane.b32.xlu1 %v10620_v16, %s10629_s3  ;;  %v6656_v16 = vld [vmem:[#allocation5 + $0x8] ss:$0 sm:$0xff] }
 0xfcf   : > { %4423 = vrot.lane.b32.xlu0 %v4379_v58, %s10629_s3  ;;  %v4605_v59 = vld [vmem:[#allocation16 + $0x80] sm:$0xff] }
 0xfd6   : > { %4931 = vperm.xlu2 %6614, %v4928_v57   ;;  %4386 = vrot.lane.b32.xlu1 %v10621_v0, %s10629_s3  ;;  %v4651_v57 = vld [vmem:[#allocation16 + $0x1f0] sm:$0xff] }
 0xfd7   : > { %4582 = vperm.xlu0 %6615, %v4574_v56   ;;  %v4384_v56 = vld [vmem:[#allocation20 + $0x10] sm:$0xff] }
 0xfde   : > { %4421 = vrot.lane.b32.xlu1 %v9007_v25, %s10629_s3  ;;  %s10640_s3 = smov 16  }
 0xfe6   : > { %4916 = vperm.xlu1 %6616, %v4913_v52   ;;  %v4601_v52 = vld [vmem:[#allocation16 + $0x60] sm:$0xff] }
0x1000   : > { %v4452_v26 = vpop.permute.xlu2 %4451 }
0x1001   : > { %v4455_v24 = vmul.f32 %v8977_v11, %v4452_v26  ;;  %v4643_v26 = vld [vmem:[#allocation16 + $0x1b0] sm:$0xff] }
0x1008   : > { %v4434_v23 = vpop.permute.xlu2 %4433 }
0x1009   : > { %v4437_v37 = vmul.f32 %v8995_v42, %v4434_v23  ;;  %v4593_v23 = vld [vmem:[#allocation16 + $0x20] sm:$0xff] }
0x1010   : > { %v4442_v53 = vpop.permute.xlu2 %4441 }
0x1018   : > { %v4446_v5 = vpop.permute.xlu1 %4445  ;;  %v4430_v41 = vpop.permute.xlu2 %4429 }
0x1019   : > { %v4458_v14 = vpop.permute.xlu0 %4457  ;;  %v4449_v17 = vmul.f32 %v6655_v1, %v4446_v5  ;;  %v4432_v61 = vmul.f32 %v9001_v55, %v4430_v41  ;;  %v4647_v5 = vld [vmem:[#allocation16 + $0x1d0] sm:$0xff] }
0x101a   : > { %v4461_v49 = vmul.f32 %v6654_v45, %v4458_v14  ;;  %v4597_v14 = vld [vmem:[#allocation16 + $0x40] sm:$0xff]  ;;  %v4615_v41 = vld [vmem:[#allocation16 + $0xd0] sm:$0xff] }
0x1020   : > { %v4440_v46 = vpop.permute.xlu1 %4439 }
0x1021   : > { %v4464_v18 = vpop.permute.xlu0 %4463  ;;  %v4443_v19 = vmul.f32 %v8989_v4, %v4440_v46  ;;  %v4652_v46 = vld [vmem:[#allocation16 + $0x1f8] sm:$0xff] }
0x1022   : > { %v4467_v0 = vmul.f32 %v6656_v16, %v4464_v18  ;;  %v4648_v18 = vld [vmem:[#allocation16 + $0x1d8] sm:$0xff] }
0x1028   : > { %v4460_v60 = vpop.permute.xlu1 %4459 }
0x1029   : > { %v4448_v33 = vpop.permute.xlu0 %4447  ;;  %v4462_v8 = vmul.f32 %v6654_v45, %v4460_v60  ;;  %v4639_v60 = vld [vmem:[#allocation16 + $0x190] sm:$0xff]  ;;  %v4644_v45 = vld [vmem:[#allocation16 + $0x1b8] sm:$0xff] }
0x102a   : > { %v4450_v50 = vmul.f32 %v6655_v1, %v4448_v33  ;;  %v4419_v33 = vld [vmem:[#allocation20 + $0x30] sm:$0xff]  ;;  %v4632_v1 = vld [vmem:[#allocation16 + $0x158] sm:$0xff] }
0x102b   : > { %4475 = vmatpush.msrb.mxu1 %v4462_v8  ;;  %v4589_v8 = vld [vmem:[#allocation16] sm:$0xff] }
0x102d   : > { %4476 = vmatpush.msrb.mxu1 %v4461_v49  ;;  %v4635_v49 = vld [vmem:[#allocation16 + $0x170] sm:$0xff] }
0x1030   : > { %v4454_v21 = vpop.permute.xlu1 %4453 }
0x1031   : > { %v4436_v29 = vpop.permute.xlu0 %4435  ;;  %v4456_v44 = vmul.f32 %v8977_v11, %v4454_v21  ;;  %v4444_v11 = vmul.f32 %v8989_v4, %v4442_v53  ;;  %v4428_v4 = vpop.permute.xlu2 %4427  ;;  %v4640_v53 = vld [vmem:[#allocation16 + $0x198] sm:$0xff]  ;;  %v4631_v21 = vld [vmem:[#allocation16 + $0x150] sm:$0xff] }
0x1032   : > { %v4438_v27 = vmul.f32 %v8995_v42, %v4436_v29  ;;  %v4431_v32 = vmul.f32 %v9001_v55, %v4428_v4  ;;  %v4636_v29 = vld [vmem:[#allocation16 + $0x178] sm:$0xff] }
0x1033   : > { %4477 = vmatpush.msrb.mxu1 %v4456_v44  ;;  %v10630_v44 = vld [vmem:[#allocation100_spill] sm:$0xff] }
0x1035   : > { %4478 = vmatpush.msrb.mxu1 %v4455_v24  ;;  %v4627_v24 = vld [vmem:[#allocation16 + $0x130] sm:$0xff] }
0x1037   : > { %4479 = vmatpush.msrb.mxu1 %v4450_v50  ;;  %v10631_v50 = vld [vmem:[#allocation98_spill] sm:$0xff] }
0x1038   : > { %v4393_v31 = vpop.permute.xlu1 %4392 }
0x1039   : > { %v4466_v12 = vpop.permute.xlu0 %4465  ;;  %v4396_v48 = vmul.f32 %v9001_v55, %v4393_v31  ;;  %4480 = vmatpush.msrb.mxu1 %v4449_v17  ;;  %v4623_v17 = vld [vmem:[#allocation16 + $0x110] sm:$0xff]  ;;  %v4628_v31 = vld [vmem:[#allocation16 + $0x138] sm:$0xff] }
0x103a   : > { %v4468_v51 = vmul.f32 %v6656_v16, %v4466_v12  ;;  %v4619_v12 = vld [vmem:[#allocation16 + $0xf0] sm:$0xff]  ;;  %v4620_v16 = vld [vmem:[#allocation16 + $0xf8] sm:$0xff] }
0x103b   : > { %4481 = vmatpush.msrb.mxu1 %v4379_v58  ;;  %4540 = vmatpush.msra.mxu3 %v4396_v48  ;;  %v4417_v58 = vld [vmem:[#allocation20 + $0x20] sm:$0xff]  ;;  %v4624_v48 = vld [vmem:[#allocation16 + $0x118] sm:$0xff] }
0x103c   : > { %4512 = vmatpush.msra.mxu2 %v4468_v51  ;;  %v4611_v51 = vld [vmem:[#allocation16 + $0xb0] sm:$0xff] }
0x103d   : > { %4482 = vmatpush.msrb.mxu1 %v9007_v25 }
0x103e   : > { %4513 = vmatpush.msra.mxu2 %v4467_v0  ;;  %v4616_v0 = vld [vmem:[#allocation16 + $0xd8] sm:$0xff] }
0x103f   : > { %4483 = vmatpush.msrb.mxu1 %v4444_v11  ;;  %6369 = vmatmul.msk.f32.vlgmr.msra.gmra.mxu2 %vm2299_vm9, %v4418_v2  ;;  %v4603_v11 = vld [vmem:[#allocation16 + $0x70] sm:$0xff] }
0x1040   : > { %4653 = vmatpush.msrb.mxu2 %v4649_v9  ;;  %v4389_v15 = vpop.permute.xlu1 %4388  ;;  %v4607_v9 = vld [vmem:[#allocation16 + $0x90] sm:$0xff] }
0x1041   : > { %v4391_v62 = vmul.f32 %v6657_v7, %v4389_v15  ;;  %4484 = vmatpush.msrb.mxu1 %v4443_v19  ;;  %v4424_v54 = vpop.permute.xlu0 %4423  ;;  %v4599_v2 = vld [vmem:[#allocation16 + $0x50] sm:$0xff]  ;;  %v10632_v15 = vld [vmem:[#allocation103_spill] sm:$0xff] }
0x1042   : > { %4654 = vmatpush.msrb.mxu2 %v4645_v34  ;;  %v4426_v42 = vmul.f32 %v6657_v7, %v4424_v54  ;;  %v4595_v34 = vld [vmem:[#allocation16 + $0x30] sm:$0xff] }
0x1043   : > { %4485 = vmatpush.msrb.mxu1 %v4438_v27  ;;  %4541 = vmatpush.msra.mxu3 %v4391_v62  ;;  %v4591_v19 = vld [vmem:[#allocation16 + $0x10] sm:$0xff]  ;;  %v4608_v27 = vld [vmem:[#allocation16 + $0x98] sm:$0xff] }
0x1044   : > { %4655 = vmatpush.msrb.mxu2 %v4641_v47  ;;  %v10633_v47 = vld [vmem:[#allocation101_spill] sm:$0xff]  ;;  %v4600_v62 = vld [vmem:[#allocation16 + $0x58] sm:$0xff] }
0x1045   : > { %4486 = vmatpush.msrb.mxu1 %v4437_v37  ;;  %v4592_v37 = vld [vmem:[#allocation16 + $0x18] sm:$0xff] }
0x1046   : > { %4656 = vmatpush.msrb.mxu2 %v4637_v36  ;;  %v4596_v36 = vld [vmem:[#allocation16 + $0x38] sm:$0xff] }
0x1047   : > { %4487 = vmatpush.msrb.mxu1 %v4432_v61  ;;  %6370 = vmatmul.msk.f32.gmra.mxu2 %vm2299_vm9, %v4420_v30  ;;  %v4567_v30 = vpop.f32.mrf.mxu0 }
0x1048   : > { %4657 = vmatpush.msrb.mxu2 %v4633_v40  ;;  %v4387_v22 = vpop.permute.xlu1 %4386 }
0x1049   : > { %v4390_v38 = vmul.f32 %v6657_v7, %v4387_v22  ;;  %4488 = vmatpush.msrb.mxu1 %v4431_v32  ;;  %v4578_v22 = vpop.permute.xlu2 %4577 }
0x104a   : > { %4658 = vmatpush.msrb.mxu2 %v4629_v3 }
0x104b   : > { %4489 = vmatpush.msrb.mxu1 %v4426_v42  ;;  %4542 = vmatpush.msra.mxu3 %v4390_v38 }
0x104c   : > { %4659 = vmatpush.msrb.mxu2 %v4625_v13  ;;  %4543 = vmatmul.f32.vlgmr.msra.gmra.mxu3 %v4382_v39 }
0x104d   : > { %4722 = vmatpush.msrb.mxu3 %v4652_v46 }
0x104e   : > { %4660 = vmatpush.msrb.mxu2 %v4621_v43 }
0x104f   : > { %4723 = vmatpush.msrb.mxu3 %v4648_v18 }
0x1050   : > { %4661 = vmatpush.msrb.mxu2 %v4617_v35  ;;  %v4422_v55 = vpop.permute.xlu1 %4421 }
0x1051   : > { %v4425_v25 = vmul.f32 %v6657_v7, %v4422_v55  ;;  %4724 = vmatpush.msrb.mxu3 %v4644_v45  ;;  %v4604_v7 = vld [vmem:[#allocation16 + $0x78] sm:$0xff] }
0x1052   : > { %4662 = vmatpush.msrb.mxu2 %v4613_v10  ;;  %v4570_v10 = vpop.f32.mrf.mxu0 }
0x1053   : > { %4490 = vmatpush.msrb.mxu1 %v4425_v25  ;;  %4725 = vmatpush.msrb.mxu3 %v4640_v53 }
0x1054   : > { %4663 = vmatpush.msrb.mxu2 %v4609_v6  ;;  %4491 = vmatmul.f32.vlgmr.msrb.gmra.mxu1 %v4417_v58  ;;  %v10634_v6 = vld [vmem:[#allocation105_spill] sm:$0xff]  ;;  %v4583_v58 = vpop.permute.xlu0 %4582 }
0x1055   : > { %4699 = vmatpush.msra.mxu1 %v4651_v57  ;;  %4546 = vmatmul.f32.gmra.mxu3 %v4384_v56  ;;  %v10635_v57 = vld [vmem:[#allocation99_spill] sm:$0xff] }
0x1056   : > { %4664 = vmatpush.msrb.mxu2 %v4605_v59  ;;  %4726 = vmatpush.msrb.mxu3 %v4636_v29 }
0x1057   : > { %4700 = vmatpush.msra.mxu1 %v4647_v5 }
0x1058   : > { %4665 = vmatpush.msrb.mxu2 %v4601_v52  ;;  %4727 = vmatpush.msrb.mxu3 %v4632_v1  ;;  %v4746_v52 = vld [vmem:[#allocation25] sm:$0xff]  ;;  %v4917_v29 = vpop.permute.xlu1 %4916 }
0x1059   : > { %4701 = vmatpush.msra.mxu1 %v4643_v26 }
0x105a   : > { %4666 = vmatpush.msrb.mxu2 %v4597_v14  ;;  %4728 = vmatpush.msrb.mxu3 %v4628_v31 }
0x105b   : > { %4702 = vmatpush.msra.mxu1 %v4639_v60  ;;  %v4745_v60 = vld [vmem:[#allocation23] sm:$0xff] }
0x105c   : > { %4667 = vmatpush.msrb.mxu2 %v4593_v23  ;;  %4494 = vmatmul.f32.gmra.mxu1 %v4419_v33 }
0x105d   : > { %4703 = vmatpush.msra.mxu1 %v4635_v49  ;;  %4729 = vmatpush.msrb.mxu3 %v4624_v48 }
0x105e   : > { %4668 = vmatpush.msrb.mxu2 %v4589_v8  ;;  %v9159_v8 = vpop.permute.xlu2 %4931 }
0x105f   : > { %4704 = vmatpush.msra.mxu1 %v4631_v21  ;;  %4730 = vmatpush.msrb.mxu3 %v4620_v16  ;;  %10642 = vst [vmem:[#allocation115_spill] sm:$0xff] %v9159_v8 }
0x1060   : > { %4764 = vmatpush.msra.mxu2 %v10630_v44  ;;  %v10648_v44 = vld [vmem:[#allocation73_spill] sm:$0xff] }
0x1061   : > { %4705 = vmatpush.msra.mxu1 %v4627_v24  ;;  %4731 = vmatpush.msrb.mxu3 %v4616_v0 }
0x1062   : > { %4765 = vmatpush.msra.mxu2 %v10631_v50 }
0x1063   : > { %4706 = vmatpush.msra.mxu1 %v4623_v17  ;;  %4732 = vmatpush.msrb.mxu3 %v4612_v28 }
0x1065   : > { %4707 = vmatpush.msra.mxu1 %v4619_v12  ;;  %4733 = vmatpush.msrb.mxu3 %v4608_v27 }
0x1067   : > { %4708 = vmatpush.msra.mxu1 %v4615_v41  ;;  %4734 = vmatpush.msrb.mxu3 %v4604_v7 }
0x1069   : > { %4709 = vmatpush.msra.mxu1 %v4611_v51  ;;  %4735 = vmatpush.msrb.mxu3 %v4600_v62 }
0x106b   : > { %4710 = vmatpush.msra.mxu1 %v4607_v9  ;;  %4736 = vmatpush.msrb.mxu3 %v4596_v36 }
0x106d   : > { %4711 = vmatpush.msra.mxu1 %v4603_v11  ;;  %4737 = vmatpush.msrb.mxu3 %v4592_v37 }
0x106f   : > { %4712 = vmatpush.msra.mxu1 %v4599_v2 }
0x1071   : > { %4713 = vmatpush.msra.mxu1 %v4595_v34 }
0x1073   : > { %4714 = vmatpush.msra.mxu1 %v4591_v19 }
0x1075   : > { %4824 = vmatpush.msrb.mxu1 %v10632_v15  ;;  %v10649_v15 = vld [vmem:[#allocation75_spill] sm:$0xff] }
0x1077   : > { %4825 = vmatpush.msrb.mxu1 %v10633_v47 }
0x10c2   : > { %v4515_v4 = vpop.f32.mrf.mxu2 }
0x10ca   : > { %v4518_v13 = vpop.f32.mrf.mxu2 }
0x10cf   : > { %v4544_v40 = vpop.f32.mrf.mxu3 }
0x10d1   : > { %v4492_v61 = vpop.f32.mrf.mxu1 }
0x10d2   : > { %v4516_v54 = vadd.f32 %v4515_v4, %v4492_v61 }
0x10d4   : > { %v4545_v3 = vadd.f32 %v4544_v40, %v4516_v54  ;;  %v4927_v54 = vld [vmem:[%s7404_s17] sm:$0x1] }
0x10d6   : > { %v4568_v32 = vadd.f32 %v4567_v30, %v4545_v3 }
0x10d8   : > { %v4585_v42 = vadd.f32 %v4578_v22, %v4568_v32  ;;  %v4547_v43 = vpop.f32.mrf.mxu3 }
0x10d9   : > { %v4495_v38 = vpop.f32.mrf.mxu1 }
0x10da   : > { %v4587_v39 = vmax.f32 %v4585_v42, 0.0  ;;  %v4519_v35 = vadd.f32 %v4518_v13, %v4495_v38 }
0x10dc   : > { %v4548_v55 = vadd.f32 %v4547_v43, %v4519_v35  ;;  %4669 = vmatmul.f32.vlgmr.msrb.gmra.mxu2 %v4587_v39  ;;  %4692 = vmatmul.f32.vlgmr.msra.gmra.mxu0 %v4587_v39 }
0x10dd   : > { %4715 = vmatmul.f32.vlgmr.msra.gmra.mxu1 %v4587_v39  ;;  %4738 = vmatmul.f32.vlgmr.msrb.gmra.mxu3 %v4587_v39 }
0x10de   : > { %4784 = vmatpush.msrb.mxu2 %v10634_v6  ;;  %v4571_v25 = vadd.f32 %v4570_v10, %v4548_v55 }
0x10e0   : > { %v4586_v59 = vadd.f32 %v4583_v58, %v4571_v25  ;;  %4785 = vmatpush.msrb.mxu2 %v10635_v57 }
0x10e2   : > { %v4588_v56 = vmax.f32 %v4586_v59, 0.0 }
0x10e4   : > { %4672 = vmatmul.f32.gmra.mxu2 %v4588_v56  ;;  %4695 = vmatmul.f32.gmra.mxu0 %v4588_v56 }
0x10e5   : > { %4718 = vmatmul.f32.gmra.mxu1 %v4588_v56  ;;  %4741 = vmatmul.f32.gmra.mxu3 %v4588_v56 }
0x10ec   : > { %6373 = vmatmul.msk.f32.vlgmr.msra.gmra.mxu2 %vm2299_vm9, %v4746_v52  ;;  %6375 = vmatmul.msk.f32.vlgmr.msrb.gmra.mxu0 %vm2299_vm9, %v4746_v52 }
0x10ed   : > { %6376 = vmatmul.msk.f32.vlgmr.msrb.gmra.mxu1 %vm2299_vm9, %v4746_v52 }
0x10f4   : > { %6374 = vmatmul.msk.f32.vlgmr.msrb.gmra.mxu2 %vm2299_vm9, %v4746_v52 }
0x1159   : > { %v9065_v5 = vpop.f32.mrf.mxu0 }
0x115a   : > { %v9067_v14 = vpop.f32.mrf.mxu1  ;;  %5443 = vrot.lane.b32.xlu0 %v9065_v5, %s10622_s0  ;;  %5475 = vrot.lane.b32.xlu2 %v9065_v5, %s10636_s9 }
0x115b   : > { %5507 = vrot.lane.b32.xlu1 %v9065_v5, %s10637_s10 }
0x115f   : > { %v9075_v26 = vpop.f32.mrf.mxu2 }
0x1160   : > { %v9077_v46 = vpop.f32.mrf.mxu3 }
0x1161   : > { %v9079_v18 = vpop.f32.mrf.mxu0 }
0x1162   : > { %v9081_v23 = vpop.f32.mrf.mxu1  ;;  %5511 = vrot.lane.b32.xlu0 %v9067_v14, %s10637_s10  ;;  %5543 = vrot.lane.b32.xlu2 %v9067_v14, %s10638_s26 }
0x1163   : > { %4887 = vmatpush.msra.mxu0 %v9081_v23  ;;  %5539 = vrot.lane.b32.xlu1 %v9065_v5, %s10638_s26 }
0x1164   : > { %4867 = vmatpush.msra.mxu3 %v9079_v18 }
0x1165   : > { %4888 = vmatpush.msra.mxu0 %v9067_v14 }
0x1166   : > { %4868 = vmatpush.msra.mxu3 %v9065_v5  ;;  %6379 = vmatmul.msk.f32.vlgmr.msra.gmra.mxu0 %vm2299_vm9, %v4745_v60 }
0x1167   : > { %6378 = vmatmul.msk.f32.vlgmr.msra.gmra.mxu3 %vm2299_vm9, %v4745_v60  ;;  %v9095_v33 = vpop.f32.mrf.mxu2 }
0x1168   : > { %v9097_v45 = vpop.f32.mrf.mxu3  ;;  %4847 = vmatpush.msra.mxu2 %v9095_v33 }
0x1169   : > { %4907 = vmatpush.msra.mxu1 %v9097_v45  ;;  %v4807_v51 = vpop.f32.mrf.mxu0 }
0x116a   : > { %5415 = vrot.lane.b32.xlu2 %v9067_v14, %s10625_s8  ;;  %5503 = vrot.lane.b32.xlu0 %v9075_v26, %s10637_s10  ;;  %v4827_v19 = vpop.f32.mrf.mxu1 }
0x116b   : > { %4908 = vmatpush.msra.mxu1 %v9077_v46  ;;  %5479 = vrot.lane.b32.xlu1 %v9067_v14, %s10636_s9 }
0x116c   : > { %4848 = vmatpush.msra.mxu2 %v9075_v26  ;;  %6380 = vmatmul.msk.f32.vlgmr.msra.gmra.mxu1 %vm2299_vm9, %v4745_v60 }
0x116d   : > { %6377 = vmatmul.msk.f32.vlgmr.msra.gmra.mxu2 %vm2299_vm9, %v4745_v60 }
0x116f   : > { %v4767_v0 = vpop.f32.mrf.mxu2 }
0x1172   : > { %5439 = vrot.lane.b32.xlu2 %v9075_v26, %s10622_s0  ;;  %5407 = vrot.lane.b32.xlu0 %v9075_v26, %s10625_s8 }
0x1173   : > { %5447 = vrot.lane.b32.xlu1 %v9067_v14, %s10622_s0 }
0x1177   : > { %v4787_v61 = vpop.f32.mrf.mxu2 }
0x117a   : > { %5387 = vrot.lane.b32.xlu2 %v9077_v46, %s10639_s1  ;;  %5355 = vrot.lane.b32.xlu0 %v9077_v46, %s10640_s3 }
0x117b   : > { %5411 = vrot.lane.b32.xlu1 %v9065_v5, %s10625_s8 }
0x1182   : > { %5343 = vrot.lane.b32.xlu2 %v9075_v26, %s10640_s3  ;;  %5311 = vrot.lane.b32.xlu0 %v9075_v26, %s10641_s2 }
0x1183   : > { %5471 = vrot.lane.b32.xlu1 %v9075_v26, %s10636_s9 }
0x118a   : > { %5547 = vrot.lane.b32.xlu2 %v9077_v46, %s10638_s26  ;;  %5477 = vrot.lane.b32.xlu0 %v9079_v18, %s10636_s9 }
0x118b   : > { %5419 = vrot.lane.b32.xlu1 %v9077_v46, %s10625_s8 }
0x1192   : > { %5483 = vrot.lane.b32.xlu2 %v9077_v46, %s10636_s9  ;;  %5545 = vrot.lane.b32.xlu0 %v9081_v23, %s10638_s26 }
0x1193   : > { %5375 = vrot.lane.b32.xlu1 %v9075_v26, %s10639_s1 }
0x119a   : > { %5451 = vrot.lane.b32.xlu2 %v9077_v46, %s10622_s0  ;;  %5417 = vrot.lane.b32.xlu0 %v9081_v23, %s10625_s8 }
0x119b   : > { %5323 = vrot.lane.b32.xlu1 %v9077_v46, %s10641_s2 }
0x11a2   : > { %5509 = vrot.lane.b32.xlu2 %v9079_v18, %s10637_s10  ;;  %5381 = vrot.lane.b32.xlu0 %v9079_v18, %s10639_s1 }
0x11a3   : > { %5535 = vrot.lane.b32.xlu1 %v9075_v26, %s10638_s26 }
0x11aa   : > { %5541 = vrot.lane.b32.xlu2 %v9079_v18, %s10638_s26  ;;  %5441 = vrot.lane.b32.xlu0 %v9095_v33, %s10622_s0 }
0x11ab   : > { %5515 = vrot.lane.b32.xlu1 %v9077_v46, %s10637_s10 }
0x11b2   : > { %5481 = vrot.lane.b32.xlu2 %v9081_v23, %s10636_s9  ;;  %5389 = vrot.lane.b32.xlu0 %v9097_v45, %s10639_s1 }
0x11b3   : > { %5445 = vrot.lane.b32.xlu1 %v9079_v18, %s10622_s0 }
0x11b4   : > { %v9167_v49 = vpop.permute.xlu2 %5475 }
0x11ba   : > { %5413 = vrot.lane.b32.xlu2 %v9079_v18, %s10625_s8  ;;  %5345 = vrot.lane.b32.xlu0 %v9095_v33, %s10640_s3 }
0x11bb   : > { %5513 = vrot.lane.b32.xlu1 %v9081_v23, %s10637_s10 }
0x11bc   : > { %v9175_v53 = vpop.permute.xlu2 %5543 }
0x11c2   : > { %5549 = vrot.lane.b32.xlu0 %v9097_v45, %s10638_s26  ;;  %5473 = vrot.lane.b32.xlu2 %v9095_v33, %s10636_s9 }
0x11c3   : > { %5449 = vrot.lane.b32.xlu1 %v9081_v23, %s10622_s0 }
0x11c4   : > { %v9183_v21 = vpop.permute.xlu2 %5415 }
0x11ca   : > { %5485 = vrot.lane.b32.xlu0 %v9097_v45, %s10636_s9  ;;  %5421 = vrot.lane.b32.xlu2 %v9097_v45, %s10625_s8 }
0x11cb   : > { %5385 = vrot.lane.b32.xlu1 %v9081_v23, %s10639_s1 }
0x11cc   : > { %v5444_v24 = vpop.permute.xlu0 %5443  ;;  %v5440_v1 = vpop.permute.xlu2 %5439 }
0x11cd   : > { %v9191_v17 = vpop.permute.xlu1 %5507  ;;  %v9195_v12 = vsel %vm1496_vm3, %v5440_v1, %v5444_v24 }
0x11d2   : > { %5377 = vrot.lane.b32.xlu2 %v9095_v33, %s10639_s1 }
0x11d3   : > { %5505 = vrot.lane.b32.xlu1 %v9095_v33, %s10637_s10 }
0x11d4   : > { %v9201_v48 = vpop.permute.xlu0 %5511  ;;  %v9203_v41 = vpop.permute.xlu2 %5387 }
0x11d5   : > { %v9205_v16 = vpop.permute.xlu1 %5539 }
0x11da   : > { %5325 = vrot.lane.b32.xlu2 %v9097_v45, %s10641_s2 }
0x11db   : > { %5409 = vrot.lane.b32.xlu1 %v9095_v33, %s10625_s8 }
0x11dc   : > { %v9211_v9 = vpop.permute.xlu0 %5503  ;;  %v9213_v11 = vpop.permute.xlu2 %5343 }
0x11dd   : > { %v5480_v2 = vpop.permute.xlu1 %5479 }
0x11de   : > { %v9218_v34 = vsel %vm1524_vm2, %v9167_v49, %v5480_v2 }
0x11e2   : > { %5537 = vrot.lane.b32.xlu2 %v9095_v33, %s10638_s26 }
0x11e3   : > { %v4890_v28 = vpop.f32.mrf.mxu0  ;;  %5357 = vrot.lane.b32.xlu1 %v9097_v45, %s10640_s3 }
0x11e4   : > { %v4891_v27 = vadd.f32 %v4890_v28, %v4807_v51  ;;  %v5408_v7 = vpop.permute.xlu0 %5407  ;;  %v9224_v62 = vpop.permute.xlu2 %5547 }
0x11e5   : > { %v5448_v36 = vpop.permute.xlu1 %5447  ;;  %v9230_v37 = vsel %vm1580_vm0, %v9175_v53, %v9224_v62 }
0x11e6   : > { %v4921_v4 = vadd.f32 %v4917_v29, %v4891_v27  ;;  %v9234_v40 = vsel %vm1496_vm3, %v5444_v24, %v5448_v36 }
0x11e8   : > { %v4925_v30 = vmax.f32 %v4921_v4, 0.0 }
0x11e9   : > { %v4910_v3 = vpop.f32.mrf.mxu1 }
0x11ea   : > { %v4870_v32 = vpop.f32.mrf.mxu3  ;;  %v4911_v22 = vadd.f32 %v4910_v3, %v4827_v19  ;;  %4993 = vmatpush.msrb.mxu0 %v4925_v30  ;;  %5517 = vrot.lane.b32.xlu2 %v9097_v45, %s10637_s10 }
0x11eb   : > { %v4871_v13 = vadd.f32 %v4870_v32, %v4787_v61  ;;  %6383 = vmatmul.msk.f32.vlgmr.msrb.gmra.mxu0 %vm2832_vm11, %v4927_v54  ;;  %5313 = vrot.lane.b32.xlu1 %v9095_v33, %s10641_s2 }
0x11ec   : > { %v4922_v42 = vadd.f32 %v4917_v29, %v4911_v22  ;;  %v9242_v38 = vpop.permute.xlu0 %5355  ;;  %v5484_v43 = vpop.permute.xlu2 %5483 }
0x11ed   : > { %v4920_v39 = vadd.f32 %v4917_v29, %v4871_v13  ;;  %v5412_v35 = vpop.permute.xlu1 %5411  ;;  %v9246_v10 = vsel %vm1524_vm2, %v5480_v2, %v5484_v43  ;;  %v10645_v13 = vld [vmem:[#allocation71_spill] sm:$0xff] }
0x11ee   : > { %v4926_v55 = vmax.f32 %v4922_v42, 0.0  ;;  %v9251_v25 = vsel %vm1468_vm4, %v5412_v35, %v9183_v21  ;;  %v9255_v58 = vsel %vm1468_vm4, %v5408_v7, %v5412_v35 }
0x11ef   : > { %v4924_v59 = vmax.f32 %v4920_v39, 0.0 }
0x11f0   : > { %v4850_v56 = vpop.f32.mrf.mxu2  ;;  %5013 = vmatpush.msrb.mxu1 %v4926_v55 }
0x11f1   : > { %v4851_v52 = vadd.f32 %v4850_v56, %v4767_v0  ;;  %4973 = vmatpush.msrb.mxu3 %v4924_v59  ;;  %6384 = vmatmul.msk.f32.vlgmr.msrb.gmra.mxu1 %vm2832_vm11, %v4927_v54 }
0x11f2   : > { %6382 = vmatmul.msk.f32.vlgmr.msrb.gmra.mxu3 %vm2832_vm11, %v4927_v54  ;;  %5453 = vrot.lane.b32.xlu2 %v9097_v45, %s10622_s0 }
0x11f3   : > { %v4919_v60 = vadd.f32 %v4917_v29, %v4851_v52 }
0x11f4   : > { %v9261_v24 = vpop.permute.xlu0 %5311  ;;  %v5452_v51 = vpop.permute.xlu2 %5451 }
0x11f5   : > { %10644 = vst [vmem:[#allocation116_spill] sm:$0xff] %v9261_v24  ;;  %v4923_v2 = vmax.f32 %v4919_v60, 0.0  ;;  %v5472_v19 = vpop.permute.xlu1 %5471  ;;  %v9265_v28 = vsel %vm1496_vm3, %v5448_v36, %v5452_v51  ;;  %v9269_v0 = vsel %vm1496_vm3, %v5452_v51, %v5440_v1 }
0x11f6   : > { %v9274_v27 = vsel %vm1524_vm2, %v5472_v19, %v9167_v49  ;;  %v9278_v29 = vsel %vm1524_vm2, %v5484_v43, %v5472_v19 }
0x11f7   : > { %4953 = vmatpush.msrb.mxu2 %v4923_v2 }
0x11f8   : > { %6381 = vmatmul.msk.f32.vlgmr.msrb.gmra.mxu2 %vm2832_vm11, %v4927_v54  ;;  %v5553_v54 = vsel %vm1580_vm0, %v9205_v16, %v9175_v53 }
0x11fc   : > { %v9281_v4 = vpop.permute.xlu0 %5477  ;;  %v9283_v36 = vpop.permute.xlu2 %5509 }
0x11fd   : > { %v5420_v61 = vpop.permute.xlu1 %5419 }
0x11fe   : > { %v9288_v1 = vsel %vm1468_vm4, %v9183_v21, %v5420_v61  ;;  %v9292_v49 = vsel %vm1468_vm4, %v5420_v61, %v5408_v7  ;;  %v5560_v21 = vmul.f32 %v5553_v54, %v10645_v13  ;;  %v9333_v54 = vld [vmem:[#allocation22 + $0x18] sm:$0xff] }
0x1204   : > { %v5546_v30 = vpop.permute.xlu0 %5545  ;;  %v5542_v3 = vpop.permute.xlu2 %5541 }
0x1205   : > { %v9298_v32 = vpop.permute.xlu1 %5375  ;;  %v5554_v22 = vsel %vm1580_vm0, %v5542_v3, %v5546_v30 }
0x1206   : > { %v5564_v42 = vmul.f32 %v5554_v22, %v10645_v13 }
0x1208   : > { %5644 = vmatpush.msra.mxu1 %v5564_v42 }
0x120a   : > { %5645 = vmatpush.msra.mxu1 %v5560_v21  ;;  %v5521_v21 = vsel %vm1552_vm1, %v9191_v17, %v9201_v48 }
0x120b   : > { %6386 = vmatmul.msk.f32.vlgmr.msra.gmra.mxu1 %vm2299_vm9, %v9333_v54  ;;  %v5528_v57 = vmul.f32 %v5521_v21, %v10648_v44  ;;  %v10650_v21 = vld [vmem:[#allocation64_spill] sm:$0xff] }
0x120c   : > { %v9304_v7 = vpop.permute.xlu0 %5417  ;;  %v9306_v43 = vpop.permute.xlu2 %5481 }
0x120d   : > { %v9308_v39 = vpop.permute.xlu1 %5323  ;;  %v5490_v6 = vsel %vm1524_vm2, %v9281_v4, %v9306_v43 }
0x120e   : > { %10646 = vst [vmem:[#allocation114_spill] sm:$0xff] %v9308_v39  ;;  %v5500_v47 = vmul.f32 %v5490_v6, %v10649_v15  ;;  %v5561_v39 = vmul.f32 %v9230_v37, %v10650_v21 }
0x1214   : > { %v9310_v35 = vpop.permute.xlu0 %5381  ;;  %v9312_v53 = vpop.permute.xlu2 %5413 }
0x1215   : > { %v5536_v55 = vpop.permute.xlu1 %5535  ;;  %v9318_v59 = vsel %vm1468_vm4, %v9312_v53, %v9304_v7 }
0x1216   : > { %v9323_v56 = vsel %vm1580_vm0, %v9224_v62, %v5536_v55 }
0x1217   : > { %10647 = vst [vmem:[#allocation113_spill] sm:$0xff] %v9323_v56  ;;  %v5496_v56 = vmul.f32 %v9218_v34, %v10649_v15 }
0x121c   : > { %v9325_v52 = vpop.permute.xlu0 %5441  ;;  %v5474_v60 = vpop.permute.xlu2 %5473 }
0x121d   : > { %v5516_v51 = vpop.permute.xlu1 %5515 }
0x1224   : > { %v9327_v2 = vpop.permute.xlu0 %5389  ;;  %v9329_v19 = vpop.permute.xlu2 %5421 }
0x1225   : > { %v9331_v61 = vpop.permute.xlu1 %5445 }
0x122c   : > { %v9337_v22 = vpop.permute.xlu0 %5345  ;;  %v9339_v42 = vpop.permute.xlu2 %5377 }
0x122d   : > { %v5514_v62 = vpop.permute.xlu1 %5513 }
0x122e   : > { %v5522_v13 = vsel %vm1552_vm1, %v9283_v36, %v5514_v62 }
0x122f   : > { %v5532_v50 = vmul.f32 %v5522_v13, %v10648_v44 }
0x1231   : > { %5610 = vmatpush.msra.mxu0 %v5532_v50 }
0x1233   : > { %5611 = vmatpush.msra.mxu0 %v5528_v57  ;;  %v10651_v57 = vld [vmem:[#allocation82_spill] sm:$0xff] }
0x1234   : > { %v9355_v63 = vpop.permute.xlu0 %5549  ;;  %v9357_v20 = vpop.permute.xlu2 %5325  ;;  %v5464_v34 = vmul.f32 %v9234_v40, %v10651_v57  ;;  %v5555_v40 = vsel %vm1580_vm0, %v5536_v55, %v9205_v16  ;;  %v5519_v16 = vsel %vm1552_vm1, %v9201_v48, %v5516_v51 }
0x1235   : > { %v5450_v8 = vpop.permute.xlu1 %5449  ;;  %v5552_v13 = vsel %vm1580_vm0, %v5546_v30, %v9355_v63  ;;  %5612 = vmatpush.msra.mxu0 %v5500_v47 }
0x1236   : > { %v5458_v50 = vsel %vm1496_vm3, %v9331_v61, %v5450_v8  ;;  %v5565_v6 = vmul.f32 %v5552_v13, %v10650_v21 }
0x1237   : > { %v5468_v44 = vmul.f32 %v5458_v50, %v10651_v57  ;;  %5613 = vmatpush.msra.mxu0 %v5496_v56 }
0x1238   : > { %5684 = vmatpush.msrb.mxu1 %v5565_v6 }
0x1239   : > { %5614 = vmatpush.msra.mxu0 %v5468_v44  ;;  %v10652_v44 = vld [vmem:[#allocation70_spill] sm:$0xff] }
0x123a   : > { %5685 = vmatpush.msrb.mxu1 %v5561_v39  ;;  %v5559_v56 = vmul.f32 %v5555_v40, %v10652_v44 }
0x123b   : > { %5615 = vmatpush.msra.mxu0 %v5464_v34  ;;  %6387 = vmatmul.msk.f32.vlgmr.msrb.gmra.mxu1 %vm2299_vm9, %v9333_v54  ;;  %v5525_v34 = vsel %vm1552_vm1, %v5516_v51, %v9211_v9 }
0x123c   : > { %v9375_v47 = vpop.permute.xlu2 %5537  ;;  %v5486_v13 = vpop.permute.xlu0 %5485 }
0x123d   : > { %v9377_v30 = vpop.permute.xlu1 %5385  ;;  %5616 = vmatpush.msra.mxu0 %v9079_v18  ;;  %v5556_v37 = vsel %vm1580_vm0, %v9375_v47, %v5542_v3  ;;  %v5523_v3 = vsel %vm1552_vm1, %v9211_v9, %v9191_v17  ;;  %v10653_v17 = vld [vmem:[#allocation65_spill] sm:$0xff]  ;;  %v5488_v48 = vsel %vm1524_vm2, %v9306_v43, %v5486_v13  ;;  %v5492_v9 = vsel %vm1524_vm2, %v5474_v60, %v9281_v4  ;;  %v10656_v43 = vld [vmem:[#allocation66_spill] sm:$0xff] }
0x123e   : > { %v5563_v39 = vmul.f32 %v5556_v37, %v10652_v44  ;;  %v5529_v21 = vmul.f32 %v5519_v16, %v10653_v17  ;;  %v10658_v16 = vld [vmem:[#allocation67_spill] sm:$0xff]  ;;  %v5497_v4 = vmul.f32 %v9246_v10, %v10656_v43 }
0x123f   : > { %5617 = vmatpush.msra.mxu0 %v9065_v5 }
0x1240   : > { %5604 = vmatpush.msra.mxu3 %v5563_v39 }
0x1242   : > { %5605 = vmatpush.msra.mxu3 %v5559_v56  ;;  %v10654_v56 = vld [vmem:[#allocation72_spill] sm:$0xff] }
0x1243   : > { %6385 = vmatmul.msk.f32.vlgmr.msra.gmra.mxu3 %vm2299_vm9, %v9333_v54  ;;  %v5527_v51 = vmul.f32 %v5523_v3, %v10654_v56 }
0x1244   : > { %v5518_v50 = vpop.permute.xlu2 %5517 }
0x1245   : > { %v5506_v55 = vpop.permute.xlu1 %5505  ;;  %v5520_v6 = vsel %vm1552_vm1, %v5514_v62, %v5518_v50  ;;  %v10655_v62 = vld [vmem:[#allocation63_spill] sm:$0xff] }
0x1246   : > { %v5524_v37 = vsel %vm1552_vm1, %v5506_v55, %v9283_v36  ;;  %v5526_v40 = vsel %vm1552_vm1, %v5518_v50, %v5506_v55  ;;  %v5533_v39 = vmul.f32 %v5520_v6, %v10653_v17  ;;  %v5494_v36 = vsel %vm1524_vm2, %v5486_v13, %v5474_v60  ;;  %v10657_v6 = vld [vmem:[#allocation74_spill] sm:$0xff] }
0x1247   : > { %v5531_v57 = vmul.f32 %v5524_v37, %v10654_v56  ;;  %v5534_v15 = vmul.f32 %v5526_v40, %v10655_v62  ;;  %v5530_v50 = vmul.f32 %v5525_v34, %v10655_v62  ;;  %v5501_v55 = vmul.f32 %v5488_v48, %v10656_v43 }
0x1248   : > { %5650 = vmatpush.msrb.mxu3 %v5533_v39  ;;  %v5499_v37 = vmul.f32 %v5492_v9, %v10657_v6  ;;  %v5502_v40 = vmul.f32 %v5494_v36, %v10658_v16  ;;  %v5495_v60 = vmul.f32 %v9274_v27, %v10657_v6  ;;  %v10660_v39 = vld [vmem:[#allocation69_spill] sm:$0xff]  ;;  %v10662_v36 = vld [vmem:[#allocation86_spill] sm:$0xff] }
0x1249   : > { %5570 = vmatpush.msra.mxu2 %v5531_v57  ;;  %5690 = vmatpush.msra.mxu1 %v5534_v15  ;;  %v5460_v15 = vsel %vm1496_vm3, %v9325_v52, %v9331_v61  ;;  %v10659_v61 = vld [vmem:[#allocation68_spill] sm:$0xff] }
0x124a   : > { %5651 = vmatpush.msrb.mxu3 %v5529_v21  ;;  %v5498_v21 = vmul.f32 %v9278_v29, %v10658_v16  ;;  %v10661_v29 = vld [vmem:[#allocation81_spill] sm:$0xff] }
0x124b   : > { %5571 = vmatpush.msra.mxu2 %v5527_v51  ;;  %5691 = vmatpush.msra.mxu1 %v5530_v50  ;;  %v5467_v9 = vmul.f32 %v5460_v15, %v10661_v29  ;;  %v5432_v50 = vmul.f32 %v9255_v58, %v10662_v36  ;;  %v10665_v15 = vld [vmem:[#allocation85_spill] sm:$0xff] }
0x124c   : > { %5652 = vmatpush.msrb.mxu3 %v5501_v55  ;;  %v5454_v57 = vpop.permute.xlu2 %5453  ;;  %v5466_v55 = vmul.f32 %v9269_v0, %v10660_v39  ;;  %v10664_v0 = vld [vmem:[#allocation76_spill] sm:$0xff] }
0x124d   : > { %v5410_v13 = vpop.permute.xlu1 %5409  ;;  %5572 = vmatpush.msra.mxu2 %v5499_v37  ;;  %5692 = vmatpush.msra.mxu1 %v5502_v40  ;;  %v5456_v3 = vsel %vm1496_vm3, %v5450_v8, %v5454_v57  ;;  %v5462_v10 = vsel %vm1496_vm3, %v5454_v57, %v9325_v52  ;;  %v5465_v8 = vmul.f32 %v9265_v28, %v10659_v61  ;;  %v10663_v28 = vld [vmem:[#allocation89_spill] sm:$0xff] }
0x124e   : > { %v5428_v27 = vsel %vm1468_vm4, %v5410_v13, %v9312_v53  ;;  %v5469_v34 = vmul.f32 %v5456_v3, %v10659_v61  ;;  %v5470_v48 = vmul.f32 %v5462_v10, %v10660_v39  ;;  %5653 = vmatpush.msrb.mxu3 %v5497_v4  ;;  %v5396_v52 = vsel %vm1440_vm5, %v9339_v42, %v9310_v35 }
0x124f   : > { %v5436_v51 = vmul.f32 %v5428_v27, %v10662_v36  ;;  %5573 = vmatpush.msra.mxu2 %v5495_v60  ;;  %5693 = vmatpush.msra.mxu1 %v5498_v21  ;;  %v5463_v53 = vmul.f32 %v9195_v12, %v10661_v29  ;;  %v5404_v37 = vmul.f32 %v5396_v52, %v10663_v28  ;;  %v10668_v21 = vld [vmem:[#allocation88_spill] sm:$0xff]  ;;  %v10671_v27 = vld [vmem:[#allocation90_spill] sm:$0xff] }
0x1250   : > { %5654 = vmatpush.msrb.mxu3 %v5469_v34  ;;  %v5430_v40 = vsel %vm1468_vm4, %v9329_v19, %v5410_v13  ;;  %v5424_v12 = vsel %vm1468_vm4, %v9304_v7, %v9329_v19  ;;  %v5437_v4 = vmul.f32 %v9318_v59, %v10664_v0  ;;  %v5394_v60 = vsel %vm1440_vm5, %v9310_v35, %v9377_v30  ;;  %v10666_v7 = vld [vmem:[#allocation77_spill] sm:$0xff]  ;;  %v10669_v13 = vld [vmem:[#allocation78_spill] sm:$0xff] }
0x1251   : > { %5574 = vmatpush.msra.mxu2 %v5467_v9  ;;  %5618 = vmatpush.msra.mxu0 %v5436_v51  ;;  %v5435_v57 = vmul.f32 %v5430_v40, %v10665_v15  ;;  %v5438_v19 = vmul.f32 %v5424_v12, %v10666_v7  ;;  %v5431_v35 = vmul.f32 %v9292_v49, %v10665_v15  ;;  %v10672_v51 = vld [vmem:[#allocation114_spill] sm:$0xff]  ;;  %v10675_v12 = vld [vmem:[#allocation115_spill] sm:$0xff] }
0x1252   : > { %5694 = vmatpush.msra.mxu1 %v5470_v48  ;;  %5655 = vmatpush.msrb.mxu3 %v5465_v8  ;;  %v5397_v59 = vsel %vm1440_vm5, %v9203_v41, %v9298_v32  ;;  %v5365_v10 = vsel %vm1412_vm6, %v9242_v38, %v9213_v11  ;;  %v5333_v8 = vsel %vm1385_vm7, %v10672_v51, %v9261_v24  ;;  %v5893_v29 = vld [vmem:[%s10697_s6] sm:$0xff] }
0x1253   : > { %5575 = vmatpush.msra.mxu2 %v5463_v53  ;;  %5619 = vmatpush.msra.mxu0 %v5432_v50  ;;  %v5367_v9 = vmul.f32 %v5365_v10, %v10671_v27  ;;  %v5558_v52 = vsel %vm1580_vm0, %v9355_v63, %v9375_v47  ;;  %v10673_v53 = vld [vmem:[#allocation92_spill] sm:$0xff] }
0x1254   : > { %5695 = vmatpush.msra.mxu1 %v5466_v55  ;;  %5656 = vmatpush.msrb.mxu3 %v9081_v23  ;;  %v5335_v55 = vmul.f32 %v5333_v8, %v10673_v53 }
0x1255   : > { %v9468_v58 = vpop.permute.xlu1 %5357  ;;  %5576 = vmatpush.msra.mxu2 %v9095_v33  ;;  %5620 = vmatpush.msra.mxu0 %v5404_v37  ;;  %v5433_v33 = vmul.f32 %v9251_v25, %v10664_v0  ;;  %v5434_v25 = vmul.f32 %v9288_v1, %v10666_v7  ;;  %v5399_v1 = vmul.f32 %v5397_v59, %v10668_v21  ;;  %v10674_v37 = vld [vmem:[#allocation62_spill] sm:$0xff] }
0x1256   : > { %5696 = vmatpush.msra.mxu1 %v9097_v45  ;;  %5657 = vmatpush.msrb.mxu3 %v9067_v14  ;;  %v5398_v45 = vsel %vm1440_vm5, %v9327_v2, %v9339_v42  ;;  %v10667_v42 = vld [vmem:[#allocation79_spill] sm:$0xff]  ;;  %v5566_v40 = vmul.f32 %v5558_v52, %v10674_v37 }
0x1257   : > { %5577 = vmatpush.msra.mxu2 %v9075_v26  ;;  %v5392_v26 = vsel %vm1440_vm5, %v9377_v30, %v9327_v2  ;;  %v5403_v49 = vmul.f32 %v5398_v45, %v10668_v21  ;;  %v5366_v2 = vsel %vm1412_vm6, %v9468_v58, %v9337_v22 }
0x1258   : > { %5697 = vmatpush.msra.mxu1 %v9077_v46  ;;  %5658 = vmatpush.msrb.mxu3 %v5437_v4  ;;  %v5405_v46 = vmul.f32 %v5394_v60, %v10667_v42  ;;  %v5406_v3 = vmul.f32 %v5392_v26, %v10669_v13  ;;  %v5371_v34 = vmul.f32 %v5366_v2, %v10671_v27  ;;  %v9533_v4 = vperm.slane %v10675_v12, 0  ;;  %v10676_v60 = vld [vmem:[#allocation113_spill] sm:$0xff] }
0x1259   : > { %5578 = vmatpush.msra.mxu2 %v5435_v57  ;;  %v5562_v57 = vmul.f32 %v10676_v60, %v10674_v37  ;;  %v10679_v12 = vld [vmem:[#allocation101_spill] sm:$0xff] }
0x125a   : > { %5698 = vmatpush.msra.mxu1 %v5438_v19  ;;  %5659 = vmatpush.msrb.mxu3 %v5433_v33 }
0x125b   : > { %5579 = vmatpush.msra.mxu2 %v5431_v35 }
0x125c   : > { %5699 = vmatpush.msra.mxu1 %v5434_v25  ;;  %5660 = vmatpush.msrb.mxu3 %v5405_v46  ;;  %v10677_v46 = vld [vmem:[#allocation102_spill] sm:$0xff] }
0x125d   : > { %v9509_v30 = vpop.permute.xlu1 %5313  ;;  %5580 = vmatpush.msra.mxu2 %v5403_v49 }
0x125e   : > { %10670 = vst [vmem:[#allocation110_spill] sm:$0xff] %v9509_v30  ;;  %5700 = vmatpush.msra.mxu1 %v5406_v3  ;;  %v5334_v48 = vsel %vm1385_vm7, %v9357_v20, %v9509_v30  ;;  %v10678_v3 = vld [vmem:[#allocation104_spill] sm:$0xff] }
0x125f   : > { %5581 = vmatpush.msra.mxu2 %v5399_v1  ;;  %v5339_v50 = vmul.f32 %v5334_v48, %v10673_v53 }
0x1261   : > { %5582 = vmatpush.msra.mxu2 %v5371_v34 }
0x1263   : > { %5583 = vmatpush.msra.mxu2 %v5367_v9 }
0x1265   : > { %5584 = vmatpush.msra.mxu2 %v5339_v50 }
0x1267   : > { %5585 = vmatpush.msra.mxu2 %v5335_v55 }
0x1268   : > { %v4995_v33 = vpop.f32.mrf.mxu0 }
0x1269   : > { %5724 = vmatpush.msrb.mxu2 %v5566_v40  ;;  %v4996_v19 = vadd.f32 %v4995_v33, %v9533_v4 }
0x126b   : > { %5725 = vmatpush.msrb.mxu2 %v5562_v57  ;;  %v5020_v63 = vsub.f32 0.0, %v4996_v19  ;;  %v10681_v57 = vld [vmem:[#allocation103_spill] sm:$0xff] }
0x126d   : > { %v5026_v47 = vmul.f32 1.442695, %v5020_v63 }
0x126e   : > { %v5015_v59 = vpop.f32.mrf.mxu1 }
0x126f   : > { %6625 = vpow2.f32 %v5026_v47  ;;  %v5016_v1 = vadd.f32 %v5015_v59, %v9533_v4 }
0x1271   : > { %v5021_v10 = vsub.f32 0.0, %v5016_v1  ;;  %v10684_v1 = vld [vmem:[#allocation105_spill] sm:$0xff] }
0x1273   : > { %v5028_v34 = vmul.f32 1.442695, %v5021_v10 }
0x1275   : > { %v6626_v45 = vpop.eup %6625  ;;  %v4975_v8 = vpop.f32.mrf.mxu3 }
0x1276   : > { %v5032_v35 = vadd.f32 1.0, %v6626_v45  ;;  %v4976_v50 = vadd.f32 %v4975_v8, %v9533_v4 }
0x1278   : > { %6627 = vrcp.f32 %v5032_v35  ;;  %v5019_v40 = vsub.f32 0.0, %v4976_v50 }
0x1279   : > { %6629 = vpow2.f32 %v5028_v34 }
0x127a   : > { %v5024_v19 = vmul.f32 1.442695, %v5019_v40  ;;  %v10688_v40 = vld [vmem:[#allocation98_spill] sm:$0xff] }
0x127e   : > { %v6628_v26 = vpop.eup %6627 }
0x127f   : > { %v5040_v25 = vperm.slane %v6628_v26, 0  ;;  %v6630_v48 = vpop.eup %6629  ;;  %v4955_v26 = vpop.f32.mrf.mxu2 }
0x1280   : > { %v5033_v9 = vadd.f32 1.0, %v6630_v48 }
0x1281   : > { %v9539_v49 = vmul.f32 %v5040_v25, %v10677_v46  ;;  %v9542_v2 = vmul.f32 %v5040_v25, %v10678_v3  ;;  %v10682_v25 = vld [vmem:[#allocation99_spill] sm:$0xff]  ;;  %v4956_v46 = vadd.f32 %v4955_v26, %v9533_v4 }
0x1282   : > { %6631 = vrcp.f32 %v5033_v9 }
0x1283   : > { %5062 = vrot.lane.b32.xlu2 %v9542_v2, %s10641_s2  ;;  %5092 = vrot.lane.b32.xlu0 %v9539_v49, %s10640_s3  ;;  %6633 = vpow2.f32 %v5024_v19  ;;  %v5018_v3 = vsub.f32 0.0, %v4956_v46 }
0x1284   : > { %5060 = vrot.lane.b32.xlu1 %v9539_v49, %s10641_s2 }
0x1285   : > { %v5022_v34 = vmul.f32 1.442695, %v5018_v3 }
0x1288   : > { %v6632_v52 = vpop.eup %6631 }
0x1289   : > { %v5041_v55 = vperm.slane %v6632_v52, 0  ;;  %v6634_v63 = vpop.eup %6633 }
0x128a   : > { %v5031_v47 = vadd.f32 1.0, %v6634_v63 }
0x128b   : > { %5124 = vrot.lane.b32.xlu2 %v9539_v49, %s10639_s1  ;;  %5126 = vrot.lane.b32.xlu0 %v9542_v2, %s10639_s1  ;;  %v9577_v60 = vmul.f32 %v5041_v55, %v10679_v12  ;;  %v9580_v33 = vmul.f32 %v5041_v55, %v10681_v57 }
0x128c   : > { %5094 = vrot.lane.b32.xlu1 %v9542_v2, %s10640_s3  ;;  %6635 = vrcp.f32 %v5031_v47  ;;  %v10692_v47 = vld [vmem:[#allocation100_spill] sm:$0xff] }
0x128d   : > { %10680 = vst [vmem:[#allocation112_spill] sm:$0xff] %v9577_v60  ;;  %6637 = vpow2.f32 %v5022_v34 }
0x1292   : > { %v6636_v45 = vpop.eup %6635 }
0x1293   : > { %5158 = vrot.lane.b32.xlu2 %v9542_v2, %s10625_s8  ;;  %5188 = vrot.lane.b32.xlu0 %v9539_v49, %s10622_s0  ;;  %v5039_v35 = vperm.slane %v6636_v45, 0  ;;  %v6638_v4 = vpop.eup %6637 }
0x1294   : > { %5156 = vrot.lane.b32.xlu1 %v9539_v49, %s10625_s8  ;;  %v5030_v9 = vadd.f32 1.0, %v6638_v4 }
0x1295   : > { %v9607_v59 = vmul.f32 %v5039_v35, %v10682_v25  ;;  %v9617_v10 = vmul.f32 %v5039_v35, %v10684_v1 }
0x1296   : > { %6639 = vrcp.f32 %v5030_v9 }
0x1297   : > { %10683 = vst [vmem:[#allocation109_spill] sm:$0xff] %v9607_v59 }
0x1298   : > { %10685 = vst [vmem:[#allocation111_spill] sm:$0xff] %v9617_v10 }
0x129b   : > { %5254 = vrot.lane.b32.xlu2 %v9542_v2, %s10637_s10  ;;  %5284 = vrot.lane.b32.xlu0 %v9539_v49, %s10638_s26 }
0x129c   : > { %5190 = vrot.lane.b32.xlu1 %v9542_v2, %s10622_s0  ;;  %v6640_v52 = vpop.eup %6639 }
0x129d   : > { %v5038_v50 = vperm.slane %v6640_v52, 0 }
0x129f   : > { %v9650_v12 = vmul.f32 %v5038_v50, %v10688_v40  ;;  %v9665_v45 = vmul.f32 %v5038_v50, %v10692_v47 }
0x12a1   : > { %10689 = vst [vmem:[#allocation106_spill] sm:$0xff] %v9650_v12 }
0x12a2   : > { %10693 = vst [vmem:[#allocation65_spill] sm:$0xff] %v9665_v45 }
0x12a3   : > { %5252 = vrot.lane.b32.xlu2 %v9539_v49, %s10637_s10  ;;  %5220 = vrot.lane.b32.xlu0 %v9539_v49, %s10636_s9 }
0x12a4   : > { %5286 = vrot.lane.b32.xlu1 %v9542_v2, %s10638_s26 }
0x12ab   : > { %5222 = vrot.lane.b32.xlu2 %v9542_v2, %s10636_s9  ;;  %5064 = vrot.lane.b32.xlu0 %v9577_v60, %s10641_s2 }
0x12ac   : > { %5066 = vrot.lane.b32.xlu1 %v9580_v33, %s10641_s2 }
0x12b3   : > { %5096 = vrot.lane.b32.xlu2 %v9577_v60, %s10640_s3  ;;  %5098 = vrot.lane.b32.xlu0 %v9580_v33, %s10640_s3 }
0x12b4   : > { %5128 = vrot.lane.b32.xlu1 %v9577_v60, %s10639_s1 }
0x12bb   : > { %5130 = vrot.lane.b32.xlu2 %v9580_v33, %s10639_s1  ;;  %5160 = vrot.lane.b32.xlu0 %v9577_v60, %s10625_s8 }
0x12bc   : > { %5162 = vrot.lane.b32.xlu1 %v9580_v33, %s10625_s8 }
0x12c3   : > { %5192 = vrot.lane.b32.xlu2 %v9577_v60, %s10622_s0  ;;  %5194 = vrot.lane.b32.xlu0 %v9580_v33, %s10622_s0 }
0x12c4   : > { %5224 = vrot.lane.b32.xlu1 %v9577_v60, %s10636_s9 }
0x12cb   : > { %5258 = vrot.lane.b32.xlu0 %v9580_v33, %s10637_s10  ;;  %5056 = vrot.lane.b32.xlu2 %v9607_v59, %s10641_s2 }
0x12cc   : > { %5088 = vrot.lane.b32.xlu1 %v9607_v59, %s10640_s3 }
0x12d3   : > { %5256 = vrot.lane.b32.xlu0 %v9577_v60, %s10637_s10  ;;  %5090 = vrot.lane.b32.xlu2 %v9617_v10, %s10640_s3 }
0x12d4   : > { %5122 = vrot.lane.b32.xlu1 %v9617_v10, %s10639_s1 }
0x12db   : > { %5226 = vrot.lane.b32.xlu0 %v9580_v33, %s10636_s9  ;;  %5152 = vrot.lane.b32.xlu2 %v9607_v59, %s10625_s8 }
0x12dc   : > { %5184 = vrot.lane.b32.xlu1 %v9607_v59, %s10622_s0 }
0x12dd   : > { %v9631_v48 = vpop.permute.xlu2 %5062 }
0x12de   : > { %10686 = vst [vmem:[#allocation108_spill] sm:$0xff] %v9631_v48 }
0x12e3   : > { %5058 = vrot.lane.b32.xlu0 %v9617_v10, %s10641_s2  ;;  %5186 = vrot.lane.b32.xlu2 %v9617_v10, %s10622_s0 }
0x12e4   : > { %5282 = vrot.lane.b32.xlu1 %v9617_v10, %s10638_s26 }
0x12e5   : > { %v9639_v8 = vpop.permute.xlu2 %5124 }
0x12e6   : > { %10687 = vst [vmem:[#allocation107_spill] sm:$0xff] %v9639_v8  ;;  %v10731_v8 = vld [vmem:[#allocation71_spill] sm:$0xff] }
0x12eb   : > { %5120 = vrot.lane.b32.xlu0 %v9607_v59, %s10639_s1  ;;  %5216 = vrot.lane.b32.xlu2 %v9607_v59, %s10636_s9 }
0x12ec   : > { %5250 = vrot.lane.b32.xlu1 %v9617_v10, %s10637_s10 }
0x12ed   : > { %v9647_v55 = vpop.permute.xlu2 %5158 }
0x12f3   : > { %5154 = vrot.lane.b32.xlu0 %v9617_v10, %s10625_s8  ;;  %5084 = vrot.lane.b32.xlu2 %v9650_v12, %s10640_s3 }
0x12f4   : > { %5248 = vrot.lane.b32.xlu1 %v9607_v59, %s10637_s10 }
0x12f5   : > { %v9658_v57 = vpop.permute.xlu0 %5092  ;;  %v9660_v19 = vpop.permute.xlu2 %5254 }
0x12f6   : > { %10690 = vst [vmem:[#allocation61_spill] sm:$0xff] %v9658_v57  ;;  %v9662_v63 = vpop.permute.xlu1 %5060 }
0x12f7   : > { %10691 = vst [vmem:[#allocation70_spill] sm:$0xff] %v9662_v63 }
0x12fb   : > { %5280 = vrot.lane.b32.xlu0 %v9607_v59, %s10638_s26  ;;  %5118 = vrot.lane.b32.xlu2 %v9665_v45, %s10639_s1 }
0x12fc   : > { %5218 = vrot.lane.b32.xlu1 %v9617_v10, %s10636_s9 }
0x12fd   : > { %v9673_v35 = vpop.permute.xlu0 %5126  ;;  %v9675_v26 = vpop.permute.xlu2 %5252 }
0x12fe   : > { %v9677_v25 = vpop.permute.xlu1 %5094 }
0x12ff   : > { %10694 = vst [vmem:[#allocation63_spill] sm:$0xff] %v9677_v25 }
0x1303   : > { %5180 = vrot.lane.b32.xlu2 %v9650_v12, %s10622_s0  ;;  %5052 = vrot.lane.b32.xlu0 %v9650_v12, %s10641_s2 }
0x1304   : > { %5054 = vrot.lane.b32.xlu1 %v9665_v45, %s10641_s2 }
0x1305   : > { %v9685_v46 = vpop.permute.xlu0 %5188  ;;  %v9687_v3 = vpop.permute.xlu2 %5222 }
0x1306   : > { %v9689_v1 = vpop.permute.xlu1 %5156 }
0x130b   : > { %5276 = vrot.lane.b32.xlu2 %v9650_v12, %s10638_s26  ;;  %5086 = vrot.lane.b32.xlu0 %v9665_v45, %s10640_s3 }
0x130c   : > { %5116 = vrot.lane.b32.xlu1 %v9650_v12, %s10639_s1 }
0x130d   : > { %v9697_v34 = vpop.permute.xlu0 %5284  ;;  %v9699_v4 = vpop.permute.xlu2 %5096 }
0x130e   : > { %10695 = vst [vmem:[#allocation66_spill] sm:$0xff] %v9699_v4  ;;  %v9701_v9 = vpop.permute.xlu1 %5190 }
0x1313   : > { %5379 = vrot.lane.b32.xlu2 %v9065_v5, %s10639_s1  ;;  %5148 = vrot.lane.b32.xlu0 %v9650_v12, %s10625_s8 }
0x1314   : > { %5150 = vrot.lane.b32.xlu1 %v9665_v45, %s10625_s8  ;;  %s10798_s8 = sshll.u32 %s10804_s5, 5 }
0x1315   : > { %v9709_v52 = vpop.permute.xlu0 %5220  ;;  %v9711_v50 = vpop.permute.xlu2 %5130  ;;  %s1370_s6 = scalar_lea.vmem %s7412_s4, %s10798_s8 }
0x1316   : > { %10696 = vst [vmem:[#allocation67_spill] sm:$0xff] %v9711_v50  ;;  %v9713_v40 = vpop.permute.xlu1 %5286 }
0x131b   : > { %5353 = vrot.lane.b32.xlu2 %v9081_v23, %s10640_s3  ;;  %5182 = vrot.lane.b32.xlu0 %v9665_v45, %s10622_s0 }
0x131c   : > { %5349 = vrot.lane.b32.xlu1 %v9079_v18, %s10640_s3 }
0x131d   : > { %v9721_v47 = vpop.permute.xlu0 %5064  ;;  %v9723_v37 = vpop.permute.xlu2 %5192 }
0x131e   : > { %10698 = vst [vmem:[#allocation68_spill] sm:$0xff] %v9721_v47  ;;  %v9725_v53 = vpop.permute.xlu1 %5066 }
0x131f   : > { %10699 = vst [vmem:[#allocation69_spill] sm:$0xff] %v9725_v53 }
0x1323   : > { %5290 = vrot.lane.b32.xlu2 %v9580_v33, %s10638_s26  ;;  %5278 = vrot.lane.b32.xlu0 %v9665_v45, %s10638_s26 }
0x1324   : > { %5351 = vrot.lane.b32.xlu1 %v9067_v14, %s10640_s3 }
0x1325   : > { %v9733_v27 = vpop.permute.xlu0 %5098  ;;  %v9735_v21 = vpop.permute.xlu2 %5056 }
0x1326   : > { %10700 = vst [vmem:[#allocation76_spill] sm:$0xff] %v9733_v27  ;;  %v9737_v59 = vpop.permute.xlu1 %5128 }
0x1327   : > { %10701 = vst [vmem:[#allocation79_spill] sm:$0xff] %v9735_v21 }
0x1328   : > { %10702 = vst [vmem:[#allocation78_spill] sm:$0xff] %v9737_v59 }
0x132b   : > { %5288 = vrot.lane.b32.xlu2 %v9577_v60, %s10638_s26  ;;  %5383 = vrot.lane.b32.xlu0 %v9067_v14, %s10639_s1 }
0x132c   : > { %5212 = vrot.lane.b32.xlu1 %v9650_v12, %s10636_s9 }
0x132d   : > { %v9745_v36 = vpop.permute.xlu0 %5160  ;;  %v9747_v15 = vpop.permute.xlu2 %5090 }
0x132e   : > { %10703 = vst [vmem:[#allocation114_spill] sm:$0xff] %v9745_v36  ;;  %v9749_v10 = vpop.permute.xlu1 %5162 }
0x132f   : > { %10704 = vst [vmem:[#allocation115_spill] sm:$0xff] %v9747_v15 }
0x1333   : > { %5896 = vperm.xlu2 %6614, %v5893_v29   ;;  %5246 = vrot.lane.b32.xlu0 %v9665_v45, %s10637_s10 }
0x1334   : > { %5321 = vrot.lane.b32.xlu1 %v9081_v23, %s10641_s2 }
0x1335   : > { %v9756_v6 = vpop.permute.xlu0 %5194  ;;  %v9758_v56 = vpop.permute.xlu2 %5152 }
0x1336   : > { %v9760_v47 = vpop.permute.xlu1 %5224 }
0x133b   : > { %5244 = vrot.lane.b32.xlu0 %v9650_v12, %s10637_s10 }
0x133c   : > { %5319 = vrot.lane.b32.xlu1 %v9067_v14, %s10641_s2 }
0x133d   : > { %v9766_v24 = vpop.permute.xlu0 %5258  ;;  %v9768_v29 = vpop.permute.xlu2 %5186 }
0x133e   : > { %10705 = vst [vmem:[#allocation113_spill] sm:$0xff] %v9768_v29  ;;  %v9770_v53 = vpop.permute.xlu1 %5088 }
0x133f   : > { %10706 = vst [vmem:[#allocation102_spill] sm:$0xff] %v9770_v53 }
0x1343   : > { %5214 = vrot.lane.b32.xlu0 %v9665_v45, %s10636_s9 }
0x1345   : > { %v9774_v23 = vpop.permute.xlu0 %5256  ;;  %v9776_v21 = vpop.permute.xlu2 %5216 }
0x1346   : > { %10707 = vst [vmem:[#allocation104_spill] sm:$0xff] %v9776_v21  ;;  %v9778_v63 = vpop.permute.xlu1 %5122 }
0x134b   : > { %5347 = vrot.lane.b32.xlu0 %v9065_v5, %s10640_s3 }
0x134d   : > { %v9782_v12 = vpop.permute.xlu0 %5226  ;;  %v5085_v14 = vpop.permute.xlu2 %5084 }
0x134e   : > { %v9784_v48 = vpop.permute.xlu1 %5184  ;;  %v9789_v29 = vsel %vm1412_vm6, %v5085_v14, %v9770_v53  ;;  %v9794_v45 = vsel %vm1412_vm6, %v9699_v4, %v5085_v14 }
0x134f   : > { %10708 = vst [vmem:[#allocation101_spill] sm:$0xff] %v9784_v48 }
0x1350   : > { %10709 = vst [vmem:[#allocation103_spill] sm:$0xff] %v9789_v29 }
0x1351   : > { %10710 = vst [vmem:[#allocation99_spill] sm:$0xff] %v9794_v45 }
0x1353   : > { %5317 = vrot.lane.b32.xlu0 %v9079_v18, %s10641_s2 }
0x1355   : > { %v9798_v21 = vpop.permute.xlu0 %5058  ;;  %v5119_v27 = vpop.permute.xlu2 %5118 }
0x1356   : > { %10711 = vst [vmem:[#allocation105_spill] sm:$0xff] %v9798_v21  ;;  %v5283_v57 = vpop.permute.xlu1 %5282  ;;  %v9803_v59 = vsel %vm1440_vm5, %v5119_v27, %v9778_v63  ;;  %v9808_v29 = vsel %vm1440_vm5, %v9711_v50, %v5119_v27 }
0x1357   : > { %10712 = vst [vmem:[#allocation98_spill] sm:$0xff] %v9803_v59 }
0x1358   : > { %10713 = vst [vmem:[#allocation100_spill] sm:$0xff] %v9808_v29 }
0x135b   : > { %5315 = vrot.lane.b32.xlu0 %v9065_v5, %s10641_s2 }
0x135d   : > { %v9812_v14 = vpop.permute.xlu0 %5120  ;;  %v5181_v18 = vpop.permute.xlu2 %5180 }
0x135e   : > { %10714 = vst [vmem:[#allocation117_spill] sm:$0xff] %v9812_v14  ;;  %v9814_v45 = vpop.permute.xlu1 %5250  ;;  %v9819_v4 = vsel %vm1496_vm3, %v5181_v18, %v9784_v48  ;;  %v9824_v59 = vsel %vm1496_vm3, %v9723_v37, %v5181_v18  ;;  %v9836_v48 = vld [vmem:[#allocation22 + $0x10] sm:$0xff] }
0x135f   : > { %10715 = vst [vmem:[#allocation118_spill] sm:$0xff] %v9814_v45  ;;  %5586 = vmatmul.f32.vlgmr.msra.gmra.mxu2 %v9836_v48 }
0x1360   : > { %10716 = vst [vmem:[#allocation119_spill] sm:$0xff] %v9819_v4 }
0x1365   : > { %v9826_v27 = vpop.permute.xlu0 %5154  ;;  %v5277_v29 = vpop.permute.xlu2 %5276 }
0x1366   : > { %v9828_v53 = vpop.permute.xlu1 %5248 }
0x1367   : > { %10717 = vst [vmem:[#allocation120_spill] sm:$0xff] %v9828_v53  ;;  %6388 = vmatmul.msk.f32.vlgmr.msrb.gmra.mxu2 %vm2299_vm9, %v9333_v54 }
0x136d   : > { %v5281_v5 = vpop.permute.xlu0 %5280  ;;  %v5380_v30 = vpop.permute.xlu2 %5379 }
0x136e   : > { %v9830_v15 = vpop.permute.xlu1 %5218  ;;  %v5395_v45 = vsel %vm1440_vm5, %v9298_v32, %v5380_v30 }
0x136f   : > { %10718 = vst [vmem:[#allocation121_spill] sm:$0xff] %v9830_v15  ;;  %v5400_v4 = vmul.f32 %v5395_v45, %v10663_v28 }
0x1371   : > { %5621 = vmatpush.msra.mxu0 %v5400_v4 }
0x1375   : > { %v9839_v18 = vpop.permute.xlu0 %5052  ;;  %v5354_v25 = vpop.permute.xlu2 %5353 }
0x1376   : > { %10719 = vst [vmem:[#allocation122_spill] sm:$0xff] %v9839_v18  ;;  %v9841_v50 = vpop.permute.xlu1 %5054 }
0x1377   : > { %10720 = vst [vmem:[#allocation123_spill] sm:$0xff] %v9841_v50  ;;  %v9847_v15 = vsel %vm1385_vm7, %v9841_v50, %v9798_v21 }
0x1378   : > { %10721 = vst [vmem:[#allocation124_spill] sm:$0xff] %v9847_v15 }
0x137d   : > { %v9851_v32 = vpop.permute.xlu0 %5086  ;;  %v5291_v45 = vpop.permute.xlu2 %5290 }
0x137e   : > { %10722 = vst [vmem:[#allocation125_spill] sm:$0xff] %v9851_v32  ;;  %v9853_v28 = vpop.permute.xlu1 %5116 }
0x137f   : > { %10723 = vst [vmem:[#allocation126_spill] sm:$0xff] %v9853_v28  ;;  %v9859_v4 = vsel %vm1440_vm5, %v9853_v28, %v9812_v14  ;;  %v10729_v28 = vld [vmem:[#allocation91_spill] sm:$0xff] }
0x1380   : > { %10724 = vst [vmem:[#allocation127_spill] sm:$0xff] %v9859_v4 }
0x1385   : > { %v9861_v18 = vpop.permute.xlu0 %5148  ;;  %v5289_v53 = vpop.permute.xlu2 %5288 }
0x1386   : > { %10725 = vst [vmem:[#allocation128_spill] sm:$0xff] %v9861_v18  ;;  %v9863_v60 = vpop.permute.xlu1 %5150  ;;  %v9867_v15 = vsel %vm1580_vm0, %v5289_v53, %v5277_v29 }
0x1387   : > { %10726 = vst [vmem:[#allocation129_spill] sm:$0xff] %v9863_v60  ;;  %v9873_v54 = vsel %vm1468_vm4, %v9863_v60, %v9826_v27 }
0x1388   : > { %10727 = vst [vmem:[#allocation130_spill] sm:$0xff] %v9867_v15  ;;  %v5296_v15 = vsel %vm1580_vm0, %v5277_v29, %v5281_v5 }
0x1389   : > { %10728 = vst [vmem:[#allocation131_spill] sm:$0xff] %v9873_v54  ;;  %v5300_v29 = vmul.f32 %v5296_v15, %v10652_v44  ;;  %v5360_v15 = vsel %vm1412_vm6, %v5354_v25, %v9468_v58 }
0x138d   : > { %v9875_v50 = vpop.permute.xlu0 %5182 }
0x138e   : > { %v5350_v32 = vpop.permute.xlu1 %5349 }
0x138f   : > { %v5364_v4 = vsel %vm1412_vm6, %v9337_v22, %v5350_v32  ;;  %v5295_v22 = vsel %vm1580_vm0, %v5283_v57, %v9713_v40  ;;  %v10797_v31 = vld [vmem:[#allocation130_spill] sm:$0xff] }
0x1390   : > { %v5372_v18 = vmul.f32 %v5364_v4, %v10729_v28  ;;  %v5305_v7 = vmul.f32 %v5295_v22, %v10731_v8 }
0x1392   : > { %5622 = vmatpush.msra.mxu0 %v5372_v18  ;;  %v5294_v18 = vsel %vm1580_vm0, %v5281_v5, %v9697_v34  ;;  %v5292_v5 = vsel %vm1580_vm0, %v9697_v34, %v5289_v53 }
0x1395   : > { %v5279_v21 = vpop.permute.xlu0 %5278 }
0x1396   : > { %v9883_v14 = vpop.permute.xlu1 %5351  ;;  %v5297_v60 = vsel %vm1580_vm0, %v5279_v21, %v5283_v57  ;;  %v9889_v54 = vsel %vm1580_vm0, %v5291_v45, %v5279_v21  ;;  %v5293_v21 = vsel %vm1580_vm0, %v9713_v40, %v5291_v45  ;;  %v5301_v57 = vmul.f32 %v5294_v18, %v10731_v8 }
0x1397   : > { %10730 = vst [vmem:[#allocation91_spill] sm:$0xff] %v9889_v54  ;;  %v5304_v4 = vmul.f32 %v5297_v60, %v10652_v44  ;;  %v9903_v54 = vld [vmem:[#allocation22 + $0x8] sm:$0xff]  ;;  %v5362_v40 = vsel %vm1412_vm6, %v5350_v32, %v5354_v25  ;;  %v5359_v25 = vsel %vm1412_vm6, %v9883_v14, %v9242_v38 }
0x1398   : > { %v10732_v60 = vld [vmem:[#allocation64_spill] sm:$0xff] }
0x1399   : > { %5767 = vmatpush.msra.mxu2 %v5304_v4  ;;  %v5306_v36 = vmul.f32 %v5293_v21, %v10732_v60  ;;  %v5302_v58 = vmul.f32 %v5292_v5, %v10732_v60  ;;  %v10733_v32 = vld [vmem:[#allocation84_spill] sm:$0xff] }
0x139a   : > { %v5374_v22 = vmul.f32 %v5360_v15, %v10733_v32  ;;  %v10734_v4 = vld [vmem:[#allocation80_spill] sm:$0xff] }
0x139b   : > { %5768 = vmatpush.msra.mxu2 %v5300_v29 }
0x139c   : > { %6389 = vmatmul.msk.f32.vlgmr.msra.gmra.mxu2 %vm2299_vm9, %v9903_v54 }
0x139d   : > { %5807 = vmatpush.msrb.mxu2 %v5305_v7  ;;  %v5384_v44 = vpop.permute.xlu0 %5383 }
0x139e   : > { %v9917_v45 = vpop.permute.xlu1 %5212  ;;  %v5391_v7 = vsel %vm1440_vm5, %v5384_v44, %v9203_v41  ;;  %v5393_v53 = vsel %vm1440_vm5, %v5380_v30, %v5384_v44  ;;  %v5373_v41 = vmul.f32 %v5362_v40, %v10734_v4  ;;  %v5370_v30 = vmul.f32 %v5359_v25, %v10733_v32 }
0x139f   : > { %5808 = vmatpush.msrb.mxu2 %v5301_v57  ;;  %v5401_v8 = vmul.f32 %v5393_v53, %v10667_v42  ;;  %v5402_v34 = vmul.f32 %v5391_v7, %v10669_v13  ;;  %v10735_v57 = vld [vmem:[#allocation87_spill] sm:$0xff]  ;;  %v5261_v44 = vsel %vm1552_vm1, %v9660_v19, %v9766_v24  ;;  %v5260_v53 = vsel %vm1552_vm1, %v9675_v26, %v9774_v23 }
0x13a0   : > { %v5197_v25 = vsel %vm1496_vm3, %v9701_v9, %v9756_v6 }
0x13a1   : > { %5847 = vmatpush.msra.mxu2 %v5306_v36  ;;  %5661 = vmatpush.msrb.mxu3 %v5401_v8  ;;  %v5274_v8 = vmul.f32 %v5261_v44, %v10653_v17 }
0x13a2   : > { %5701 = vmatpush.msra.mxu1 %v5402_v34  ;;  %v5229_v34 = vsel %vm1524_vm2, %v9687_v3, %v9782_v12 }
0x13a3   : > { %5848 = vmatpush.msra.mxu2 %v5302_v58  ;;  %5662 = vmatpush.msrb.mxu3 %v5373_v41 }
0x13a4   : > { %5702 = vmatpush.msra.mxu1 %v5374_v22  ;;  %6390 = vmatmul.msk.f32.vlgmr.msrb.gmra.mxu2 %vm2299_vm9, %v9903_v54 }
0x13a5   : > { %v9934_v18 = vpop.permute.xlu0 %5246 }
0x13a6   : > { %5703 = vmatpush.msra.mxu1 %v5370_v30  ;;  %v9938_v36 = vpop.permute.xlu1 %5321  ;;  %v5267_v38 = vsel %vm1552_vm1, %v9766_v24, %v9934_v18 }
0x13a7   : > { %v5328_v29 = vsel %vm1385_vm7, %v9938_v36, %v9357_v20  ;;  %v5275_v21 = vmul.f32 %v5267_v38, %v10655_v62  ;;  %v5196_v38 = vsel %vm1496_vm3, %v9685_v46, %v9723_v37  ;;  %v5207_v37 = vmul.f32 %v9824_v59, %v10660_v39 }
0x13a8   : > { %v5342_v60 = vmul.f32 %v5328_v29, %v10735_v57  ;;  %v5210_v29 = vmul.f32 %v5197_v25, %v10659_v61  ;;  %v5166_v59 = vsel %vm1468_vm4, %v9758_v56, %v9689_v1 }
0x13a9   : > { %5853 = vmatpush.msrb.mxu2 %v5275_v21 }
0x13aa   : > { %5704 = vmatpush.msra.mxu1 %v5342_v60 }
0x13ac   : > { %6391 = vmatmul.msk.f32.vlgmr.msra.gmra.mxu2 %vm2299_vm9, %v9903_v54 }
0x13ad   : > { %v9950_v5 = vpop.permute.xlu0 %5244 }
0x13ae   : > { %v9958_v15 = vpop.permute.xlu1 %5319  ;;  %v5266_v20 = vsel %vm1552_vm1, %v9774_v23, %v9950_v5  ;;  %v5242_v23 = vmul.f32 %v5229_v34, %v10656_v43 }
0x13af   : > { %v5327_v40 = vsel %vm1385_vm7, %v9958_v15, %v10672_v51  ;;  %v5271_v7 = vmul.f32 %v5266_v20, %v10655_v62  ;;  %v5270_v51 = vmul.f32 %v5260_v53, %v10653_v17  ;;  %v5228_v62 = vsel %vm1524_vm2, %v9709_v52, %v9760_v47  ;;  %v10739_v53 = vld [vmem:[#allocation117_spill] sm:$0xff] }
0x13b0   : > { %v5338_v24 = vmul.f32 %v5327_v40, %v10735_v57  ;;  %v5234_v17 = vsel %vm1524_vm2, %v9760_v47, %v9917_v45  ;;  %v5238_v41 = vmul.f32 %v5228_v62, %v10656_v43  ;;  %v5203_v47 = vsel %vm1496_vm3, %v9756_v6, %v9875_v50  ;;  %v10737_v40 = vld [vmem:[#allocation77_spill] sm:$0xff]  ;;  %v10743_v62 = vld [vmem:[#allocation115_spill] sm:$0xff] }
0x13b1   : > { %5854 = vmatpush.msrb.mxu2 %v5271_v7  ;;  %v5239_v21 = vmul.f32 %v5234_v17, %v10658_v16  ;;  %v5206_v43 = vmul.f32 %v5196_v38, %v10659_v61  ;;  %v5167_v6 = vsel %vm1468_vm4, %v9826_v27, %v9647_v55  ;;  %v10744_v17 = vld [vmem:[#allocation110_spill] sm:$0xff]  ;;  %v10746_v38 = vld [vmem:[#allocation93_spill] sm:$0xff] }
0x13b2   : > { %5705 = vmatpush.msra.mxu1 %v5338_v24  ;;  %v5178_v27 = vmul.f32 %v5167_v6, %v10664_v0 }
0x13b3   : > { %5706 = vmatmul.f32.vlgmr.msra.gmra.mxu1 %v9836_v48 }
0x13b4   : > { %5813 = vmatpush.msrb.mxu1 %v5274_v8  ;;  %v10740_v8 = vld [vmem:[#allocation112_spill] sm:$0xff] }
0x13b5   : > { %v9986_v58 = vpop.permute.xlu0 %5214 }
0x13b6   : > { %5814 = vmatpush.msrb.mxu1 %v5270_v51  ;;  %v5235_v22 = vsel %vm1524_vm2, %v9782_v12, %v9986_v58  ;;  %v5211_v12 = vmul.f32 %v5203_v47, %v10660_v39  ;;  %v10742_v51 = vld [vmem:[#allocation63_spill] sm:$0xff] }
0x13b7   : > { %v5243_v30 = vmul.f32 %v5235_v22, %v10658_v16 }
0x13b8   : > { %5815 = vmatpush.msrb.mxu1 %v5242_v23  ;;  %v5103_v23 = vsel %vm1412_vm6, %v10743_v62, %v10742_v51 }
0x13b9   : > { %5855 = vmatpush.msrb.mxu2 %v5243_v30 }
0x13ba   : > { %5816 = vmatpush.msrb.mxu1 %v5238_v41 }
0x13bb   : > { %5856 = vmatpush.msrb.mxu2 %v5239_v21 }
0x13bc   : > { %5817 = vmatpush.msrb.mxu1 %v5210_v29  ;;  %v10747_v29 = vld [vmem:[#allocation83_spill] sm:$0xff] }
0x13bd   : > { %v5348_v60 = vpop.permute.xlu0 %5347  ;;  %5857 = vmatpush.msrb.mxu2 %v5211_v12  ;;  %v10749_v12 = vld [vmem:[#allocation102_spill] sm:$0xff] }
0x13be   : > { %5818 = vmatpush.msrb.mxu1 %v5206_v43  ;;  %v5361_v16 = vsel %vm1412_vm6, %v5348_v60, %v9883_v14  ;;  %v5363_v61 = vsel %vm1412_vm6, %v9213_v11, %v5348_v60  ;;  %v5165_v14 = vsel %vm1468_vm4, %v9647_v55, %v9749_v10  ;;  %v5135_v11 = vsel %vm1440_vm5, %v9778_v63, %v9673_v35  ;;  %v10741_v63 = vld [vmem:[#allocation67_spill] sm:$0xff]  ;;  %v10750_v60 = vld [vmem:[#allocation76_spill] sm:$0xff] }
0x13bf   : > { %v5368_v44 = vmul.f32 %v5363_v61, %v10729_v28  ;;  %v5369_v39 = vmul.f32 %v5361_v16, %v10734_v4  ;;  %5858 = vmatpush.msrb.mxu2 %v5207_v37  ;;  %v5174_v55 = vmul.f32 %v5166_v59, %v10664_v0  ;;  %v5179_v7 = vmul.f32 %v5165_v14, %v10737_v40  ;;  %v10751_v61 = vld [vmem:[#allocation108_spill] sm:$0xff]  ;;  %v10753_v59 = vld [vmem:[#allocation66_spill] sm:$0xff] }
0x13c0   : > { %5819 = vmatpush.msrb.mxu1 %v9542_v2  ;;  %v10736_v2 = vld [vmem:[#allocation114_spill] sm:$0xff]  ;;  %v5146_v34 = vmul.f32 %v5135_v11, %v10667_v42  ;;  %v5101_v6 = vsel %vm1412_vm6, %v10742_v51, %v10750_v60  ;;  %v10755_v11 = vld [vmem:[#allocation79_spill] sm:$0xff] }
0x13c1   : > { %5623 = vmatpush.msra.mxu0 %v5368_v44  ;;  %5663 = vmatpush.msrb.mxu3 %v5369_v39  ;;  %v5164_v20 = vsel %vm1468_vm4, %v9689_v1, %v10736_v2  ;;  %v10752_v44 = vld [vmem:[#allocation105_spill] sm:$0xff] }
0x13c2   : > { %5820 = vmatpush.msrb.mxu1 %v9539_v49  ;;  %5859 = vmatpush.msrb.mxu2 %v9580_v33  ;;  %v10738_v49 = vld [vmem:[#allocation107_spill] sm:$0xff]  ;;  %v5133_v33 = vsel %vm1440_vm5, %v9673_v35, %v10741_v63  ;;  %v5175_v0 = vmul.f32 %v5164_v20, %v10737_v40  ;;  %v10745_v35 = vld [vmem:[#allocation78_spill] sm:$0xff]  ;;  %v5071_v39 = vsel %vm1385_vm7, %v10752_v44, %v10751_v61  ;;  %v10756_v40 = vld [vmem:[#allocation69_spill] sm:$0xff] }
0x13c3   : > { %v5134_v24 = vsel %vm1440_vm5, %v10739_v53, %v10738_v49  ;;  %v5132_v41 = vsel %vm1440_vm5, %v10738_v49, %v10745_v35  ;;  %v5147_v43 = vmul.f32 %v5133_v33, %v10669_v13  ;;  %v5082_v49 = vmul.f32 %v5071_v39, %v10747_v29  ;;  %v10757_v63 = vld [vmem:[#allocation116_spill] sm:$0xff]  ;;  %v10768_v39 = vld [vmem:[#allocation101_spill] sm:$0xff] }
0x13c4   : > { %5821 = vmatpush.msrb.mxu1 %v5178_v27  ;;  %5860 = vmatpush.msrb.mxu2 %v10740_v8  ;;  %v5142_v30 = vmul.f32 %v5134_v24, %v10667_v42  ;;  %v5114_v42 = vmul.f32 %v5103_v23, %v10734_v4  ;;  %v5143_v16 = vmul.f32 %v5132_v41, %v10669_v13  ;;  %v10754_v27 = vld [vmem:[#allocation70_spill] sm:$0xff] }
0x13c5   : > { %v5318_v1 = vpop.permute.xlu0 %5317  ;;  %v5070_v20 = vsel %vm1385_vm7, %v10755_v11, %v10754_v27  ;;  %v5115_v13 = vmul.f32 %v5101_v6, %v10733_v32  ;;  %v10766_v6 = vld [vmem:[#allocation74_spill] sm:$0xff] }
0x13c6   : > { %5822 = vmatpush.msrb.mxu1 %v5174_v55  ;;  %v5330_v25 = vsel %vm1385_vm7, %v5318_v1, %v9938_v36  ;;  %v5332_v22 = vsel %vm1385_vm7, %v10744_v17, %v5318_v1  ;;  %5861 = vmatpush.msrb.mxu2 %v5179_v7  ;;  %v10748_v36 = vld [vmem:[#allocation61_spill] sm:$0xff]  ;;  %v5069_v7 = vsel %vm1385_vm7, %v10751_v61, %v10756_v40 }
0x13c7   : > { %v5340_v47 = vmul.f32 %v5332_v22, %v10746_v38  ;;  %v5341_v21 = vmul.f32 %v5330_v25, %v10747_v29  ;;  %v5102_v37 = vsel %vm1412_vm6, %v10749_v12, %v10748_v36  ;;  %v5100_v14 = vsel %vm1412_vm6, %v10748_v36, %v10753_v59  ;;  %v10761_v22 = vld [vmem:[#allocation73_spill] sm:$0xff]  ;;  %v10764_v12 = vld [vmem:[#allocation104_spill] sm:$0xff] }
0x13c8   : > { %5823 = vmatpush.msrb.mxu1 %v5146_v34  ;;  %5862 = vmatpush.msrb.mxu2 %v5175_v0  ;;  %v5110_v55 = vmul.f32 %v5102_v37, %v10734_v4  ;;  %v5111_v24 = vmul.f32 %v5100_v14, %v10733_v32  ;;  %v5078_v8 = vmul.f32 %v5070_v20, %v10747_v29  ;;  %v10758_v34 = vld [vmem:[#allocation118_spill] sm:$0xff] }
0x13c9   : > { %5624 = vmatpush.msra.mxu0 %v5340_v47  ;;  %5664 = vmatpush.msrb.mxu3 %v5341_v21  ;;  %v5263_v1 = vsel %vm1552_vm1, %v10758_v34, %v9660_v19  ;;  %v5265_v32 = vsel %vm1552_vm1, %v9934_v18, %v10758_v34  ;;  %v5083_v25 = vmul.f32 %v5069_v7, %v10735_v57  ;;  %v10760_v19 = vld [vmem:[#allocation120_spill] sm:$0xff]  ;;  %v10763_v21 = vld [vmem:[#allocation121_spill] sm:$0xff]  ;;  %v10769_v14 = vld [vmem:[#allocation82_spill] sm:$0xff] }
0x13ca   : > { %5824 = vmatpush.msrb.mxu1 %v5142_v30  ;;  %5863 = vmatpush.msrb.mxu2 %v5147_v43  ;;  %v5262_v17 = vsel %vm1552_vm1, %v10760_v19, %v9675_v26  ;;  %v5264_v18 = vsel %vm1552_vm1, %v9950_v5, %v10760_v19  ;;  %v5273_v41 = vmul.f32 %v5263_v1, %v10761_v22  ;;  %v10762_v30 = vld [vmem:[#allocation72_spill] sm:$0xff]  ;;  %v10772_v7 = vld [vmem:[#allocation129_spill] sm:$0xff]  ;;  %v10777_v34 = vld [vmem:[#allocation86_spill] sm:$0xff] }
0x13cb   : > { %v5272_v47 = vmul.f32 %v5265_v32, %v10762_v30  ;;  %v5231_v26 = vsel %vm1524_vm2, %v10763_v21, %v9687_v3  ;;  %v5233_v5 = vsel %vm1524_vm2, %v9986_v58, %v10763_v21  ;;  %v5269_v43 = vmul.f32 %v5262_v17, %v10761_v22  ;;  %v10778_v1 = vld [vmem:[#allocation131_spill] sm:$0xff]  ;;  %v10783_v19 = vld [vmem:[#allocation100_spill] sm:$0xff]  ;;  %v10785_v22 = vld [vmem:[#allocation98_spill] sm:$0xff] }
0x13cc   : > { %5825 = vmatpush.msrb.mxu1 %v5114_v42  ;;  %5864 = vmatpush.msrb.mxu2 %v5143_v16  ;;  %v5268_v36 = vmul.f32 %v5264_v18, %v10762_v30  ;;  %v5230_v3 = vsel %vm1524_vm2, %v10764_v12, %v9709_v52  ;;  %v5232_v58 = vsel %vm1524_vm2, %v9917_v45, %v10764_v12  ;;  %v10767_v16 = vld [vmem:[#allocation113_spill] sm:$0xff]  ;;  %v10787_v21 = vld [vmem:[#allocation127_spill] sm:$0xff] }
0x13cd   : > { %v5316_v53 = vpop.permute.xlu0 %5315  ;;  %v5240_v42 = vmul.f32 %v5233_v5, %v10766_v6  ;;  %v5199_v61 = vsel %vm1496_vm3, %v10767_v16, %v9701_v9  ;;  %v5201_v52 = vsel %vm1496_vm3, %v9875_v50, %v10767_v16  ;;  %v5236_v44 = vmul.f32 %v5232_v58, %v10766_v6  ;;  %v10784_v18 = vld [vmem:[#allocation89_spill] sm:$0xff]  ;;  %v10788_v5 = vld [vmem:[#allocation90_spill] sm:$0xff]  ;;  %v10789_v12 = vld [vmem:[#allocation123_spill] sm:$0xff] }
0x13ce   : > { %5826 = vmatpush.msrb.mxu1 %v5110_v55  ;;  %v5329_v4 = vsel %vm1385_vm7, %v5316_v53, %v9958_v15  ;;  %v5331_v33 = vsel %vm1385_vm7, %v10757_v63, %v5316_v53  ;;  %5865 = vmatpush.msrb.mxu2 %v5115_v13  ;;  %v10759_v15 = vld [vmem:[#allocation68_spill] sm:$0xff]  ;;  %v5198_v59 = vsel %vm1496_vm3, %v10768_v39, %v9685_v46  ;;  %v10771_v55 = vld [vmem:[#allocation119_spill] sm:$0xff]  ;;  %v10776_v63 = vld [vmem:[#allocation85_spill] sm:$0xff] }
0x13cf   : > { %v5336_v0 = vmul.f32 %v5331_v33, %v10746_v38  ;;  %v5337_v51 = vmul.f32 %v5329_v4, %v10747_v29  ;;  %v5068_v23 = vsel %vm1385_vm7, %v10754_v27, %v10759_v15  ;;  %v5209_v9 = vmul.f32 %v5199_v61, %v10769_v14  ;;  %v10770_v27 = vld [vmem:[#allocation81_spill] sm:$0xff]  ;;  %v10774_v53 = vld [vmem:[#allocation111_spill] sm:$0xff]  ;;  %v10793_v16 = vld [vmem:[#allocation92_spill] sm:$0xff] }
0x13d0   : > { %5827 = vmatpush.msrb.mxu1 %v5082_v49  ;;  %5866 = vmatpush.msrb.mxu2 %v5111_v24  ;;  %v5079_v29 = vmul.f32 %v5068_v23, %v10735_v57  ;;  %v10154_v57 = vld [vmem:[#allocation22] sm:$0xff]  ;;  %v5208_v20 = vmul.f32 %v5201_v52, %v10770_v27  ;;  %v5205_v50 = vmul.f32 %v5198_v59, %v10769_v14  ;;  %v10773_v49 = vld [vmem:[#allocation65_spill] sm:$0xff]  ;;  %v10775_v24 = vld [vmem:[#allocation128_spill] sm:$0xff]  ;;  %v5647_v59 = vpop.f32.mrf.mxu1 }
0x13d1   : > { %5625 = vmatpush.msra.mxu0 %v5336_v0  ;;  %5665 = vmatpush.msrb.mxu3 %v5337_v51  ;;  %v5204_v13 = vmul.f32 %v10771_v55, %v10770_v27  ;;  %v5171_v46 = vsel %vm1468_vm4, %v9749_v10, %v10772_v7  ;;  %v5170_v4 = vsel %vm1468_vm4, %v10736_v2, %v10775_v24  ;;  %v10779_v10 = vld [vmem:[#allocation106_spill] sm:$0xff]  ;;  %v10780_v0 = vld [vmem:[#allocation109_spill] sm:$0xff]  ;;  %v10791_v58 = vld [vmem:[#allocation103_spill] sm:$0xff] }
0x13d2   : > { %5828 = vmatpush.msrb.mxu1 %v5078_v8  ;;  %5867 = vmatpush.msrb.mxu2 %v5083_v25  ;;  %v5168_v8 = vsel %vm1468_vm4, %v10775_v24, %v9758_v56  ;;  %v5176_v33 = vmul.f32 %v5171_v46, %v10776_v63  ;;  %v5177_v32 = vmul.f32 %v10778_v1, %v10777_v34  ;;  %v10781_v56 = vld [vmem:[#allocation126_spill] sm:$0xff]  ;;  %v10782_v25 = vld [vmem:[#allocation88_spill] sm:$0xff]  ;;  %v10786_v30 = vld [vmem:[#allocation125_spill] sm:$0xff]  ;;  %v5897_v24 = vpop.permute.xlu2 %5896 }
0x13d3   : > { %5626 = vmatmul.f32.vlgmr.msra.gmra.mxu0 %v9836_v48  ;;  %5666 = vmatmul.f32.vlgmr.msrb.gmra.mxu3 %v9836_v48  ;;  %v10765_v48 = vld [vmem:[#allocation75_spill] sm:$0xff]  ;;  %v5172_v51 = vmul.f32 %v5170_v4, %v10776_v63  ;;  %v5173_v23 = vmul.f32 %v5168_v8, %v10777_v34  ;;  %v5138_v2 = vsel %vm1440_vm5, %v10745_v35, %v10781_v56  ;;  %v10794_v61 = vld [vmem:[#allocation124_spill] sm:$0xff] }
0x13d4   : > { %5733 = vmatpush.msrb.mxu0 %v5272_v47  ;;  %5773 = vmatpush.msra.mxu3 %v5273_v41  ;;  %v5241_v37 = vmul.f32 %v5231_v26, %v10765_v48  ;;  %v5237_v45 = vmul.f32 %v5230_v3, %v10765_v48  ;;  %v5144_v17 = vmul.f32 %v10783_v19, %v10782_v25 }
0x13d5   : > { %5868 = vmatpush.msrb.mxu2 %v5079_v29  ;;  %5829 = vmatmul.f32.vlgmr.msrb.gmra.mxu1 %v10154_v57  ;;  %v5145_v41 = vmul.f32 %v10785_v22, %v10784_v18  ;;  %v5105_v47 = vsel %vm1412_vm6, %v10786_v30, %v10743_v62  ;;  %v5107_v29 = vsel %vm1412_vm6, %v10750_v60, %v10786_v30  ;;  %v10790_v60 = vld [vmem:[#allocation99_spill] sm:$0xff]  ;;  %v10800_v22 = vld [vmem:[#allocation94_spill] sm:$0xff] }
0x13d6   : > { %5734 = vmatpush.msrb.mxu0 %v5268_v36  ;;  %5774 = vmatpush.msra.mxu3 %v5269_v43  ;;  %v5140_v35 = vmul.f32 %v5138_v2, %v10782_v25  ;;  %v5141_v26 = vmul.f32 %v10787_v21, %v10784_v18  ;;  %v5112_v43 = vmul.f32 %v5107_v29, %v10788_v5 }
0x13d7   : > { %5869 = vmatmul.f32.vlgmr.msrb.gmra.mxu2 %v10154_v57  ;;  %v5113_v36 = vmul.f32 %v5105_v47, %v10729_v28  ;;  %v5075_v62 = vsel %vm1385_vm7, %v10756_v40, %v10789_v12  ;;  %v5108_v3 = vmul.f32 %v10790_v60, %v10788_v5  ;;  %v5109_v48 = vmul.f32 %v10791_v58, %v10729_v28  ;;  %v10801_v5 = vld [vmem:[#allocation95_spill] sm:$0xff] }
0x13d8   : > { %5735 = vmatpush.msrb.mxu0 %v5240_v42  ;;  %5775 = vmatpush.msra.mxu3 %v5241_v37  ;;  %v10792_v37 = vld [vmem:[#allocation122_spill] sm:$0xff]  ;;  %v5080_v40 = vmul.f32 %v5075_v62, %v10793_v16  ;;  %v5081_v52 = vmul.f32 %v10794_v61, %v10746_v38 }
0x13d9   : > { %v5072_v6 = vsel %vm1385_vm7, %v10792_v37, %v10755_v11  ;;  %v5074_v42 = vsel %vm1385_vm7, %v10759_v15, %v10792_v37  ;;  %v10796_v11 = vld [vmem:[#allocation91_spill] sm:$0xff] }
0x13da   : > { %5736 = vmatpush.msrb.mxu0 %v5236_v44  ;;  %5776 = vmatpush.msra.mxu3 %v5237_v45  ;;  %v5076_v28 = vmul.f32 %v5074_v42, %v10793_v16  ;;  %v5077_v45 = vmul.f32 %v5072_v6, %v10746_v38  ;;  %v10795_v44 = vld [vmem:[#allocation62_spill] sm:$0xff] }
0x13db   : > { %v5307_v39 = vmul.f32 %v10796_v11, %v10795_v44  ;;  %v5303_v15 = vmul.f32 %v10797_v31, %v10795_v44 }
0x13dc   : > { %5737 = vmatpush.msrb.mxu0 %v5208_v20  ;;  %5777 = vmatpush.msra.mxu3 %v5209_v9  ;;  %v5687_v9 = vpop.f32.mrf.mxu1  ;;  %v5607_v20 = vpop.f32.mrf.mxu3 }
0x13de   : > { %5738 = vmatpush.msrb.mxu0 %v5204_v13  ;;  %5778 = vmatpush.msra.mxu3 %v5205_v50 }
0x13e0   : > { %5739 = vmatpush.msrb.mxu0 %v10773_v49  ;;  %5779 = vmatpush.msra.mxu3 %v10774_v53 }
0x13e2   : > { %5740 = vmatpush.msrb.mxu0 %v10779_v10  ;;  %5780 = vmatpush.msra.mxu3 %v10780_v0  ;;  %v5587_v38 = vpop.f32.mrf.mxu2 }
0x13e3   : > { %v5608_v34 = vadd.f32 %v5607_v20, %v5587_v38 }
0x13e4   : > { %5741 = vmatpush.msrb.mxu0 %v5176_v33  ;;  %5781 = vmatpush.msra.mxu3 %v5177_v32 }
0x13e6   : > { %5742 = vmatpush.msrb.mxu0 %v5172_v51  ;;  %5782 = vmatpush.msra.mxu3 %v5173_v23 }
0x13e8   : > { %5743 = vmatpush.msrb.mxu0 %v5144_v17  ;;  %5783 = vmatpush.msra.mxu3 %v5145_v41 }
0x13ea   : > { %5744 = vmatpush.msrb.mxu0 %v5140_v35  ;;  %5784 = vmatpush.msra.mxu3 %v5141_v26  ;;  %v5727_v14 = vpop.f32.mrf.mxu2 }
0x13ec   : > { %5745 = vmatpush.msrb.mxu0 %v5112_v43  ;;  %5785 = vmatpush.msra.mxu3 %v5113_v36  ;;  %v10802_v36 = vld [vmem:[#allocation96_spill] sm:$0xff] }
0x13ee   : > { %5746 = vmatpush.msrb.mxu0 %v5108_v3  ;;  %5786 = vmatpush.msra.mxu3 %v5109_v48 }
0x13f0   : > { %5747 = vmatpush.msrb.mxu0 %v5080_v40  ;;  %5787 = vmatpush.msra.mxu3 %v5081_v52 }
0x13f2   : > { %5748 = vmatpush.msrb.mxu0 %v5076_v28  ;;  %5788 = vmatpush.msra.mxu3 %v5077_v45 }
0x13f3   : > { %5749 = vmatmul.f32.vlgmr.msrb.gmra.mxu0 %v10154_v57  ;;  %5789 = vmatmul.f32.vlgmr.msra.gmra.mxu3 %v10154_v57 }
0x13f4   : > { %5887 = vmatpush.msra.mxu0 %v5307_v39 }
0x13f6   : > { %5888 = vmatpush.msra.mxu0 %v5303_v15 }
0x13fb   : > { %6392 = vmatmul.msk.f32.vlgmr.msra.gmra.mxu0 %vm2299_vm9, %v9903_v54  ;;  %v10799_v54 = vld [vmem:[#allocation97_spill] sm:$0xff] }
0x141f   : > { %v5770_v27 = vpop.f32.mrf.mxu2 }
0x1427   : > { %v5810_v55 = vpop.f32.mrf.mxu2 }
0x142f   : > { %v5850_v49 = vpop.f32.mrf.mxu2 }
0x1430   : > { %v5707_v50 = vpop.f32.mrf.mxu1 }
0x1431   : > { %v5728_v51 = vadd.f32 %v5727_v14, %v5707_v50 }
0x1450   : > { %v5627_v33 = vpop.f32.mrf.mxu0 }
0x1451   : > { %v5648_v23 = vadd.f32 %v5647_v59, %v5627_v33 }
0x1452   : > { %v5830_v57 = vpop.f32.mrf.mxu1 }
0x1456   : > { %v5667_v13 = vpop.f32.mrf.mxu3 }
0x1457   : > { %v5688_v7 = vadd.f32 %v5687_v9, %v5667_v13 }
0x1459   : > { %v5831_v46 = vadd.f32 %v5830_v57, %v5688_v7 }
0x145a   : > { %v5870_v0 = vpop.f32.mrf.mxu2 }
0x145b   : > { %v5851_v53 = vadd.f32 %v5850_v49, %v5831_v46  ;;  %v5871_v25 = vadd.f32 %v5870_v0, %v5728_v51 }
0x145d   : > { %v5901_v8 = vadd.f32 %v5897_v24, %v5851_v53 }
0x145f   : > { %v5905_v4 = vmax.f32 %v5901_v8, 0.0 }
0x1461   : > { %v5909_v63 = vadd.f32 %v5905_v4, %v10799_v54 }
0x1463   : > { %5913 = vst [vmem:[%s1370_s6 + $0x10] sm:$0xff] %v5909_v63 }
0x1470   : > { %v5750_v1 = vpop.f32.mrf.mxu0 }
0x1471   : > { %v5751_v32 = vadd.f32 %v5750_v1, %v5608_v34 }
0x1473   : > { %v5771_v10 = vadd.f32 %v5770_v27, %v5751_v32 }
0x1475   : > { %v5899_v56 = vadd.f32 %v5897_v24, %v5771_v10 }
0x1476   : > { %v5790_v2 = vpop.f32.mrf.mxu3 }
0x1477   : > { %v5903_v19 = vmax.f32 %v5899_v56, 0.0  ;;  %v5791_v17 = vadd.f32 %v5790_v2, %v5648_v23 }
0x1478   : > { %v5890_v18 = vpop.f32.mrf.mxu0 }
0x1479   : > { %v5907_v41 = vadd.f32 %v5903_v19, %v10800_v22  ;;  %v5811_v30 = vadd.f32 %v5810_v55, %v5791_v17  ;;  %v5891_v47 = vadd.f32 %v5890_v18, %v5871_v25 }
0x147b   : > { %5911 = vst [vmem:[%s1370_s6] sm:$0xff] %v5907_v41  ;;  %v5900_v29 = vadd.f32 %v5897_v24, %v5811_v30  ;;  %v5902_v35 = vadd.f32 %v5897_v24, %v5891_v47 }
0x147d   : > { %v5904_v21 = vmax.f32 %v5900_v29, 0.0  ;;  %v5906_v26 = vmax.f32 %v5902_v35, 0.0 }
0x147f   : > { %v5908_v43 = vadd.f32 %v5904_v21, %v10801_v5  ;;  %v5910_v12 = vadd.f32 %v5906_v26, %v10802_v36 }
0x1481   : > { %5912 = vst [vmem:[%s1370_s6 + $0x8] sm:$0xff] %v5908_v43 }
0x1482   : > { %5914 = vst [vmem:[%s1370_s6 + $0x18] sm:$0xff] %v5910_v12 }
0x1483 PF: > { %s95_s7 = sadd.s32 1, %s7146_s7  }
0x1484   : > { %p92_p2 = scmp.ge.s32.totalorder %s95_s7, 4  }
0x1486   :  { %94 = sbr.rel (!%p92_p2) target bundleno = 75 (0x4b), region = 328 }
0x148b   :  { %5936 = vsyncpa [#allocation4], 1 }
0x148c   :  { %5938 = vsyncpa [#allocation4 + $0x1], 1 }
0x148d   :  { %5939 = vsyncpa [#allocation6], 1 }
0x148e   :  { %5940 = vsyncpa [#allocation9], 1 }
0x148f   :  { %5941 = vsyncpa [#allocation12], 1 }
0x1490   :  { %5942 = vsyncpa [#allocation15], 1 }
0x1491   :  { %5943 = vsyncpa [#allocation18], 1 }
0x1492   :  { %5944 = vsyncpa [#allocation21], 1 }
0x1493   :  { %5945 = vsyncpa [#allocation24], 1 }

</bundles_post_ra>
